<compile_context>
chip_gen: v6e
topology: v6e:2x2x1
jax: 0.10.0
libtpu: 0.0.40
codegen_flags: <defaults>
</compile_context>

<pallas_src>
import functools

import numpy as np
import jax
import jax.numpy as jnp
from jax.experimental import pallas as pl
from jax.experimental.pallas import tpu as pltpu


# ----------------------------------------------------------------------------
# Small host-side constant builders
# ----------------------------------------------------------------------------
def _head_matrices(n_head, d_k, d_v):
    """hsel: per-head channel-sum selector; hexp: per-head channel broadcaster."""
    ck, cv = n_head * d_k, n_head * d_v
    hsel = np.zeros((n_head, ck), np.float32)
    hsel[np.arange(ck) // d_k, np.arange(ck)] = 1.0
    hexp = np.zeros((cv, n_head), np.float32)
    hexp[np.arange(cv), np.arange(cv) // d_v] = 1.0
    return hsel, hexp


def _row_col_indices(H, W):
    """(2, H*W) float32: row index and column index of each flattened spatial position."""
    pos = np.arange(H * W)
    return np.stack([pos // W, pos % W]).astype(np.float32)


# ----------------------------------------------------------------------------
# In-kernel building blocks (operate on loaded VMEM values, everything unrolled)
# ----------------------------------------------------------------------------
def _build_displacements(row, col, ksize, pad, H, W):
    """Per window displacement: (lane-roll shift, border-validity mask or None)."""
    HW = H * W
    disp = []
    for idx in range(ksize * ksize):
        oy = idx // ksize - pad
        ox = idx % ksize - pad
        shift = (-(oy * W + ox)) % HW          # rolled[p] = x[p + oy*W + ox]
        conds = []
        if oy < 0:
            conds.append(row >= float(-oy))
        if oy > 0:
            conds.append(row < float(H - oy))
        if ox < 0:
            conds.append(col >= float(-ox))
        if ox > 0:
            conds.append(col < float(W - ox))
        if conds:
            c = conds[0]
            for extra in conds[1:]:
                c = jnp.logical_and(c, extra)
            mask = jnp.where(c, 1.0, 0.0)      # (1, HW) f32
        else:
            mask = None                        # center displacement: always valid
        disp.append((shift, mask))
    return disp


def _window_local_attention(q, k, v, hsel_bf, hexp_f32, hexp_bf, disp, inv_temp):
    """Correlation -> softmax (two-pass, zero-padded semantics) -> ChannelAttention.

    q, k: (ck, HW) f32; v: (cv, HW) f32.  Returns (cv, HW) f32.
    """
    cv = hexp_f32.shape[0]
    hw = q.shape[-1]

    # Pass 1: masked per-head scores for all displacements + running max.
    scores = []
    m = None
    for shift, mask in disp:
        ks = k if shift == 0 else pltpu.roll(k, shift, axis=1)      # XLU lane rotate
        s = jnp.dot(hsel_bf, (q * ks).astype(jnp.bfloat16),
                    preferred_element_type=jnp.float32)             # (n_head, HW)
        # out-of-image displacements get score exactly 0 (zero-padded correlation),
        # so they stay in the softmax denominator like the reference.
        s = s * inv_temp if mask is None else s * (inv_temp * mask)
        scores.append(s)
        m = s if m is None else jnp.maximum(m, s)

    # Pass 2: exp / denominator / weighted value accumulation.
    l = jnp.zeros_like(m)
    acc = jnp.zeros((cv, hw), jnp.float32)
    for (shift, mask), s in zip(disp, scores):
        p = jnp.exp(s - m)                                          # (n_head, HW) f32
        l = l + p
        vs = v if shift == 0 else pltpu.roll(v, shift, axis=1)
        pm = p if mask is None else p * mask                        # zero value off-image
        acc = acc + jnp.dot(hexp_bf, pm.astype(jnp.bfloat16),
                            preferred_element_type=jnp.float32) * vs

    inv_l = pl.reciprocal(l, approx=False)                          # exact (outside hot loop)
    return acc * jnp.dot(hexp_f32, inv_l, preferred_element_type=jnp.float32)


def _group_batchnorm(ys, gamma, beta, eps):
    """Training-mode BatchNorm2d over one group (list of per-batch (C, HW) maps)."""
    inv_n = 1.0 / float(len(ys) * ys[0].shape[-1])
    mean = sum(jnp.sum(y, axis=1, keepdims=True) for y in ys) * inv_n          # (C, 1)
    var = sum(jnp.sum(jnp.square(y - mean), axis=1, keepdims=True) for y in ys) * inv_n
    scale = gamma * jax.lax.rsqrt(var + eps)
    bias_term = beta - mean * scale
    return [y * scale + bias_term for y in ys]


def _mha_block(xq_list, xkv_list, w_qkv, w_fc, gamma, beta,
               hsel_bf, hexp_f32, hexp_bf, disp, inv_temp, ck, eps):
    """MultiHeadAttention block: q/k/v proj -> window attention -> fc + residual -> BN."""
    ys = []
    for x_q, x_kv in zip(xq_list, xkv_list):
        xq_bf = x_q.astype(jnp.bfloat16)
        if x_q is x_kv:                                   # self-attention: one fused matmul
            qkv = jnp.dot(w_qkv, xq_bf, preferred_element_type=jnp.float32)
            q, k, v = qkv[:ck], qkv[ck:2 * ck], qkv[2 * ck:]
        else:                                             # cross-attention
            xkv_bf = x_kv.astype(jnp.bfloat16)
            q = jnp.dot(w_qkv[:ck], xq_bf, preferred_element_type=jnp.float32)
            kv = jnp.dot(w_qkv[ck:], xkv_bf, preferred_element_type=jnp.float32)
            k, v = kv[:ck], kv[ck:]
        attn = _window_local_attention(q, k, v, hsel_bf, hexp_f32, hexp_bf, disp, inv_temp)
        y = jnp.dot(w_fc, attn.astype(jnp.bfloat16),
                    preferred_element_type=jnp.float32) + x_q       # fc + residual (before BN)
        ys.append(y)
    return _group_batchnorm(ys, gamma, beta, eps)


def _ffn_block(x_list, w1, b1, w2, b2, gamma, beta, eps):
    """PositionwiseFeedForward block: w1+relu -> w2 -> BN -> + residual (after BN)."""
    zs = []
    for x in x_list:
        h = jnp.maximum(jnp.dot(w1, x.astype(jnp.bfloat16),
                                preferred_element_type=jnp.float32) + b1, 0.0)
        z = jnp.dot(w2, h.astype(jnp.bfloat16),
                    preferred_element_type=jnp.float32) + b2
        zs.append(z)
    zn = _group_batchnorm(zs, gamma, beta, eps)
    return [z + x for z, x in zip(zn, x_list)]


# ----------------------------------------------------------------------------
# The single fused kernel: one grid step == one full encoder->decoder pipeline
# ----------------------------------------------------------------------------
def _attention_layer_kernel(xe_ref, xd_ref, rc_ref, hsel_ref, hexp_ref,
                            wqkv_ref, wfc_ref, w1_ref, b1_ref, w2_ref, b2_ref, bn_ref,
                            out_ref, *, n_head, d_k, ksize, pad, H, W, eps):
    B = xe_ref.shape[1]
    ck = n_head * d_k
    inv_temp = 1.0 / float(d_k ** 0.5)

    rc = rc_ref[...]
    row = rc[0:1, :]
    col = rc[1:2, :]
    disp = _build_displacements(row, col, ksize, pad, H, W)

    hsel_bf = hsel_ref[...]                   # (n_head, ck) bf16 (exact 0/1)
    hexp_f32 = hexp_ref[...]                  # (cv, n_head) f32
    hexp_bf = hexp_f32.astype(jnp.bfloat16)

    def mha(xq_list, xkv_list, i, bn_i):
        bn = bn_ref[bn_i]                     # (C, 2): gamma | beta
        return _mha_block(xq_list, xkv_list, wqkv_ref[i], wfc_ref[i],
                          bn[:, 0:1], bn[:, 1:2],
                          hsel_bf, hexp_f32, hexp_bf, disp, inv_temp, ck, eps)

    def ffn(x_list, i, bn_i):
        bn = bn_ref[bn_i]
        return _ffn_block(x_list, w1_ref[i], b1_ref[i], w2_ref[i], b2_ref[i],
                          bn[:, 0:1], bn[:, 1:2], eps)

    xe = [xe_ref[0, b] for b in range(B)]     # encoder input (residuals included)
    xd = [xd_ref[0, b] for b in range(B)]     # decoder self-attention input

    h = mha(xe, xe, 0, 0)                     # encoder self-attention block
    enc = ffn(h, 0, 1)                        # encoder FFN block
    h = mha(xd, xd, 1, 2)                     # decoder self-attention block
    h = mha(h, enc, 2, 3)                     # decoder cross-attention (kv = encoder output)
    out = ffn(h, 1, 4)                        # decoder FFN block
    for b in range(B):
        out_ref[0, b] = out[b]


# ----------------------------------------------------------------------------
# Wrapper: parameter packing + pallas_call
# ----------------------------------------------------------------------------
def attention_layer_forward(params, input1, input2, n_head, d_k, d_v, ksize, pad, eps=1e-5):
    assert ksize == 2 * pad + 1, "same-size output requires kernel == 2*pad + 1"
    B, C, H, W = input1.shape
    HW = H * W
    ck, cv = n_head * d_k, n_head * d_v
    G = 2  # the two encoder->decoder pipelines share the enc / dec parameters

    x1 = input1.reshape(B, C, HW)             # NCHW -> (B, C, HW): contiguous, free
    x2 = input2.reshape(B, C, HW)
    # group 0 -> res1 = decoder(x2, encoder(x1)); group 1 -> res2 = decoder(x1, encoder(x2))
    xe = jnp.stack([x1, x2], axis=0)          # (G, B, C, HW): encoder inputs
    xd = jnp.stack([x2, x1], axis=0)          # (G, B, C, HW): decoder self-attn inputs

    hsel_np, hexp_np = _head_matrices(n_head, d_k, d_v)
    hsel = jnp.asarray(hsel_np, jnp.bfloat16)
    hexp = jnp.asarray(hexp_np, jnp.float32)
    rc = jnp.asarray(_row_col_indices(H, W), jnp.float32)

    mhas = [params["enc"]["slf"], params["dec"]["slf"], params["dec"]["enc"]]
    ffns = [params["enc"]["ffn"], params["dec"]["ffn"]]
    bns = [params["enc"]["slf"], params["enc"]["ffn"], params["dec"]["slf"],
           params["dec"]["enc"], params["dec"]["ffn"]]

    # Packed, pre-cast (bf16) parameter slabs -- one small DMA per family, not per tensor.
    wqkv = jnp.stack([jnp.concatenate([p["w_qs"], p["w_ks"], p["w_vs"]], axis=0)
                      for p in mhas]).astype(jnp.bfloat16)               # (3, 2ck+cv, C)
    wfc = jnp.stack([p["fc"] for p in mhas]).astype(jnp.bfloat16)        # (3, C, cv)
    w1 = jnp.stack([p["w1"] for p in ffns]).astype(jnp.bfloat16)         # (2, d_hid, C)
    b1 = jnp.stack([p["b1"].reshape(-1, 1) for p in ffns])               # (2, d_hid, 1) f32
    w2 = jnp.stack([p["w2"] for p in ffns]).astype(jnp.bfloat16)         # (2, C, d_hid)
    b2 = jnp.stack([p["b2"].reshape(-1, 1) for p in ffns])               # (2, C, 1) f32
    bn = jnp.stack([jnp.stack([p["bn_w"], p["bn_b"]], axis=1)
                    for p in bns])                                       # (5, C, 2) f32
    d_hid = int(w1.shape[1])

    grp_spec = pl.BlockSpec((1, B, C, HW), lambda g: (g, 0, 0, 0))

    def cspec(a):
        zeros = (0,) * a.ndim
        return pl.BlockSpec(tuple(a.shape), lambda g: zeros)

    args = [xe, xd, rc, hsel, hexp, wqkv, wfc, w1, b1, w2, b2, bn]
    in_specs = [grp_spec, grp_spec] + [cspec(a) for a in args[2:]]

    nd = ksize * ksize
    per_mha = (2 * HW * ((2 * ck + cv) * C + C * cv + nd * n_head * (ck + cv) + n_head * cv)
               + nd * HW * (ck + 6 * n_head + 3 * cv) + 10 * C * HW)
    per_ffn = 4 * HW * C * d_hid + 4 * d_hid * HW + 10 * C * HW
    flops = (3 * per_mha + 2 * per_ffn) * B * G
    transcendentals = (3 * nd + 4) * n_head * HW * B * G
    bytes_accessed = (4 * 3 * G * B * C * HW + 4 * 2 * HW
                      + 2 * (3 * (2 * ck + cv) * C + 3 * C * cv + 4 * C * d_hid)
                      + 4 * (10 * C + 2 * (d_hid + C)))

    out = pl.pallas_call(
        functools.partial(_attention_layer_kernel, n_head=n_head, d_k=d_k,
                          ksize=ksize, pad=pad, H=H, W=W, eps=eps),
        grid=(G,),
        in_specs=in_specs,
        out_specs=grp_spec,
        out_shape=jax.ShapeDtypeStruct((G, B, C, HW), jnp.float32),
        compiler_params=pltpu.CompilerParams(dimension_semantics=("parallel",)),
        cost_estimate=pl.CostEstimate(flops=int(flops),
                                      transcendentals=int(transcendentals),
                                      bytes_accessed=int(bytes_accessed)),
    )(*args)

    return out[0].reshape(B, C, H, W), out[1].reshape(B, C, H, W)


# ----------------------------------------------------------------------------
# Deterministic parameter initialization (synthetic; matches module shapes)
# TODO(synk): eval-mode running-stats BatchNorm not implemented (train-mode parity only).
# ----------------------------------------------------------------------------
def init_mha_params(key, d_model, n_head, d_k, d_v):
    ks = jax.random.split(key, 4)
    s = 0.1
    return {
        "w_qs": s * jax.random.normal(ks[0], (n_head * d_k, d_model), jnp.float32),
        "w_ks": s * jax.random.normal(ks[1], (n_head * d_k, d_model), jnp.float32),
        "w_vs": s * jax.random.normal(ks[2], (n_head * d_v, d_model), jnp.float32),
        "fc": s * jax.random.normal(ks[3], (d_model, n_head * d_v), jnp.float32),
        "bn_w": jnp.ones((d_model,), jnp.float32),
        "bn_b": jnp.zeros((d_model,), jnp.float32),
    }


def init_ffn_params(key, d_in, d_hid):
    ks = jax.random.split(key, 4)
    s = 0.1
    return {
        "w1": s * jax.random.normal(ks[0], (d_hid, d_in), jnp.float32),
        "b1": s * jax.random.normal(ks[1], (d_hid,), jnp.float32),
        "w2": s * jax.random.normal(ks[2], (d_in, d_hid), jnp.float32),
        "b2": s * jax.random.normal(ks[3], (d_in,), jnp.float32),
        "bn_w": jnp.ones((d_in,), jnp.float32),
        "bn_b": jnp.zeros((d_in,), jnp.float32),
    }


def init_attention_layer(key, in_planes, n_head, d_k, d_v):
    ks = jax.random.split(key, 5)
    return {
        "enc": {
            "slf": init_mha_params(ks[0], in_planes, n_head, d_k, d_v),
            "ffn": init_ffn_params(ks[1], in_planes, in_planes),
        },
        "dec": {
            "slf": init_mha_params(ks[2], in_planes, n_head, d_k, d_v),
            "enc": init_mha_params(ks[3], in_planes, n_head, d_k, d_v),
            "ffn": init_ffn_params(ks[4], in_planes, in_planes),
        },
    }


# ----------------------------------------------------------------------------
if __name__ == "__main__":
    B, C, H, W = 2, 8, 16, 16                 # in_planes = d_model = 8
    n_head, d_k, d_v = 2, 4, 4
    ksize, pad = 3, 1

    key = jax.random.PRNGKey(0)
    k1, k2, kp = jax.random.split(key, 3)
    x1 = jax.random.normal(k1, (B, C, H, W), jnp.float32)
    x2 = jax.random.normal(k2, (B, C, H, W), jnp.float32)
    params = init_attention_layer(kp, C, n_head, d_k, d_v)

    fwd = jax.jit(functools.partial(attention_layer_forward, n_head=n_head,
                                    d_k=d_k, d_v=d_v, ksize=ksize, pad=pad))
    r1, r2 = fwd(params, x1, x2)
    jax.block_until_ready((r1, r2))
    assert r1.shape == (B, C, H, W) and r2.shape == (B, C, H, W)
    assert bool(jnp.all(jnp.isfinite(r1))) and bool(jnp.all(jnp.isfinite(r2)))
    print("KERNEL_OK")
</pallas_src>

<mosaic_0001>
module attributes {stable_mosaic.version = 11 : i64} {
  func.func @_attention_layer_kernel(%arg0: i32, %arg1: memref<1x2x8x256xf32, #tpu.memory_space<vmem>>, %arg2: memref<1x2x8x256xf32, #tpu.memory_space<vmem>>, %arg3: memref<2x256xf32, #tpu.memory_space<vmem>>, %arg4: memref<2x8xbf16, #tpu.memory_space<vmem>>, %arg5: memref<8x2xf32, #tpu.memory_space<vmem>>, %arg6: memref<3x24x8xbf16, #tpu.memory_space<vmem>>, %arg7: memref<3x8x8xbf16, #tpu.memory_space<vmem>>, %arg8: memref<2x8x8xbf16, #tpu.memory_space<vmem>>, %arg9: memref<2x8x1xf32, #tpu.memory_space<vmem>>, %arg10: memref<2x8x8xbf16, #tpu.memory_space<vmem>>, %arg11: memref<2x8x1xf32, #tpu.memory_space<vmem>>, %arg12: memref<5x8x2xf32, #tpu.memory_space<vmem>>, %arg13: memref<1x2x8x256xf32, #tpu.memory_space<vmem>>) attributes {dimension_semantics = [#tpu.dimension_semantics<parallel>], iteration_bounds = array<i64: 2>, scalar_prefetch = 0 : i64, scratch_operands = 0 : i64, tpu.core_type = #tpu.core_type<tc>, window_params = [{transform_indices = @transform_0, window_bounds = array<i64: 1, 2, 8, 256>}, {transform_indices = @transform_1, window_bounds = array<i64: 1, 2, 8, 256>}, {pipeline_mode = #tpu.pipeline_mode<synchronous>, transform_indices = @transform_2, window_bounds = array<i64: 2, 256>}, {pipeline_mode = #tpu.pipeline_mode<synchronous>, transform_indices = @transform_3, window_bounds = array<i64: 2, 8>}, {pipeline_mode = #tpu.pipeline_mode<synchronous>, transform_indices = @transform_4, window_bounds = array<i64: 8, 2>}, {pipeline_mode = #tpu.pipeline_mode<synchronous>, transform_indices = @transform_5, window_bounds = array<i64: 3, 24, 8>}, {pipeline_mode = #tpu.pipeline_mode<synchronous>, transform_indices = @transform_6, window_bounds = array<i64: 3, 8, 8>}, {pipeline_mode = #tpu.pipeline_mode<synchronous>, transform_indices = @transform_7, window_bounds = array<i64: 2, 8, 8>}, {pipeline_mode = #tpu.pipeline_mode<synchronous>, transform_indices = @transform_8, window_bounds = array<i64: 2, 8, 1>}, {pipeline_mode = #tpu.pipeline_mode<synchronous>, transform_indices = @transform_9, window_bounds = array<i64: 2, 8, 8>}, {pipeline_mode = #tpu.pipeline_mode<synchronous>, transform_indices = @transform_10, window_bounds = array<i64: 2, 8, 1>}, {pipeline_mode = #tpu.pipeline_mode<synchronous>, transform_indices = @transform_11, window_bounds = array<i64: 5, 8, 2>}, {transform_indices = @transform_12, window_bounds = array<i64: 1, 2, 8, 256>}]} {
    %c0 = arith.constant 0 : index
    %c0_0 = arith.constant 0 : index
    %0 = vector.load %arg3[%c0, %c0_0] : memref<2x256xf32, #tpu.memory_space<vmem>>, vector<2x256xf32>
    %1 = vector.extract_strided_slice %0 {offsets = [0, 0], sizes = [1, 256], strides = [1, 1]} : vector<2x256xf32> to vector<1x256xf32>
    %2 = vector.extract_strided_slice %0 {offsets = [1, 0], sizes = [1, 256], strides = [1, 1]} : vector<2x256xf32> to vector<1x256xf32>
    %cst = arith.constant 1.000000e+00 : f32
    %3 = vector.broadcast %cst : f32 to vector<1x256xf32>
    %4 = arith.cmpf oge, %1, %3 : vector<1x256xf32>
    %cst_1 = arith.constant 1.000000e+00 : f32
    %5 = vector.broadcast %cst_1 : f32 to vector<1x256xf32>
    %6 = arith.cmpf oge, %2, %5 : vector<1x256xf32>
    %7 = arith.andi %4, %6 : vector<1x256xi1>
    %cst_2 = arith.constant 1.000000e+00 : f32
    %cst_3 = arith.constant 0.000000e+00 : f32
    %8 = vector.broadcast %cst_2 : f32 to vector<1x256xf32>
    %9 = vector.broadcast %cst_3 : f32 to vector<1x256xf32>
    %10 = arith.select %7, %8, %9 : vector<1x256xi1>, vector<1x256xf32>
    %cst_4 = arith.constant 1.000000e+00 : f32
    %11 = vector.broadcast %cst_4 : f32 to vector<1x256xf32>
    %12 = arith.cmpf oge, %1, %11 : vector<1x256xf32>
    %cst_5 = arith.constant 1.000000e+00 : f32
    %cst_6 = arith.constant 0.000000e+00 : f32
    %13 = vector.broadcast %cst_5 : f32 to vector<1x256xf32>
    %14 = vector.broadcast %cst_6 : f32 to vector<1x256xf32>
    %15 = arith.select %12, %13, %14 : vector<1x256xi1>, vector<1x256xf32>
    %cst_7 = arith.constant 1.000000e+00 : f32
    %16 = vector.broadcast %cst_7 : f32 to vector<1x256xf32>
    %17 = arith.cmpf oge, %1, %16 : vector<1x256xf32>
    %cst_8 = arith.constant 1.500000e+01 : f32
    %18 = vector.broadcast %cst_8 : f32 to vector<1x256xf32>
    %19 = arith.cmpf olt, %2, %18 : vector<1x256xf32>
    %20 = arith.andi %17, %19 : vector<1x256xi1>
    %cst_9 = arith.constant 1.000000e+00 : f32
    %cst_10 = arith.constant 0.000000e+00 : f32
    %21 = vector.broadcast %cst_9 : f32 to vector<1x256xf32>
    %22 = vector.broadcast %cst_10 : f32 to vector<1x256xf32>
    %23 = arith.select %20, %21, %22 : vector<1x256xi1>, vector<1x256xf32>
    %cst_11 = arith.constant 1.000000e+00 : f32
    %24 = vector.broadcast %cst_11 : f32 to vector<1x256xf32>
    %25 = arith.cmpf oge, %2, %24 : vector<1x256xf32>
    %cst_12 = arith.constant 1.000000e+00 : f32
    %cst_13 = arith.constant 0.000000e+00 : f32
    %26 = vector.broadcast %cst_12 : f32 to vector<1x256xf32>
    %27 = vector.broadcast %cst_13 : f32 to vector<1x256xf32>
    %28 = arith.select %25, %26, %27 : vector<1x256xi1>, vector<1x256xf32>
    %cst_14 = arith.constant 1.500000e+01 : f32
    %29 = vector.broadcast %cst_14 : f32 to vector<1x256xf32>
    %30 = arith.cmpf olt, %2, %29 : vector<1x256xf32>
    %cst_15 = arith.constant 1.000000e+00 : f32
    %cst_16 = arith.constant 0.000000e+00 : f32
    %31 = vector.broadcast %cst_15 : f32 to vector<1x256xf32>
    %32 = vector.broadcast %cst_16 : f32 to vector<1x256xf32>
    %33 = arith.select %30, %31, %32 : vector<1x256xi1>, vector<1x256xf32>
    %cst_17 = arith.constant 1.500000e+01 : f32
    %34 = vector.broadcast %cst_17 : f32 to vector<1x256xf32>
    %35 = arith.cmpf olt, %1, %34 : vector<1x256xf32>
    %cst_18 = arith.constant 1.000000e+00 : f32
    %36 = vector.broadcast %cst_18 : f32 to vector<1x256xf32>
    %37 = arith.cmpf oge, %2, %36 : vector<1x256xf32>
    %38 = arith.andi %35, %37 : vector<1x256xi1>
    %cst_19 = arith.constant 1.000000e+00 : f32
    %cst_20 = arith.constant 0.000000e+00 : f32
    %39 = vector.broadcast %cst_19 : f32 to vector<1x256xf32>
    %40 = vector.broadcast %cst_20 : f32 to vector<1x256xf32>
    %41 = arith.select %38, %39, %40 : vector<1x256xi1>, vector<1x256xf32>
    %cst_21 = arith.constant 1.500000e+01 : f32
    %42 = vector.broadcast %cst_21 : f32 to vector<1x256xf32>
    %43 = arith.cmpf olt, %1, %42 : vector<1x256xf32>
    %cst_22 = arith.constant 1.000000e+00 : f32
    %cst_23 = arith.constant 0.000000e+00 : f32
    %44 = vector.broadcast %cst_22 : f32 to vector<1x256xf32>
    %45 = vector.broadcast %cst_23 : f32 to vector<1x256xf32>
    %46 = arith.select %43, %44, %45 : vector<1x256xi1>, vector<1x256xf32>
    %cst_24 = arith.constant 1.500000e+01 : f32
    %47 = vector.broadcast %cst_24 : f32 to vector<1x256xf32>
    %48 = arith.cmpf olt, %1, %47 : vector<1x256xf32>
    %cst_25 = arith.constant 1.500000e+01 : f32
    %49 = vector.broadcast %cst_25 : f32 to vector<1x256xf32>
    %50 = arith.cmpf olt, %2, %49 : vector<1x256xf32>
    %51 = arith.andi %48, %50 : vector<1x256xi1>
    %cst_26 = arith.constant 1.000000e+00 : f32
    %cst_27 = arith.constant 0.000000e+00 : f32
    %52 = vector.broadcast %cst_26 : f32 to vector<1x256xf32>
    %53 = vector.broadcast %cst_27 : f32 to vector<1x256xf32>
    %54 = arith.select %51, %52, %53 : vector<1x256xi1>, vector<1x256xf32>
    %c0_28 = arith.constant 0 : index
    %c0_29 = arith.constant 0 : index
    %55 = vector.load %arg4[%c0_28, %c0_29] : memref<2x8xbf16, #tpu.memory_space<vmem>>, vector<2x8xbf16>
    %c0_30 = arith.constant 0 : index
    %c0_31 = arith.constant 0 : index
    %56 = vector.load %arg5[%c0_30, %c0_31] : memref<8x2xf32, #tpu.memory_space<vmem>>, vector<8x2xf32>
    %57 = arith.truncf %56 : vector<8x2xf32> to vector<8x2xbf16>
    %c0_32 = arith.constant 0 : index
    %c0_33 = arith.constant 0 : index
    %c0_34 = arith.constant 0 : index
    %c0_35 = arith.constant 0 : index
    %58 = vector.load %arg1[%c0_32, %c0_33, %c0_34, %c0_35] : memref<1x2x8x256xf32, #tpu.memory_space<vmem>>, vector<1x1x8x256xf32>
    %59 = vector.shape_cast %58 : vector<1x1x8x256xf32> to vector<8x256xf32>
    %c0_36 = arith.constant 0 : index
    %c1 = arith.constant 1 : index
    %c0_37 = arith.constant 0 : index
    %c0_38 = arith.constant 0 : index
    %60 = vector.load %arg1[%c0_36, %c1, %c0_37, %c0_38] : memref<1x2x8x256xf32, #tpu.memory_space<vmem>>, vector<1x1x8x256xf32>
    %61 = vector.shape_cast %60 : vector<1x1x8x256xf32> to vector<8x256xf32>
    %c0_39 = arith.constant 0 : index
    %c0_40 = arith.constant 0 : index
    %c0_41 = arith.constant 0 : index
    %c0_42 = arith.constant 0 : index
    %62 = vector.load %arg2[%c0_39, %c0_40, %c0_41, %c0_42] : memref<1x2x8x256xf32, #tpu.memory_space<vmem>>, vector<1x1x8x256xf32>
    %63 = vector.shape_cast %62 : vector<1x1x8x256xf32> to vector<8x256xf32>
    %c0_43 = arith.constant 0 : index
    %c1_44 = arith.constant 1 : index
    %c0_45 = arith.constant 0 : index
    %c0_46 = arith.constant 0 : index
    %64 = vector.load %arg2[%c0_43, %c1_44, %c0_45, %c0_46] : memref<1x2x8x256xf32, #tpu.memory_space<vmem>>, vector<1x1x8x256xf32>
    %65 = vector.shape_cast %64 : vector<1x1x8x256xf32> to vector<8x256xf32>
    %c0_47 = arith.constant 0 : index
    %c0_48 = arith.constant 0 : index
    %c0_49 = arith.constant 0 : index
    %66 = vector.load %arg12[%c0_47, %c0_48, %c0_49] : memref<5x8x2xf32, #tpu.memory_space<vmem>>, vector<1x8x2xf32>
    %67 = vector.shape_cast %66 : vector<1x8x2xf32> to vector<8x2xf32>
    %c0_50 = arith.constant 0 : index
    %c0_51 = arith.constant 0 : index
    %c0_52 = arith.constant 0 : index
    %68 = vector.load %arg6[%c0_50, %c0_51, %c0_52] : memref<3x24x8xbf16, #tpu.memory_space<vmem>>, vector<1x24x8xbf16>
    %69 = vector.shape_cast %68 : vector<1x24x8xbf16> to vector<24x8xbf16>
    %c0_53 = arith.constant 0 : index
    %c0_54 = arith.constant 0 : index
    %c0_55 = arith.constant 0 : index
    %70 = vector.load %arg7[%c0_53, %c0_54, %c0_55] : memref<3x8x8xbf16, #tpu.memory_space<vmem>>, vector<1x8x8xbf16>
    %71 = vector.shape_cast %70 : vector<1x8x8xbf16> to vector<8x8xbf16>
    %72 = vector.extract_strided_slice %67 {offsets = [0, 0], sizes = [8, 1], strides = [1, 1]} : vector<8x2xf32> to vector<8x1xf32>
    %73 = vector.extract_strided_slice %67 {offsets = [0, 1], sizes = [8, 1], strides = [1, 1]} : vector<8x2xf32> to vector<8x1xf32>
    %74 = arith.truncf %59 : vector<8x256xf32> to vector<8x256xbf16>
    %cst_56 = arith.constant dense<0.000000e+00> : vector<24x256xf32>
    %75 = tpu.matmul %69, %74, %cst_56 {dimension_numbers = #tpu.dot_dimension_numbers<[1], [0], [0], [1], [0, 0, 1, 1], [], []>} : vector<24x8xbf16>, vector<8x256xbf16>, vector<24x256xf32> -> vector<24x256xf32>
    %76 = vector.extract_strided_slice %75 {offsets = [0, 0], sizes = [8, 256], strides = [1, 1]} : vector<24x256xf32> to vector<8x256xf32>
    %77 = vector.extract_strided_slice %75 {offsets = [8, 0], sizes = [8, 256], strides = [1, 1]} : vector<24x256xf32> to vector<8x256xf32>
    %78 = vector.extract_strided_slice %75 {offsets = [16, 0], sizes = [8, 256], strides = [1, 1]} : vector<24x256xf32> to vector<8x256xf32>
    %c17_i32 = arith.constant 17 : i32
    %79 = tpu.dynamic_rotate %77 by %c17_i32 dim 1 : vector<8x256xf32>, i32 -> vector<8x256xf32>
    %80 = arith.mulf %76, %79 : vector<8x256xf32>
    %81 = arith.truncf %80 : vector<8x256xf32> to vector<8x256xbf16>
    %cst_57 = arith.constant dense<0.000000e+00> : vector<2x256xf32>
    %82 = tpu.matmul %55, %81, %cst_57 {dimension_numbers = #tpu.dot_dimension_numbers<[1], [0], [0], [1], [0, 0, 1, 1], [], []>} : vector<2x8xbf16>, vector<8x256xbf16>, vector<2x256xf32> -> vector<2x256xf32>
    %cst_58 = arith.constant 5.000000e-01 : f32
    %83 = vector.broadcast %cst_58 : f32 to vector<1x256xf32>
    %84 = arith.mulf %83, %10 : vector<1x256xf32>
    %85 = vector.broadcast %84 : vector<1x256xf32> to vector<2x256xf32>
    %86 = arith.mulf %82, %85 : vector<2x256xf32>
    %c16_i32 = arith.constant 16 : i32
    %87 = tpu.dynamic_rotate %77 by %c16_i32 dim 1 : vector<8x256xf32>, i32 -> vector<8x256xf32>
    %88 = arith.mulf %76, %87 : vector<8x256xf32>
    %89 = arith.truncf %88 : vector<8x256xf32> to vector<8x256xbf16>
    %cst_59 = arith.constant dense<0.000000e+00> : vector<2x256xf32>
    %90 = tpu.matmul %55, %89, %cst_59 {dimension_numbers = #tpu.dot_dimension_numbers<[1], [0], [0], [1], [0, 0, 1, 1], [], []>} : vector<2x8xbf16>, vector<8x256xbf16>, vector<2x256xf32> -> vector<2x256xf32>
    %cst_60 = arith.constant 5.000000e-01 : f32
    %91 = vector.broadcast %cst_60 : f32 to vector<1x256xf32>
    %92 = arith.mulf %91, %15 : vector<1x256xf32>
    %93 = vector.broadcast %92 : vector<1x256xf32> to vector<2x256xf32>
    %94 = arith.mulf %90, %93 : vector<2x256xf32>
    %95 = arith.maximumf %86, %94 : vector<2x256xf32>
    %c15_i32 = arith.constant 15 : i32
    %96 = tpu.dynamic_rotate %77 by %c15_i32 dim 1 : vector<8x256xf32>, i32 -> vector<8x256xf32>
    %97 = arith.mulf %76, %96 : vector<8x256xf32>
    %98 = arith.truncf %97 : vector<8x256xf32> to vector<8x256xbf16>
    %cst_61 = arith.constant dense<0.000000e+00> : vector<2x256xf32>
    %99 = tpu.matmul %55, %98, %cst_61 {dimension_numbers = #tpu.dot_dimension_numbers<[1], [0], [0], [1], [0, 0, 1, 1], [], []>} : vector<2x8xbf16>, vector<8x256xbf16>, vector<2x256xf32> -> vector<2x256xf32>
    %cst_62 = arith.constant 5.000000e-01 : f32
    %100 = vector.broadcast %cst_62 : f32 to vector<1x256xf32>
    %101 = arith.mulf %100, %23 : vector<1x256xf32>
    %102 = vector.broadcast %101 : vector<1x256xf32> to vector<2x256xf32>
    %103 = arith.mulf %99, %102 : vector<2x256xf32>
    %104 = arith.maximumf %95, %103 : vector<2x256xf32>
    %c1_i32 = arith.constant 1 : i32
    %105 = tpu.dynamic_rotate %77 by %c1_i32 dim 1 : vector<8x256xf32>, i32 -> vector<8x256xf32>
    %106 = arith.mulf %76, %105 : vector<8x256xf32>
    %107 = arith.truncf %106 : vector<8x256xf32> to vector<8x256xbf16>
    %cst_63 = arith.constant dense<0.000000e+00> : vector<2x256xf32>
    %108 = tpu.matmul %55, %107, %cst_63 {dimension_numbers = #tpu.dot_dimension_numbers<[1], [0], [0], [1], [0, 0, 1, 1], [], []>} : vector<2x8xbf16>, vector<8x256xbf16>, vector<2x256xf32> -> vector<2x256xf32>
    %cst_64 = arith.constant 5.000000e-01 : f32
    %109 = vector.broadcast %cst_64 : f32 to vector<1x256xf32>
    %110 = arith.mulf %109, %28 : vector<1x256xf32>
    %111 = vector.broadcast %110 : vector<1x256xf32> to vector<2x256xf32>
    %112 = arith.mulf %108, %111 : vector<2x256xf32>
    %113 = arith.maximumf %104, %112 : vector<2x256xf32>
    %114 = arith.mulf %76, %77 : vector<8x256xf32>
    %115 = arith.truncf %114 : vector<8x256xf32> to vector<8x256xbf16>
    %cst_65 = arith.constant dense<0.000000e+00> : vector<2x256xf32>
    %116 = tpu.matmul %55, %115, %cst_65 {dimension_numbers = #tpu.dot_dimension_numbers<[1], [0], [0], [1], [0, 0, 1, 1], [], []>} : vector<2x8xbf16>, vector<8x256xbf16>, vector<2x256xf32> -> vector<2x256xf32>
    %cst_66 = arith.constant 5.000000e-01 : f32
    %117 = vector.broadcast %cst_66 : f32 to vector<2x256xf32>
    %118 = arith.mulf %116, %117 : vector<2x256xf32>
    %119 = arith.maximumf %113, %118 : vector<2x256xf32>
    %c255_i32 = arith.constant 255 : i32
    %120 = tpu.dynamic_rotate %77 by %c255_i32 dim 1 : vector<8x256xf32>, i32 -> vector<8x256xf32>
    %121 = arith.mulf %76, %120 : vector<8x256xf32>
    %122 = arith.truncf %121 : vector<8x256xf32> to vector<8x256xbf16>
    %cst_67 = arith.constant dense<0.000000e+00> : vector<2x256xf32>
    %123 = tpu.matmul %55, %122, %cst_67 {dimension_numbers = #tpu.dot_dimension_numbers<[1], [0], [0], [1], [0, 0, 1, 1], [], []>} : vector<2x8xbf16>, vector<8x256xbf16>, vector<2x256xf32> -> vector<2x256xf32>
    %cst_68 = arith.constant 5.000000e-01 : f32
    %124 = vector.broadcast %cst_68 : f32 to vector<1x256xf32>
    %125 = arith.mulf %124, %33 : vector<1x256xf32>
    %126 = vector.broadcast %125 : vector<1x256xf32> to vector<2x256xf32>
    %127 = arith.mulf %123, %126 : vector<2x256xf32>
    %128 = arith.maximumf %119, %127 : vector<2x256xf32>
    %c241_i32 = arith.constant 241 : i32
    %129 = tpu.dynamic_rotate %77 by %c241_i32 dim 1 : vector<8x256xf32>, i32 -> vector<8x256xf32>
    %130 = arith.mulf %76, %129 : vector<8x256xf32>
    %131 = arith.truncf %130 : vector<8x256xf32> to vector<8x256xbf16>
    %cst_69 = arith.constant dense<0.000000e+00> : vector<2x256xf32>
    %132 = tpu.matmul %55, %131, %cst_69 {dimension_numbers = #tpu.dot_dimension_numbers<[1], [0], [0], [1], [0, 0, 1, 1], [], []>} : vector<2x8xbf16>, vector<8x256xbf16>, vector<2x256xf32> -> vector<2x256xf32>
    %cst_70 = arith.constant 5.000000e-01 : f32
    %133 = vector.broadcast %cst_70 : f32 to vector<1x256xf32>
    %134 = arith.mulf %133, %41 : vector<1x256xf32>
    %135 = vector.broadcast %134 : vector<1x256xf32> to vector<2x256xf32>
    %136 = arith.mulf %132, %135 : vector<2x256xf32>
    %137 = arith.maximumf %128, %136 : vector<2x256xf32>
    %c240_i32 = arith.constant 240 : i32
    %138 = tpu.dynamic_rotate %77 by %c240_i32 dim 1 : vector<8x256xf32>, i32 -> vector<8x256xf32>
    %139 = arith.mulf %76, %138 : vector<8x256xf32>
    %140 = arith.truncf %139 : vector<8x256xf32> to vector<8x256xbf16>
    %cst_71 = arith.constant dense<0.000000e+00> : vector<2x256xf32>
    %141 = tpu.matmul %55, %140, %cst_71 {dimension_numbers = #tpu.dot_dimension_numbers<[1], [0], [0], [1], [0, 0, 1, 1], [], []>} : vector<2x8xbf16>, vector<8x256xbf16>, vector<2x256xf32> -> vector<2x256xf32>
    %cst_72 = arith.constant 5.000000e-01 : f32
    %142 = vector.broadcast %cst_72 : f32 to vector<1x256xf32>
    %143 = arith.mulf %142, %46 : vector<1x256xf32>
    %144 = vector.broadcast %143 : vector<1x256xf32> to vector<2x256xf32>
    %145 = arith.mulf %141, %144 : vector<2x256xf32>
    %146 = arith.maximumf %137, %145 : vector<2x256xf32>
    %c239_i32 = arith.constant 239 : i32
    %147 = tpu.dynamic_rotate %77 by %c239_i32 dim 1 : vector<8x256xf32>, i32 -> vector<8x256xf32>
    %148 = arith.mulf %76, %147 : vector<8x256xf32>
    %149 = arith.truncf %148 : vector<8x256xf32> to vector<8x256xbf16>
    %cst_73 = arith.constant dense<0.000000e+00> : vector<2x256xf32>
    %150 = tpu.matmul %55, %149, %cst_73 {dimension_numbers = #tpu.dot_dimension_numbers<[1], [0], [0], [1], [0, 0, 1, 1], [], []>} : vector<2x8xbf16>, vector<8x256xbf16>, vector<2x256xf32> -> vector<2x256xf32>
    %cst_74 = arith.constant 5.000000e-01 : f32
    %151 = vector.broadcast %cst_74 : f32 to vector<1x256xf32>
    %152 = arith.mulf %151, %54 : vector<1x256xf32>
    %153 = vector.broadcast %152 : vector<1x256xf32> to vector<2x256xf32>
    %154 = arith.mulf %150, %153 : vector<2x256xf32>
    %155 = arith.maximumf %146, %154 : vector<2x256xf32>
    %cst_75 = arith.constant 0.000000e+00 : f32
    %156 = vector.broadcast %cst_75 : f32 to vector<2x256xf32>
    %cst_76 = arith.constant 0.000000e+00 : f32
    %157 = vector.broadcast %cst_76 : f32 to vector<8x256xf32>
    %158 = arith.subf %86, %155 : vector<2x256xf32>
    %159 = math.exp %158 : vector<2x256xf32>
    %160 = arith.addf %156, %159 : vector<2x256xf32>
    %c17_i32_77 = arith.constant 17 : i32
    %161 = tpu.dynamic_rotate %78 by %c17_i32_77 dim 1 : vector<8x256xf32>, i32 -> vector<8x256xf32>
    %162 = vector.broadcast %10 : vector<1x256xf32> to vector<2x256xf32>
    %163 = arith.mulf %159, %162 : vector<2x256xf32>
    %164 = arith.truncf %163 : vector<2x256xf32> to vector<2x256xbf16>
    %cst_78 = arith.constant dense<0.000000e+00> : vector<8x256xf32>
    %165 = tpu.matmul %57, %164, %cst_78 {dimension_numbers = #tpu.dot_dimension_numbers<[1], [0], [0], [1], [0, 0, 1, 1], [], []>} : vector<8x2xbf16>, vector<2x256xbf16>, vector<8x256xf32> -> vector<8x256xf32>
    %166 = arith.mulf %165, %161 : vector<8x256xf32>
    %167 = arith.addf %157, %166 : vector<8x256xf32>
    %168 = arith.subf %94, %155 : vector<2x256xf32>
    %169 = math.exp %168 : vector<2x256xf32>
    %170 = arith.addf %160, %169 : vector<2x256xf32>
    %c16_i32_79 = arith.constant 16 : i32
    %171 = tpu.dynamic_rotate %78 by %c16_i32_79 dim 1 : vector<8x256xf32>, i32 -> vector<8x256xf32>
    %172 = vector.broadcast %15 : vector<1x256xf32> to vector<2x256xf32>
    %173 = arith.mulf %169, %172 : vector<2x256xf32>
    %174 = arith.truncf %173 : vector<2x256xf32> to vector<2x256xbf16>
    %cst_80 = arith.constant dense<0.000000e+00> : vector<8x256xf32>
    %175 = tpu.matmul %57, %174, %cst_80 {dimension_numbers = #tpu.dot_dimension_numbers<[1], [0], [0], [1], [0, 0, 1, 1], [], []>} : vector<8x2xbf16>, vector<2x256xbf16>, vector<8x256xf32> -> vector<8x256xf32>
    %176 = arith.mulf %175, %171 : vector<8x256xf32>
    %177 = arith.addf %167, %176 : vector<8x256xf32>
    %178 = arith.subf %103, %155 : vector<2x256xf32>
    %179 = math.exp %178 : vector<2x256xf32>
    %180 = arith.addf %170, %179 : vector<2x256xf32>
    %c15_i32_81 = arith.constant 15 : i32
    %181 = tpu.dynamic_rotate %78 by %c15_i32_81 dim 1 : vector<8x256xf32>, i32 -> vector<8x256xf32>
    %182 = vector.broadcast %23 : vector<1x256xf32> to vector<2x256xf32>
    %183 = arith.mulf %179, %182 : vector<2x256xf32>
    %184 = arith.truncf %183 : vector<2x256xf32> to vector<2x256xbf16>
    %cst_82 = arith.constant dense<0.000000e+00> : vector<8x256xf32>
    %185 = tpu.matmul %57, %184, %cst_82 {dimension_numbers = #tpu.dot_dimension_numbers<[1], [0], [0], [1], [0, 0, 1, 1], [], []>} : vector<8x2xbf16>, vector<2x256xbf16>, vector<8x256xf32> -> vector<8x256xf32>
    %186 = arith.mulf %185, %181 : vector<8x256xf32>
    %187 = arith.addf %177, %186 : vector<8x256xf32>
    %188 = arith.subf %112, %155 : vector<2x256xf32>
    %189 = math.exp %188 : vector<2x256xf32>
    %190 = arith.addf %180, %189 : vector<2x256xf32>
    %c1_i32_83 = arith.constant 1 : i32
    %191 = tpu.dynamic_rotate %78 by %c1_i32_83 dim 1 : vector<8x256xf32>, i32 -> vector<8x256xf32>
    %192 = vector.broadcast %28 : vector<1x256xf32> to vector<2x256xf32>
    %193 = arith.mulf %189, %192 : vector<2x256xf32>
    %194 = arith.truncf %193 : vector<2x256xf32> to vector<2x256xbf16>
    %cst_84 = arith.constant dense<0.000000e+00> : vector<8x256xf32>
    %195 = tpu.matmul %57, %194, %cst_84 {dimension_numbers = #tpu.dot_dimension_numbers<[1], [0], [0], [1], [0, 0, 1, 1], [], []>} : vector<8x2xbf16>, vector<2x256xbf16>, vector<8x256xf32> -> vector<8x256xf32>
    %196 = arith.mulf %195, %191 : vector<8x256xf32>
    %197 = arith.addf %187, %196 : vector<8x256xf32>
    %198 = arith.subf %118, %155 : vector<2x256xf32>
    %199 = math.exp %198 : vector<2x256xf32>
    %200 = arith.addf %190, %199 : vector<2x256xf32>
    %201 = arith.truncf %199 : vector<2x256xf32> to vector<2x256xbf16>
    %cst_85 = arith.constant dense<0.000000e+00> : vector<8x256xf32>
    %202 = tpu.matmul %57, %201, %cst_85 {dimension_numbers = #tpu.dot_dimension_numbers<[1], [0], [0], [1], [0, 0, 1, 1], [], []>} : vector<8x2xbf16>, vector<2x256xbf16>, vector<8x256xf32> -> vector<8x256xf32>
    %203 = arith.mulf %202, %78 : vector<8x256xf32>
    %204 = arith.addf %197, %203 : vector<8x256xf32>
    %205 = arith.subf %127, %155 : vector<2x256xf32>
    %206 = math.exp %205 : vector<2x256xf32>
    %207 = arith.addf %200, %206 : vector<2x256xf32>
    %c255_i32_86 = arith.constant 255 : i32
    %208 = tpu.dynamic_rotate %78 by %c255_i32_86 dim 1 : vector<8x256xf32>, i32 -> vector<8x256xf32>
    %209 = vector.broadcast %33 : vector<1x256xf32> to vector<2x256xf32>
    %210 = arith.mulf %206, %209 : vector<2x256xf32>
    %211 = arith.truncf %210 : vector<2x256xf32> to vector<2x256xbf16>
    %cst_87 = arith.constant dense<0.000000e+00> : vector<8x256xf32>
    %212 = tpu.matmul %57, %211, %cst_87 {dimension_numbers = #tpu.dot_dimension_numbers<[1], [0], [0], [1], [0, 0, 1, 1], [], []>} : vector<8x2xbf16>, vector<2x256xbf16>, vector<8x256xf32> -> vector<8x256xf32>
    %213 = arith.mulf %212, %208 : vector<8x256xf32>
    %214 = arith.addf %204, %213 : vector<8x256xf32>
    %215 = arith.subf %136, %155 : vector<2x256xf32>
    %216 = math.exp %215 : vector<2x256xf32>
    %217 = arith.addf %207, %216 : vector<2x256xf32>
    %c241_i32_88 = arith.constant 241 : i32
    %218 = tpu.dynamic_rotate %78 by %c241_i32_88 dim 1 : vector<8x256xf32>, i32 -> vector<8x256xf32>
    %219 = vector.broadcast %41 : vector<1x256xf32> to vector<2x256xf32>
    %220 = arith.mulf %216, %219 : vector<2x256xf32>
    %221 = arith.truncf %220 : vector<2x256xf32> to vector<2x256xbf16>
    %cst_89 = arith.constant dense<0.000000e+00> : vector<8x256xf32>
    %222 = tpu.matmul %57, %221, %cst_89 {dimension_numbers = #tpu.dot_dimension_numbers<[1], [0], [0], [1], [0, 0, 1, 1], [], []>} : vector<8x2xbf16>, vector<2x256xbf16>, vector<8x256xf32> -> vector<8x256xf32>
    %223 = arith.mulf %222, %218 : vector<8x256xf32>
    %224 = arith.addf %214, %223 : vector<8x256xf32>
    %225 = arith.subf %145, %155 : vector<2x256xf32>
    %226 = math.exp %225 : vector<2x256xf32>
    %227 = arith.addf %217, %226 : vector<2x256xf32>
    %c240_i32_90 = arith.constant 240 : i32
    %228 = tpu.dynamic_rotate %78 by %c240_i32_90 dim 1 : vector<8x256xf32>, i32 -> vector<8x256xf32>
    %229 = vector.broadcast %46 : vector<1x256xf32> to vector<2x256xf32>
    %230 = arith.mulf %226, %229 : vector<2x256xf32>
    %231 = arith.truncf %230 : vector<2x256xf32> to vector<2x256xbf16>
    %cst_91 = arith.constant dense<0.000000e+00> : vector<8x256xf32>
    %232 = tpu.matmul %57, %231, %cst_91 {dimension_numbers = #tpu.dot_dimension_numbers<[1], [0], [0], [1], [0, 0, 1, 1], [], []>} : vector<8x2xbf16>, vector<2x256xbf16>, vector<8x256xf32> -> vector<8x256xf32>
    %233 = arith.mulf %232, %228 : vector<8x256xf32>
    %234 = arith.addf %224, %233 : vector<8x256xf32>
    %235 = arith.subf %154, %155 : vector<2x256xf32>
    %236 = math.exp %235 : vector<2x256xf32>
    %237 = arith.addf %227, %236 : vector<2x256xf32>
    %c239_i32_92 = arith.constant 239 : i32
    %238 = tpu.dynamic_rotate %78 by %c239_i32_92 dim 1 : vector<8x256xf32>, i32 -> vector<8x256xf32>
    %239 = vector.broadcast %54 : vector<1x256xf32> to vector<2x256xf32>
    %240 = arith.mulf %236, %239 : vector<2x256xf32>
    %241 = arith.truncf %240 : vector<2x256xf32> to vector<2x256xbf16>
    %cst_93 = arith.constant dense<0.000000e+00> : vector<8x256xf32>
    %242 = tpu.matmul %57, %241, %cst_93 {dimension_numbers = #tpu.dot_dimension_numbers<[1], [0], [0], [1], [0, 0, 1, 1], [], []>} : vector<8x2xbf16>, vector<2x256xbf16>, vector<8x256xf32> -> vector<8x256xf32>
    %243 = arith.mulf %242, %238 : vector<8x256xf32>
    %244 = arith.addf %234, %243 : vector<8x256xf32>
    %245 = tpu.reciprocal %237 : vector<2x256xf32> -> vector<2x256xf32>
    %cst_94 = arith.constant dense<0.000000e+00> : vector<8x256xf32>
    %246 = tpu.matmul %56, %245, %cst_94 {dimension_numbers = #tpu.dot_dimension_numbers<[1], [0], [0], [1], [0, 0, 1, 1], [], []>} : vector<8x2xf32>, vector<2x256xf32>, vector<8x256xf32> -> vector<8x256xf32>
    %247 = arith.mulf %244, %246 : vector<8x256xf32>
    %248 = arith.truncf %247 : vector<8x256xf32> to vector<8x256xbf16>
    %cst_95 = arith.constant dense<0.000000e+00> : vector<8x256xf32>
    %249 = tpu.matmul %71, %248, %cst_95 {dimension_numbers = #tpu.dot_dimension_numbers<[1], [0], [0], [1], [0, 0, 1, 1], [], []>} : vector<8x8xbf16>, vector<8x256xbf16>, vector<8x256xf32> -> vector<8x256xf32>
    %250 = arith.addf %249, %59 : vector<8x256xf32>
    %251 = arith.truncf %61 : vector<8x256xf32> to vector<8x256xbf16>
    %cst_96 = arith.constant dense<0.000000e+00> : vector<24x256xf32>
    %252 = tpu.matmul %69, %251, %cst_96 {dimension_numbers = #tpu.dot_dimension_numbers<[1], [0], [0], [1], [0, 0, 1, 1], [], []>} : vector<24x8xbf16>, vector<8x256xbf16>, vector<24x256xf32> -> vector<24x256xf32>
    %253 = vector.extract_strided_slice %252 {offsets = [0, 0], sizes = [8, 256], strides = [1, 1]} : vector<24x256xf32> to vector<8x256xf32>
    %254 = vector.extract_strided_slice %252 {offsets = [8, 0], sizes = [8, 256], strides = [1, 1]} : vector<24x256xf32> to vector<8x256xf32>
    %255 = vector.extract_strided_slice %252 {offsets = [16, 0], sizes = [8, 256], strides = [1, 1]} : vector<24x256xf32> to vector<8x256xf32>
    %c17_i32_97 = arith.constant 17 : i32
    %256 = tpu.dynamic_rotate %254 by %c17_i32_97 dim 1 : vector<8x256xf32>, i32 -> vector<8x256xf32>
    %257 = arith.mulf %253, %256 : vector<8x256xf32>
    %258 = arith.truncf %257 : vector<8x256xf32> to vector<8x256xbf16>
    %cst_98 = arith.constant dense<0.000000e+00> : vector<2x256xf32>
    %259 = tpu.matmul %55, %258, %cst_98 {dimension_numbers = #tpu.dot_dimension_numbers<[1], [0], [0], [1], [0, 0, 1, 1], [], []>} : vector<2x8xbf16>, vector<8x256xbf16>, vector<2x256xf32> -> vector<2x256xf32>
    %cst_99 = arith.constant 5.000000e-01 : f32
    %260 = vector.broadcast %cst_99 : f32 to vector<1x256xf32>
    %261 = arith.mulf %260, %10 : vector<1x256xf32>
    %262 = vector.broadcast %261 : vector<1x256xf32> to vector<2x256xf32>
    %263 = arith.mulf %259, %262 : vector<2x256xf32>
    %c16_i32_100 = arith.constant 16 : i32
    %264 = tpu.dynamic_rotate %254 by %c16_i32_100 dim 1 : vector<8x256xf32>, i32 -> vector<8x256xf32>
    %265 = arith.mulf %253, %264 : vector<8x256xf32>
    %266 = arith.truncf %265 : vector<8x256xf32> to vector<8x256xbf16>
    %cst_101 = arith.constant dense<0.000000e+00> : vector<2x256xf32>
    %267 = tpu.matmul %55, %266, %cst_101 {dimension_numbers = #tpu.dot_dimension_numbers<[1], [0], [0], [1], [0, 0, 1, 1], [], []>} : vector<2x8xbf16>, vector<8x256xbf16>, vector<2x256xf32> -> vector<2x256xf32>
    %cst_102 = arith.constant 5.000000e-01 : f32
    %268 = vector.broadcast %cst_102 : f32 to vector<1x256xf32>
    %269 = arith.mulf %268, %15 : vector<1x256xf32>
    %270 = vector.broadcast %269 : vector<1x256xf32> to vector<2x256xf32>
    %271 = arith.mulf %267, %270 : vector<2x256xf32>
    %272 = arith.maximumf %263, %271 : vector<2x256xf32>
    %c15_i32_103 = arith.constant 15 : i32
    %273 = tpu.dynamic_rotate %254 by %c15_i32_103 dim 1 : vector<8x256xf32>, i32 -> vector<8x256xf32>
    %274 = arith.mulf %253, %273 : vector<8x256xf32>
    %275 = arith.truncf %274 : vector<8x256xf32> to vector<8x256xbf16>
    %cst_104 = arith.constant dense<0.000000e+00> : vector<2x256xf32>
    %276 = tpu.matmul %55, %275, %cst_104 {dimension_numbers = #tpu.dot_dimension_numbers<[1], [0], [0], [1], [0, 0, 1, 1], [], []>} : vector<2x8xbf16>, vector<8x256xbf16>, vector<2x256xf32> -> vector<2x256xf32>
    %cst_105 = arith.constant 5.000000e-01 : f32
    %277 = vector.broadcast %cst_105 : f32 to vector<1x256xf32>
    %278 = arith.mulf %277, %23 : vector<1x256xf32>
    %279 = vector.broadcast %278 : vector<1x256xf32> to vector<2x256xf32>
    %280 = arith.mulf %276, %279 : vector<2x256xf32>
    %281 = arith.maximumf %272, %280 : vector<2x256xf32>
    %c1_i32_106 = arith.constant 1 : i32
    %282 = tpu.dynamic_rotate %254 by %c1_i32_106 dim 1 : vector<8x256xf32>, i32 -> vector<8x256xf32>
    %283 = arith.mulf %253, %282 : vector<8x256xf32>
    %284 = arith.truncf %283 : vector<8x256xf32> to vector<8x256xbf16>
    %cst_107 = arith.constant dense<0.000000e+00> : vector<2x256xf32>
    %285 = tpu.matmul %55, %284, %cst_107 {dimension_numbers = #tpu.dot_dimension_numbers<[1], [0], [0], [1], [0, 0, 1, 1], [], []>} : vector<2x8xbf16>, vector<8x256xbf16>, vector<2x256xf32> -> vector<2x256xf32>
    %cst_108 = arith.constant 5.000000e-01 : f32
    %286 = vector.broadcast %cst_108 : f32 to vector<1x256xf32>
    %287 = arith.mulf %286, %28 : vector<1x256xf32>
    %288 = vector.broadcast %287 : vector<1x256xf32> to vector<2x256xf32>
    %289 = arith.mulf %285, %288 : vector<2x256xf32>
    %290 = arith.maximumf %281, %289 : vector<2x256xf32>
    %291 = arith.mulf %253, %254 : vector<8x256xf32>
    %292 = arith.truncf %291 : vector<8x256xf32> to vector<8x256xbf16>
    %cst_109 = arith.constant dense<0.000000e+00> : vector<2x256xf32>
    %293 = tpu.matmul %55, %292, %cst_109 {dimension_numbers = #tpu.dot_dimension_numbers<[1], [0], [0], [1], [0, 0, 1, 1], [], []>} : vector<2x8xbf16>, vector<8x256xbf16>, vector<2x256xf32> -> vector<2x256xf32>
    %cst_110 = arith.constant 5.000000e-01 : f32
    %294 = vector.broadcast %cst_110 : f32 to vector<2x256xf32>
    %295 = arith.mulf %293, %294 : vector<2x256xf32>
    %296 = arith.maximumf %290, %295 : vector<2x256xf32>
    %c255_i32_111 = arith.constant 255 : i32
    %297 = tpu.dynamic_rotate %254 by %c255_i32_111 dim 1 : vector<8x256xf32>, i32 -> vector<8x256xf32>
    %298 = arith.mulf %253, %297 : vector<8x256xf32>
    %299 = arith.truncf %298 : vector<8x256xf32> to vector<8x256xbf16>
    %cst_112 = arith.constant dense<0.000000e+00> : vector<2x256xf32>
    %300 = tpu.matmul %55, %299, %cst_112 {dimension_numbers = #tpu.dot_dimension_numbers<[1], [0], [0], [1], [0, 0, 1, 1], [], []>} : vector<2x8xbf16>, vector<8x256xbf16>, vector<2x256xf32> -> vector<2x256xf32>
    %cst_113 = arith.constant 5.000000e-01 : f32
    %301 = vector.broadcast %cst_113 : f32 to vector<1x256xf32>
    %302 = arith.mulf %301, %33 : vector<1x256xf32>
    %303 = vector.broadcast %302 : vector<1x256xf32> to vector<2x256xf32>
    %304 = arith.mulf %300, %303 : vector<2x256xf32>
    %305 = arith.maximumf %296, %304 : vector<2x256xf32>
    %c241_i32_114 = arith.constant 241 : i32
    %306 = tpu.dynamic_rotate %254 by %c241_i32_114 dim 1 : vector<8x256xf32>, i32 -> vector<8x256xf32>
    %307 = arith.mulf %253, %306 : vector<8x256xf32>
    %308 = arith.truncf %307 : vector<8x256xf32> to vector<8x256xbf16>
    %cst_115 = arith.constant dense<0.000000e+00> : vector<2x256xf32>
    %309 = tpu.matmul %55, %308, %cst_115 {dimension_numbers = #tpu.dot_dimension_numbers<[1], [0], [0], [1], [0, 0, 1, 1], [], []>} : vector<2x8xbf16>, vector<8x256xbf16>, vector<2x256xf32> -> vector<2x256xf32>
    %cst_116 = arith.constant 5.000000e-01 : f32
    %310 = vector.broadcast %cst_116 : f32 to vector<1x256xf32>
    %311 = arith.mulf %310, %41 : vector<1x256xf32>
    %312 = vector.broadcast %311 : vector<1x256xf32> to vector<2x256xf32>
    %313 = arith.mulf %309, %312 : vector<2x256xf32>
    %314 = arith.maximumf %305, %313 : vector<2x256xf32>
    %c240_i32_117 = arith.constant 240 : i32
    %315 = tpu.dynamic_rotate %254 by %c240_i32_117 dim 1 : vector<8x256xf32>, i32 -> vector<8x256xf32>
    %316 = arith.mulf %253, %315 : vector<8x256xf32>
    %317 = arith.truncf %316 : vector<8x256xf32> to vector<8x256xbf16>
    %cst_118 = arith.constant dense<0.000000e+00> : vector<2x256xf32>
    %318 = tpu.matmul %55, %317, %cst_118 {dimension_numbers = #tpu.dot_dimension_numbers<[1], [0], [0], [1], [0, 0, 1, 1], [], []>} : vector<2x8xbf16>, vector<8x256xbf16>, vector<2x256xf32> -> vector<2x256xf32>
    %cst_119 = arith.constant 5.000000e-01 : f32
    %319 = vector.broadcast %cst_119 : f32 to vector<1x256xf32>
    %320 = arith.mulf %319, %46 : vector<1x256xf32>
    %321 = vector.broadcast %320 : vector<1x256xf32> to vector<2x256xf32>
    %322 = arith.mulf %318, %321 : vector<2x256xf32>
    %323 = arith.maximumf %314, %322 : vector<2x256xf32>
    %c239_i32_120 = arith.constant 239 : i32
    %324 = tpu.dynamic_rotate %254 by %c239_i32_120 dim 1 : vector<8x256xf32>, i32 -> vector<8x256xf32>
    %325 = arith.mulf %253, %324 : vector<8x256xf32>
    %326 = arith.truncf %325 : vector<8x256xf32> to vector<8x256xbf16>
    %cst_121 = arith.constant dense<0.000000e+00> : vector<2x256xf32>
    %327 = tpu.matmul %55, %326, %cst_121 {dimension_numbers = #tpu.dot_dimension_numbers<[1], [0], [0], [1], [0, 0, 1, 1], [], []>} : vector<2x8xbf16>, vector<8x256xbf16>, vector<2x256xf32> -> vector<2x256xf32>
    %cst_122 = arith.constant 5.000000e-01 : f32
    %328 = vector.broadcast %cst_122 : f32 to vector<1x256xf32>
    %329 = arith.mulf %328, %54 : vector<1x256xf32>
    %330 = vector.broadcast %329 : vector<1x256xf32> to vector<2x256xf32>
    %331 = arith.mulf %327, %330 : vector<2x256xf32>
    %332 = arith.maximumf %323, %331 : vector<2x256xf32>
    %cst_123 = arith.constant 0.000000e+00 : f32
    %333 = vector.broadcast %cst_123 : f32 to vector<2x256xf32>
    %cst_124 = arith.constant 0.000000e+00 : f32
    %334 = vector.broadcast %cst_124 : f32 to vector<8x256xf32>
    %335 = arith.subf %263, %332 : vector<2x256xf32>
    %336 = math.exp %335 : vector<2x256xf32>
    %337 = arith.addf %333, %336 : vector<2x256xf32>
    %c17_i32_125 = arith.constant 17 : i32
    %338 = tpu.dynamic_rotate %255 by %c17_i32_125 dim 1 : vector<8x256xf32>, i32 -> vector<8x256xf32>
    %339 = vector.broadcast %10 : vector<1x256xf32> to vector<2x256xf32>
    %340 = arith.mulf %336, %339 : vector<2x256xf32>
    %341 = arith.truncf %340 : vector<2x256xf32> to vector<2x256xbf16>
    %cst_126 = arith.constant dense<0.000000e+00> : vector<8x256xf32>
    %342 = tpu.matmul %57, %341, %cst_126 {dimension_numbers = #tpu.dot_dimension_numbers<[1], [0], [0], [1], [0, 0, 1, 1], [], []>} : vector<8x2xbf16>, vector<2x256xbf16>, vector<8x256xf32> -> vector<8x256xf32>
    %343 = arith.mulf %342, %338 : vector<8x256xf32>
    %344 = arith.addf %334, %343 : vector<8x256xf32>
    %345 = arith.subf %271, %332 : vector<2x256xf32>
    %346 = math.exp %345 : vector<2x256xf32>
    %347 = arith.addf %337, %346 : vector<2x256xf32>
    %c16_i32_127 = arith.constant 16 : i32
    %348 = tpu.dynamic_rotate %255 by %c16_i32_127 dim 1 : vector<8x256xf32>, i32 -> vector<8x256xf32>
    %349 = vector.broadcast %15 : vector<1x256xf32> to vector<2x256xf32>
    %350 = arith.mulf %346, %349 : vector<2x256xf32>
    %351 = arith.truncf %350 : vector<2x256xf32> to vector<2x256xbf16>
    %cst_128 = arith.constant dense<0.000000e+00> : vector<8x256xf32>
    %352 = tpu.matmul %57, %351, %cst_128 {dimension_numbers = #tpu.dot_dimension_numbers<[1], [0], [0], [1], [0, 0, 1, 1], [], []>} : vector<8x2xbf16>, vector<2x256xbf16>, vector<8x256xf32> -> vector<8x256xf32>
    %353 = arith.mulf %352, %348 : vector<8x256xf32>
    %354 = arith.addf %344, %353 : vector<8x256xf32>
    %355 = arith.subf %280, %332 : vector<2x256xf32>
    %356 = math.exp %355 : vector<2x256xf32>
    %357 = arith.addf %347, %356 : vector<2x256xf32>
    %c15_i32_129 = arith.constant 15 : i32
    %358 = tpu.dynamic_rotate %255 by %c15_i32_129 dim 1 : vector<8x256xf32>, i32 -> vector<8x256xf32>
    %359 = vector.broadcast %23 : vector<1x256xf32> to vector<2x256xf32>
    %360 = arith.mulf %356, %359 : vector<2x256xf32>
    %361 = arith.truncf %360 : vector<2x256xf32> to vector<2x256xbf16>
    %cst_130 = arith.constant dense<0.000000e+00> : vector<8x256xf32>
    %362 = tpu.matmul %57, %361, %cst_130 {dimension_numbers = #tpu.dot_dimension_numbers<[1], [0], [0], [1], [0, 0, 1, 1], [], []>} : vector<8x2xbf16>, vector<2x256xbf16>, vector<8x256xf32> -> vector<8x256xf32>
    %363 = arith.mulf %362, %358 : vector<8x256xf32>
    %364 = arith.addf %354, %363 : vector<8x256xf32>
    %365 = arith.subf %289, %332 : vector<2x256xf32>
    %366 = math.exp %365 : vector<2x256xf32>
    %367 = arith.addf %357, %366 : vector<2x256xf32>
    %c1_i32_131 = arith.constant 1 : i32
    %368 = tpu.dynamic_rotate %255 by %c1_i32_131 dim 1 : vector<8x256xf32>, i32 -> vector<8x256xf32>
    %369 = vector.broadcast %28 : vector<1x256xf32> to vector<2x256xf32>
    %370 = arith.mulf %366, %369 : vector<2x256xf32>
    %371 = arith.truncf %370 : vector<2x256xf32> to vector<2x256xbf16>
    %cst_132 = arith.constant dense<0.000000e+00> : vector<8x256xf32>
    %372 = tpu.matmul %57, %371, %cst_132 {dimension_numbers = #tpu.dot_dimension_numbers<[1], [0], [0], [1], [0, 0, 1, 1], [], []>} : vector<8x2xbf16>, vector<2x256xbf16>, vector<8x256xf32> -> vector<8x256xf32>
    %373 = arith.mulf %372, %368 : vector<8x256xf32>
    %374 = arith.addf %364, %373 : vector<8x256xf32>
    %375 = arith.subf %295, %332 : vector<2x256xf32>
    %376 = math.exp %375 : vector<2x256xf32>
    %377 = arith.addf %367, %376 : vector<2x256xf32>
    %378 = arith.truncf %376 : vector<2x256xf32> to vector<2x256xbf16>
    %cst_133 = arith.constant dense<0.000000e+00> : vector<8x256xf32>
    %379 = tpu.matmul %57, %378, %cst_133 {dimension_numbers = #tpu.dot_dimension_numbers<[1], [0], [0], [1], [0, 0, 1, 1], [], []>} : vector<8x2xbf16>, vector<2x256xbf16>, vector<8x256xf32> -> vector<8x256xf32>
    %380 = arith.mulf %379, %255 : vector<8x256xf32>
    %381 = arith.addf %374, %380 : vector<8x256xf32>
    %382 = arith.subf %304, %332 : vector<2x256xf32>
    %383 = math.exp %382 : vector<2x256xf32>
    %384 = arith.addf %377, %383 : vector<2x256xf32>
    %c255_i32_134 = arith.constant 255 : i32
    %385 = tpu.dynamic_rotate %255 by %c255_i32_134 dim 1 : vector<8x256xf32>, i32 -> vector<8x256xf32>
    %386 = vector.broadcast %33 : vector<1x256xf32> to vector<2x256xf32>
    %387 = arith.mulf %383, %386 : vector<2x256xf32>
    %388 = arith.truncf %387 : vector<2x256xf32> to vector<2x256xbf16>
    %cst_135 = arith.constant dense<0.000000e+00> : vector<8x256xf32>
    %389 = tpu.matmul %57, %388, %cst_135 {dimension_numbers = #tpu.dot_dimension_numbers<[1], [0], [0], [1], [0, 0, 1, 1], [], []>} : vector<8x2xbf16>, vector<2x256xbf16>, vector<8x256xf32> -> vector<8x256xf32>
    %390 = arith.mulf %389, %385 : vector<8x256xf32>
    %391 = arith.addf %381, %390 : vector<8x256xf32>
    %392 = arith.subf %313, %332 : vector<2x256xf32>
    %393 = math.exp %392 : vector<2x256xf32>
    %394 = arith.addf %384, %393 : vector<2x256xf32>
    %c241_i32_136 = arith.constant 241 : i32
    %395 = tpu.dynamic_rotate %255 by %c241_i32_136 dim 1 : vector<8x256xf32>, i32 -> vector<8x256xf32>
    %396 = vector.broadcast %41 : vector<1x256xf32> to vector<2x256xf32>
    %397 = arith.mulf %393, %396 : vector<2x256xf32>
    %398 = arith.truncf %397 : vector<2x256xf32> to vector<2x256xbf16>
    %cst_137 = arith.constant dense<0.000000e+00> : vector<8x256xf32>
    %399 = tpu.matmul %57, %398, %cst_137 {dimension_numbers = #tpu.dot_dimension_numbers<[1], [0], [0], [1], [0, 0, 1, 1], [], []>} : vector<8x2xbf16>, vector<2x256xbf16>, vector<8x256xf32> -> vector<8x256xf32>
    %400 = arith.mulf %399, %395 : vector<8x256xf32>
    %401 = arith.addf %391, %400 : vector<8x256xf32>
    %402 = arith.subf %322, %332 : vector<2x256xf32>
    %403 = math.exp %402 : vector<2x256xf32>
    %404 = arith.addf %394, %403 : vector<2x256xf32>
    %c240_i32_138 = arith.constant 240 : i32
    %405 = tpu.dynamic_rotate %255 by %c240_i32_138 dim 1 : vector<8x256xf32>, i32 -> vector<8x256xf32>
    %406 = vector.broadcast %46 : vector<1x256xf32> to vector<2x256xf32>
    %407 = arith.mulf %403, %406 : vector<2x256xf32>
    %408 = arith.truncf %407 : vector<2x256xf32> to vector<2x256xbf16>
    %cst_139 = arith.constant dense<0.000000e+00> : vector<8x256xf32>
    %409 = tpu.matmul %57, %408, %cst_139 {dimension_numbers = #tpu.dot_dimension_numbers<[1], [0], [0], [1], [0, 0, 1, 1], [], []>} : vector<8x2xbf16>, vector<2x256xbf16>, vector<8x256xf32> -> vector<8x256xf32>
    %410 = arith.mulf %409, %405 : vector<8x256xf32>
    %411 = arith.addf %401, %410 : vector<8x256xf32>
    %412 = arith.subf %331, %332 : vector<2x256xf32>
    %413 = math.exp %412 : vector<2x256xf32>
    %414 = arith.addf %404, %413 : vector<2x256xf32>
    %c239_i32_140 = arith.constant 239 : i32
    %415 = tpu.dynamic_rotate %255 by %c239_i32_140 dim 1 : vector<8x256xf32>, i32 -> vector<8x256xf32>
    %416 = vector.broadcast %54 : vector<1x256xf32> to vector<2x256xf32>
    %417 = arith.mulf %413, %416 : vector<2x256xf32>
    %418 = arith.truncf %417 : vector<2x256xf32> to vector<2x256xbf16>
    %cst_141 = arith.constant dense<0.000000e+00> : vector<8x256xf32>
    %419 = tpu.matmul %57, %418, %cst_141 {dimension_numbers = #tpu.dot_dimension_numbers<[1], [0], [0], [1], [0, 0, 1, 1], [], []>} : vector<8x2xbf16>, vector<2x256xbf16>, vector<8x256xf32> -> vector<8x256xf32>
    %420 = arith.mulf %419, %415 : vector<8x256xf32>
    %421 = arith.addf %411, %420 : vector<8x256xf32>
    %422 = tpu.reciprocal %414 : vector<2x256xf32> -> vector<2x256xf32>
    %cst_142 = arith.constant dense<0.000000e+00> : vector<8x256xf32>
    %423 = tpu.matmul %56, %422, %cst_142 {dimension_numbers = #tpu.dot_dimension_numbers<[1], [0], [0], [1], [0, 0, 1, 1], [], []>} : vector<8x2xf32>, vector<2x256xf32>, vector<8x256xf32> -> vector<8x256xf32>
    %424 = arith.mulf %421, %423 : vector<8x256xf32>
    %425 = arith.truncf %424 : vector<8x256xf32> to vector<8x256xbf16>
    %cst_143 = arith.constant dense<0.000000e+00> : vector<8x256xf32>
    %426 = tpu.matmul %71, %425, %cst_143 {dimension_numbers = #tpu.dot_dimension_numbers<[1], [0], [0], [1], [0, 0, 1, 1], [], []>} : vector<8x8xbf16>, vector<8x256xbf16>, vector<8x256xf32> -> vector<8x256xf32>
    %427 = arith.addf %426, %61 : vector<8x256xf32>
    %cst_144 = arith.constant dense<0.000000e+00> : vector<8xf32>
    %428 = vector.multi_reduction <add>, %250, %cst_144 [1] : vector<8x256xf32> to vector<8xf32>
    %429 = vector.shape_cast %428 : vector<8xf32> to vector<8x1xf32>
    %cst_145 = arith.constant 0.000000e+00 : f32
    %430 = vector.broadcast %cst_145 : f32 to vector<8x1xf32>
    %431 = arith.addf %430, %429 : vector<8x1xf32>
    %cst_146 = arith.constant dense<0.000000e+00> : vector<8xf32>
    %432 = vector.multi_reduction <add>, %427, %cst_146 [1] : vector<8x256xf32> to vector<8xf32>
    %433 = vector.shape_cast %432 : vector<8xf32> to vector<8x1xf32>
    %434 = arith.addf %431, %433 : vector<8x1xf32>
    %cst_147 = arith.constant 0.001953125 : f32
    %435 = vector.broadcast %cst_147 : f32 to vector<8x1xf32>
    %436 = arith.mulf %434, %435 : vector<8x1xf32>
    %437 = vector.broadcast %436 : vector<8x1xf32> to vector<8x256xf32>
    %438 = arith.subf %250, %437 : vector<8x256xf32>
    %439 = arith.mulf %438, %438 : vector<8x256xf32>
    %cst_148 = arith.constant dense<0.000000e+00> : vector<8xf32>
    %440 = vector.multi_reduction <add>, %439, %cst_148 [1] : vector<8x256xf32> to vector<8xf32>
    %441 = vector.shape_cast %440 : vector<8xf32> to vector<8x1xf32>
    %cst_149 = arith.constant 0.000000e+00 : f32
    %442 = vector.broadcast %cst_149 : f32 to vector<8x1xf32>
    %443 = arith.addf %442, %441 : vector<8x1xf32>
    %444 = vector.broadcast %436 : vector<8x1xf32> to vector<8x256xf32>
    %445 = arith.subf %427, %444 : vector<8x256xf32>
    %446 = arith.mulf %445, %445 : vector<8x256xf32>
    %cst_150 = arith.constant dense<0.000000e+00> : vector<8xf32>
    %447 = vector.multi_reduction <add>, %446, %cst_150 [1] : vector<8x256xf32> to vector<8xf32>
    %448 = vector.shape_cast %447 : vector<8xf32> to vector<8x1xf32>
    %449 = arith.addf %443, %448 : vector<8x1xf32>
    %cst_151 = arith.constant 0.001953125 : f32
    %450 = vector.broadcast %cst_151 : f32 to vector<8x1xf32>
    %451 = arith.mulf %449, %450 : vector<8x1xf32>
    %cst_152 = arith.constant 9.99999974E-6 : f32
    %452 = vector.broadcast %cst_152 : f32 to vector<8x1xf32>
    %453 = arith.addf %451, %452 : vector<8x1xf32>
    %454 = math.rsqrt %453 : vector<8x1xf32>
    %455 = arith.mulf %72, %454 : vector<8x1xf32>
    %456 = arith.mulf %436, %455 : vector<8x1xf32>
    %457 = arith.subf %73, %456 : vector<8x1xf32>
    %458 = vector.broadcast %455 : vector<8x1xf32> to vector<8x256xf32>
    %459 = arith.mulf %250, %458 : vector<8x256xf32>
    %460 = vector.broadcast %457 : vector<8x1xf32> to vector<8x256xf32>
    %461 = arith.addf %459, %460 : vector<8x256xf32>
    %462 = vector.broadcast %455 : vector<8x1xf32> to vector<8x256xf32>
    %463 = arith.mulf %427, %462 : vector<8x256xf32>
    %464 = vector.broadcast %457 : vector<8x1xf32> to vector<8x256xf32>
    %465 = arith.addf %463, %464 : vector<8x256xf32>
    %c1_153 = arith.constant 1 : index
    %c0_154 = arith.constant 0 : index
    %c0_155 = arith.constant 0 : index
    %466 = vector.load %arg12[%c1_153, %c0_154, %c0_155] : memref<5x8x2xf32, #tpu.memory_space<vmem>>, vector<1x8x2xf32>
    %467 = vector.shape_cast %466 : vector<1x8x2xf32> to vector<8x2xf32>
    %c0_156 = arith.constant 0 : index
    %c0_157 = arith.constant 0 : index
    %c0_158 = arith.constant 0 : index
    %468 = vector.load %arg8[%c0_156, %c0_157, %c0_158] : memref<2x8x8xbf16, #tpu.memory_space<vmem>>, vector<1x8x8xbf16>
    %469 = vector.shape_cast %468 : vector<1x8x8xbf16> to vector<8x8xbf16>
    %c0_159 = arith.constant 0 : index
    %c0_160 = arith.constant 0 : index
    %c0_161 = arith.constant 0 : index
    %470 = vector.load %arg9[%c0_159, %c0_160, %c0_161] : memref<2x8x1xf32, #tpu.memory_space<vmem>>, vector<1x8x1xf32>
    %471 = vector.shape_cast %470 : vector<1x8x1xf32> to vector<8x1xf32>
    %c0_162 = arith.constant 0 : index
    %c0_163 = arith.constant 0 : index
    %c0_164 = arith.constant 0 : index
    %472 = vector.load %arg10[%c0_162, %c0_163, %c0_164] : memref<2x8x8xbf16, #tpu.memory_space<vmem>>, vector<1x8x8xbf16>
    %473 = vector.shape_cast %472 : vector<1x8x8xbf16> to vector<8x8xbf16>
    %c0_165 = arith.constant 0 : index
    %c0_166 = arith.constant 0 : index
    %c0_167 = arith.constant 0 : index
    %474 = vector.load %arg11[%c0_165, %c0_166, %c0_167] : memref<2x8x1xf32, #tpu.memory_space<vmem>>, vector<1x8x1xf32>
    %475 = vector.shape_cast %474 : vector<1x8x1xf32> to vector<8x1xf32>
    %476 = vector.extract_strided_slice %467 {offsets = [0, 0], sizes = [8, 1], strides = [1, 1]} : vector<8x2xf32> to vector<8x1xf32>
    %477 = vector.extract_strided_slice %467 {offsets = [0, 1], sizes = [8, 1], strides = [1, 1]} : vector<8x2xf32> to vector<8x1xf32>
    %478 = arith.truncf %461 : vector<8x256xf32> to vector<8x256xbf16>
    %cst_168 = arith.constant dense<0.000000e+00> : vector<8x256xf32>
    %479 = tpu.matmul %469, %478, %cst_168 {dimension_numbers = #tpu.dot_dimension_numbers<[1], [0], [0], [1], [0, 0, 1, 1], [], []>} : vector<8x8xbf16>, vector<8x256xbf16>, vector<8x256xf32> -> vector<8x256xf32>
    %480 = vector.broadcast %471 : vector<8x1xf32> to vector<8x256xf32>
    %481 = arith.addf %479, %480 : vector<8x256xf32>
    %cst_169 = arith.constant 0.000000e+00 : f32
    %482 = vector.broadcast %cst_169 : f32 to vector<8x256xf32>
    %483 = arith.maximumf %481, %482 : vector<8x256xf32>
    %484 = arith.truncf %483 : vector<8x256xf32> to vector<8x256xbf16>
    %cst_170 = arith.constant dense<0.000000e+00> : vector<8x256xf32>
    %485 = tpu.matmul %473, %484, %cst_170 {dimension_numbers = #tpu.dot_dimension_numbers<[1], [0], [0], [1], [0, 0, 1, 1], [], []>} : vector<8x8xbf16>, vector<8x256xbf16>, vector<8x256xf32> -> vector<8x256xf32>
    %486 = vector.broadcast %475 : vector<8x1xf32> to vector<8x256xf32>
    %487 = arith.addf %485, %486 : vector<8x256xf32>
    %488 = arith.truncf %465 : vector<8x256xf32> to vector<8x256xbf16>
    %cst_171 = arith.constant dense<0.000000e+00> : vector<8x256xf32>
    %489 = tpu.matmul %469, %488, %cst_171 {dimension_numbers = #tpu.dot_dimension_numbers<[1], [0], [0], [1], [0, 0, 1, 1], [], []>} : vector<8x8xbf16>, vector<8x256xbf16>, vector<8x256xf32> -> vector<8x256xf32>
    %490 = vector.broadcast %471 : vector<8x1xf32> to vector<8x256xf32>
    %491 = arith.addf %489, %490 : vector<8x256xf32>
    %cst_172 = arith.constant 0.000000e+00 : f32
    %492 = vector.broadcast %cst_172 : f32 to vector<8x256xf32>
    %493 = arith.maximumf %491, %492 : vector<8x256xf32>
    %494 = arith.truncf %493 : vector<8x256xf32> to vector<8x256xbf16>
    %cst_173 = arith.constant dense<0.000000e+00> : vector<8x256xf32>
    %495 = tpu.matmul %473, %494, %cst_173 {dimension_numbers = #tpu.dot_dimension_numbers<[1], [0], [0], [1], [0, 0, 1, 1], [], []>} : vector<8x8xbf16>, vector<8x256xbf16>, vector<8x256xf32> -> vector<8x256xf32>
    %496 = vector.broadcast %475 : vector<8x1xf32> to vector<8x256xf32>
    %497 = arith.addf %495, %496 : vector<8x256xf32>
    %cst_174 = arith.constant dense<0.000000e+00> : vector<8xf32>
    %498 = vector.multi_reduction <add>, %487, %cst_174 [1] : vector<8x256xf32> to vector<8xf32>
    %499 = vector.shape_cast %498 : vector<8xf32> to vector<8x1xf32>
    %cst_175 = arith.constant 0.000000e+00 : f32
    %500 = vector.broadcast %cst_175 : f32 to vector<8x1xf32>
    %501 = arith.addf %500, %499 : vector<8x1xf32>
    %cst_176 = arith.constant dense<0.000000e+00> : vector<8xf32>
    %502 = vector.multi_reduction <add>, %497, %cst_176 [1] : vector<8x256xf32> to vector<8xf32>
    %503 = vector.shape_cast %502 : vector<8xf32> to vector<8x1xf32>
    %504 = arith.addf %501, %503 : vector<8x1xf32>
    %cst_177 = arith.constant 0.001953125 : f32
    %505 = vector.broadcast %cst_177 : f32 to vector<8x1xf32>
    %506 = arith.mulf %504, %505 : vector<8x1xf32>
    %507 = vector.broadcast %506 : vector<8x1xf32> to vector<8x256xf32>
    %508 = arith.subf %487, %507 : vector<8x256xf32>
    %509 = arith.mulf %508, %508 : vector<8x256xf32>
    %cst_178 = arith.constant dense<0.000000e+00> : vector<8xf32>
    %510 = vector.multi_reduction <add>, %509, %cst_178 [1] : vector<8x256xf32> to vector<8xf32>
    %511 = vector.shape_cast %510 : vector<8xf32> to vector<8x1xf32>
    %cst_179 = arith.constant 0.000000e+00 : f32
    %512 = vector.broadcast %cst_179 : f32 to vector<8x1xf32>
    %513 = arith.addf %512, %511 : vector<8x1xf32>
    %514 = vector.broadcast %506 : vector<8x1xf32> to vector<8x256xf32>
    %515 = arith.subf %497, %514 : vector<8x256xf32>
    %516 = arith.mulf %515, %515 : vector<8x256xf32>
    %cst_180 = arith.constant dense<0.000000e+00> : vector<8xf32>
    %517 = vector.multi_reduction <add>, %516, %cst_180 [1] : vector<8x256xf32> to vector<8xf32>
    %518 = vector.shape_cast %517 : vector<8xf32> to vector<8x1xf32>
    %519 = arith.addf %513, %518 : vector<8x1xf32>
    %cst_181 = arith.constant 0.001953125 : f32
    %520 = vector.broadcast %cst_181 : f32 to vector<8x1xf32>
    %521 = arith.mulf %519, %520 : vector<8x1xf32>
    %cst_182 = arith.constant 9.99999974E-6 : f32
    %522 = vector.broadcast %cst_182 : f32 to vector<8x1xf32>
    %523 = arith.addf %521, %522 : vector<8x1xf32>
    %524 = math.rsqrt %523 : vector<8x1xf32>
    %525 = arith.mulf %476, %524 : vector<8x1xf32>
    %526 = arith.mulf %506, %525 : vector<8x1xf32>
    %527 = arith.subf %477, %526 : vector<8x1xf32>
    %528 = vector.broadcast %525 : vector<8x1xf32> to vector<8x256xf32>
    %529 = arith.mulf %487, %528 : vector<8x256xf32>
    %530 = vector.broadcast %527 : vector<8x1xf32> to vector<8x256xf32>
    %531 = arith.addf %529, %530 : vector<8x256xf32>
    %532 = vector.broadcast %525 : vector<8x1xf32> to vector<8x256xf32>
    %533 = arith.mulf %497, %532 : vector<8x256xf32>
    %534 = vector.broadcast %527 : vector<8x1xf32> to vector<8x256xf32>
    %535 = arith.addf %533, %534 : vector<8x256xf32>
    %536 = arith.addf %531, %461 : vector<8x256xf32>
    %537 = arith.addf %535, %465 : vector<8x256xf32>
    %c2 = arith.constant 2 : index
    %c0_183 = arith.constant 0 : index
    %c0_184 = arith.constant 0 : index
    %538 = vector.load %arg12[%c2, %c0_183, %c0_184] : memref<5x8x2xf32, #tpu.memory_space<vmem>>, vector<1x8x2xf32>
    %539 = vector.shape_cast %538 : vector<1x8x2xf32> to vector<8x2xf32>
    %c1_185 = arith.constant 1 : index
    %c0_186 = arith.constant 0 : index
    %c0_187 = arith.constant 0 : index
    %540 = vector.load %arg6[%c1_185, %c0_186, %c0_187] : memref<3x24x8xbf16, #tpu.memory_space<vmem>>, vector<1x24x8xbf16>
    %541 = vector.shape_cast %540 : vector<1x24x8xbf16> to vector<24x8xbf16>
    %c1_188 = arith.constant 1 : index
    %c0_189 = arith.constant 0 : index
    %c0_190 = arith.constant 0 : index
    %542 = vector.load %arg7[%c1_188, %c0_189, %c0_190] : memref<3x8x8xbf16, #tpu.memory_space<vmem>>, vector<1x8x8xbf16>
    %543 = vector.shape_cast %542 : vector<1x8x8xbf16> to vector<8x8xbf16>
    %544 = vector.extract_strided_slice %539 {offsets = [0, 0], sizes = [8, 1], strides = [1, 1]} : vector<8x2xf32> to vector<8x1xf32>
    %545 = vector.extract_strided_slice %539 {offsets = [0, 1], sizes = [8, 1], strides = [1, 1]} : vector<8x2xf32> to vector<8x1xf32>
    %546 = arith.truncf %63 : vector<8x256xf32> to vector<8x256xbf16>
    %cst_191 = arith.constant dense<0.000000e+00> : vector<24x256xf32>
    %547 = tpu.matmul %541, %546, %cst_191 {dimension_numbers = #tpu.dot_dimension_numbers<[1], [0], [0], [1], [0, 0, 1, 1], [], []>} : vector<24x8xbf16>, vector<8x256xbf16>, vector<24x256xf32> -> vector<24x256xf32>
    %548 = vector.extract_strided_slice %547 {offsets = [0, 0], sizes = [8, 256], strides = [1, 1]} : vector<24x256xf32> to vector<8x256xf32>
    %549 = vector.extract_strided_slice %547 {offsets = [8, 0], sizes = [8, 256], strides = [1, 1]} : vector<24x256xf32> to vector<8x256xf32>
    %550 = vector.extract_strided_slice %547 {offsets = [16, 0], sizes = [8, 256], strides = [1, 1]} : vector<24x256xf32> to vector<8x256xf32>
    %c17_i32_192 = arith.constant 17 : i32
    %551 = tpu.dynamic_rotate %549 by %c17_i32_192 dim 1 : vector<8x256xf32>, i32 -> vector<8x256xf32>
    %552 = arith.mulf %548, %551 : vector<8x256xf32>
    %553 = arith.truncf %552 : vector<8x256xf32> to vector<8x256xbf16>
    %cst_193 = arith.constant dense<0.000000e+00> : vector<2x256xf32>
    %554 = tpu.matmul %55, %553, %cst_193 {dimension_numbers = #tpu.dot_dimension_numbers<[1], [0], [0], [1], [0, 0, 1, 1], [], []>} : vector<2x8xbf16>, vector<8x256xbf16>, vector<2x256xf32> -> vector<2x256xf32>
    %cst_194 = arith.constant 5.000000e-01 : f32
    %555 = vector.broadcast %cst_194 : f32 to vector<1x256xf32>
    %556 = arith.mulf %555, %10 : vector<1x256xf32>
    %557 = vector.broadcast %556 : vector<1x256xf32> to vector<2x256xf32>
    %558 = arith.mulf %554, %557 : vector<2x256xf32>
    %c16_i32_195 = arith.constant 16 : i32
    %559 = tpu.dynamic_rotate %549 by %c16_i32_195 dim 1 : vector<8x256xf32>, i32 -> vector<8x256xf32>
    %560 = arith.mulf %548, %559 : vector<8x256xf32>
    %561 = arith.truncf %560 : vector<8x256xf32> to vector<8x256xbf16>
    %cst_196 = arith.constant dense<0.000000e+00> : vector<2x256xf32>
    %562 = tpu.matmul %55, %561, %cst_196 {dimension_numbers = #tpu.dot_dimension_numbers<[1], [0], [0], [1], [0, 0, 1, 1], [], []>} : vector<2x8xbf16>, vector<8x256xbf16>, vector<2x256xf32> -> vector<2x256xf32>
    %cst_197 = arith.constant 5.000000e-01 : f32
    %563 = vector.broadcast %cst_197 : f32 to vector<1x256xf32>
    %564 = arith.mulf %563, %15 : vector<1x256xf32>
    %565 = vector.broadcast %564 : vector<1x256xf32> to vector<2x256xf32>
    %566 = arith.mulf %562, %565 : vector<2x256xf32>
    %567 = arith.maximumf %558, %566 : vector<2x256xf32>
    %c15_i32_198 = arith.constant 15 : i32
    %568 = tpu.dynamic_rotate %549 by %c15_i32_198 dim 1 : vector<8x256xf32>, i32 -> vector<8x256xf32>
    %569 = arith.mulf %548, %568 : vector<8x256xf32>
    %570 = arith.truncf %569 : vector<8x256xf32> to vector<8x256xbf16>
    %cst_199 = arith.constant dense<0.000000e+00> : vector<2x256xf32>
    %571 = tpu.matmul %55, %570, %cst_199 {dimension_numbers = #tpu.dot_dimension_numbers<[1], [0], [0], [1], [0, 0, 1, 1], [], []>} : vector<2x8xbf16>, vector<8x256xbf16>, vector<2x256xf32> -> vector<2x256xf32>
    %cst_200 = arith.constant 5.000000e-01 : f32
    %572 = vector.broadcast %cst_200 : f32 to vector<1x256xf32>
    %573 = arith.mulf %572, %23 : vector<1x256xf32>
    %574 = vector.broadcast %573 : vector<1x256xf32> to vector<2x256xf32>
    %575 = arith.mulf %571, %574 : vector<2x256xf32>
    %576 = arith.maximumf %567, %575 : vector<2x256xf32>
    %c1_i32_201 = arith.constant 1 : i32
    %577 = tpu.dynamic_rotate %549 by %c1_i32_201 dim 1 : vector<8x256xf32>, i32 -> vector<8x256xf32>
    %578 = arith.mulf %548, %577 : vector<8x256xf32>
    %579 = arith.truncf %578 : vector<8x256xf32> to vector<8x256xbf16>
    %cst_202 = arith.constant dense<0.000000e+00> : vector<2x256xf32>
    %580 = tpu.matmul %55, %579, %cst_202 {dimension_numbers = #tpu.dot_dimension_numbers<[1], [0], [0], [1], [0, 0, 1, 1], [], []>} : vector<2x8xbf16>, vector<8x256xbf16>, vector<2x256xf32> -> vector<2x256xf32>
    %cst_203 = arith.constant 5.000000e-01 : f32
    %581 = vector.broadcast %cst_203 : f32 to vector<1x256xf32>
    %582 = arith.mulf %581, %28 : vector<1x256xf32>
    %583 = vector.broadcast %582 : vector<1x256xf32> to vector<2x256xf32>
    %584 = arith.mulf %580, %583 : vector<2x256xf32>
    %585 = arith.maximumf %576, %584 : vector<2x256xf32>
    %586 = arith.mulf %548, %549 : vector<8x256xf32>
    %587 = arith.truncf %586 : vector<8x256xf32> to vector<8x256xbf16>
    %cst_204 = arith.constant dense<0.000000e+00> : vector<2x256xf32>
    %588 = tpu.matmul %55, %587, %cst_204 {dimension_numbers = #tpu.dot_dimension_numbers<[1], [0], [0], [1], [0, 0, 1, 1], [], []>} : vector<2x8xbf16>, vector<8x256xbf16>, vector<2x256xf32> -> vector<2x256xf32>
    %cst_205 = arith.constant 5.000000e-01 : f32
    %589 = vector.broadcast %cst_205 : f32 to vector<2x256xf32>
    %590 = arith.mulf %588, %589 : vector<2x256xf32>
    %591 = arith.maximumf %585, %590 : vector<2x256xf32>
    %c255_i32_206 = arith.constant 255 : i32
    %592 = tpu.dynamic_rotate %549 by %c255_i32_206 dim 1 : vector<8x256xf32>, i32 -> vector<8x256xf32>
    %593 = arith.mulf %548, %592 : vector<8x256xf32>
    %594 = arith.truncf %593 : vector<8x256xf32> to vector<8x256xbf16>
    %cst_207 = arith.constant dense<0.000000e+00> : vector<2x256xf32>
    %595 = tpu.matmul %55, %594, %cst_207 {dimension_numbers = #tpu.dot_dimension_numbers<[1], [0], [0], [1], [0, 0, 1, 1], [], []>} : vector<2x8xbf16>, vector<8x256xbf16>, vector<2x256xf32> -> vector<2x256xf32>
    %cst_208 = arith.constant 5.000000e-01 : f32
    %596 = vector.broadcast %cst_208 : f32 to vector<1x256xf32>
    %597 = arith.mulf %596, %33 : vector<1x256xf32>
    %598 = vector.broadcast %597 : vector<1x256xf32> to vector<2x256xf32>
    %599 = arith.mulf %595, %598 : vector<2x256xf32>
    %600 = arith.maximumf %591, %599 : vector<2x256xf32>
    %c241_i32_209 = arith.constant 241 : i32
    %601 = tpu.dynamic_rotate %549 by %c241_i32_209 dim 1 : vector<8x256xf32>, i32 -> vector<8x256xf32>
    %602 = arith.mulf %548, %601 : vector<8x256xf32>
    %603 = arith.truncf %602 : vector<8x256xf32> to vector<8x256xbf16>
    %cst_210 = arith.constant dense<0.000000e+00> : vector<2x256xf32>
    %604 = tpu.matmul %55, %603, %cst_210 {dimension_numbers = #tpu.dot_dimension_numbers<[1], [0], [0], [1], [0, 0, 1, 1], [], []>} : vector<2x8xbf16>, vector<8x256xbf16>, vector<2x256xf32> -> vector<2x256xf32>
    %cst_211 = arith.constant 5.000000e-01 : f32
    %605 = vector.broadcast %cst_211 : f32 to vector<1x256xf32>
    %606 = arith.mulf %605, %41 : vector<1x256xf32>
    %607 = vector.broadcast %606 : vector<1x256xf32> to vector<2x256xf32>
    %608 = arith.mulf %604, %607 : vector<2x256xf32>
    %609 = arith.maximumf %600, %608 : vector<2x256xf32>
    %c240_i32_212 = arith.constant 240 : i32
    %610 = tpu.dynamic_rotate %549 by %c240_i32_212 dim 1 : vector<8x256xf32>, i32 -> vector<8x256xf32>
    %611 = arith.mulf %548, %610 : vector<8x256xf32>
    %612 = arith.truncf %611 : vector<8x256xf32> to vector<8x256xbf16>
    %cst_213 = arith.constant dense<0.000000e+00> : vector<2x256xf32>
    %613 = tpu.matmul %55, %612, %cst_213 {dimension_numbers = #tpu.dot_dimension_numbers<[1], [0], [0], [1], [0, 0, 1, 1], [], []>} : vector<2x8xbf16>, vector<8x256xbf16>, vector<2x256xf32> -> vector<2x256xf32>
    %cst_214 = arith.constant 5.000000e-01 : f32
    %614 = vector.broadcast %cst_214 : f32 to vector<1x256xf32>
    %615 = arith.mulf %614, %46 : vector<1x256xf32>
    %616 = vector.broadcast %615 : vector<1x256xf32> to vector<2x256xf32>
    %617 = arith.mulf %613, %616 : vector<2x256xf32>
    %618 = arith.maximumf %609, %617 : vector<2x256xf32>
    %c239_i32_215 = arith.constant 239 : i32
    %619 = tpu.dynamic_rotate %549 by %c239_i32_215 dim 1 : vector<8x256xf32>, i32 -> vector<8x256xf32>
    %620 = arith.mulf %548, %619 : vector<8x256xf32>
    %621 = arith.truncf %620 : vector<8x256xf32> to vector<8x256xbf16>
    %cst_216 = arith.constant dense<0.000000e+00> : vector<2x256xf32>
    %622 = tpu.matmul %55, %621, %cst_216 {dimension_numbers = #tpu.dot_dimension_numbers<[1], [0], [0], [1], [0, 0, 1, 1], [], []>} : vector<2x8xbf16>, vector<8x256xbf16>, vector<2x256xf32> -> vector<2x256xf32>
    %cst_217 = arith.constant 5.000000e-01 : f32
    %623 = vector.broadcast %cst_217 : f32 to vector<1x256xf32>
    %624 = arith.mulf %623, %54 : vector<1x256xf32>
    %625 = vector.broadcast %624 : vector<1x256xf32> to vector<2x256xf32>
    %626 = arith.mulf %622, %625 : vector<2x256xf32>
    %627 = arith.maximumf %618, %626 : vector<2x256xf32>
    %cst_218 = arith.constant 0.000000e+00 : f32
    %628 = vector.broadcast %cst_218 : f32 to vector<2x256xf32>
    %cst_219 = arith.constant 0.000000e+00 : f32
    %629 = vector.broadcast %cst_219 : f32 to vector<8x256xf32>
    %630 = arith.subf %558, %627 : vector<2x256xf32>
    %631 = math.exp %630 : vector<2x256xf32>
    %632 = arith.addf %628, %631 : vector<2x256xf32>
    %c17_i32_220 = arith.constant 17 : i32
    %633 = tpu.dynamic_rotate %550 by %c17_i32_220 dim 1 : vector<8x256xf32>, i32 -> vector<8x256xf32>
    %634 = vector.broadcast %10 : vector<1x256xf32> to vector<2x256xf32>
    %635 = arith.mulf %631, %634 : vector<2x256xf32>
    %636 = arith.truncf %635 : vector<2x256xf32> to vector<2x256xbf16>
    %cst_221 = arith.constant dense<0.000000e+00> : vector<8x256xf32>
    %637 = tpu.matmul %57, %636, %cst_221 {dimension_numbers = #tpu.dot_dimension_numbers<[1], [0], [0], [1], [0, 0, 1, 1], [], []>} : vector<8x2xbf16>, vector<2x256xbf16>, vector<8x256xf32> -> vector<8x256xf32>
    %638 = arith.mulf %637, %633 : vector<8x256xf32>
    %639 = arith.addf %629, %638 : vector<8x256xf32>
    %640 = arith.subf %566, %627 : vector<2x256xf32>
    %641 = math.exp %640 : vector<2x256xf32>
    %642 = arith.addf %632, %641 : vector<2x256xf32>
    %c16_i32_222 = arith.constant 16 : i32
    %643 = tpu.dynamic_rotate %550 by %c16_i32_222 dim 1 : vector<8x256xf32>, i32 -> vector<8x256xf32>
    %644 = vector.broadcast %15 : vector<1x256xf32> to vector<2x256xf32>
    %645 = arith.mulf %641, %644 : vector<2x256xf32>
    %646 = arith.truncf %645 : vector<2x256xf32> to vector<2x256xbf16>
    %cst_223 = arith.constant dense<0.000000e+00> : vector<8x256xf32>
    %647 = tpu.matmul %57, %646, %cst_223 {dimension_numbers = #tpu.dot_dimension_numbers<[1], [0], [0], [1], [0, 0, 1, 1], [], []>} : vector<8x2xbf16>, vector<2x256xbf16>, vector<8x256xf32> -> vector<8x256xf32>
    %648 = arith.mulf %647, %643 : vector<8x256xf32>
    %649 = arith.addf %639, %648 : vector<8x256xf32>
    %650 = arith.subf %575, %627 : vector<2x256xf32>
    %651 = math.exp %650 : vector<2x256xf32>
    %652 = arith.addf %642, %651 : vector<2x256xf32>
    %c15_i32_224 = arith.constant 15 : i32
    %653 = tpu.dynamic_rotate %550 by %c15_i32_224 dim 1 : vector<8x256xf32>, i32 -> vector<8x256xf32>
    %654 = vector.broadcast %23 : vector<1x256xf32> to vector<2x256xf32>
    %655 = arith.mulf %651, %654 : vector<2x256xf32>
    %656 = arith.truncf %655 : vector<2x256xf32> to vector<2x256xbf16>
    %cst_225 = arith.constant dense<0.000000e+00> : vector<8x256xf32>
    %657 = tpu.matmul %57, %656, %cst_225 {dimension_numbers = #tpu.dot_dimension_numbers<[1], [0], [0], [1], [0, 0, 1, 1], [], []>} : vector<8x2xbf16>, vector<2x256xbf16>, vector<8x256xf32> -> vector<8x256xf32>
    %658 = arith.mulf %657, %653 : vector<8x256xf32>
    %659 = arith.addf %649, %658 : vector<8x256xf32>
    %660 = arith.subf %584, %627 : vector<2x256xf32>
    %661 = math.exp %660 : vector<2x256xf32>
    %662 = arith.addf %652, %661 : vector<2x256xf32>
    %c1_i32_226 = arith.constant 1 : i32
    %663 = tpu.dynamic_rotate %550 by %c1_i32_226 dim 1 : vector<8x256xf32>, i32 -> vector<8x256xf32>
    %664 = vector.broadcast %28 : vector<1x256xf32> to vector<2x256xf32>
    %665 = arith.mulf %661, %664 : vector<2x256xf32>
    %666 = arith.truncf %665 : vector<2x256xf32> to vector<2x256xbf16>
    %cst_227 = arith.constant dense<0.000000e+00> : vector<8x256xf32>
    %667 = tpu.matmul %57, %666, %cst_227 {dimension_numbers = #tpu.dot_dimension_numbers<[1], [0], [0], [1], [0, 0, 1, 1], [], []>} : vector<8x2xbf16>, vector<2x256xbf16>, vector<8x256xf32> -> vector<8x256xf32>
    %668 = arith.mulf %667, %663 : vector<8x256xf32>
    %669 = arith.addf %659, %668 : vector<8x256xf32>
    %670 = arith.subf %590, %627 : vector<2x256xf32>
    %671 = math.exp %670 : vector<2x256xf32>
    %672 = arith.addf %662, %671 : vector<2x256xf32>
    %673 = arith.truncf %671 : vector<2x256xf32> to vector<2x256xbf16>
    %cst_228 = arith.constant dense<0.000000e+00> : vector<8x256xf32>
    %674 = tpu.matmul %57, %673, %cst_228 {dimension_numbers = #tpu.dot_dimension_numbers<[1], [0], [0], [1], [0, 0, 1, 1], [], []>} : vector<8x2xbf16>, vector<2x256xbf16>, vector<8x256xf32> -> vector<8x256xf32>
    %675 = arith.mulf %674, %550 : vector<8x256xf32>
    %676 = arith.addf %669, %675 : vector<8x256xf32>
    %677 = arith.subf %599, %627 : vector<2x256xf32>
    %678 = math.exp %677 : vector<2x256xf32>
    %679 = arith.addf %672, %678 : vector<2x256xf32>
    %c255_i32_229 = arith.constant 255 : i32
    %680 = tpu.dynamic_rotate %550 by %c255_i32_229 dim 1 : vector<8x256xf32>, i32 -> vector<8x256xf32>
    %681 = vector.broadcast %33 : vector<1x256xf32> to vector<2x256xf32>
    %682 = arith.mulf %678, %681 : vector<2x256xf32>
    %683 = arith.truncf %682 : vector<2x256xf32> to vector<2x256xbf16>
    %cst_230 = arith.constant dense<0.000000e+00> : vector<8x256xf32>
    %684 = tpu.matmul %57, %683, %cst_230 {dimension_numbers = #tpu.dot_dimension_numbers<[1], [0], [0], [1], [0, 0, 1, 1], [], []>} : vector<8x2xbf16>, vector<2x256xbf16>, vector<8x256xf32> -> vector<8x256xf32>
    %685 = arith.mulf %684, %680 : vector<8x256xf32>
    %686 = arith.addf %676, %685 : vector<8x256xf32>
    %687 = arith.subf %608, %627 : vector<2x256xf32>
    %688 = math.exp %687 : vector<2x256xf32>
    %689 = arith.addf %679, %688 : vector<2x256xf32>
    %c241_i32_231 = arith.constant 241 : i32
    %690 = tpu.dynamic_rotate %550 by %c241_i32_231 dim 1 : vector<8x256xf32>, i32 -> vector<8x256xf32>
    %691 = vector.broadcast %41 : vector<1x256xf32> to vector<2x256xf32>
    %692 = arith.mulf %688, %691 : vector<2x256xf32>
    %693 = arith.truncf %692 : vector<2x256xf32> to vector<2x256xbf16>
    %cst_232 = arith.constant dense<0.000000e+00> : vector<8x256xf32>
    %694 = tpu.matmul %57, %693, %cst_232 {dimension_numbers = #tpu.dot_dimension_numbers<[1], [0], [0], [1], [0, 0, 1, 1], [], []>} : vector<8x2xbf16>, vector<2x256xbf16>, vector<8x256xf32> -> vector<8x256xf32>
    %695 = arith.mulf %694, %690 : vector<8x256xf32>
    %696 = arith.addf %686, %695 : vector<8x256xf32>
    %697 = arith.subf %617, %627 : vector<2x256xf32>
    %698 = math.exp %697 : vector<2x256xf32>
    %699 = arith.addf %689, %698 : vector<2x256xf32>
    %c240_i32_233 = arith.constant 240 : i32
    %700 = tpu.dynamic_rotate %550 by %c240_i32_233 dim 1 : vector<8x256xf32>, i32 -> vector<8x256xf32>
    %701 = vector.broadcast %46 : vector<1x256xf32> to vector<2x256xf32>
    %702 = arith.mulf %698, %701 : vector<2x256xf32>
    %703 = arith.truncf %702 : vector<2x256xf32> to vector<2x256xbf16>
    %cst_234 = arith.constant dense<0.000000e+00> : vector<8x256xf32>
    %704 = tpu.matmul %57, %703, %cst_234 {dimension_numbers = #tpu.dot_dimension_numbers<[1], [0], [0], [1], [0, 0, 1, 1], [], []>} : vector<8x2xbf16>, vector<2x256xbf16>, vector<8x256xf32> -> vector<8x256xf32>
    %705 = arith.mulf %704, %700 : vector<8x256xf32>
    %706 = arith.addf %696, %705 : vector<8x256xf32>
    %707 = arith.subf %626, %627 : vector<2x256xf32>
    %708 = math.exp %707 : vector<2x256xf32>
    %709 = arith.addf %699, %708 : vector<2x256xf32>
    %c239_i32_235 = arith.constant 239 : i32
    %710 = tpu.dynamic_rotate %550 by %c239_i32_235 dim 1 : vector<8x256xf32>, i32 -> vector<8x256xf32>
    %711 = vector.broadcast %54 : vector<1x256xf32> to vector<2x256xf32>
    %712 = arith.mulf %708, %711 : vector<2x256xf32>
    %713 = arith.truncf %712 : vector<2x256xf32> to vector<2x256xbf16>
    %cst_236 = arith.constant dense<0.000000e+00> : vector<8x256xf32>
    %714 = tpu.matmul %57, %713, %cst_236 {dimension_numbers = #tpu.dot_dimension_numbers<[1], [0], [0], [1], [0, 0, 1, 1], [], []>} : vector<8x2xbf16>, vector<2x256xbf16>, vector<8x256xf32> -> vector<8x256xf32>
    %715 = arith.mulf %714, %710 : vector<8x256xf32>
    %716 = arith.addf %706, %715 : vector<8x256xf32>
    %717 = tpu.reciprocal %709 : vector<2x256xf32> -> vector<2x256xf32>
    %cst_237 = arith.constant dense<0.000000e+00> : vector<8x256xf32>
    %718 = tpu.matmul %56, %717, %cst_237 {dimension_numbers = #tpu.dot_dimension_numbers<[1], [0], [0], [1], [0, 0, 1, 1], [], []>} : vector<8x2xf32>, vector<2x256xf32>, vector<8x256xf32> -> vector<8x256xf32>
    %719 = arith.mulf %716, %718 : vector<8x256xf32>
    %720 = arith.truncf %719 : vector<8x256xf32> to vector<8x256xbf16>
    %cst_238 = arith.constant dense<0.000000e+00> : vector<8x256xf32>
    %721 = tpu.matmul %543, %720, %cst_238 {dimension_numbers = #tpu.dot_dimension_numbers<[1], [0], [0], [1], [0, 0, 1, 1], [], []>} : vector<8x8xbf16>, vector<8x256xbf16>, vector<8x256xf32> -> vector<8x256xf32>
    %722 = arith.addf %721, %63 : vector<8x256xf32>
    %723 = arith.truncf %65 : vector<8x256xf32> to vector<8x256xbf16>
    %cst_239 = arith.constant dense<0.000000e+00> : vector<24x256xf32>
    %724 = tpu.matmul %541, %723, %cst_239 {dimension_numbers = #tpu.dot_dimension_numbers<[1], [0], [0], [1], [0, 0, 1, 1], [], []>} : vector<24x8xbf16>, vector<8x256xbf16>, vector<24x256xf32> -> vector<24x256xf32>
    %725 = vector.extract_strided_slice %724 {offsets = [0, 0], sizes = [8, 256], strides = [1, 1]} : vector<24x256xf32> to vector<8x256xf32>
    %726 = vector.extract_strided_slice %724 {offsets = [8, 0], sizes = [8, 256], strides = [1, 1]} : vector<24x256xf32> to vector<8x256xf32>
    %727 = vector.extract_strided_slice %724 {offsets = [16, 0], sizes = [8, 256], strides = [1, 1]} : vector<24x256xf32> to vector<8x256xf32>
    %c17_i32_240 = arith.constant 17 : i32
    %728 = tpu.dynamic_rotate %726 by %c17_i32_240 dim 1 : vector<8x256xf32>, i32 -> vector<8x256xf32>
    %729 = arith.mulf %725, %728 : vector<8x256xf32>
    %730 = arith.truncf %729 : vector<8x256xf32> to vector<8x256xbf16>
    %cst_241 = arith.constant dense<0.000000e+00> : vector<2x256xf32>
    %731 = tpu.matmul %55, %730, %cst_241 {dimension_numbers = #tpu.dot_dimension_numbers<[1], [0], [0], [1], [0, 0, 1, 1], [], []>} : vector<2x8xbf16>, vector<8x256xbf16>, vector<2x256xf32> -> vector<2x256xf32>
    %cst_242 = arith.constant 5.000000e-01 : f32
    %732 = vector.broadcast %cst_242 : f32 to vector<1x256xf32>
    %733 = arith.mulf %732, %10 : vector<1x256xf32>
    %734 = vector.broadcast %733 : vector<1x256xf32> to vector<2x256xf32>
    %735 = arith.mulf %731, %734 : vector<2x256xf32>
    %c16_i32_243 = arith.constant 16 : i32
    %736 = tpu.dynamic_rotate %726 by %c16_i32_243 dim 1 : vector<8x256xf32>, i32 -> vector<8x256xf32>
    %737 = arith.mulf %725, %736 : vector<8x256xf32>
    %738 = arith.truncf %737 : vector<8x256xf32> to vector<8x256xbf16>
    %cst_244 = arith.constant dense<0.000000e+00> : vector<2x256xf32>
    %739 = tpu.matmul %55, %738, %cst_244 {dimension_numbers = #tpu.dot_dimension_numbers<[1], [0], [0], [1], [0, 0, 1, 1], [], []>} : vector<2x8xbf16>, vector<8x256xbf16>, vector<2x256xf32> -> vector<2x256xf32>
    %cst_245 = arith.constant 5.000000e-01 : f32
    %740 = vector.broadcast %cst_245 : f32 to vector<1x256xf32>
    %741 = arith.mulf %740, %15 : vector<1x256xf32>
    %742 = vector.broadcast %741 : vector<1x256xf32> to vector<2x256xf32>
    %743 = arith.mulf %739, %742 : vector<2x256xf32>
    %744 = arith.maximumf %735, %743 : vector<2x256xf32>
    %c15_i32_246 = arith.constant 15 : i32
    %745 = tpu.dynamic_rotate %726 by %c15_i32_246 dim 1 : vector<8x256xf32>, i32 -> vector<8x256xf32>
    %746 = arith.mulf %725, %745 : vector<8x256xf32>
    %747 = arith.truncf %746 : vector<8x256xf32> to vector<8x256xbf16>
    %cst_247 = arith.constant dense<0.000000e+00> : vector<2x256xf32>
    %748 = tpu.matmul %55, %747, %cst_247 {dimension_numbers = #tpu.dot_dimension_numbers<[1], [0], [0], [1], [0, 0, 1, 1], [], []>} : vector<2x8xbf16>, vector<8x256xbf16>, vector<2x256xf32> -> vector<2x256xf32>
    %cst_248 = arith.constant 5.000000e-01 : f32
    %749 = vector.broadcast %cst_248 : f32 to vector<1x256xf32>
    %750 = arith.mulf %749, %23 : vector<1x256xf32>
    %751 = vector.broadcast %750 : vector<1x256xf32> to vector<2x256xf32>
    %752 = arith.mulf %748, %751 : vector<2x256xf32>
    %753 = arith.maximumf %744, %752 : vector<2x256xf32>
    %c1_i32_249 = arith.constant 1 : i32
    %754 = tpu.dynamic_rotate %726 by %c1_i32_249 dim 1 : vector<8x256xf32>, i32 -> vector<8x256xf32>
    %755 = arith.mulf %725, %754 : vector<8x256xf32>
    %756 = arith.truncf %755 : vector<8x256xf32> to vector<8x256xbf16>
    %cst_250 = arith.constant dense<0.000000e+00> : vector<2x256xf32>
    %757 = tpu.matmul %55, %756, %cst_250 {dimension_numbers = #tpu.dot_dimension_numbers<[1], [0], [0], [1], [0, 0, 1, 1], [], []>} : vector<2x8xbf16>, vector<8x256xbf16>, vector<2x256xf32> -> vector<2x256xf32>
    %cst_251 = arith.constant 5.000000e-01 : f32
    %758 = vector.broadcast %cst_251 : f32 to vector<1x256xf32>
    %759 = arith.mulf %758, %28 : vector<1x256xf32>
    %760 = vector.broadcast %759 : vector<1x256xf32> to vector<2x256xf32>
    %761 = arith.mulf %757, %760 : vector<2x256xf32>
    %762 = arith.maximumf %753, %761 : vector<2x256xf32>
    %763 = arith.mulf %725, %726 : vector<8x256xf32>
    %764 = arith.truncf %763 : vector<8x256xf32> to vector<8x256xbf16>
    %cst_252 = arith.constant dense<0.000000e+00> : vector<2x256xf32>
    %765 = tpu.matmul %55, %764, %cst_252 {dimension_numbers = #tpu.dot_dimension_numbers<[1], [0], [0], [1], [0, 0, 1, 1], [], []>} : vector<2x8xbf16>, vector<8x256xbf16>, vector<2x256xf32> -> vector<2x256xf32>
    %cst_253 = arith.constant 5.000000e-01 : f32
    %766 = vector.broadcast %cst_253 : f32 to vector<2x256xf32>
    %767 = arith.mulf %765, %766 : vector<2x256xf32>
    %768 = arith.maximumf %762, %767 : vector<2x256xf32>
    %c255_i32_254 = arith.constant 255 : i32
    %769 = tpu.dynamic_rotate %726 by %c255_i32_254 dim 1 : vector<8x256xf32>, i32 -> vector<8x256xf32>
    %770 = arith.mulf %725, %769 : vector<8x256xf32>
    %771 = arith.truncf %770 : vector<8x256xf32> to vector<8x256xbf16>
    %cst_255 = arith.constant dense<0.000000e+00> : vector<2x256xf32>
    %772 = tpu.matmul %55, %771, %cst_255 {dimension_numbers = #tpu.dot_dimension_numbers<[1], [0], [0], [1], [0, 0, 1, 1], [], []>} : vector<2x8xbf16>, vector<8x256xbf16>, vector<2x256xf32> -> vector<2x256xf32>
    %cst_256 = arith.constant 5.000000e-01 : f32
    %773 = vector.broadcast %cst_256 : f32 to vector<1x256xf32>
    %774 = arith.mulf %773, %33 : vector<1x256xf32>
    %775 = vector.broadcast %774 : vector<1x256xf32> to vector<2x256xf32>
    %776 = arith.mulf %772, %775 : vector<2x256xf32>
    %777 = arith.maximumf %768, %776 : vector<2x256xf32>
    %c241_i32_257 = arith.constant 241 : i32
    %778 = tpu.dynamic_rotate %726 by %c241_i32_257 dim 1 : vector<8x256xf32>, i32 -> vector<8x256xf32>
    %779 = arith.mulf %725, %778 : vector<8x256xf32>
    %780 = arith.truncf %779 : vector<8x256xf32> to vector<8x256xbf16>
    %cst_258 = arith.constant dense<0.000000e+00> : vector<2x256xf32>
    %781 = tpu.matmul %55, %780, %cst_258 {dimension_numbers = #tpu.dot_dimension_numbers<[1], [0], [0], [1], [0, 0, 1, 1], [], []>} : vector<2x8xbf16>, vector<8x256xbf16>, vector<2x256xf32> -> vector<2x256xf32>
    %cst_259 = arith.constant 5.000000e-01 : f32
    %782 = vector.broadcast %cst_259 : f32 to vector<1x256xf32>
    %783 = arith.mulf %782, %41 : vector<1x256xf32>
    %784 = vector.broadcast %783 : vector<1x256xf32> to vector<2x256xf32>
    %785 = arith.mulf %781, %784 : vector<2x256xf32>
    %786 = arith.maximumf %777, %785 : vector<2x256xf32>
    %c240_i32_260 = arith.constant 240 : i32
    %787 = tpu.dynamic_rotate %726 by %c240_i32_260 dim 1 : vector<8x256xf32>, i32 -> vector<8x256xf32>
    %788 = arith.mulf %725, %787 : vector<8x256xf32>
    %789 = arith.truncf %788 : vector<8x256xf32> to vector<8x256xbf16>
    %cst_261 = arith.constant dense<0.000000e+00> : vector<2x256xf32>
    %790 = tpu.matmul %55, %789, %cst_261 {dimension_numbers = #tpu.dot_dimension_numbers<[1], [0], [0], [1], [0, 0, 1, 1], [], []>} : vector<2x8xbf16>, vector<8x256xbf16>, vector<2x256xf32> -> vector<2x256xf32>
    %cst_262 = arith.constant 5.000000e-01 : f32
    %791 = vector.broadcast %cst_262 : f32 to vector<1x256xf32>
    %792 = arith.mulf %791, %46 : vector<1x256xf32>
    %793 = vector.broadcast %792 : vector<1x256xf32> to vector<2x256xf32>
    %794 = arith.mulf %790, %793 : vector<2x256xf32>
    %795 = arith.maximumf %786, %794 : vector<2x256xf32>
    %c239_i32_263 = arith.constant 239 : i32
    %796 = tpu.dynamic_rotate %726 by %c239_i32_263 dim 1 : vector<8x256xf32>, i32 -> vector<8x256xf32>
    %797 = arith.mulf %725, %796 : vector<8x256xf32>
    %798 = arith.truncf %797 : vector<8x256xf32> to vector<8x256xbf16>
    %cst_264 = arith.constant dense<0.000000e+00> : vector<2x256xf32>
    %799 = tpu.matmul %55, %798, %cst_264 {dimension_numbers = #tpu.dot_dimension_numbers<[1], [0], [0], [1], [0, 0, 1, 1], [], []>} : vector<2x8xbf16>, vector<8x256xbf16>, vector<2x256xf32> -> vector<2x256xf32>
    %cst_265 = arith.constant 5.000000e-01 : f32
    %800 = vector.broadcast %cst_265 : f32 to vector<1x256xf32>
    %801 = arith.mulf %800, %54 : vector<1x256xf32>
    %802 = vector.broadcast %801 : vector<1x256xf32> to vector<2x256xf32>
    %803 = arith.mulf %799, %802 : vector<2x256xf32>
    %804 = arith.maximumf %795, %803 : vector<2x256xf32>
    %cst_266 = arith.constant 0.000000e+00 : f32
    %805 = vector.broadcast %cst_266 : f32 to vector<2x256xf32>
    %cst_267 = arith.constant 0.000000e+00 : f32
    %806 = vector.broadcast %cst_267 : f32 to vector<8x256xf32>
    %807 = arith.subf %735, %804 : vector<2x256xf32>
    %808 = math.exp %807 : vector<2x256xf32>
    %809 = arith.addf %805, %808 : vector<2x256xf32>
    %c17_i32_268 = arith.constant 17 : i32
    %810 = tpu.dynamic_rotate %727 by %c17_i32_268 dim 1 : vector<8x256xf32>, i32 -> vector<8x256xf32>
    %811 = vector.broadcast %10 : vector<1x256xf32> to vector<2x256xf32>
    %812 = arith.mulf %808, %811 : vector<2x256xf32>
    %813 = arith.truncf %812 : vector<2x256xf32> to vector<2x256xbf16>
    %cst_269 = arith.constant dense<0.000000e+00> : vector<8x256xf32>
    %814 = tpu.matmul %57, %813, %cst_269 {dimension_numbers = #tpu.dot_dimension_numbers<[1], [0], [0], [1], [0, 0, 1, 1], [], []>} : vector<8x2xbf16>, vector<2x256xbf16>, vector<8x256xf32> -> vector<8x256xf32>
    %815 = arith.mulf %814, %810 : vector<8x256xf32>
    %816 = arith.addf %806, %815 : vector<8x256xf32>
    %817 = arith.subf %743, %804 : vector<2x256xf32>
    %818 = math.exp %817 : vector<2x256xf32>
    %819 = arith.addf %809, %818 : vector<2x256xf32>
    %c16_i32_270 = arith.constant 16 : i32
    %820 = tpu.dynamic_rotate %727 by %c16_i32_270 dim 1 : vector<8x256xf32>, i32 -> vector<8x256xf32>
    %821 = vector.broadcast %15 : vector<1x256xf32> to vector<2x256xf32>
    %822 = arith.mulf %818, %821 : vector<2x256xf32>
    %823 = arith.truncf %822 : vector<2x256xf32> to vector<2x256xbf16>
    %cst_271 = arith.constant dense<0.000000e+00> : vector<8x256xf32>
    %824 = tpu.matmul %57, %823, %cst_271 {dimension_numbers = #tpu.dot_dimension_numbers<[1], [0], [0], [1], [0, 0, 1, 1], [], []>} : vector<8x2xbf16>, vector<2x256xbf16>, vector<8x256xf32> -> vector<8x256xf32>
    %825 = arith.mulf %824, %820 : vector<8x256xf32>
    %826 = arith.addf %816, %825 : vector<8x256xf32>
    %827 = arith.subf %752, %804 : vector<2x256xf32>
    %828 = math.exp %827 : vector<2x256xf32>
    %829 = arith.addf %819, %828 : vector<2x256xf32>
    %c15_i32_272 = arith.constant 15 : i32
    %830 = tpu.dynamic_rotate %727 by %c15_i32_272 dim 1 : vector<8x256xf32>, i32 -> vector<8x256xf32>
    %831 = vector.broadcast %23 : vector<1x256xf32> to vector<2x256xf32>
    %832 = arith.mulf %828, %831 : vector<2x256xf32>
    %833 = arith.truncf %832 : vector<2x256xf32> to vector<2x256xbf16>
    %cst_273 = arith.constant dense<0.000000e+00> : vector<8x256xf32>
    %834 = tpu.matmul %57, %833, %cst_273 {dimension_numbers = #tpu.dot_dimension_numbers<[1], [0], [0], [1], [0, 0, 1, 1], [], []>} : vector<8x2xbf16>, vector<2x256xbf16>, vector<8x256xf32> -> vector<8x256xf32>
    %835 = arith.mulf %834, %830 : vector<8x256xf32>
    %836 = arith.addf %826, %835 : vector<8x256xf32>
    %837 = arith.subf %761, %804 : vector<2x256xf32>
    %838 = math.exp %837 : vector<2x256xf32>
    %839 = arith.addf %829, %838 : vector<2x256xf32>
    %c1_i32_274 = arith.constant 1 : i32
    %840 = tpu.dynamic_rotate %727 by %c1_i32_274 dim 1 : vector<8x256xf32>, i32 -> vector<8x256xf32>
    %841 = vector.broadcast %28 : vector<1x256xf32> to vector<2x256xf32>
    %842 = arith.mulf %838, %841 : vector<2x256xf32>
    %843 = arith.truncf %842 : vector<2x256xf32> to vector<2x256xbf16>
    %cst_275 = arith.constant dense<0.000000e+00> : vector<8x256xf32>
    %844 = tpu.matmul %57, %843, %cst_275 {dimension_numbers = #tpu.dot_dimension_numbers<[1], [0], [0], [1], [0, 0, 1, 1], [], []>} : vector<8x2xbf16>, vector<2x256xbf16>, vector<8x256xf32> -> vector<8x256xf32>
    %845 = arith.mulf %844, %840 : vector<8x256xf32>
    %846 = arith.addf %836, %845 : vector<8x256xf32>
    %847 = arith.subf %767, %804 : vector<2x256xf32>
    %848 = math.exp %847 : vector<2x256xf32>
    %849 = arith.addf %839, %848 : vector<2x256xf32>
    %850 = arith.truncf %848 : vector<2x256xf32> to vector<2x256xbf16>
    %cst_276 = arith.constant dense<0.000000e+00> : vector<8x256xf32>
    %851 = tpu.matmul %57, %850, %cst_276 {dimension_numbers = #tpu.dot_dimension_numbers<[1], [0], [0], [1], [0, 0, 1, 1], [], []>} : vector<8x2xbf16>, vector<2x256xbf16>, vector<8x256xf32> -> vector<8x256xf32>
    %852 = arith.mulf %851, %727 : vector<8x256xf32>
    %853 = arith.addf %846, %852 : vector<8x256xf32>
    %854 = arith.subf %776, %804 : vector<2x256xf32>
    %855 = math.exp %854 : vector<2x256xf32>
    %856 = arith.addf %849, %855 : vector<2x256xf32>
    %c255_i32_277 = arith.constant 255 : i32
    %857 = tpu.dynamic_rotate %727 by %c255_i32_277 dim 1 : vector<8x256xf32>, i32 -> vector<8x256xf32>
    %858 = vector.broadcast %33 : vector<1x256xf32> to vector<2x256xf32>
    %859 = arith.mulf %855, %858 : vector<2x256xf32>
    %860 = arith.truncf %859 : vector<2x256xf32> to vector<2x256xbf16>
    %cst_278 = arith.constant dense<0.000000e+00> : vector<8x256xf32>
    %861 = tpu.matmul %57, %860, %cst_278 {dimension_numbers = #tpu.dot_dimension_numbers<[1], [0], [0], [1], [0, 0, 1, 1], [], []>} : vector<8x2xbf16>, vector<2x256xbf16>, vector<8x256xf32> -> vector<8x256xf32>
    %862 = arith.mulf %861, %857 : vector<8x256xf32>
    %863 = arith.addf %853, %862 : vector<8x256xf32>
    %864 = arith.subf %785, %804 : vector<2x256xf32>
    %865 = math.exp %864 : vector<2x256xf32>
    %866 = arith.addf %856, %865 : vector<2x256xf32>
    %c241_i32_279 = arith.constant 241 : i32
    %867 = tpu.dynamic_rotate %727 by %c241_i32_279 dim 1 : vector<8x256xf32>, i32 -> vector<8x256xf32>
    %868 = vector.broadcast %41 : vector<1x256xf32> to vector<2x256xf32>
    %869 = arith.mulf %865, %868 : vector<2x256xf32>
    %870 = arith.truncf %869 : vector<2x256xf32> to vector<2x256xbf16>
    %cst_280 = arith.constant dense<0.000000e+00> : vector<8x256xf32>
    %871 = tpu.matmul %57, %870, %cst_280 {dimension_numbers = #tpu.dot_dimension_numbers<[1], [0], [0], [1], [0, 0, 1, 1], [], []>} : vector<8x2xbf16>, vector<2x256xbf16>, vector<8x256xf32> -> vector<8x256xf32>
    %872 = arith.mulf %871, %867 : vector<8x256xf32>
    %873 = arith.addf %863, %872 : vector<8x256xf32>
    %874 = arith.subf %794, %804 : vector<2x256xf32>
    %875 = math.exp %874 : vector<2x256xf32>
    %876 = arith.addf %866, %875 : vector<2x256xf32>
    %c240_i32_281 = arith.constant 240 : i32
    %877 = tpu.dynamic_rotate %727 by %c240_i32_281 dim 1 : vector<8x256xf32>, i32 -> vector<8x256xf32>
    %878 = vector.broadcast %46 : vector<1x256xf32> to vector<2x256xf32>
    %879 = arith.mulf %875, %878 : vector<2x256xf32>
    %880 = arith.truncf %879 : vector<2x256xf32> to vector<2x256xbf16>
    %cst_282 = arith.constant dense<0.000000e+00> : vector<8x256xf32>
    %881 = tpu.matmul %57, %880, %cst_282 {dimension_numbers = #tpu.dot_dimension_numbers<[1], [0], [0], [1], [0, 0, 1, 1], [], []>} : vector<8x2xbf16>, vector<2x256xbf16>, vector<8x256xf32> -> vector<8x256xf32>
    %882 = arith.mulf %881, %877 : vector<8x256xf32>
    %883 = arith.addf %873, %882 : vector<8x256xf32>
    %884 = arith.subf %803, %804 : vector<2x256xf32>
    %885 = math.exp %884 : vector<2x256xf32>
    %886 = arith.addf %876, %885 : vector<2x256xf32>
    %c239_i32_283 = arith.constant 239 : i32
    %887 = tpu.dynamic_rotate %727 by %c239_i32_283 dim 1 : vector<8x256xf32>, i32 -> vector<8x256xf32>
    %888 = vector.broadcast %54 : vector<1x256xf32> to vector<2x256xf32>
    %889 = arith.mulf %885, %888 : vector<2x256xf32>
    %890 = arith.truncf %889 : vector<2x256xf32> to vector<2x256xbf16>
    %cst_284 = arith.constant dense<0.000000e+00> : vector<8x256xf32>
    %891 = tpu.matmul %57, %890, %cst_284 {dimension_numbers = #tpu.dot_dimension_numbers<[1], [0], [0], [1], [0, 0, 1, 1], [], []>} : vector<8x2xbf16>, vector<2x256xbf16>, vector<8x256xf32> -> vector<8x256xf32>
    %892 = arith.mulf %891, %887 : vector<8x256xf32>
    %893 = arith.addf %883, %892 : vector<8x256xf32>
    %894 = tpu.reciprocal %886 : vector<2x256xf32> -> vector<2x256xf32>
    %cst_285 = arith.constant dense<0.000000e+00> : vector<8x256xf32>
    %895 = tpu.matmul %56, %894, %cst_285 {dimension_numbers = #tpu.dot_dimension_numbers<[1], [0], [0], [1], [0, 0, 1, 1], [], []>} : vector<8x2xf32>, vector<2x256xf32>, vector<8x256xf32> -> vector<8x256xf32>
    %896 = arith.mulf %893, %895 : vector<8x256xf32>
    %897 = arith.truncf %896 : vector<8x256xf32> to vector<8x256xbf16>
    %cst_286 = arith.constant dense<0.000000e+00> : vector<8x256xf32>
    %898 = tpu.matmul %543, %897, %cst_286 {dimension_numbers = #tpu.dot_dimension_numbers<[1], [0], [0], [1], [0, 0, 1, 1], [], []>} : vector<8x8xbf16>, vector<8x256xbf16>, vector<8x256xf32> -> vector<8x256xf32>
    %899 = arith.addf %898, %65 : vector<8x256xf32>
    %cst_287 = arith.constant dense<0.000000e+00> : vector<8xf32>
    %900 = vector.multi_reduction <add>, %722, %cst_287 [1] : vector<8x256xf32> to vector<8xf32>
    %901 = vector.shape_cast %900 : vector<8xf32> to vector<8x1xf32>
    %cst_288 = arith.constant 0.000000e+00 : f32
    %902 = vector.broadcast %cst_288 : f32 to vector<8x1xf32>
    %903 = arith.addf %902, %901 : vector<8x1xf32>
    %cst_289 = arith.constant dense<0.000000e+00> : vector<8xf32>
    %904 = vector.multi_reduction <add>, %899, %cst_289 [1] : vector<8x256xf32> to vector<8xf32>
    %905 = vector.shape_cast %904 : vector<8xf32> to vector<8x1xf32>
    %906 = arith.addf %903, %905 : vector<8x1xf32>
    %cst_290 = arith.constant 0.001953125 : f32
    %907 = vector.broadcast %cst_290 : f32 to vector<8x1xf32>
    %908 = arith.mulf %906, %907 : vector<8x1xf32>
    %909 = vector.broadcast %908 : vector<8x1xf32> to vector<8x256xf32>
    %910 = arith.subf %722, %909 : vector<8x256xf32>
    %911 = arith.mulf %910, %910 : vector<8x256xf32>
    %cst_291 = arith.constant dense<0.000000e+00> : vector<8xf32>
    %912 = vector.multi_reduction <add>, %911, %cst_291 [1] : vector<8x256xf32> to vector<8xf32>
    %913 = vector.shape_cast %912 : vector<8xf32> to vector<8x1xf32>
    %cst_292 = arith.constant 0.000000e+00 : f32
    %914 = vector.broadcast %cst_292 : f32 to vector<8x1xf32>
    %915 = arith.addf %914, %913 : vector<8x1xf32>
    %916 = vector.broadcast %908 : vector<8x1xf32> to vector<8x256xf32>
    %917 = arith.subf %899, %916 : vector<8x256xf32>
    %918 = arith.mulf %917, %917 : vector<8x256xf32>
    %cst_293 = arith.constant dense<0.000000e+00> : vector<8xf32>
    %919 = vector.multi_reduction <add>, %918, %cst_293 [1] : vector<8x256xf32> to vector<8xf32>
    %920 = vector.shape_cast %919 : vector<8xf32> to vector<8x1xf32>
    %921 = arith.addf %915, %920 : vector<8x1xf32>
    %cst_294 = arith.constant 0.001953125 : f32
    %922 = vector.broadcast %cst_294 : f32 to vector<8x1xf32>
    %923 = arith.mulf %921, %922 : vector<8x1xf32>
    %cst_295 = arith.constant 9.99999974E-6 : f32
    %924 = vector.broadcast %cst_295 : f32 to vector<8x1xf32>
    %925 = arith.addf %923, %924 : vector<8x1xf32>
    %926 = math.rsqrt %925 : vector<8x1xf32>
    %927 = arith.mulf %544, %926 : vector<8x1xf32>
    %928 = arith.mulf %908, %927 : vector<8x1xf32>
    %929 = arith.subf %545, %928 : vector<8x1xf32>
    %930 = vector.broadcast %927 : vector<8x1xf32> to vector<8x256xf32>
    %931 = arith.mulf %722, %930 : vector<8x256xf32>
    %932 = vector.broadcast %929 : vector<8x1xf32> to vector<8x256xf32>
    %933 = arith.addf %931, %932 : vector<8x256xf32>
    %934 = vector.broadcast %927 : vector<8x1xf32> to vector<8x256xf32>
    %935 = arith.mulf %899, %934 : vector<8x256xf32>
    %936 = vector.broadcast %929 : vector<8x1xf32> to vector<8x256xf32>
    %937 = arith.addf %935, %936 : vector<8x256xf32>
    %c3 = arith.constant 3 : index
    %c0_296 = arith.constant 0 : index
    %c0_297 = arith.constant 0 : index
    %938 = vector.load %arg12[%c3, %c0_296, %c0_297] : memref<5x8x2xf32, #tpu.memory_space<vmem>>, vector<1x8x2xf32>
    %939 = vector.shape_cast %938 : vector<1x8x2xf32> to vector<8x2xf32>
    %c2_298 = arith.constant 2 : index
    %c0_299 = arith.constant 0 : index
    %c0_300 = arith.constant 0 : index
    %940 = vector.load %arg6[%c2_298, %c0_299, %c0_300] : memref<3x24x8xbf16, #tpu.memory_space<vmem>>, vector<1x24x8xbf16>
    %941 = vector.shape_cast %940 : vector<1x24x8xbf16> to vector<24x8xbf16>
    %c2_301 = arith.constant 2 : index
    %c0_302 = arith.constant 0 : index
    %c0_303 = arith.constant 0 : index
    %942 = vector.load %arg7[%c2_301, %c0_302, %c0_303] : memref<3x8x8xbf16, #tpu.memory_space<vmem>>, vector<1x8x8xbf16>
    %943 = vector.shape_cast %942 : vector<1x8x8xbf16> to vector<8x8xbf16>
    %944 = vector.extract_strided_slice %939 {offsets = [0, 0], sizes = [8, 1], strides = [1, 1]} : vector<8x2xf32> to vector<8x1xf32>
    %945 = vector.extract_strided_slice %939 {offsets = [0, 1], sizes = [8, 1], strides = [1, 1]} : vector<8x2xf32> to vector<8x1xf32>
    %946 = arith.truncf %933 : vector<8x256xf32> to vector<8x256xbf16>
    %947 = arith.truncf %536 : vector<8x256xf32> to vector<8x256xbf16>
    %948 = vector.extract_strided_slice %941 {offsets = [0, 0], sizes = [8, 8], strides = [1, 1]} : vector<24x8xbf16> to vector<8x8xbf16>
    %cst_304 = arith.constant dense<0.000000e+00> : vector<8x256xf32>
    %949 = tpu.matmul %948, %946, %cst_304 {dimension_numbers = #tpu.dot_dimension_numbers<[1], [0], [0], [1], [0, 0, 1, 1], [], []>} : vector<8x8xbf16>, vector<8x256xbf16>, vector<8x256xf32> -> vector<8x256xf32>
    %950 = vector.extract_strided_slice %941 {offsets = [8, 0], sizes = [16, 8], strides = [1, 1]} : vector<24x8xbf16> to vector<16x8xbf16>
    %cst_305 = arith.constant dense<0.000000e+00> : vector<16x256xf32>
    %951 = tpu.matmul %950, %947, %cst_305 {dimension_numbers = #tpu.dot_dimension_numbers<[1], [0], [0], [1], [0, 0, 1, 1], [], []>} : vector<16x8xbf16>, vector<8x256xbf16>, vector<16x256xf32> -> vector<16x256xf32>
    %952 = vector.extract_strided_slice %951 {offsets = [0, 0], sizes = [8, 256], strides = [1, 1]} : vector<16x256xf32> to vector<8x256xf32>
    %953 = vector.extract_strided_slice %951 {offsets = [8, 0], sizes = [8, 256], strides = [1, 1]} : vector<16x256xf32> to vector<8x256xf32>
    %c17_i32_306 = arith.constant 17 : i32
    %954 = tpu.dynamic_rotate %952 by %c17_i32_306 dim 1 : vector<8x256xf32>, i32 -> vector<8x256xf32>
    %955 = arith.mulf %949, %954 : vector<8x256xf32>
    %956 = arith.truncf %955 : vector<8x256xf32> to vector<8x256xbf16>
    %cst_307 = arith.constant dense<0.000000e+00> : vector<2x256xf32>
    %957 = tpu.matmul %55, %956, %cst_307 {dimension_numbers = #tpu.dot_dimension_numbers<[1], [0], [0], [1], [0, 0, 1, 1], [], []>} : vector<2x8xbf16>, vector<8x256xbf16>, vector<2x256xf32> -> vector<2x256xf32>
    %cst_308 = arith.constant 5.000000e-01 : f32
    %958 = vector.broadcast %cst_308 : f32 to vector<1x256xf32>
    %959 = arith.mulf %958, %10 : vector<1x256xf32>
    %960 = vector.broadcast %959 : vector<1x256xf32> to vector<2x256xf32>
    %961 = arith.mulf %957, %960 : vector<2x256xf32>
    %c16_i32_309 = arith.constant 16 : i32
    %962 = tpu.dynamic_rotate %952 by %c16_i32_309 dim 1 : vector<8x256xf32>, i32 -> vector<8x256xf32>
    %963 = arith.mulf %949, %962 : vector<8x256xf32>
    %964 = arith.truncf %963 : vector<8x256xf32> to vector<8x256xbf16>
    %cst_310 = arith.constant dense<0.000000e+00> : vector<2x256xf32>
    %965 = tpu.matmul %55, %964, %cst_310 {dimension_numbers = #tpu.dot_dimension_numbers<[1], [0], [0], [1], [0, 0, 1, 1], [], []>} : vector<2x8xbf16>, vector<8x256xbf16>, vector<2x256xf32> -> vector<2x256xf32>
    %cst_311 = arith.constant 5.000000e-01 : f32
    %966 = vector.broadcast %cst_311 : f32 to vector<1x256xf32>
    %967 = arith.mulf %966, %15 : vector<1x256xf32>
    %968 = vector.broadcast %967 : vector<1x256xf32> to vector<2x256xf32>
    %969 = arith.mulf %965, %968 : vector<2x256xf32>
    %970 = arith.maximumf %961, %969 : vector<2x256xf32>
    %c15_i32_312 = arith.constant 15 : i32
    %971 = tpu.dynamic_rotate %952 by %c15_i32_312 dim 1 : vector<8x256xf32>, i32 -> vector<8x256xf32>
    %972 = arith.mulf %949, %971 : vector<8x256xf32>
    %973 = arith.truncf %972 : vector<8x256xf32> to vector<8x256xbf16>
    %cst_313 = arith.constant dense<0.000000e+00> : vector<2x256xf32>
    %974 = tpu.matmul %55, %973, %cst_313 {dimension_numbers = #tpu.dot_dimension_numbers<[1], [0], [0], [1], [0, 0, 1, 1], [], []>} : vector<2x8xbf16>, vector<8x256xbf16>, vector<2x256xf32> -> vector<2x256xf32>
    %cst_314 = arith.constant 5.000000e-01 : f32
    %975 = vector.broadcast %cst_314 : f32 to vector<1x256xf32>
    %976 = arith.mulf %975, %23 : vector<1x256xf32>
    %977 = vector.broadcast %976 : vector<1x256xf32> to vector<2x256xf32>
    %978 = arith.mulf %974, %977 : vector<2x256xf32>
    %979 = arith.maximumf %970, %978 : vector<2x256xf32>
    %c1_i32_315 = arith.constant 1 : i32
    %980 = tpu.dynamic_rotate %952 by %c1_i32_315 dim 1 : vector<8x256xf32>, i32 -> vector<8x256xf32>
    %981 = arith.mulf %949, %980 : vector<8x256xf32>
    %982 = arith.truncf %981 : vector<8x256xf32> to vector<8x256xbf16>
    %cst_316 = arith.constant dense<0.000000e+00> : vector<2x256xf32>
    %983 = tpu.matmul %55, %982, %cst_316 {dimension_numbers = #tpu.dot_dimension_numbers<[1], [0], [0], [1], [0, 0, 1, 1], [], []>} : vector<2x8xbf16>, vector<8x256xbf16>, vector<2x256xf32> -> vector<2x256xf32>
    %cst_317 = arith.constant 5.000000e-01 : f32
    %984 = vector.broadcast %cst_317 : f32 to vector<1x256xf32>
    %985 = arith.mulf %984, %28 : vector<1x256xf32>
    %986 = vector.broadcast %985 : vector<1x256xf32> to vector<2x256xf32>
    %987 = arith.mulf %983, %986 : vector<2x256xf32>
    %988 = arith.maximumf %979, %987 : vector<2x256xf32>
    %989 = arith.mulf %949, %952 : vector<8x256xf32>
    %990 = arith.truncf %989 : vector<8x256xf32> to vector<8x256xbf16>
    %cst_318 = arith.constant dense<0.000000e+00> : vector<2x256xf32>
    %991 = tpu.matmul %55, %990, %cst_318 {dimension_numbers = #tpu.dot_dimension_numbers<[1], [0], [0], [1], [0, 0, 1, 1], [], []>} : vector<2x8xbf16>, vector<8x256xbf16>, vector<2x256xf32> -> vector<2x256xf32>
    %cst_319 = arith.constant 5.000000e-01 : f32
    %992 = vector.broadcast %cst_319 : f32 to vector<2x256xf32>
    %993 = arith.mulf %991, %992 : vector<2x256xf32>
    %994 = arith.maximumf %988, %993 : vector<2x256xf32>
    %c255_i32_320 = arith.constant 255 : i32
    %995 = tpu.dynamic_rotate %952 by %c255_i32_320 dim 1 : vector<8x256xf32>, i32 -> vector<8x256xf32>
    %996 = arith.mulf %949, %995 : vector<8x256xf32>
    %997 = arith.truncf %996 : vector<8x256xf32> to vector<8x256xbf16>
    %cst_321 = arith.constant dense<0.000000e+00> : vector<2x256xf32>
    %998 = tpu.matmul %55, %997, %cst_321 {dimension_numbers = #tpu.dot_dimension_numbers<[1], [0], [0], [1], [0, 0, 1, 1], [], []>} : vector<2x8xbf16>, vector<8x256xbf16>, vector<2x256xf32> -> vector<2x256xf32>
    %cst_322 = arith.constant 5.000000e-01 : f32
    %999 = vector.broadcast %cst_322 : f32 to vector<1x256xf32>
    %1000 = arith.mulf %999, %33 : vector<1x256xf32>
    %1001 = vector.broadcast %1000 : vector<1x256xf32> to vector<2x256xf32>
    %1002 = arith.mulf %998, %1001 : vector<2x256xf32>
    %1003 = arith.maximumf %994, %1002 : vector<2x256xf32>
    %c241_i32_323 = arith.constant 241 : i32
    %1004 = tpu.dynamic_rotate %952 by %c241_i32_323 dim 1 : vector<8x256xf32>, i32 -> vector<8x256xf32>
    %1005 = arith.mulf %949, %1004 : vector<8x256xf32>
    %1006 = arith.truncf %1005 : vector<8x256xf32> to vector<8x256xbf16>
    %cst_324 = arith.constant dense<0.000000e+00> : vector<2x256xf32>
    %1007 = tpu.matmul %55, %1006, %cst_324 {dimension_numbers = #tpu.dot_dimension_numbers<[1], [0], [0], [1], [0, 0, 1, 1], [], []>} : vector<2x8xbf16>, vector<8x256xbf16>, vector<2x256xf32> -> vector<2x256xf32>
    %cst_325 = arith.constant 5.000000e-01 : f32
    %1008 = vector.broadcast %cst_325 : f32 to vector<1x256xf32>
    %1009 = arith.mulf %1008, %41 : vector<1x256xf32>
    %1010 = vector.broadcast %1009 : vector<1x256xf32> to vector<2x256xf32>
    %1011 = arith.mulf %1007, %1010 : vector<2x256xf32>
    %1012 = arith.maximumf %1003, %1011 : vector<2x256xf32>
    %c240_i32_326 = arith.constant 240 : i32
    %1013 = tpu.dynamic_rotate %952 by %c240_i32_326 dim 1 : vector<8x256xf32>, i32 -> vector<8x256xf32>
    %1014 = arith.mulf %949, %1013 : vector<8x256xf32>
    %1015 = arith.truncf %1014 : vector<8x256xf32> to vector<8x256xbf16>
    %cst_327 = arith.constant dense<0.000000e+00> : vector<2x256xf32>
    %1016 = tpu.matmul %55, %1015, %cst_327 {dimension_numbers = #tpu.dot_dimension_numbers<[1], [0], [0], [1], [0, 0, 1, 1], [], []>} : vector<2x8xbf16>, vector<8x256xbf16>, vector<2x256xf32> -> vector<2x256xf32>
    %cst_328 = arith.constant 5.000000e-01 : f32
    %1017 = vector.broadcast %cst_328 : f32 to vector<1x256xf32>
    %1018 = arith.mulf %1017, %46 : vector<1x256xf32>
    %1019 = vector.broadcast %1018 : vector<1x256xf32> to vector<2x256xf32>
    %1020 = arith.mulf %1016, %1019 : vector<2x256xf32>
    %1021 = arith.maximumf %1012, %1020 : vector<2x256xf32>
    %c239_i32_329 = arith.constant 239 : i32
    %1022 = tpu.dynamic_rotate %952 by %c239_i32_329 dim 1 : vector<8x256xf32>, i32 -> vector<8x256xf32>
    %1023 = arith.mulf %949, %1022 : vector<8x256xf32>
    %1024 = arith.truncf %1023 : vector<8x256xf32> to vector<8x256xbf16>
    %cst_330 = arith.constant dense<0.000000e+00> : vector<2x256xf32>
    %1025 = tpu.matmul %55, %1024, %cst_330 {dimension_numbers = #tpu.dot_dimension_numbers<[1], [0], [0], [1], [0, 0, 1, 1], [], []>} : vector<2x8xbf16>, vector<8x256xbf16>, vector<2x256xf32> -> vector<2x256xf32>
    %cst_331 = arith.constant 5.000000e-01 : f32
    %1026 = vector.broadcast %cst_331 : f32 to vector<1x256xf32>
    %1027 = arith.mulf %1026, %54 : vector<1x256xf32>
    %1028 = vector.broadcast %1027 : vector<1x256xf32> to vector<2x256xf32>
    %1029 = arith.mulf %1025, %1028 : vector<2x256xf32>
    %1030 = arith.maximumf %1021, %1029 : vector<2x256xf32>
    %cst_332 = arith.constant 0.000000e+00 : f32
    %1031 = vector.broadcast %cst_332 : f32 to vector<2x256xf32>
    %cst_333 = arith.constant 0.000000e+00 : f32
    %1032 = vector.broadcast %cst_333 : f32 to vector<8x256xf32>
    %1033 = arith.subf %961, %1030 : vector<2x256xf32>
    %1034 = math.exp %1033 : vector<2x256xf32>
    %1035 = arith.addf %1031, %1034 : vector<2x256xf32>
    %c17_i32_334 = arith.constant 17 : i32
    %1036 = tpu.dynamic_rotate %953 by %c17_i32_334 dim 1 : vector<8x256xf32>, i32 -> vector<8x256xf32>
    %1037 = vector.broadcast %10 : vector<1x256xf32> to vector<2x256xf32>
    %1038 = arith.mulf %1034, %1037 : vector<2x256xf32>
    %1039 = arith.truncf %1038 : vector<2x256xf32> to vector<2x256xbf16>
    %cst_335 = arith.constant dense<0.000000e+00> : vector<8x256xf32>
    %1040 = tpu.matmul %57, %1039, %cst_335 {dimension_numbers = #tpu.dot_dimension_numbers<[1], [0], [0], [1], [0, 0, 1, 1], [], []>} : vector<8x2xbf16>, vector<2x256xbf16>, vector<8x256xf32> -> vector<8x256xf32>
    %1041 = arith.mulf %1040, %1036 : vector<8x256xf32>
    %1042 = arith.addf %1032, %1041 : vector<8x256xf32>
    %1043 = arith.subf %969, %1030 : vector<2x256xf32>
    %1044 = math.exp %1043 : vector<2x256xf32>
    %1045 = arith.addf %1035, %1044 : vector<2x256xf32>
    %c16_i32_336 = arith.constant 16 : i32
    %1046 = tpu.dynamic_rotate %953 by %c16_i32_336 dim 1 : vector<8x256xf32>, i32 -> vector<8x256xf32>
    %1047 = vector.broadcast %15 : vector<1x256xf32> to vector<2x256xf32>
    %1048 = arith.mulf %1044, %1047 : vector<2x256xf32>
    %1049 = arith.truncf %1048 : vector<2x256xf32> to vector<2x256xbf16>
    %cst_337 = arith.constant dense<0.000000e+00> : vector<8x256xf32>
    %1050 = tpu.matmul %57, %1049, %cst_337 {dimension_numbers = #tpu.dot_dimension_numbers<[1], [0], [0], [1], [0, 0, 1, 1], [], []>} : vector<8x2xbf16>, vector<2x256xbf16>, vector<8x256xf32> -> vector<8x256xf32>
    %1051 = arith.mulf %1050, %1046 : vector<8x256xf32>
    %1052 = arith.addf %1042, %1051 : vector<8x256xf32>
    %1053 = arith.subf %978, %1030 : vector<2x256xf32>
    %1054 = math.exp %1053 : vector<2x256xf32>
    %1055 = arith.addf %1045, %1054 : vector<2x256xf32>
    %c15_i32_338 = arith.constant 15 : i32
    %1056 = tpu.dynamic_rotate %953 by %c15_i32_338 dim 1 : vector<8x256xf32>, i32 -> vector<8x256xf32>
    %1057 = vector.broadcast %23 : vector<1x256xf32> to vector<2x256xf32>
    %1058 = arith.mulf %1054, %1057 : vector<2x256xf32>
    %1059 = arith.truncf %1058 : vector<2x256xf32> to vector<2x256xbf16>
    %cst_339 = arith.constant dense<0.000000e+00> : vector<8x256xf32>
    %1060 = tpu.matmul %57, %1059, %cst_339 {dimension_numbers = #tpu.dot_dimension_numbers<[1], [0], [0], [1], [0, 0, 1, 1], [], []>} : vector<8x2xbf16>, vector<2x256xbf16>, vector<8x256xf32> -> vector<8x256xf32>
    %1061 = arith.mulf %1060, %1056 : vector<8x256xf32>
    %1062 = arith.addf %1052, %1061 : vector<8x256xf32>
    %1063 = arith.subf %987, %1030 : vector<2x256xf32>
    %1064 = math.exp %1063 : vector<2x256xf32>
    %1065 = arith.addf %1055, %1064 : vector<2x256xf32>
    %c1_i32_340 = arith.constant 1 : i32
    %1066 = tpu.dynamic_rotate %953 by %c1_i32_340 dim 1 : vector<8x256xf32>, i32 -> vector<8x256xf32>
    %1067 = vector.broadcast %28 : vector<1x256xf32> to vector<2x256xf32>
    %1068 = arith.mulf %1064, %1067 : vector<2x256xf32>
    %1069 = arith.truncf %1068 : vector<2x256xf32> to vector<2x256xbf16>
    %cst_341 = arith.constant dense<0.000000e+00> : vector<8x256xf32>
    %1070 = tpu.matmul %57, %1069, %cst_341 {dimension_numbers = #tpu.dot_dimension_numbers<[1], [0], [0], [1], [0, 0, 1, 1], [], []>} : vector<8x2xbf16>, vector<2x256xbf16>, vector<8x256xf32> -> vector<8x256xf32>
    %1071 = arith.mulf %1070, %1066 : vector<8x256xf32>
    %1072 = arith.addf %1062, %1071 : vector<8x256xf32>
    %1073 = arith.subf %993, %1030 : vector<2x256xf32>
    %1074 = math.exp %1073 : vector<2x256xf32>
    %1075 = arith.addf %1065, %1074 : vector<2x256xf32>
    %1076 = arith.truncf %1074 : vector<2x256xf32> to vector<2x256xbf16>
    %cst_342 = arith.constant dense<0.000000e+00> : vector<8x256xf32>
    %1077 = tpu.matmul %57, %1076, %cst_342 {dimension_numbers = #tpu.dot_dimension_numbers<[1], [0], [0], [1], [0, 0, 1, 1], [], []>} : vector<8x2xbf16>, vector<2x256xbf16>, vector<8x256xf32> -> vector<8x256xf32>
    %1078 = arith.mulf %1077, %953 : vector<8x256xf32>
    %1079 = arith.addf %1072, %1078 : vector<8x256xf32>
    %1080 = arith.subf %1002, %1030 : vector<2x256xf32>
    %1081 = math.exp %1080 : vector<2x256xf32>
    %1082 = arith.addf %1075, %1081 : vector<2x256xf32>
    %c255_i32_343 = arith.constant 255 : i32
    %1083 = tpu.dynamic_rotate %953 by %c255_i32_343 dim 1 : vector<8x256xf32>, i32 -> vector<8x256xf32>
    %1084 = vector.broadcast %33 : vector<1x256xf32> to vector<2x256xf32>
    %1085 = arith.mulf %1081, %1084 : vector<2x256xf32>
    %1086 = arith.truncf %1085 : vector<2x256xf32> to vector<2x256xbf16>
    %cst_344 = arith.constant dense<0.000000e+00> : vector<8x256xf32>
    %1087 = tpu.matmul %57, %1086, %cst_344 {dimension_numbers = #tpu.dot_dimension_numbers<[1], [0], [0], [1], [0, 0, 1, 1], [], []>} : vector<8x2xbf16>, vector<2x256xbf16>, vector<8x256xf32> -> vector<8x256xf32>
    %1088 = arith.mulf %1087, %1083 : vector<8x256xf32>
    %1089 = arith.addf %1079, %1088 : vector<8x256xf32>
    %1090 = arith.subf %1011, %1030 : vector<2x256xf32>
    %1091 = math.exp %1090 : vector<2x256xf32>
    %1092 = arith.addf %1082, %1091 : vector<2x256xf32>
    %c241_i32_345 = arith.constant 241 : i32
    %1093 = tpu.dynamic_rotate %953 by %c241_i32_345 dim 1 : vector<8x256xf32>, i32 -> vector<8x256xf32>
    %1094 = vector.broadcast %41 : vector<1x256xf32> to vector<2x256xf32>
    %1095 = arith.mulf %1091, %1094 : vector<2x256xf32>
    %1096 = arith.truncf %1095 : vector<2x256xf32> to vector<2x256xbf16>
    %cst_346 = arith.constant dense<0.000000e+00> : vector<8x256xf32>
    %1097 = tpu.matmul %57, %1096, %cst_346 {dimension_numbers = #tpu.dot_dimension_numbers<[1], [0], [0], [1], [0, 0, 1, 1], [], []>} : vector<8x2xbf16>, vector<2x256xbf16>, vector<8x256xf32> -> vector<8x256xf32>
    %1098 = arith.mulf %1097, %1093 : vector<8x256xf32>
    %1099 = arith.addf %1089, %1098 : vector<8x256xf32>
    %1100 = arith.subf %1020, %1030 : vector<2x256xf32>
    %1101 = math.exp %1100 : vector<2x256xf32>
    %1102 = arith.addf %1092, %1101 : vector<2x256xf32>
    %c240_i32_347 = arith.constant 240 : i32
    %1103 = tpu.dynamic_rotate %953 by %c240_i32_347 dim 1 : vector<8x256xf32>, i32 -> vector<8x256xf32>
    %1104 = vector.broadcast %46 : vector<1x256xf32> to vector<2x256xf32>
    %1105 = arith.mulf %1101, %1104 : vector<2x256xf32>
    %1106 = arith.truncf %1105 : vector<2x256xf32> to vector<2x256xbf16>
    %cst_348 = arith.constant dense<0.000000e+00> : vector<8x256xf32>
    %1107 = tpu.matmul %57, %1106, %cst_348 {dimension_numbers = #tpu.dot_dimension_numbers<[1], [0], [0], [1], [0, 0, 1, 1], [], []>} : vector<8x2xbf16>, vector<2x256xbf16>, vector<8x256xf32> -> vector<8x256xf32>
    %1108 = arith.mulf %1107, %1103 : vector<8x256xf32>
    %1109 = arith.addf %1099, %1108 : vector<8x256xf32>
    %1110 = arith.subf %1029, %1030 : vector<2x256xf32>
    %1111 = math.exp %1110 : vector<2x256xf32>
    %1112 = arith.addf %1102, %1111 : vector<2x256xf32>
    %c239_i32_349 = arith.constant 239 : i32
    %1113 = tpu.dynamic_rotate %953 by %c239_i32_349 dim 1 : vector<8x256xf32>, i32 -> vector<8x256xf32>
    %1114 = vector.broadcast %54 : vector<1x256xf32> to vector<2x256xf32>
    %1115 = arith.mulf %1111, %1114 : vector<2x256xf32>
    %1116 = arith.truncf %1115 : vector<2x256xf32> to vector<2x256xbf16>
    %cst_350 = arith.constant dense<0.000000e+00> : vector<8x256xf32>
    %1117 = tpu.matmul %57, %1116, %cst_350 {dimension_numbers = #tpu.dot_dimension_numbers<[1], [0], [0], [1], [0, 0, 1, 1], [], []>} : vector<8x2xbf16>, vector<2x256xbf16>, vector<8x256xf32> -> vector<8x256xf32>
    %1118 = arith.mulf %1117, %1113 : vector<8x256xf32>
    %1119 = arith.addf %1109, %1118 : vector<8x256xf32>
    %1120 = tpu.reciprocal %1112 : vector<2x256xf32> -> vector<2x256xf32>
    %cst_351 = arith.constant dense<0.000000e+00> : vector<8x256xf32>
    %1121 = tpu.matmul %56, %1120, %cst_351 {dimension_numbers = #tpu.dot_dimension_numbers<[1], [0], [0], [1], [0, 0, 1, 1], [], []>} : vector<8x2xf32>, vector<2x256xf32>, vector<8x256xf32> -> vector<8x256xf32>
    %1122 = arith.mulf %1119, %1121 : vector<8x256xf32>
    %1123 = arith.truncf %1122 : vector<8x256xf32> to vector<8x256xbf16>
    %cst_352 = arith.constant dense<0.000000e+00> : vector<8x256xf32>
    %1124 = tpu.matmul %943, %1123, %cst_352 {dimension_numbers = #tpu.dot_dimension_numbers<[1], [0], [0], [1], [0, 0, 1, 1], [], []>} : vector<8x8xbf16>, vector<8x256xbf16>, vector<8x256xf32> -> vector<8x256xf32>
    %1125 = arith.addf %1124, %933 : vector<8x256xf32>
    %1126 = arith.truncf %937 : vector<8x256xf32> to vector<8x256xbf16>
    %1127 = arith.truncf %537 : vector<8x256xf32> to vector<8x256xbf16>
    %1128 = vector.extract_strided_slice %941 {offsets = [0, 0], sizes = [8, 8], strides = [1, 1]} : vector<24x8xbf16> to vector<8x8xbf16>
    %cst_353 = arith.constant dense<0.000000e+00> : vector<8x256xf32>
    %1129 = tpu.matmul %1128, %1126, %cst_353 {dimension_numbers = #tpu.dot_dimension_numbers<[1], [0], [0], [1], [0, 0, 1, 1], [], []>} : vector<8x8xbf16>, vector<8x256xbf16>, vector<8x256xf32> -> vector<8x256xf32>
    %1130 = vector.extract_strided_slice %941 {offsets = [8, 0], sizes = [16, 8], strides = [1, 1]} : vector<24x8xbf16> to vector<16x8xbf16>
    %cst_354 = arith.constant dense<0.000000e+00> : vector<16x256xf32>
    %1131 = tpu.matmul %1130, %1127, %cst_354 {dimension_numbers = #tpu.dot_dimension_numbers<[1], [0], [0], [1], [0, 0, 1, 1], [], []>} : vector<16x8xbf16>, vector<8x256xbf16>, vector<16x256xf32> -> vector<16x256xf32>
    %1132 = vector.extract_strided_slice %1131 {offsets = [0, 0], sizes = [8, 256], strides = [1, 1]} : vector<16x256xf32> to vector<8x256xf32>
    %1133 = vector.extract_strided_slice %1131 {offsets = [8, 0], sizes = [8, 256], strides = [1, 1]} : vector<16x256xf32> to vector<8x256xf32>
    %c17_i32_355 = arith.constant 17 : i32
    %1134 = tpu.dynamic_rotate %1132 by %c17_i32_355 dim 1 : vector<8x256xf32>, i32 -> vector<8x256xf32>
    %1135 = arith.mulf %1129, %1134 : vector<8x256xf32>
    %1136 = arith.truncf %1135 : vector<8x256xf32> to vector<8x256xbf16>
    %cst_356 = arith.constant dense<0.000000e+00> : vector<2x256xf32>
    %1137 = tpu.matmul %55, %1136, %cst_356 {dimension_numbers = #tpu.dot_dimension_numbers<[1], [0], [0], [1], [0, 0, 1, 1], [], []>} : vector<2x8xbf16>, vector<8x256xbf16>, vector<2x256xf32> -> vector<2x256xf32>
    %cst_357 = arith.constant 5.000000e-01 : f32
    %1138 = vector.broadcast %cst_357 : f32 to vector<1x256xf32>
    %1139 = arith.mulf %1138, %10 : vector<1x256xf32>
    %1140 = vector.broadcast %1139 : vector<1x256xf32> to vector<2x256xf32>
    %1141 = arith.mulf %1137, %1140 : vector<2x256xf32>
    %c16_i32_358 = arith.constant 16 : i32
    %1142 = tpu.dynamic_rotate %1132 by %c16_i32_358 dim 1 : vector<8x256xf32>, i32 -> vector<8x256xf32>
    %1143 = arith.mulf %1129, %1142 : vector<8x256xf32>
    %1144 = arith.truncf %1143 : vector<8x256xf32> to vector<8x256xbf16>
    %cst_359 = arith.constant dense<0.000000e+00> : vector<2x256xf32>
    %1145 = tpu.matmul %55, %1144, %cst_359 {dimension_numbers = #tpu.dot_dimension_numbers<[1], [0], [0], [1], [0, 0, 1, 1], [], []>} : vector<2x8xbf16>, vector<8x256xbf16>, vector<2x256xf32> -> vector<2x256xf32>
    %cst_360 = arith.constant 5.000000e-01 : f32
    %1146 = vector.broadcast %cst_360 : f32 to vector<1x256xf32>
    %1147 = arith.mulf %1146, %15 : vector<1x256xf32>
    %1148 = vector.broadcast %1147 : vector<1x256xf32> to vector<2x256xf32>
    %1149 = arith.mulf %1145, %1148 : vector<2x256xf32>
    %1150 = arith.maximumf %1141, %1149 : vector<2x256xf32>
    %c15_i32_361 = arith.constant 15 : i32
    %1151 = tpu.dynamic_rotate %1132 by %c15_i32_361 dim 1 : vector<8x256xf32>, i32 -> vector<8x256xf32>
    %1152 = arith.mulf %1129, %1151 : vector<8x256xf32>
    %1153 = arith.truncf %1152 : vector<8x256xf32> to vector<8x256xbf16>
    %cst_362 = arith.constant dense<0.000000e+00> : vector<2x256xf32>
    %1154 = tpu.matmul %55, %1153, %cst_362 {dimension_numbers = #tpu.dot_dimension_numbers<[1], [0], [0], [1], [0, 0, 1, 1], [], []>} : vector<2x8xbf16>, vector<8x256xbf16>, vector<2x256xf32> -> vector<2x256xf32>
    %cst_363 = arith.constant 5.000000e-01 : f32
    %1155 = vector.broadcast %cst_363 : f32 to vector<1x256xf32>
    %1156 = arith.mulf %1155, %23 : vector<1x256xf32>
    %1157 = vector.broadcast %1156 : vector<1x256xf32> to vector<2x256xf32>
    %1158 = arith.mulf %1154, %1157 : vector<2x256xf32>
    %1159 = arith.maximumf %1150, %1158 : vector<2x256xf32>
    %c1_i32_364 = arith.constant 1 : i32
    %1160 = tpu.dynamic_rotate %1132 by %c1_i32_364 dim 1 : vector<8x256xf32>, i32 -> vector<8x256xf32>
    %1161 = arith.mulf %1129, %1160 : vector<8x256xf32>
    %1162 = arith.truncf %1161 : vector<8x256xf32> to vector<8x256xbf16>
    %cst_365 = arith.constant dense<0.000000e+00> : vector<2x256xf32>
    %1163 = tpu.matmul %55, %1162, %cst_365 {dimension_numbers = #tpu.dot_dimension_numbers<[1], [0], [0], [1], [0, 0, 1, 1], [], []>} : vector<2x8xbf16>, vector<8x256xbf16>, vector<2x256xf32> -> vector<2x256xf32>
    %cst_366 = arith.constant 5.000000e-01 : f32
    %1164 = vector.broadcast %cst_366 : f32 to vector<1x256xf32>
    %1165 = arith.mulf %1164, %28 : vector<1x256xf32>
    %1166 = vector.broadcast %1165 : vector<1x256xf32> to vector<2x256xf32>
    %1167 = arith.mulf %1163, %1166 : vector<2x256xf32>
    %1168 = arith.maximumf %1159, %1167 : vector<2x256xf32>
    %1169 = arith.mulf %1129, %1132 : vector<8x256xf32>
    %1170 = arith.truncf %1169 : vector<8x256xf32> to vector<8x256xbf16>
    %cst_367 = arith.constant dense<0.000000e+00> : vector<2x256xf32>
    %1171 = tpu.matmul %55, %1170, %cst_367 {dimension_numbers = #tpu.dot_dimension_numbers<[1], [0], [0], [1], [0, 0, 1, 1], [], []>} : vector<2x8xbf16>, vector<8x256xbf16>, vector<2x256xf32> -> vector<2x256xf32>
    %cst_368 = arith.constant 5.000000e-01 : f32
    %1172 = vector.broadcast %cst_368 : f32 to vector<2x256xf32>
    %1173 = arith.mulf %1171, %1172 : vector<2x256xf32>
    %1174 = arith.maximumf %1168, %1173 : vector<2x256xf32>
    %c255_i32_369 = arith.constant 255 : i32
    %1175 = tpu.dynamic_rotate %1132 by %c255_i32_369 dim 1 : vector<8x256xf32>, i32 -> vector<8x256xf32>
    %1176 = arith.mulf %1129, %1175 : vector<8x256xf32>
    %1177 = arith.truncf %1176 : vector<8x256xf32> to vector<8x256xbf16>
    %cst_370 = arith.constant dense<0.000000e+00> : vector<2x256xf32>
    %1178 = tpu.matmul %55, %1177, %cst_370 {dimension_numbers = #tpu.dot_dimension_numbers<[1], [0], [0], [1], [0, 0, 1, 1], [], []>} : vector<2x8xbf16>, vector<8x256xbf16>, vector<2x256xf32> -> vector<2x256xf32>
    %cst_371 = arith.constant 5.000000e-01 : f32
    %1179 = vector.broadcast %cst_371 : f32 to vector<1x256xf32>
    %1180 = arith.mulf %1179, %33 : vector<1x256xf32>
    %1181 = vector.broadcast %1180 : vector<1x256xf32> to vector<2x256xf32>
    %1182 = arith.mulf %1178, %1181 : vector<2x256xf32>
    %1183 = arith.maximumf %1174, %1182 : vector<2x256xf32>
    %c241_i32_372 = arith.constant 241 : i32
    %1184 = tpu.dynamic_rotate %1132 by %c241_i32_372 dim 1 : vector<8x256xf32>, i32 -> vector<8x256xf32>
    %1185 = arith.mulf %1129, %1184 : vector<8x256xf32>
    %1186 = arith.truncf %1185 : vector<8x256xf32> to vector<8x256xbf16>
    %cst_373 = arith.constant dense<0.000000e+00> : vector<2x256xf32>
    %1187 = tpu.matmul %55, %1186, %cst_373 {dimension_numbers = #tpu.dot_dimension_numbers<[1], [0], [0], [1], [0, 0, 1, 1], [], []>} : vector<2x8xbf16>, vector<8x256xbf16>, vector<2x256xf32> -> vector<2x256xf32>
    %cst_374 = arith.constant 5.000000e-01 : f32
    %1188 = vector.broadcast %cst_374 : f32 to vector<1x256xf32>
    %1189 = arith.mulf %1188, %41 : vector<1x256xf32>
    %1190 = vector.broadcast %1189 : vector<1x256xf32> to vector<2x256xf32>
    %1191 = arith.mulf %1187, %1190 : vector<2x256xf32>
    %1192 = arith.maximumf %1183, %1191 : vector<2x256xf32>
    %c240_i32_375 = arith.constant 240 : i32
    %1193 = tpu.dynamic_rotate %1132 by %c240_i32_375 dim 1 : vector<8x256xf32>, i32 -> vector<8x256xf32>
    %1194 = arith.mulf %1129, %1193 : vector<8x256xf32>
    %1195 = arith.truncf %1194 : vector<8x256xf32> to vector<8x256xbf16>
    %cst_376 = arith.constant dense<0.000000e+00> : vector<2x256xf32>
    %1196 = tpu.matmul %55, %1195, %cst_376 {dimension_numbers = #tpu.dot_dimension_numbers<[1], [0], [0], [1], [0, 0, 1, 1], [], []>} : vector<2x8xbf16>, vector<8x256xbf16>, vector<2x256xf32> -> vector<2x256xf32>
    %cst_377 = arith.constant 5.000000e-01 : f32
    %1197 = vector.broadcast %cst_377 : f32 to vector<1x256xf32>
    %1198 = arith.mulf %1197, %46 : vector<1x256xf32>
    %1199 = vector.broadcast %1198 : vector<1x256xf32> to vector<2x256xf32>
    %1200 = arith.mulf %1196, %1199 : vector<2x256xf32>
    %1201 = arith.maximumf %1192, %1200 : vector<2x256xf32>
    %c239_i32_378 = arith.constant 239 : i32
    %1202 = tpu.dynamic_rotate %1132 by %c239_i32_378 dim 1 : vector<8x256xf32>, i32 -> vector<8x256xf32>
    %1203 = arith.mulf %1129, %1202 : vector<8x256xf32>
    %1204 = arith.truncf %1203 : vector<8x256xf32> to vector<8x256xbf16>
    %cst_379 = arith.constant dense<0.000000e+00> : vector<2x256xf32>
    %1205 = tpu.matmul %55, %1204, %cst_379 {dimension_numbers = #tpu.dot_dimension_numbers<[1], [0], [0], [1], [0, 0, 1, 1], [], []>} : vector<2x8xbf16>, vector<8x256xbf16>, vector<2x256xf32> -> vector<2x256xf32>
    %cst_380 = arith.constant 5.000000e-01 : f32
    %1206 = vector.broadcast %cst_380 : f32 to vector<1x256xf32>
    %1207 = arith.mulf %1206, %54 : vector<1x256xf32>
    %1208 = vector.broadcast %1207 : vector<1x256xf32> to vector<2x256xf32>
    %1209 = arith.mulf %1205, %1208 : vector<2x256xf32>
    %1210 = arith.maximumf %1201, %1209 : vector<2x256xf32>
    %cst_381 = arith.constant 0.000000e+00 : f32
    %1211 = vector.broadcast %cst_381 : f32 to vector<2x256xf32>
    %cst_382 = arith.constant 0.000000e+00 : f32
    %1212 = vector.broadcast %cst_382 : f32 to vector<8x256xf32>
    %1213 = arith.subf %1141, %1210 : vector<2x256xf32>
    %1214 = math.exp %1213 : vector<2x256xf32>
    %1215 = arith.addf %1211, %1214 : vector<2x256xf32>
    %c17_i32_383 = arith.constant 17 : i32
    %1216 = tpu.dynamic_rotate %1133 by %c17_i32_383 dim 1 : vector<8x256xf32>, i32 -> vector<8x256xf32>
    %1217 = vector.broadcast %10 : vector<1x256xf32> to vector<2x256xf32>
    %1218 = arith.mulf %1214, %1217 : vector<2x256xf32>
    %1219 = arith.truncf %1218 : vector<2x256xf32> to vector<2x256xbf16>
    %cst_384 = arith.constant dense<0.000000e+00> : vector<8x256xf32>
    %1220 = tpu.matmul %57, %1219, %cst_384 {dimension_numbers = #tpu.dot_dimension_numbers<[1], [0], [0], [1], [0, 0, 1, 1], [], []>} : vector<8x2xbf16>, vector<2x256xbf16>, vector<8x256xf32> -> vector<8x256xf32>
    %1221 = arith.mulf %1220, %1216 : vector<8x256xf32>
    %1222 = arith.addf %1212, %1221 : vector<8x256xf32>
    %1223 = arith.subf %1149, %1210 : vector<2x256xf32>
    %1224 = math.exp %1223 : vector<2x256xf32>
    %1225 = arith.addf %1215, %1224 : vector<2x256xf32>
    %c16_i32_385 = arith.constant 16 : i32
    %1226 = tpu.dynamic_rotate %1133 by %c16_i32_385 dim 1 : vector<8x256xf32>, i32 -> vector<8x256xf32>
    %1227 = vector.broadcast %15 : vector<1x256xf32> to vector<2x256xf32>
    %1228 = arith.mulf %1224, %1227 : vector<2x256xf32>
    %1229 = arith.truncf %1228 : vector<2x256xf32> to vector<2x256xbf16>
    %cst_386 = arith.constant dense<0.000000e+00> : vector<8x256xf32>
    %1230 = tpu.matmul %57, %1229, %cst_386 {dimension_numbers = #tpu.dot_dimension_numbers<[1], [0], [0], [1], [0, 0, 1, 1], [], []>} : vector<8x2xbf16>, vector<2x256xbf16>, vector<8x256xf32> -> vector<8x256xf32>
    %1231 = arith.mulf %1230, %1226 : vector<8x256xf32>
    %1232 = arith.addf %1222, %1231 : vector<8x256xf32>
    %1233 = arith.subf %1158, %1210 : vector<2x256xf32>
    %1234 = math.exp %1233 : vector<2x256xf32>
    %1235 = arith.addf %1225, %1234 : vector<2x256xf32>
    %c15_i32_387 = arith.constant 15 : i32
    %1236 = tpu.dynamic_rotate %1133 by %c15_i32_387 dim 1 : vector<8x256xf32>, i32 -> vector<8x256xf32>
    %1237 = vector.broadcast %23 : vector<1x256xf32> to vector<2x256xf32>
    %1238 = arith.mulf %1234, %1237 : vector<2x256xf32>
    %1239 = arith.truncf %1238 : vector<2x256xf32> to vector<2x256xbf16>
    %cst_388 = arith.constant dense<0.000000e+00> : vector<8x256xf32>
    %1240 = tpu.matmul %57, %1239, %cst_388 {dimension_numbers = #tpu.dot_dimension_numbers<[1], [0], [0], [1], [0, 0, 1, 1], [], []>} : vector<8x2xbf16>, vector<2x256xbf16>, vector<8x256xf32> -> vector<8x256xf32>
    %1241 = arith.mulf %1240, %1236 : vector<8x256xf32>
    %1242 = arith.addf %1232, %1241 : vector<8x256xf32>
    %1243 = arith.subf %1167, %1210 : vector<2x256xf32>
    %1244 = math.exp %1243 : vector<2x256xf32>
    %1245 = arith.addf %1235, %1244 : vector<2x256xf32>
    %c1_i32_389 = arith.constant 1 : i32
    %1246 = tpu.dynamic_rotate %1133 by %c1_i32_389 dim 1 : vector<8x256xf32>, i32 -> vector<8x256xf32>
    %1247 = vector.broadcast %28 : vector<1x256xf32> to vector<2x256xf32>
    %1248 = arith.mulf %1244, %1247 : vector<2x256xf32>
    %1249 = arith.truncf %1248 : vector<2x256xf32> to vector<2x256xbf16>
    %cst_390 = arith.constant dense<0.000000e+00> : vector<8x256xf32>
    %1250 = tpu.matmul %57, %1249, %cst_390 {dimension_numbers = #tpu.dot_dimension_numbers<[1], [0], [0], [1], [0, 0, 1, 1], [], []>} : vector<8x2xbf16>, vector<2x256xbf16>, vector<8x256xf32> -> vector<8x256xf32>
    %1251 = arith.mulf %1250, %1246 : vector<8x256xf32>
    %1252 = arith.addf %1242, %1251 : vector<8x256xf32>
    %1253 = arith.subf %1173, %1210 : vector<2x256xf32>
    %1254 = math.exp %1253 : vector<2x256xf32>
    %1255 = arith.addf %1245, %1254 : vector<2x256xf32>
    %1256 = arith.truncf %1254 : vector<2x256xf32> to vector<2x256xbf16>
    %cst_391 = arith.constant dense<0.000000e+00> : vector<8x256xf32>
    %1257 = tpu.matmul %57, %1256, %cst_391 {dimension_numbers = #tpu.dot_dimension_numbers<[1], [0], [0], [1], [0, 0, 1, 1], [], []>} : vector<8x2xbf16>, vector<2x256xbf16>, vector<8x256xf32> -> vector<8x256xf32>
    %1258 = arith.mulf %1257, %1133 : vector<8x256xf32>
    %1259 = arith.addf %1252, %1258 : vector<8x256xf32>
    %1260 = arith.subf %1182, %1210 : vector<2x256xf32>
    %1261 = math.exp %1260 : vector<2x256xf32>
    %1262 = arith.addf %1255, %1261 : vector<2x256xf32>
    %c255_i32_392 = arith.constant 255 : i32
    %1263 = tpu.dynamic_rotate %1133 by %c255_i32_392 dim 1 : vector<8x256xf32>, i32 -> vector<8x256xf32>
    %1264 = vector.broadcast %33 : vector<1x256xf32> to vector<2x256xf32>
    %1265 = arith.mulf %1261, %1264 : vector<2x256xf32>
    %1266 = arith.truncf %1265 : vector<2x256xf32> to vector<2x256xbf16>
    %cst_393 = arith.constant dense<0.000000e+00> : vector<8x256xf32>
    %1267 = tpu.matmul %57, %1266, %cst_393 {dimension_numbers = #tpu.dot_dimension_numbers<[1], [0], [0], [1], [0, 0, 1, 1], [], []>} : vector<8x2xbf16>, vector<2x256xbf16>, vector<8x256xf32> -> vector<8x256xf32>
    %1268 = arith.mulf %1267, %1263 : vector<8x256xf32>
    %1269 = arith.addf %1259, %1268 : vector<8x256xf32>
    %1270 = arith.subf %1191, %1210 : vector<2x256xf32>
    %1271 = math.exp %1270 : vector<2x256xf32>
    %1272 = arith.addf %1262, %1271 : vector<2x256xf32>
    %c241_i32_394 = arith.constant 241 : i32
    %1273 = tpu.dynamic_rotate %1133 by %c241_i32_394 dim 1 : vector<8x256xf32>, i32 -> vector<8x256xf32>
    %1274 = vector.broadcast %41 : vector<1x256xf32> to vector<2x256xf32>
    %1275 = arith.mulf %1271, %1274 : vector<2x256xf32>
    %1276 = arith.truncf %1275 : vector<2x256xf32> to vector<2x256xbf16>
    %cst_395 = arith.constant dense<0.000000e+00> : vector<8x256xf32>
    %1277 = tpu.matmul %57, %1276, %cst_395 {dimension_numbers = #tpu.dot_dimension_numbers<[1], [0], [0], [1], [0, 0, 1, 1], [], []>} : vector<8x2xbf16>, vector<2x256xbf16>, vector<8x256xf32> -> vector<8x256xf32>
    %1278 = arith.mulf %1277, %1273 : vector<8x256xf32>
    %1279 = arith.addf %1269, %1278 : vector<8x256xf32>
    %1280 = arith.subf %1200, %1210 : vector<2x256xf32>
    %1281 = math.exp %1280 : vector<2x256xf32>
    %1282 = arith.addf %1272, %1281 : vector<2x256xf32>
    %c240_i32_396 = arith.constant 240 : i32
    %1283 = tpu.dynamic_rotate %1133 by %c240_i32_396 dim 1 : vector<8x256xf32>, i32 -> vector<8x256xf32>
    %1284 = vector.broadcast %46 : vector<1x256xf32> to vector<2x256xf32>
    %1285 = arith.mulf %1281, %1284 : vector<2x256xf32>
    %1286 = arith.truncf %1285 : vector<2x256xf32> to vector<2x256xbf16>
    %cst_397 = arith.constant dense<0.000000e+00> : vector<8x256xf32>
    %1287 = tpu.matmul %57, %1286, %cst_397 {dimension_numbers = #tpu.dot_dimension_numbers<[1], [0], [0], [1], [0, 0, 1, 1], [], []>} : vector<8x2xbf16>, vector<2x256xbf16>, vector<8x256xf32> -> vector<8x256xf32>
    %1288 = arith.mulf %1287, %1283 : vector<8x256xf32>
    %1289 = arith.addf %1279, %1288 : vector<8x256xf32>
    %1290 = arith.subf %1209, %1210 : vector<2x256xf32>
    %1291 = math.exp %1290 : vector<2x256xf32>
    %1292 = arith.addf %1282, %1291 : vector<2x256xf32>
    %c239_i32_398 = arith.constant 239 : i32
    %1293 = tpu.dynamic_rotate %1133 by %c239_i32_398 dim 1 : vector<8x256xf32>, i32 -> vector<8x256xf32>
    %1294 = vector.broadcast %54 : vector<1x256xf32> to vector<2x256xf32>
    %1295 = arith.mulf %1291, %1294 : vector<2x256xf32>
    %1296 = arith.truncf %1295 : vector<2x256xf32> to vector<2x256xbf16>
    %cst_399 = arith.constant dense<0.000000e+00> : vector<8x256xf32>
    %1297 = tpu.matmul %57, %1296, %cst_399 {dimension_numbers = #tpu.dot_dimension_numbers<[1], [0], [0], [1], [0, 0, 1, 1], [], []>} : vector<8x2xbf16>, vector<2x256xbf16>, vector<8x256xf32> -> vector<8x256xf32>
    %1298 = arith.mulf %1297, %1293 : vector<8x256xf32>
    %1299 = arith.addf %1289, %1298 : vector<8x256xf32>
    %1300 = tpu.reciprocal %1292 : vector<2x256xf32> -> vector<2x256xf32>
    %cst_400 = arith.constant dense<0.000000e+00> : vector<8x256xf32>
    %1301 = tpu.matmul %56, %1300, %cst_400 {dimension_numbers = #tpu.dot_dimension_numbers<[1], [0], [0], [1], [0, 0, 1, 1], [], []>} : vector<8x2xf32>, vector<2x256xf32>, vector<8x256xf32> -> vector<8x256xf32>
    %1302 = arith.mulf %1299, %1301 : vector<8x256xf32>
    %1303 = arith.truncf %1302 : vector<8x256xf32> to vector<8x256xbf16>
    %cst_401 = arith.constant dense<0.000000e+00> : vector<8x256xf32>
    %1304 = tpu.matmul %943, %1303, %cst_401 {dimension_numbers = #tpu.dot_dimension_numbers<[1], [0], [0], [1], [0, 0, 1, 1], [], []>} : vector<8x8xbf16>, vector<8x256xbf16>, vector<8x256xf32> -> vector<8x256xf32>
    %1305 = arith.addf %1304, %937 : vector<8x256xf32>
    %cst_402 = arith.constant dense<0.000000e+00> : vector<8xf32>
    %1306 = vector.multi_reduction <add>, %1125, %cst_402 [1] : vector<8x256xf32> to vector<8xf32>
    %1307 = vector.shape_cast %1306 : vector<8xf32> to vector<8x1xf32>
    %cst_403 = arith.constant 0.000000e+00 : f32
    %1308 = vector.broadcast %cst_403 : f32 to vector<8x1xf32>
    %1309 = arith.addf %1308, %1307 : vector<8x1xf32>
    %cst_404 = arith.constant dense<0.000000e+00> : vector<8xf32>
    %1310 = vector.multi_reduction <add>, %1305, %cst_404 [1] : vector<8x256xf32> to vector<8xf32>
    %1311 = vector.shape_cast %1310 : vector<8xf32> to vector<8x1xf32>
    %1312 = arith.addf %1309, %1311 : vector<8x1xf32>
    %cst_405 = arith.constant 0.001953125 : f32
    %1313 = vector.broadcast %cst_405 : f32 to vector<8x1xf32>
    %1314 = arith.mulf %1312, %1313 : vector<8x1xf32>
    %1315 = vector.broadcast %1314 : vector<8x1xf32> to vector<8x256xf32>
    %1316 = arith.subf %1125, %1315 : vector<8x256xf32>
    %1317 = arith.mulf %1316, %1316 : vector<8x256xf32>
    %cst_406 = arith.constant dense<0.000000e+00> : vector<8xf32>
    %1318 = vector.multi_reduction <add>, %1317, %cst_406 [1] : vector<8x256xf32> to vector<8xf32>
    %1319 = vector.shape_cast %1318 : vector<8xf32> to vector<8x1xf32>
    %cst_407 = arith.constant 0.000000e+00 : f32
    %1320 = vector.broadcast %cst_407 : f32 to vector<8x1xf32>
    %1321 = arith.addf %1320, %1319 : vector<8x1xf32>
    %1322 = vector.broadcast %1314 : vector<8x1xf32> to vector<8x256xf32>
    %1323 = arith.subf %1305, %1322 : vector<8x256xf32>
    %1324 = arith.mulf %1323, %1323 : vector<8x256xf32>
    %cst_408 = arith.constant dense<0.000000e+00> : vector<8xf32>
    %1325 = vector.multi_reduction <add>, %1324, %cst_408 [1] : vector<8x256xf32> to vector<8xf32>
    %1326 = vector.shape_cast %1325 : vector<8xf32> to vector<8x1xf32>
    %1327 = arith.addf %1321, %1326 : vector<8x1xf32>
    %cst_409 = arith.constant 0.001953125 : f32
    %1328 = vector.broadcast %cst_409 : f32 to vector<8x1xf32>
    %1329 = arith.mulf %1327, %1328 : vector<8x1xf32>
    %cst_410 = arith.constant 9.99999974E-6 : f32
    %1330 = vector.broadcast %cst_410 : f32 to vector<8x1xf32>
    %1331 = arith.addf %1329, %1330 : vector<8x1xf32>
    %1332 = math.rsqrt %1331 : vector<8x1xf32>
    %1333 = arith.mulf %944, %1332 : vector<8x1xf32>
    %1334 = arith.mulf %1314, %1333 : vector<8x1xf32>
    %1335 = arith.subf %945, %1334 : vector<8x1xf32>
    %1336 = vector.broadcast %1333 : vector<8x1xf32> to vector<8x256xf32>
    %1337 = arith.mulf %1125, %1336 : vector<8x256xf32>
    %1338 = vector.broadcast %1335 : vector<8x1xf32> to vector<8x256xf32>
    %1339 = arith.addf %1337, %1338 : vector<8x256xf32>
    %1340 = vector.broadcast %1333 : vector<8x1xf32> to vector<8x256xf32>
    %1341 = arith.mulf %1305, %1340 : vector<8x256xf32>
    %1342 = vector.broadcast %1335 : vector<8x1xf32> to vector<8x256xf32>
    %1343 = arith.addf %1341, %1342 : vector<8x256xf32>
    %c4 = arith.constant 4 : index
    %c0_411 = arith.constant 0 : index
    %c0_412 = arith.constant 0 : index
    %1344 = vector.load %arg12[%c4, %c0_411, %c0_412] : memref<5x8x2xf32, #tpu.memory_space<vmem>>, vector<1x8x2xf32>
    %1345 = vector.shape_cast %1344 : vector<1x8x2xf32> to vector<8x2xf32>
    %c1_413 = arith.constant 1 : index
    %c0_414 = arith.constant 0 : index
    %c0_415 = arith.constant 0 : index
    %1346 = vector.load %arg8[%c1_413, %c0_414, %c0_415] : memref<2x8x8xbf16, #tpu.memory_space<vmem>>, vector<1x8x8xbf16>
    %1347 = vector.shape_cast %1346 : vector<1x8x8xbf16> to vector<8x8xbf16>
    %c1_416 = arith.constant 1 : index
    %c0_417 = arith.constant 0 : index
    %c0_418 = arith.constant 0 : index
    %1348 = vector.load %arg9[%c1_416, %c0_417, %c0_418] : memref<2x8x1xf32, #tpu.memory_space<vmem>>, vector<1x8x1xf32>
    %1349 = vector.shape_cast %1348 : vector<1x8x1xf32> to vector<8x1xf32>
    %c1_419 = arith.constant 1 : index
    %c0_420 = arith.constant 0 : index
    %c0_421 = arith.constant 0 : index
    %1350 = vector.load %arg10[%c1_419, %c0_420, %c0_421] : memref<2x8x8xbf16, #tpu.memory_space<vmem>>, vector<1x8x8xbf16>
    %1351 = vector.shape_cast %1350 : vector<1x8x8xbf16> to vector<8x8xbf16>
    %c1_422 = arith.constant 1 : index
    %c0_423 = arith.constant 0 : index
    %c0_424 = arith.constant 0 : index
    %1352 = vector.load %arg11[%c1_422, %c0_423, %c0_424] : memref<2x8x1xf32, #tpu.memory_space<vmem>>, vector<1x8x1xf32>
    %1353 = vector.shape_cast %1352 : vector<1x8x1xf32> to vector<8x1xf32>
    %1354 = vector.extract_strided_slice %1345 {offsets = [0, 0], sizes = [8, 1], strides = [1, 1]} : vector<8x2xf32> to vector<8x1xf32>
    %1355 = vector.extract_strided_slice %1345 {offsets = [0, 1], sizes = [8, 1], strides = [1, 1]} : vector<8x2xf32> to vector<8x1xf32>
    %1356 = arith.truncf %1339 : vector<8x256xf32> to vector<8x256xbf16>
    %cst_425 = arith.constant dense<0.000000e+00> : vector<8x256xf32>
    %1357 = tpu.matmul %1347, %1356, %cst_425 {dimension_numbers = #tpu.dot_dimension_numbers<[1], [0], [0], [1], [0, 0, 1, 1], [], []>} : vector<8x8xbf16>, vector<8x256xbf16>, vector<8x256xf32> -> vector<8x256xf32>
    %1358 = vector.broadcast %1349 : vector<8x1xf32> to vector<8x256xf32>
    %1359 = arith.addf %1357, %1358 : vector<8x256xf32>
    %cst_426 = arith.constant 0.000000e+00 : f32
    %1360 = vector.broadcast %cst_426 : f32 to vector<8x256xf32>
    %1361 = arith.maximumf %1359, %1360 : vector<8x256xf32>
    %1362 = arith.truncf %1361 : vector<8x256xf32> to vector<8x256xbf16>
    %cst_427 = arith.constant dense<0.000000e+00> : vector<8x256xf32>
    %1363 = tpu.matmul %1351, %1362, %cst_427 {dimension_numbers = #tpu.dot_dimension_numbers<[1], [0], [0], [1], [0, 0, 1, 1], [], []>} : vector<8x8xbf16>, vector<8x256xbf16>, vector<8x256xf32> -> vector<8x256xf32>
    %1364 = vector.broadcast %1353 : vector<8x1xf32> to vector<8x256xf32>
    %1365 = arith.addf %1363, %1364 : vector<8x256xf32>
    %1366 = arith.truncf %1343 : vector<8x256xf32> to vector<8x256xbf16>
    %cst_428 = arith.constant dense<0.000000e+00> : vector<8x256xf32>
    %1367 = tpu.matmul %1347, %1366, %cst_428 {dimension_numbers = #tpu.dot_dimension_numbers<[1], [0], [0], [1], [0, 0, 1, 1], [], []>} : vector<8x8xbf16>, vector<8x256xbf16>, vector<8x256xf32> -> vector<8x256xf32>
    %1368 = vector.broadcast %1349 : vector<8x1xf32> to vector<8x256xf32>
    %1369 = arith.addf %1367, %1368 : vector<8x256xf32>
    %cst_429 = arith.constant 0.000000e+00 : f32
    %1370 = vector.broadcast %cst_429 : f32 to vector<8x256xf32>
    %1371 = arith.maximumf %1369, %1370 : vector<8x256xf32>
    %1372 = arith.truncf %1371 : vector<8x256xf32> to vector<8x256xbf16>
    %cst_430 = arith.constant dense<0.000000e+00> : vector<8x256xf32>
    %1373 = tpu.matmul %1351, %1372, %cst_430 {dimension_numbers = #tpu.dot_dimension_numbers<[1], [0], [0], [1], [0, 0, 1, 1], [], []>} : vector<8x8xbf16>, vector<8x256xbf16>, vector<8x256xf32> -> vector<8x256xf32>
    %1374 = vector.broadcast %1353 : vector<8x1xf32> to vector<8x256xf32>
    %1375 = arith.addf %1373, %1374 : vector<8x256xf32>
    %cst_431 = arith.constant dense<0.000000e+00> : vector<8xf32>
    %1376 = vector.multi_reduction <add>, %1365, %cst_431 [1] : vector<8x256xf32> to vector<8xf32>
    %1377 = vector.shape_cast %1376 : vector<8xf32> to vector<8x1xf32>
    %cst_432 = arith.constant 0.000000e+00 : f32
    %1378 = vector.broadcast %cst_432 : f32 to vector<8x1xf32>
    %1379 = arith.addf %1378, %1377 : vector<8x1xf32>
    %cst_433 = arith.constant dense<0.000000e+00> : vector<8xf32>
    %1380 = vector.multi_reduction <add>, %1375, %cst_433 [1] : vector<8x256xf32> to vector<8xf32>
    %1381 = vector.shape_cast %1380 : vector<8xf32> to vector<8x1xf32>
    %1382 = arith.addf %1379, %1381 : vector<8x1xf32>
    %cst_434 = arith.constant 0.001953125 : f32
    %1383 = vector.broadcast %cst_434 : f32 to vector<8x1xf32>
    %1384 = arith.mulf %1382, %1383 : vector<8x1xf32>
    %1385 = vector.broadcast %1384 : vector<8x1xf32> to vector<8x256xf32>
    %1386 = arith.subf %1365, %1385 : vector<8x256xf32>
    %1387 = arith.mulf %1386, %1386 : vector<8x256xf32>
    %cst_435 = arith.constant dense<0.000000e+00> : vector<8xf32>
    %1388 = vector.multi_reduction <add>, %1387, %cst_435 [1] : vector<8x256xf32> to vector<8xf32>
    %1389 = vector.shape_cast %1388 : vector<8xf32> to vector<8x1xf32>
    %cst_436 = arith.constant 0.000000e+00 : f32
    %1390 = vector.broadcast %cst_436 : f32 to vector<8x1xf32>
    %1391 = arith.addf %1390, %1389 : vector<8x1xf32>
    %1392 = vector.broadcast %1384 : vector<8x1xf32> to vector<8x256xf32>
    %1393 = arith.subf %1375, %1392 : vector<8x256xf32>
    %1394 = arith.mulf %1393, %1393 : vector<8x256xf32>
    %cst_437 = arith.constant dense<0.000000e+00> : vector<8xf32>
    %1395 = vector.multi_reduction <add>, %1394, %cst_437 [1] : vector<8x256xf32> to vector<8xf32>
    %1396 = vector.shape_cast %1395 : vector<8xf32> to vector<8x1xf32>
    %1397 = arith.addf %1391, %1396 : vector<8x1xf32>
    %cst_438 = arith.constant 0.001953125 : f32
    %1398 = vector.broadcast %cst_438 : f32 to vector<8x1xf32>
    %1399 = arith.mulf %1397, %1398 : vector<8x1xf32>
    %cst_439 = arith.constant 9.99999974E-6 : f32
    %1400 = vector.broadcast %cst_439 : f32 to vector<8x1xf32>
    %1401 = arith.addf %1399, %1400 : vector<8x1xf32>
    %1402 = math.rsqrt %1401 : vector<8x1xf32>
    %1403 = arith.mulf %1354, %1402 : vector<8x1xf32>
    %1404 = arith.mulf %1384, %1403 : vector<8x1xf32>
    %1405 = arith.subf %1355, %1404 : vector<8x1xf32>
    %1406 = vector.broadcast %1403 : vector<8x1xf32> to vector<8x256xf32>
    %1407 = arith.mulf %1365, %1406 : vector<8x256xf32>
    %1408 = vector.broadcast %1405 : vector<8x1xf32> to vector<8x256xf32>
    %1409 = arith.addf %1407, %1408 : vector<8x256xf32>
    %1410 = vector.broadcast %1403 : vector<8x1xf32> to vector<8x256xf32>
    %1411 = arith.mulf %1375, %1410 : vector<8x256xf32>
    %1412 = vector.broadcast %1405 : vector<8x1xf32> to vector<8x256xf32>
    %1413 = arith.addf %1411, %1412 : vector<8x256xf32>
    %1414 = arith.addf %1409, %1339 : vector<8x256xf32>
    %1415 = arith.addf %1413, %1343 : vector<8x256xf32>
    %c0_440 = arith.constant 0 : index
    %c0_441 = arith.constant 0 : index
    %c0_442 = arith.constant 0 : index
    %c0_443 = arith.constant 0 : index
    %1416 = vector.load %arg13[%c0_440, %c0_441, %c0_442, %c0_443] : memref<1x2x8x256xf32, #tpu.memory_space<vmem>>, vector<1x1x8x256xf32>
    %1417 = vector.shape_cast %1416 : vector<1x1x8x256xf32> to vector<8x256xf32>
    %1418 = vector.shape_cast %1414 : vector<8x256xf32> to vector<1x1x8x256xf32>
    tpu.vector_store %arg13[%c0_440, %c0_441, %c0_442, %c0_443], %1418 {strides = array<i32>} : memref<1x2x8x256xf32, #tpu.memory_space<vmem>>, vector<1x1x8x256xf32>,
    %c0_444 = arith.constant 0 : index
    %c1_445 = arith.constant 1 : index
    %c0_446 = arith.constant 0 : index
    %c0_447 = arith.constant 0 : index
    %1419 = vector.load %arg13[%c0_444, %c1_445, %c0_446, %c0_447] : memref<1x2x8x256xf32, #tpu.memory_space<vmem>>, vector<1x1x8x256xf32>
    %1420 = vector.shape_cast %1419 : vector<1x1x8x256xf32> to vector<8x256xf32>
    %1421 = vector.shape_cast %1415 : vector<8x256xf32> to vector<1x1x8x256xf32>
    tpu.vector_store %arg13[%c0_444, %c1_445, %c0_446, %c0_447], %1421 {strides = array<i32>} : memref<1x2x8x256xf32, #tpu.memory_space<vmem>>, vector<1x1x8x256xf32>,
    return
  }
  func.func @transform_0(%arg0: i32) -> (i32, i32, i32, i32) {
    %c0_i32 = arith.constant 0 : i32
    %c0_i32_0 = arith.constant 0 : i32
    %c0_i32_1 = arith.constant 0 : i32
    %c0_i32_2 = arith.constant 0 : i32
    return %arg0, %c0_i32, %c0_i32_0, %c0_i32_1 : i32, i32, i32, i32
  }
  func.func @transform_1(%arg0: i32) -> (i32, i32, i32, i32) {
    %c0_i32 = arith.constant 0 : i32
    %c0_i32_0 = arith.constant 0 : i32
    %c0_i32_1 = arith.constant 0 : i32
    %c0_i32_2 = arith.constant 0 : i32
    return %arg0, %c0_i32, %c0_i32_0, %c0_i32_1 : i32, i32, i32, i32
  }
  func.func @transform_2(%arg0: i32) -> (i32, i32) {
    %c0_i32 = arith.constant 0 : i32
    %c0_i32_0 = arith.constant 0 : i32
    %c0_i32_1 = arith.constant 0 : i32
    return %c0_i32, %c0_i32_0 : i32, i32
  }
  func.func @transform_3(%arg0: i32) -> (i32, i32) {
    %c0_i32 = arith.constant 0 : i32
    %c0_i32_0 = arith.constant 0 : i32
    %c0_i32_1 = arith.constant 0 : i32
    return %c0_i32, %c0_i32_0 : i32, i32
  }
  func.func @transform_4(%arg0: i32) -> (i32, i32) {
    %c0_i32 = arith.constant 0 : i32
    %c0_i32_0 = arith.constant 0 : i32
    %c0_i32_1 = arith.constant 0 : i32
    return %c0_i32, %c0_i32_0 : i32, i32
  }
  func.func @transform_5(%arg0: i32) -> (i32, i32, i32) {
    %c0_i32 = arith.constant 0 : i32
    %c0_i32_0 = arith.constant 0 : i32
    %c0_i32_1 = arith.constant 0 : i32
    %c0_i32_2 = arith.constant 0 : i32
    return %c0_i32, %c0_i32_0, %c0_i32_1 : i32, i32, i32
  }
  func.func @transform_6(%arg0: i32) -> (i32, i32, i32) {
    %c0_i32 = arith.constant 0 : i32
    %c0_i32_0 = arith.constant 0 : i32
    %c0_i32_1 = arith.constant 0 : i32
    %c0_i32_2 = arith.constant 0 : i32
    return %c0_i32, %c0_i32_0, %c0_i32_1 : i32, i32, i32
  }
  func.func @transform_7(%arg0: i32) -> (i32, i32, i32) {
    %c0_i32 = arith.constant 0 : i32
    %c0_i32_0 = arith.constant 0 : i32
    %c0_i32_1 = arith.constant 0 : i32
    %c0_i32_2 = arith.constant 0 : i32
    return %c0_i32, %c0_i32_0, %c0_i32_1 : i32, i32, i32
  }
  func.func @transform_8(%arg0: i32) -> (i32, i32, i32) {
    %c0_i32 = arith.constant 0 : i32
    %c0_i32_0 = arith.constant 0 : i32
    %c0_i32_1 = arith.constant 0 : i32
    %c0_i32_2 = arith.constant 0 : i32
    return %c0_i32, %c0_i32_0, %c0_i32_1 : i32, i32, i32
  }
  func.func @transform_9(%arg0: i32) -> (i32, i32, i32) {
    %c0_i32 = arith.constant 0 : i32
    %c0_i32_0 = arith.constant 0 : i32
    %c0_i32_1 = arith.constant 0 : i32
    %c0_i32_2 = arith.constant 0 : i32
    return %c0_i32, %c0_i32_0, %c0_i32_1 : i32, i32, i32
  }
  func.func @transform_10(%arg0: i32) -> (i32, i32, i32) {
    %c0_i32 = arith.constant 0 : i32
    %c0_i32_0 = arith.constant 0 : i32
    %c0_i32_1 = arith.constant 0 : i32
    %c0_i32_2 = arith.constant 0 : i32
    return %c0_i32, %c0_i32_0, %c0_i32_1 : i32, i32, i32
  }
  func.func @transform_11(%arg0: i32) -> (i32, i32, i32) {
    %c0_i32 = arith.constant 0 : i32
    %c0_i32_0 = arith.constant 0 : i32
    %c0_i32_1 = arith.constant 0 : i32
    %c0_i32_2 = arith.constant 0 : i32
    return %c0_i32, %c0_i32_0, %c0_i32_1 : i32, i32, i32
  }
  func.func @transform_12(%arg0: i32) -> (i32, i32, i32, i32) {
    %c0_i32 = arith.constant 0 : i32
    %c0_i32_0 = arith.constant 0 : i32
    %c0_i32_1 = arith.constant 0 : i32
    %c0_i32_2 = arith.constant 0 : i32
    return %arg0, %c0_i32, %c0_i32_0, %c0_i32_1 : i32, i32, i32, i32
  }
}

</mosaic_0001>

<bundles_post_ra>
// kernel: squeeze.3
= control target key start
LH: loop header
LB: loop body
LE: loop exit
PB: predicated region body
PF: predicated region fallthrough
CT: control target
= control target key end

     0   :  { %s351_s8 = smov 112   ;;  %s468_s0 = inlined_call_operand.vmem [shape: f32[1,2,8,256], index: 0, kind: input, shape index: {}]   ;;  %s469_s1 = inlined_call_operand.hbm [shape: f32[2,8,16,16], index: 1, kind: output, shape index: {}]  }
   0x1   :  { %v301_v0 = vld.sshfl [vmem:[%s468_s0 + $0x10] sm:$0xff pattern:$0xb3a29180]   ;;  %v42_v1 = vld.sshfl [vmem:[%s468_s0] sm:$0xff pattern:$0xb3a29180]  }
   0x2   :  { %61 = vrot.lane.b32.xlu1 %v301_v0, %s351_s8  ;;  %43 = vrot.lane.b32.xlu0 %v42_v1, %s351_s8  ;;  %v302_v2 = vld.sshfl [vmem:[%s468_s0 + $0x14] sm:$0xff pattern:$0xb3a29180]   ;;  %v300_v3 = vld.sshfl [vmem:[%s468_s0 + $0x4] sm:$0xff pattern:$0xb3a29180]  }
   0x3   :  { %2 = vsyncpa [#allocation1], 0  ;;  %s352_s15 = smov 96   ;;  %s353_s16 = smov 80   ;;  %vm4_vm0 = vcmask 130048   ;;  %v3_v4 = vld [vmem:[%s468_s0] sm:$0xff]  }
   0x4   :  { %s354_s17 = smov 64   ;;  %s355_s18 = smov 48   ;;  %v297_v5 = vld [vmem:[%s468_s0 + $0x8] sm:$0xff]   ;;  %v298_v6 = vld [vmem:[%s468_s0 + $0x10] sm:$0xff]   ;;  %v299_v7 = vld [vmem:[%s468_s0 + $0x18] sm:$0xff]  }
   0x5   :  { %s356_s25 = smov 32   ;;  %5 = vst.msk [vmem:[#allocation0] ss:$16 sm:$0x3] %vm4_vm0, %v3_v4   ;;  %s357_s0 = smov 16  }
   0x6   :  { %70 = vrot.lane.b32.xlu1 %v302_v2, %s351_s8  ;;  %52 = vrot.lane.b32.xlu0 %v300_v3, %s351_s8  ;;  %6 = vst.msk [vmem:[#allocation0] ss:$16 sm:$0xc] %vm4_vm0, %v3_v4   ;;  %7 = vst.msk [vmem:[#allocation0] ss:$16 sm:$0x30] %vm4_vm0, %v3_v4  }
   0x7   :  { %8 = vst.msk [vmem:[#allocation0] ss:$16 sm:$0xc0] %vm4_vm0, %v3_v4   ;;  %13 = vst.msk [vmem:[#allocation0 + $0x8] ss:$16 sm:$0x3] %vm4_vm0, %v297_v5  }
   0x8   :  { %15 = vst.msk [vmem:[#allocation0 + $0x8] ss:$16 sm:$0xc] %vm4_vm0, %v297_v5   ;;  %17 = vst.msk [vmem:[#allocation0 + $0x8] ss:$16 sm:$0x30] %vm4_vm0, %v297_v5  }
   0x9   :  { %19 = vst.msk [vmem:[#allocation0 + $0x8] ss:$16 sm:$0xc0] %vm4_vm0, %v297_v5   ;;  %24 = vst.msk [vmem:[#allocation0 + $0x80] ss:$16 sm:$0x3] %vm4_vm0, %v298_v6  }
   0xa   :  { %87 = vrot.lane.b32.xlu1 %v300_v3, %s352_s15  ;;  %78 = vrot.lane.b32.xlu0 %v42_v1, %s352_s15  ;;  %26 = vst.msk [vmem:[#allocation0 + $0x80] ss:$16 sm:$0xc] %vm4_vm0, %v298_v6   ;;  %28 = vst.msk [vmem:[#allocation0 + $0x80] ss:$16 sm:$0x30] %vm4_vm0, %v298_v6  }
   0xb   :  { %30 = vst.msk [vmem:[#allocation0 + $0x80] ss:$16 sm:$0xc0] %vm4_vm0, %v298_v6   ;;  %35 = vst.msk [vmem:[#allocation0 + $0x88] ss:$16 sm:$0x3] %vm4_vm0, %v299_v7  }
   0xc   :  { %37 = vst.msk [vmem:[#allocation0 + $0x88] ss:$16 sm:$0xc] %vm4_vm0, %v299_v7   ;;  %39 = vst.msk [vmem:[#allocation0 + $0x88] ss:$16 sm:$0x30] %vm4_vm0, %v299_v7  }
   0xd   :  { %41 = vst.msk [vmem:[#allocation0 + $0x88] ss:$16 sm:$0xc0] %vm4_vm0, %v299_v7   ;;  %s358_s28 = smov [#allocation0]  }
   0xe   :  { %105 = vrot.lane.b32.xlu1 %v302_v2, %s352_s15  ;;  %96 = vrot.lane.b32.xlu0 %v301_v0, %s352_s15  ;;  %s291_s29 = sshll.u32 %s358_s28, 4  ;;  %s292_s29 = int_to_ptr.vmem [resolvable:$true] %s291_s29 }
   0xf   :  { %s329_s30 = scalar_lea.vmem %s292_s29, 4096  ;;  %p334_p1 = scmp.lt.s32.totalorder %s292_s29, %s292_s29 }
  0x10   :  { %p330_p0 = scmp.ne.s32.totalorder %s292_s29, %s329_s30  ;;  %p335_p2 = scmp.lt.s32.totalorder %s329_s30, %s329_s30 }
  0x12   :  { %122 = vrot.lane.b32.xlu1 %v300_v3, %s353_s16  ;;  %113 = vrot.lane.b32.xlu0 %v42_v1, %s353_s16  ;;  %p336_p3 = por %p335_p2, %p334_p1 }
  0x14   :  { %p337_p4 = pnand %p336_p3, %p330_p0 }
  0x16   :  { %140 = vrot.lane.b32.xlu1 %v302_v2, %s353_s16  ;;  %131 = vrot.lane.b32.xlu0 %v301_v0, %s353_s16 }
  0x1a   :  { %157 = vrot.lane.b32.xlu1 %v300_v3, %s354_s17  ;;  %148 = vrot.lane.b32.xlu0 %v42_v1, %s354_s17 }
  0x1e   :  { %175 = vrot.lane.b32.xlu1 %v302_v2, %s354_s17  ;;  %166 = vrot.lane.b32.xlu0 %v301_v0, %s354_s17 }
  0x22   :  { %192 = vrot.lane.b32.xlu1 %v300_v3, %s355_s18  ;;  %183 = vrot.lane.b32.xlu0 %v42_v1, %s355_s18 }
  0x26   :  { %210 = vrot.lane.b32.xlu1 %v302_v2, %s355_s18  ;;  %201 = vrot.lane.b32.xlu0 %v301_v0, %s355_s18 }
  0x2a   :  { %227 = vrot.lane.b32.xlu1 %v300_v3, %s356_s25  ;;  %218 = vrot.lane.b32.xlu0 %v42_v1, %s356_s25 }
  0x2e   :  { %245 = vrot.lane.b32.xlu1 %v302_v2, %s356_s25  ;;  %236 = vrot.lane.b32.xlu0 %v301_v0, %s356_s25 }
  0x32   :  { %262 = vrot.lane.b32.xlu1 %v300_v3, %s357_s0  ;;  %253 = vrot.lane.b32.xlu0 %v42_v1, %s357_s0 }
  0x36   :  { %280 = vrot.lane.b32.xlu1 %v302_v2, %s357_s0  ;;  %271 = vrot.lane.b32.xlu0 %v301_v0, %s357_s0 }
  0x74   :  { %v62_v8 = vpop.permute.xlu1 %61   ;;  %v44_v9 = vpop.permute.xlu0 %43  }
  0x75   :  { %65 = vst.msk [vmem:[#allocation0 + $0x81] ss:$8 sm:$0xf] %vm4_vm0, %v62_v8   ;;  %67 = vst.msk [vmem:[#allocation0 + $0x81] ss:$8 sm:$0xf0] %vm4_vm0, %v62_v8  }
  0x76   :  { %47 = vst.msk [vmem:[#allocation0 + $0x1] ss:$8 sm:$0xf] %vm4_vm0, %v44_v9   ;;  %49 = vst.msk [vmem:[#allocation0 + $0x1] ss:$8 sm:$0xf0] %vm4_vm0, %v44_v9  }
  0x78   :  { %v71_v10 = vpop.permute.xlu1 %70   ;;  %v53_v11 = vpop.permute.xlu0 %52  }
  0x79   :  { %74 = vst.msk [vmem:[#allocation0 + $0xc1] ss:$8 sm:$0xf] %vm4_vm0, %v71_v10   ;;  %76 = vst.msk [vmem:[#allocation0 + $0xc1] ss:$8 sm:$0xf0] %vm4_vm0, %v71_v10  }
  0x7a   :  { %56 = vst.msk [vmem:[#allocation0 + $0x41] ss:$8 sm:$0xf] %vm4_vm0, %v53_v11   ;;  %58 = vst.msk [vmem:[#allocation0 + $0x41] ss:$8 sm:$0xf0] %vm4_vm0, %v53_v11  }
  0x7c   :  { %v88_v12 = vpop.permute.xlu1 %87   ;;  %v79_v13 = vpop.permute.xlu0 %78  }
  0x7d   :  { %91 = vst.msk [vmem:[#allocation0 + $0x42] ss:$8 sm:$0xf] %vm4_vm0, %v88_v12   ;;  %93 = vst.msk [vmem:[#allocation0 + $0x42] ss:$8 sm:$0xf0] %vm4_vm0, %v88_v12  }
  0x7e   :  { %82 = vst.msk [vmem:[#allocation0 + $0x2] ss:$8 sm:$0xf] %vm4_vm0, %v79_v13   ;;  %84 = vst.msk [vmem:[#allocation0 + $0x2] ss:$8 sm:$0xf0] %vm4_vm0, %v79_v13  }
  0x80   :  { %v106_v14 = vpop.permute.xlu1 %105   ;;  %v97_v15 = vpop.permute.xlu0 %96  }
  0x81   :  { %109 = vst.msk [vmem:[#allocation0 + $0xc2] ss:$8 sm:$0xf] %vm4_vm0, %v106_v14   ;;  %111 = vst.msk [vmem:[#allocation0 + $0xc2] ss:$8 sm:$0xf0] %vm4_vm0, %v106_v14  }
  0x82   :  { %100 = vst.msk [vmem:[#allocation0 + $0x82] ss:$8 sm:$0xf] %vm4_vm0, %v97_v15   ;;  %102 = vst.msk [vmem:[#allocation0 + $0x82] ss:$8 sm:$0xf0] %vm4_vm0, %v97_v15  }
  0x84   :  { %v123_v16 = vpop.permute.xlu1 %122   ;;  %v114_v17 = vpop.permute.xlu0 %113  }
  0x85   :  { %126 = vst.msk [vmem:[#allocation0 + $0x43] ss:$8 sm:$0xf] %vm4_vm0, %v123_v16   ;;  %128 = vst.msk [vmem:[#allocation0 + $0x43] ss:$8 sm:$0xf0] %vm4_vm0, %v123_v16  }
  0x86   :  { %117 = vst.msk [vmem:[#allocation0 + $0x3] ss:$8 sm:$0xf] %vm4_vm0, %v114_v17   ;;  %119 = vst.msk [vmem:[#allocation0 + $0x3] ss:$8 sm:$0xf0] %vm4_vm0, %v114_v17  }
  0x88   :  { %v141_v18 = vpop.permute.xlu1 %140   ;;  %v132_v19 = vpop.permute.xlu0 %131  }
  0x89   :  { %144 = vst.msk [vmem:[#allocation0 + $0xc3] ss:$8 sm:$0xf] %vm4_vm0, %v141_v18   ;;  %146 = vst.msk [vmem:[#allocation0 + $0xc3] ss:$8 sm:$0xf0] %vm4_vm0, %v141_v18  }
  0x8a   :  { %135 = vst.msk [vmem:[#allocation0 + $0x83] ss:$8 sm:$0xf] %vm4_vm0, %v132_v19   ;;  %137 = vst.msk [vmem:[#allocation0 + $0x83] ss:$8 sm:$0xf0] %vm4_vm0, %v132_v19  }
  0x8c   :  { %v158_v20 = vpop.permute.xlu1 %157   ;;  %v149_v21 = vpop.permute.xlu0 %148  }
  0x8d   :  { %161 = vst.msk [vmem:[#allocation0 + $0x44] ss:$8 sm:$0xf] %vm4_vm0, %v158_v20   ;;  %163 = vst.msk [vmem:[#allocation0 + $0x44] ss:$8 sm:$0xf0] %vm4_vm0, %v158_v20  }
  0x8e   :  { %152 = vst.msk [vmem:[#allocation0 + $0x4] ss:$8 sm:$0xf] %vm4_vm0, %v149_v21   ;;  %154 = vst.msk [vmem:[#allocation0 + $0x4] ss:$8 sm:$0xf0] %vm4_vm0, %v149_v21  }
  0x90   :  { %v176_v22 = vpop.permute.xlu1 %175   ;;  %v167_v23 = vpop.permute.xlu0 %166  }
  0x91   :  { %179 = vst.msk [vmem:[#allocation0 + $0xc4] ss:$8 sm:$0xf] %vm4_vm0, %v176_v22   ;;  %181 = vst.msk [vmem:[#allocation0 + $0xc4] ss:$8 sm:$0xf0] %vm4_vm0, %v176_v22  }
  0x92   :  { %170 = vst.msk [vmem:[#allocation0 + $0x84] ss:$8 sm:$0xf] %vm4_vm0, %v167_v23   ;;  %172 = vst.msk [vmem:[#allocation0 + $0x84] ss:$8 sm:$0xf0] %vm4_vm0, %v167_v23  }
  0x94   :  { %v193_v24 = vpop.permute.xlu1 %192   ;;  %v184_v25 = vpop.permute.xlu0 %183  }
  0x95   :  { %196 = vst.msk [vmem:[#allocation0 + $0x45] ss:$8 sm:$0xf] %vm4_vm0, %v193_v24   ;;  %198 = vst.msk [vmem:[#allocation0 + $0x45] ss:$8 sm:$0xf0] %vm4_vm0, %v193_v24  }
  0x96   :  { %187 = vst.msk [vmem:[#allocation0 + $0x5] ss:$8 sm:$0xf] %vm4_vm0, %v184_v25   ;;  %189 = vst.msk [vmem:[#allocation0 + $0x5] ss:$8 sm:$0xf0] %vm4_vm0, %v184_v25  }
  0x98   :  { %v211_v26 = vpop.permute.xlu1 %210   ;;  %v202_v27 = vpop.permute.xlu0 %201  }
  0x99   :  { %214 = vst.msk [vmem:[#allocation0 + $0xc5] ss:$8 sm:$0xf] %vm4_vm0, %v211_v26   ;;  %216 = vst.msk [vmem:[#allocation0 + $0xc5] ss:$8 sm:$0xf0] %vm4_vm0, %v211_v26  }
  0x9a   :  { %205 = vst.msk [vmem:[#allocation0 + $0x85] ss:$8 sm:$0xf] %vm4_vm0, %v202_v27   ;;  %207 = vst.msk [vmem:[#allocation0 + $0x85] ss:$8 sm:$0xf0] %vm4_vm0, %v202_v27  }
  0x9c   :  { %v228_v28 = vpop.permute.xlu1 %227   ;;  %v219_v29 = vpop.permute.xlu0 %218  }
  0x9d   :  { %231 = vst.msk [vmem:[#allocation0 + $0x46] ss:$8 sm:$0xf] %vm4_vm0, %v228_v28   ;;  %233 = vst.msk [vmem:[#allocation0 + $0x46] ss:$8 sm:$0xf0] %vm4_vm0, %v228_v28  }
  0x9e   :  { %222 = vst.msk [vmem:[#allocation0 + $0x6] ss:$8 sm:$0xf] %vm4_vm0, %v219_v29   ;;  %224 = vst.msk [vmem:[#allocation0 + $0x6] ss:$8 sm:$0xf0] %vm4_vm0, %v219_v29  }
  0xa0   :  { %v246_v30 = vpop.permute.xlu1 %245   ;;  %v237_v31 = vpop.permute.xlu0 %236  }
  0xa1   :  { %249 = vst.msk [vmem:[#allocation0 + $0xc6] ss:$8 sm:$0xf] %vm4_vm0, %v246_v30   ;;  %251 = vst.msk [vmem:[#allocation0 + $0xc6] ss:$8 sm:$0xf0] %vm4_vm0, %v246_v30  }
  0xa2   :  { %240 = vst.msk [vmem:[#allocation0 + $0x86] ss:$8 sm:$0xf] %vm4_vm0, %v237_v31   ;;  %242 = vst.msk [vmem:[#allocation0 + $0x86] ss:$8 sm:$0xf0] %vm4_vm0, %v237_v31  }
  0xa4   :  { %v263_v32 = vpop.permute.xlu1 %262   ;;  %v254_v33 = vpop.permute.xlu0 %253  }
  0xa5   :  { %266 = vst.msk [vmem:[#allocation0 + $0x47] ss:$8 sm:$0xf] %vm4_vm0, %v263_v32   ;;  %268 = vst.msk [vmem:[#allocation0 + $0x47] ss:$8 sm:$0xf0] %vm4_vm0, %v263_v32  }
  0xa6   :  { %257 = vst.msk [vmem:[#allocation0 + $0x7] ss:$8 sm:$0xf] %vm4_vm0, %v254_v33   ;;  %259 = vst.msk [vmem:[#allocation0 + $0x7] ss:$8 sm:$0xf0] %vm4_vm0, %v254_v33  }
  0xa8   :  { %v281_v34 = vpop.permute.xlu1 %280   ;;  %v272_v35 = vpop.permute.xlu0 %271  }
  0xa9   :  { %284 = vst.msk [vmem:[#allocation0 + $0xc7] ss:$8 sm:$0xf] %vm4_vm0, %v281_v34   ;;  %286 = vst.msk [vmem:[#allocation0 + $0xc7] ss:$8 sm:$0xf0] %vm4_vm0, %v281_v34  }
  0xaa   :  { %275 = vst.msk [vmem:[#allocation0 + $0x87] ss:$8 sm:$0xf] %vm4_vm0, %v272_v35   ;;  %277 = vst.msk [vmem:[#allocation0 + $0x87] ss:$8 sm:$0xf0] %vm4_vm0, %v272_v35  }
  0xab   :  { %340 = shalt.err (!%p337_p4)
}
  0xac   :  { %294 = dma.vmem_to_hbm [thread:$0]  %s292_s29, 4096, %s469_s1, [#allocation1]  }
  0xad   :  { %349 = dma.done.wait [#allocation1], 4096  }
  0xae   :  { %350 = vsyncadd [#allocation1], 4294963200 }
  0xaf   :  { %296 = vsyncpa [#allocation1], 1 }

// kernel: attention_layer_forward.1
= control target key start
LH: loop header
LB: loop body
LE: loop exit
PB: predicated region body
PF: predicated region fallthrough
CT: control target
= control target key end

     0   :  { %s10520_s21 = smov 0   ;;  %s13290_s0 = inlined_call_operand.vmem [shape: f32[2,2,8,256], index: 0, kind: input, shape index: {}]   ;;  %s13291_s1 = inlined_call_operand.vmem [shape: f32[2,2,8,256], index: 1, kind: input, shape index: {}]   ;;  %s13292_s2 = inlined_call_operand.vmem [shape: f32[2,256], index: 2, kind: input, shape index: {}]   ;;  %s13293_s3 = inlined_call_operand.vmem [shape: bf16[2,8], index: 3, kind: input, shape index: {}]   ;;  %s13294_s4 = inlined_call_operand.vmem [shape: f32[8,2], index: 4, kind: input, shape index: {}]   ;;  %s13295_s5 = inlined_call_operand.vmem [shape: bf16[3,24,8], index: 5, kind: input, shape index: {}]   ;;  %s13296_s6 = inlined_call_operand.vmem [shape: bf16[3,8,8], index: 6, kind: input, shape index: {}]   ;;  %s13297_s7 = inlined_call_operand.vmem [shape: bf16[2,8,8], index: 7, kind: input, shape index: {}]   ;;  %s13298_s8 = inlined_call_operand.vmem [shape: f32[2,8,1], index: 8, kind: input, shape index: {}]   ;;  %s13299_s9 = inlined_call_operand.vmem [shape: bf16[2,8,8], index: 9, kind: input, shape index: {}]   ;;  %s13300_s10 = inlined_call_operand.vmem [shape: f32[2,8,1], index: 10, kind: input, shape index: {}]   ;;  %s13301_s11 = inlined_call_operand.vmem [shape: f32[5,8,2], index: 11, kind: input, shape index: {}]   ;;  %s13302_s12 = inlined_call_operand.vmem [shape: f32[2,2,8,256], index: 12, kind: output, shape index: {}]  }
   0x1 LB: > { %s9801_s22 = sadd.s32 4294967295, %s10442_s21   ;;  %p9805_p0 = scmp.ge.s32.totalorder %s10442_s21, 1  ;;  %s10442_s21 = sphi %s10520_s21, %s22_s21  }
   0x2   : > { %p372_p1 = scmp.lt.s32.totalorder %s10442_s21, 3 }
   0x4   : > { %p373_p2 = pnand %p9805_p0, %p372_p1 }
   0x6   : > { %376 = sbr.rel (%p373_p2) target bundleno = 7723 (0x1e2b), region = 68 }
   0xb   : > { %p419_p3 = scmp.lt.s32.totalorder %s9801_s22, 1  ;;  %v13305_v0 = vmov 0   ;;  %vm491_vm0 = vcmask 1043456   ;;  %v10158_v6 = vld [vmem:[%s13295_s5] sm:$0xff]   ;;  %vm484_vm1 = vcmask 64512   ;;  %s10445_s13 = smov 16   ;;  %v553_v16 = vlaneseq }
   0xc   : > { %530 = vmatprep.mubr.bf16.mxu0 %v13305_v0  ;;  %603 = vmatprep.mubr.bf16.mxu1 %v13305_v0  ;;  %v10159_v7 = vld [vmem:[%s13295_s5 + $0x8] ss:$0 sps:$4 sm:$0xff]   ;;  %s10446_s14 = smov 17   ;;  %s10447_s15 = smov 15   ;;  %v10661_v43 = vld [vmem:[%s13293_s3] sm:$0x1] }
   0xd   : > { %s13505_s22 = smov (!%p419_p3, %s9801_s22), 1  ;;  %10147 = vset.pattern.permute.xlu0 %v13305_v0  ;;  %s10448_s16 = smov 1   ;;  %v10616_v17 = vand.u32 127, %v553_v16 }
   0xe   : > { %s10531_s23 = sshll.u32 %s13505_s22, 5  ;;  %s10449_s17 = smov 127  }
   0xf   : > { %s10537_s26 = scalar_lea.vmem %s13290_s0, %s10531_s23  ;;  %s10450_s18 = smov 113   ;;  %vm638_vm2 = vcmp.lt.s32.totalorder %v10616_v17, 16  ;;  %vm555_vm3 = vcmp.lt.s32.totalorder %v10616_v17, 17  ;;  %vm720_vm4 = vcmp.lt.s32.totalorder %v10616_v17, 15  ;;  %vm802_vm5 = vcmp.lt.s32.totalorder %v10616_v17, 1 }
  0x10   : > { %v460_v1 = vld [vmem:[%s10537_s26 + $0x8] sm:$0xff]  ;;  %v459_v2 = vld [vmem:[%s10537_s26] sm:$0xff]  ;;  %s10451_s19 = smov 112   ;;  %s10452_s20 = smov 111   ;;  %vm937_vm6 = vcmp.lt.s32.totalorder %v10616_v17, 127  ;;  %vm1019_vm7 = vcmp.lt.s32.totalorder %v10616_v17, 113 }
  0x11   : > { %v475_v3 = vpack.c.bf16 %v460_v1, %v460_v1  ;;  %v474_v4 = vpack.c.bf16 %v459_v2, %v459_v2  ;;  %vm1101_vm8 = vcmp.lt.s32.totalorder %v10616_v17, 112  ;;  %vm1181_vm9 = vcmp.lt.s32.totalorder %v10616_v17, 111  ;;  %s11569_s22 = scalar_lea.vmem %s13291_s1, %s10531_s23  ;;  %v10435_v17 = vld [vmem:[%s13296_s6 + $0x8] sm:$0xf] }
  0x13   : > { %9820 = vmatprep.subr.msk.bf16.mxu0 %vm491_vm0, %v475_v3  ;;  %v493_v5 = vsel %vm491_vm0, %v474_v4, 0 }
  0x14   : > { %513 = vmatpush1.bf16.msra.mxu0 %v493_v5 }
  0x17   : > { %9821 = vmatmul.mubr.msk.bf16.vlgmr.msra.gmra.mxu0 %vm484_vm1, %v10158_v6 }
  0x18   : > { %540 = vmatprep.mubr.bf16.mxu0 %v13305_v0 }
  0x1f   : > { %9822 = vmatmul.mubr.msk.bf16.gmra.mxu0 %vm484_vm1, %v10159_v7 }
  0x20   : > { %765 = vmatprep.mubr.bf16.mxu0 %v13305_v0 }
  0xd7   : > { %v10553_v8 = vpop.f32.mrf.mxu0 }
  0xd9   : > { %v10555_v9 = vpop.f32.mrf.mxu0 }
  0xdb   : > { %v10557_v10 = vpop.f32.mrf.mxu0 }
  0xdc   : > { %634 = vrot.lane.b32.xlu1 %v10557_v10, %s10445_s13  ;;  %549 = vrot.lane.b32.xlu0 %v10557_v10, %s10446_s14  ;;  %v878_v34 = vmul.f32 %v10557_v10, %v10553_v8 }
  0xdd   : > { %v10563_v11 = vpop.f32.mrf.mxu0 }
  0xde   : > { %v879_v38 = vmul.f32 %v10563_v11, %v10555_v9  ;;  %v880_v51 = vpack.c.bf16 %v878_v34, %v878_v34 }
  0xdf   : > { %v10593_v12 = vpop.f32.mrf.mxu0 }
  0xe0   : > { %636 = vrot.lane.b32.xlu1 %v10563_v11, %s10445_s13  ;;  %551 = vrot.lane.b32.xlu0 %v10563_v11, %s10446_s14  ;;  %v881_v50 = vpack.c.bf16 %v879_v38, %v879_v38  ;;  %v883_v62 = vsel %vm491_vm0, %v880_v51, 0 }
  0xe1   : > { %v10597_v13 = vpop.f32.mrf.mxu0 }
  0xe3   : > { %v546_v14 = vpop.f32.mrf.mxu0 }
  0xe4   : > { %718 = vrot.lane.b32.xlu1 %v10563_v11, %s10447_s15  ;;  %716 = vrot.lane.b32.xlu0 %v10557_v10, %s10447_s15 }
  0xe5   : > { %v547_v15 = vpop.f32.mrf.mxu0 }
  0xe8   : > { %800 = vrot.lane.b32.xlu1 %v10563_v11, %s10448_s16  ;;  %798 = vrot.lane.b32.xlu0 %v10557_v10, %s10448_s16 }
  0xec   : > { %935 = vrot.lane.b32.xlu1 %v10563_v11, %s10449_s17  ;;  %933 = vrot.lane.b32.xlu0 %v10557_v10, %s10449_s17 }
  0xf0   : > { %1017 = vrot.lane.b32.xlu1 %v10563_v11, %s10450_s18  ;;  %1015 = vrot.lane.b32.xlu0 %v10557_v10, %s10450_s18 }
  0xf4   : > { %1099 = vrot.lane.b32.xlu1 %v10563_v11, %s10451_s19  ;;  %1097 = vrot.lane.b32.xlu0 %v10557_v10, %s10451_s19 }
  0xf8   : > { %1179 = vrot.lane.b32.xlu1 %v10563_v11, %s10452_s20  ;;  %1177 = vrot.lane.b32.xlu0 %v10557_v10, %s10452_s20 }
  0xfc   : > { %1267 = vrot.lane.b32.xlu0 %v10593_v12, %s10446_s14  ;;  %1269 = vrot.lane.b32.xlu1 %v10597_v13, %s10446_s14 }
 0x100   : > { %1360 = vrot.lane.b32.xlu0 %v10593_v12, %s10445_s13  ;;  %1362 = vrot.lane.b32.xlu1 %v10597_v13, %s10445_s13 }
 0x104   : > { %1448 = vrot.lane.b32.xlu0 %v10593_v12, %s10447_s15  ;;  %1450 = vrot.lane.b32.xlu1 %v10597_v13, %s10447_s15 }
 0x108   : > { %1536 = vrot.lane.b32.xlu0 %v10593_v12, %s10448_s16  ;;  %1538 = vrot.lane.b32.xlu1 %v10597_v13, %s10448_s16 }
 0x10c   : > { %1684 = vrot.lane.b32.xlu0 %v10593_v12, %s10449_s17  ;;  %1686 = vrot.lane.b32.xlu1 %v10597_v13, %s10449_s17 }
 0x110   : > { %1772 = vrot.lane.b32.xlu0 %v10593_v12, %s10450_s18  ;;  %1774 = vrot.lane.b32.xlu1 %v10597_v13, %s10450_s18 }
 0x114   : > { %1860 = vrot.lane.b32.xlu0 %v10593_v12, %s10451_s19  ;;  %1862 = vrot.lane.b32.xlu1 %v10597_v13, %s10451_s19 }
 0x118   : > { %1947 = vrot.lane.b32.xlu0 %v10593_v12, %s10452_s20  ;;  %1949 = vrot.lane.b32.xlu1 %v10597_v13, %s10452_s20 }
 0x14e   : > { %v635_v18 = vpop.permute.xlu1 %634  ;;  %v550_v19 = vpop.permute.xlu0 %549 }
 0x152   : > { %v637_v20 = vpop.permute.xlu1 %636  ;;  %v552_v21 = vpop.permute.xlu0 %551 }
 0x153   : > { %v639_v22 = vsel %vm638_vm2, %v635_v18, %v637_v20  ;;  %v640_v23 = vsel %vm638_vm2, %v637_v20, %v635_v18  ;;  %v557_v24 = vsel %vm555_vm3, %v552_v21, %v550_v19  ;;  %v556_v25 = vsel %vm555_vm3, %v550_v19, %v552_v21 }
 0x154   : > { %v641_v26 = vmul.f32 %v640_v23, %v10553_v8  ;;  %v642_v27 = vmul.f32 %v639_v22, %v10555_v9  ;;  %v559_v28 = vmul.f32 %v556_v25, %v10555_v9  ;;  %v558_v29 = vmul.f32 %v557_v24, %v10553_v8 }
 0x156   : > { %v719_v30 = vpop.permute.xlu1 %718  ;;  %v717_v31 = vpop.permute.xlu0 %716  ;;  %v561_v32 = vpack.c.bf16 %v559_v28, %v559_v28  ;;  %v560_v33 = vpack.c.bf16 %v558_v29, %v558_v29  ;;  %v643_v35 = vpack.c.bf16 %v641_v26, %v641_v26  ;;  %v644_v39 = vpack.c.bf16 %v642_v27, %v642_v27 }
 0x157   : > { %v721_v36 = vsel %vm720_vm4, %v717_v31, %v719_v30  ;;  %v722_v37 = vsel %vm720_vm4, %v719_v30, %v717_v31 }
 0x158   : > { %v723_v40 = vmul.f32 %v722_v37, %v10553_v8  ;;  %v724_v41 = vmul.f32 %v721_v36, %v10555_v9  ;;  %9823 = vmatprep.subr.msk.bf16.mxu1 %vm491_vm0, %v561_v32  ;;  %v566_v42 = vsel %vm491_vm0, %v560_v33, 0  ;;  %v646_v54 = vsel %vm491_vm0, %v643_v35, 0  ;;  %v435_v37 = vld [vmem:[%s13292_s2] sm:$0xf] }
 0x159   : > { %586 = vmatpush1.bf16.msra.mxu1 %v566_v42  ;;  %vm436_vm10 = vcmp.ge.f32.partialorder %v435_v37, 1.0  ;;  %vm444_vm11 = vcmp.lt.f32.partialorder %v435_v37, 15.0 }
 0x15a   : > { %v725_v44 = vpack.c.bf16 %v723_v40, %v723_v40  ;;  %v726_v45 = vpack.c.bf16 %v724_v41, %v724_v41  ;;  %v801_v46 = vpop.permute.xlu1 %800  ;;  %9825 = vmatprep.subr.msk.bf16.mxu1 %vm491_vm0, %v644_v39  ;;  %v799_v47 = vpop.permute.xlu0 %798  ;;  %v437_v38 = vsel %vm436_vm10, 1, %v13305_v0  ;;  %v445_v39 = vsel %vm444_vm11, 1, %v13305_v0 }
 0x15b   : > { %v803_v48 = vsel %vm802_vm5, %v799_v47, %v801_v46  ;;  %v804_v49 = vsel %vm802_vm5, %v801_v46, %v799_v47  ;;  %v9812_v40 = vrot.slane %v437_v38, 9  ;;  %v9813_v41 = vrot.slane %v445_v39, 9 }
 0x15c   : > { %v805_v52 = vmul.f32 %v804_v49, %v10553_v8  ;;  %v806_v53 = vmul.f32 %v803_v48, %v10555_v9  ;;  %9824 = vmatmul.mubr.msk.bf16.vlgmr.msra.gmra.mxu1 %vm484_vm1, %v10661_v43  ;;  %9827 = vmatprep.subr.msk.bf16.mxu0 %vm491_vm0, %v726_v45  ;;  %v728_v55 = vsel %vm491_vm0, %v725_v44, 0  ;;  %v13303_v44 = vmov 0.0  }
 0x15d   : > { %666 = vmatpush1.bf16.msra.mxu1 %v646_v54  ;;  %748 = vmatpush1.bf16.msra.mxu0 %v728_v55  ;;  %vm10748_vm12 = vcmp.ne.s32.totalorder %v9812_v40, 0  ;;  %vm10752_vm13 = vcmp.ne.s32.totalorder %v9813_v41, 0  ;;  %v10759_v45 = vsel %vm436_vm10, 1.0, %v13303_v44  ;;  %v615_v46 = vshrl.u32 %v553_v16, 7 }
 0x15e   : > { %v808_v56 = vpack.c.bf16 %v806_v53, %v806_v53  ;;  %v936_v57 = vpop.permute.xlu1 %935  ;;  %v934_v58 = vpop.permute.xlu0 %933  ;;  %9831 = vmatprep.subr.msk.bf16.mxu0 %vm491_vm0, %v881_v50  ;;  %683 = vmatprep.mubr.bf16.mxu1 %v13305_v0  ;;  %v807_v60 = vpack.c.bf16 %v805_v52, %v805_v52  ;;  %vm441_vm14 = vmand %vm436_vm10, %vm10748_vm12  ;;  %v692_v49 = vmul.f32 0.5, %v10759_v45 }
 0x15f   : > { %v939_v59 = vsel %vm937_vm6, %v936_v57, %v934_v58  ;;  %v938_v63 = vsel %vm937_vm6, %v934_v58, %v936_v57  ;;  %vm449_vm15 = vmand %vm436_vm10, %vm10752_vm13  ;;  %v10765_v47 = vsel %vm441_vm14, 1.0, %v13303_v44  ;;  %v10772_v53 = vsub.s32 0, %v615_v46 }
 0x160   : > { %v941_v61 = vmul.f32 %v939_v59, %v10555_v9  ;;  %9828 = vmatmul.mubr.msk.bf16.vlgmr.msra.gmra.mxu0 %vm484_vm1, %v10661_v43  ;;  %9829 = vmatprep.subr.msk.bf16.mxu1 %vm491_vm0, %v808_v56  ;;  %v940_v6 = vmul.f32 %v938_v63, %v10553_v8  ;;  %v810_v11 = vsel %vm491_vm0, %v807_v60, 0  ;;  %v10769_v51 = vsel %vm449_vm15, 1.0, %v13303_v44  ;;  %vm452_vm10 = vmand %vm444_vm11, %vm10748_vm12 }
 0x161   : > { %903 = vmatpush1.bf16.msra.mxu0 %v883_v62  ;;  %920 = vmatprep.mubr.bf16.mxu0 %v13305_v0  ;;  %v612_v52 = vmul.f32 0.5, %v10765_v47  ;;  %v774_v16 = vmul.f32 0.5, %v10769_v51  ;;  %v697_v56 = vrot.slane %v692_v49, %v10772_v53  ;;  %v10776_v57 = vsub.s32 2, %v615_v46  ;;  %vm454_vm12 = vmand %vm444_vm11, %vm10752_vm13 }
 0x162   : > { %v943_v1 = vpack.c.bf16 %v941_v61, %v941_v61  ;;  %v1018_v2 = vpop.permute.xlu1 %1017  ;;  %v1016_v3 = vpop.permute.xlu0 %1015  ;;  %v942_v21 = vpack.c.bf16 %v940_v6, %v940_v6  ;;  %v10779_v61 = vsub.s32 1, %v615_v46  ;;  %v10850_v41 = vsel %vm454_vm12, 1.0, %v13303_v44 }
 0x163   : > { %v1020_v4 = vsel %vm1019_vm7, %v1016_v3, %v1018_v2  ;;  %v1021_v5 = vsel %vm1019_vm7, %v1018_v2, %v1016_v3  ;;  %v617_v60 = vrot.slane %v612_v52, %v10772_v53  ;;  %v779_v2 = vrot.slane %v774_v16, %v10772_v53 }
 0x164   : > { %v1022_v7 = vmul.f32 %v1020_v4, %v10553_v8  ;;  %v1023_v10 = vmul.f32 %v1021_v5, %v10555_v9  ;;  %9826 = vmatmul.mubr.msk.bf16.vlgmr.msra.gmra.mxu1 %vm484_vm1, %v10661_v43  ;;  %v945_v33 = vsel %vm491_vm0, %v942_v21, 0  ;;  %v10784_v3 = vrot.slane %v697_v56, %v10772_v53 }
 0x165   : > { %830 = vmatpush1.bf16.msra.mxu1 %v810_v11  ;;  %847 = vmatprep.mubr.bf16.mxu1 %v13305_v0  ;;  %v621_v4 = vrot.slane %v612_v52, %v10776_v57  ;;  %v10794_v11 = vrot.slane %v617_v60, %v10772_v53  ;;  %vm1296_vm13 = vcmask 15360   ;;  %vm2032_vm14 = vcmask 1041408  }
 0x166   : > { %v1024_v14 = vpack.c.bf16 %v1022_v7, %v1022_v7  ;;  %v1025_v15 = vpack.c.bf16 %v1023_v10, %v1023_v10  ;;  %9833 = vmatprep.subr.msk.bf16.mxu1 %vm491_vm0, %v943_v1  ;;  %v1100_v18 = vpop.permute.xlu1 %1099  ;;  %v1098_v19 = vpop.permute.xlu0 %1097  ;;  %v701_v1 = vrot.slane %v692_v49, %v10776_v57  ;;  %13383 = vst [vmem:[#allocation2_spill] sm:$0xff] %v10784_v3  ;;  %v10787_v7 = vsub.s32 3, %v615_v46 }
 0x167   : > { %v1103_v20 = vsel %vm1101_vm8, %v1100_v18, %v1098_v19  ;;  %v1102_v24 = vsel %vm1101_vm8, %v1098_v19, %v1100_v18  ;;  %v10791_v10 = vsel %vm444_vm11, 1.0, %v13303_v44  ;;  %13384 = vst [vmem:[#allocation3_spill] sm:$0xff] %v10794_v11  ;;  %vm1300_vm11 = vcmask 1040384  }
 0x168   : > { %v1105_v22 = vmul.f32 %v1103_v20, %v10555_v9  ;;  %9832 = vmatmul.mubr.msk.bf16.vlgmr.msra.gmra.mxu0 %vm484_vm1, %v10661_v43  ;;  %9835 = vmatprep.subr.msk.bf16.mxu0 %vm491_vm0, %v1025_v15  ;;  %v1027_v23 = vsel %vm491_vm0, %v1024_v14, 0  ;;  %v1104_v30 = vmul.f32 %v1102_v24, %v10553_v8  ;;  %v859_v14 = vrot.slane %v692_v49, %v10779_v61 }
 0x169   : > { %1047 = vmatpush1.bf16.msra.mxu0 %v1027_v23  ;;  %1064 = vmatprep.mubr.bf16.mxu0 %v13305_v0  ;;  %v10801_v15 = vrot.slane %v701_v1, %v10772_v53  ;;  %v10804_v20 = vrot.slane %v779_v2, %v10772_v53  ;;  %v10813_v23 = vrot.slane %v621_v4, %v10772_v53 }
 0x16a   : > { %v1107_v25 = vpack.c.bf16 %v1105_v22, %v1105_v22  ;;  %v1180_v26 = vpop.permute.xlu1 %1179  ;;  %v1178_v27 = vpop.permute.xlu0 %1177  ;;  %v1106_v36 = vpack.c.bf16 %v1104_v30, %v1104_v30  ;;  %v10810_v22 = vmul.f32 0.5, %v10791_v10  ;;  %v783_v24 = vrot.slane %v774_v16, %v10776_v57 }
 0x16b   : > { %v1182_v28 = vsel %vm1181_vm9, %v1178_v27, %v1180_v26  ;;  %v1183_v29 = vsel %vm1181_vm9, %v1180_v26, %v1178_v27  ;;  %13385 = vst [vmem:[#allocation4_spill] sm:$0xff] %v10801_v15  ;;  %13386 = vst [vmem:[#allocation5_spill] sm:$0xff] %v10804_v20  ;;  %v863_v27 = vrot.slane %v692_v49, %v10787_v7 }
 0x16c   : > { %v1184_v31 = vmul.f32 %v1182_v28, %v10553_v8  ;;  %v1185_v32 = vmul.f32 %v1183_v29, %v10555_v9  ;;  %9830 = vmatmul.mubr.msk.bf16.vlgmr.msra.gmra.mxu1 %vm484_vm1, %v10661_v43  ;;  %v1109_v9 = vsel %vm491_vm0, %v1106_v36, 0  ;;  %13387 = vst [vmem:[#allocation6_spill] sm:$0xff] %v10813_v23  ;;  %v10818_v28 = vsel %vm452_vm10, 1.0, %v13303_v44 }
 0x16d   : > { %965 = vmatpush1.bf16.msra.mxu1 %v945_v33  ;;  %982 = vmatprep.mubr.bf16.mxu1 %v13305_v0  ;;  %v10824_v30 = vrot.slane %v859_v14, %v10779_v61  ;;  %v1073_v36 = vmul.f32 0.5, %v10818_v28  ;;  %v10844_v37 = vrot.slane %v783_v24, %v10772_v53  ;;  %v10847_v39 = vrot.slane %v863_v27, %v10779_v61 }
 0x16e   : > { %v1186_v34 = vpack.c.bf16 %v1184_v31, %v1184_v31  ;;  %v1187_v35 = vpack.c.bf16 %v1185_v32, %v1185_v32  ;;  %9837 = vmatprep.subr.msk.bf16.mxu1 %vm491_vm0, %v1107_v25  ;;  %v1000_v49 = vrot.slane %v10810_v22, %v10787_v7 }
 0x16f   : > { %13388 = vst [vmem:[#allocation7_spill] sm:$0xff] %v10824_v30  ;;  %13389 = vst [vmem:[#allocation8_spill] sm:$0xff] %v10844_v37  ;;  %v1078_v52 = vrot.slane %v1073_v36, %v10772_v53  ;;  %v1082_v24 = vrot.slane %v1073_v36, %v10776_v57 }
 0x170   : > { %9836 = vmatmul.mubr.msk.bf16.vlgmr.msra.gmra.mxu0 %vm484_vm1, %v10661_v43  ;;  %9839 = vmatprep.subr.msk.bf16.mxu0 %vm491_vm0, %v1187_v35  ;;  %v1189_v8 = vsel %vm491_vm0, %v1186_v34, 0  ;;  %13390 = vst [vmem:[#allocation9_spill] sm:$0xff] %v10847_v39 }
 0x171   : > { %1209 = vmatpush1.bf16.msra.mxu0 %v1189_v8  ;;  %1226 = vmatprep.mubr.bf16.mxu0 %v13305_v0  ;;  %v996_v8 = vrot.slane %v10810_v22, %v10779_v61 }
 0x174   : > { %9834 = vmatmul.mubr.msk.bf16.vlgmr.msra.gmra.mxu1 %vm484_vm1, %v10661_v43 }
 0x175   : > { %1129 = vmatpush1.bf16.msra.mxu1 %v1109_v9  ;;  %1146 = vmatprep.mubr.bf16.mxu1 %v13305_v0 }
 0x178   : > { %9840 = vmatmul.mubr.msk.bf16.vlgmr.msra.gmra.mxu0 %vm484_vm1, %v10661_v43 }
 0x179   : > { %1427 = vmatprep.mubr.bf16.mxu0 %v13305_v0 }
 0x17c   : > { %9838 = vmatmul.mubr.msk.bf16.vlgmr.msra.gmra.mxu1 %vm484_vm1, %v10661_v43 }
 0x17d   : > { %1339 = vmatprep.mubr.bf16.mxu1 %v13305_v0 }
 0x21c   : > { %v605_v48 = vpop.f32.mrf.mxu1 }
 0x21d   : > { %v10821_v29 = vmul.f32 %v10794_v11, %v605_v48 }
 0x21e   : > { %v607_v50 = vpop.f32.mrf.mxu1 }
 0x21f   : > { %v10841_v9 = vmul.f32 %v10813_v23, %v607_v50 }
 0x220   : > { %v609_v54 = vpop.f32.mrf.mxu1  ;;  %v767_v55 = vpop.f32.mrf.mxu0 }
 0x221   : > { %v10833_v34 = vmul.f32 %v10804_v20, %v767_v55  ;;  %v10862_v54 = vrot.slane %v996_v8, %v10779_v61  ;;  %v1235_v55 = vmul.f32 0.5, %v10850_v41 }
 0x222   : > { %v610_v58 = vpop.f32.mrf.mxu1  ;;  %v769_v59 = vpop.f32.mrf.mxu0 }
 0x223   : > { %13391 = vst [vmem:[#allocation10_spill] sm:$0xff] %v10862_v54  ;;  %v10866_v16 = vmul.f32 %v10844_v37, %v769_v59  ;;  %v1240_v14 = vrot.slane %v1235_v55, %v10772_v53 }
 0x224   : > { %v685_v62 = vpop.f32.mrf.mxu1  ;;  %v771_v63 = vpop.f32.mrf.mxu0 }
 0x225   : > { %v10807_v21 = vmul.f32 %v10784_v3, %v685_v62  ;;  %v10900_v36 = vrot.slane %v1240_v14, %v10772_v53 }
 0x226   : > { %v687_v5 = vpop.f32.mrf.mxu1  ;;  %v772_v6 = vpop.f32.mrf.mxu0 }
 0x227   : > { %v10830_v31 = vmul.f32 %v10801_v15, %v687_v5  ;;  %v714_v35 = vmax.f32 %v10821_v29, %v10807_v21  ;;  %v10876_v5 = vrot.slane %v1000_v49, %v10779_v61  ;;  %v10879_v6 = vrot.slane %v1078_v52, %v10772_v53  ;;  %13394 = vst [vmem:[#allocation13_spill] sm:$0xff] %v10900_v36 }
 0x228   : > { %v689_v18 = vpop.f32.mrf.mxu1  ;;  %v922_v19 = vpop.f32.mrf.mxu0 }
 0x229   : > { %v715_v43 = vmax.f32 %v10841_v9, %v10830_v31  ;;  %v796_v50 = vmax.f32 %v714_v35, %v10833_v34  ;;  %v10871_v62 = vmul.f32 0.5, %v922_v19  ;;  %13392 = vst [vmem:[#allocation11_spill] sm:$0xff] %v10876_v5  ;;  %13393 = vst [vmem:[#allocation12_spill] sm:$0xff] %v10879_v6  ;;  %v1158_v18 = vrot.slane %v10810_v22, %v10772_v53 }
 0x22a   : > { %v690_v25 = vpop.f32.mrf.mxu1  ;;  %v924_v26 = vpop.f32.mrf.mxu0 }
 0x22b   : > { %v797_v1 = vmax.f32 %v715_v43, %v10866_v16  ;;  %v10892_v35 = vmul.f32 0.5, %v924_v26  ;;  %v10903_v49 = vrot.slane %v1158_v18, %v10772_v53 }
 0x22c   : > { %v849_v32 = vpop.f32.mrf.mxu1  ;;  %v926_v33 = vpop.f32.mrf.mxu0 }
 0x22d   : > { %v10853_v42 = vmul.f32 %v10824_v30, %v849_v32  ;;  %v1162_v33 = vrot.slane %v10810_v22, %v10776_v57  ;;  %13395 = vst [vmem:[#allocation14_spill] sm:$0xff] %v10903_v49 }
 0x22e   : > { %v851_v38 = vpop.f32.mrf.mxu1  ;;  %v927_v40 = vpop.f32.mrf.mxu0 }
 0x22f   : > { %v10869_v56 = vmul.f32 %v10847_v39, %v851_v38  ;;  %v876_v63 = vmax.f32 %v796_v50, %v10853_v42  ;;  %v10906_v50 = vrot.slane %v1082_v24, %v10772_v53 }
 0x230   : > { %v853_v46 = vpop.f32.mrf.mxu1  ;;  %v1066_v48 = vpop.f32.mrf.mxu0 }
 0x231   : > { %v877_v19 = vmax.f32 %v797_v1, %v10869_v56  ;;  %v931_v32 = vmax.f32 %v876_v63, %v10871_v62  ;;  %v10896_v43 = vmul.f32 %v10879_v6, %v1066_v48  ;;  %13396 = vst [vmem:[#allocation15_spill] sm:$0xff] %v10906_v50  ;;  %v1244_v63 = vrot.slane %v1235_v55, %v10776_v57 }
 0x232   : > { %v854_v58 = vpop.f32.mrf.mxu1  ;;  %v1068_v60 = vpop.f32.mrf.mxu0 }
 0x233   : > { %v932_v22 = vmax.f32 %v877_v19, %v10892_v35  ;;  %v10910_v58 = vrot.slane %v1162_v33, %v10772_v53  ;;  %v10921_v19 = vmul.f32 %v10906_v50, %v1068_v60  ;;  %v10928_v55 = vrot.slane %v1244_v63, %v10772_v53 }
 0x234   : > { %v984_v2 = vpop.f32.mrf.mxu1  ;;  %v1070_v4 = vpop.f32.mrf.mxu0 }
 0x235   : > { %v10882_v59 = vmul.f32 %v10862_v54, %v984_v2  ;;  %13397 = vst [vmem:[#allocation16_spill] sm:$0xff] %v10910_v58 }
 0x236   : > { %v986_v25 = vpop.f32.mrf.mxu1  ;;  %v1071_v27 = vpop.f32.mrf.mxu0 }
 0x237   : > { %v1012_v8 = vmul.f32 %v10876_v5, %v986_v25  ;;  %v1013_v46 = vmax.f32 %v931_v32, %v10882_v59 }
 0x238   : > { %v988_v38 = vpop.f32.mrf.mxu1  ;;  %v1228_v40 = vpop.f32.mrf.mxu0 }
 0x239   : > { %v1014_v48 = vmax.f32 %v932_v22, %v1012_v8  ;;  %v10914_v4 = vmul.f32 %v10900_v36, %v1228_v40  ;;  %v1095_v14 = vmax.f32 %v1013_v46, %v10896_v43 }
 0x23a   : > { %v989_v26 = vpop.f32.mrf.mxu1  ;;  %v1230_v52 = vpop.f32.mrf.mxu0 }
 0x23b   : > { %v1096_v33 = vmax.f32 %v1014_v48, %v10921_v19 }
 0x23c   : > { %v1148_v1 = vpop.f32.mrf.mxu1  ;;  %v1232_v2 = vpop.f32.mrf.mxu0 }
 0x23d   : > { %v10918_v18 = vmul.f32 %v10903_v49, %v1148_v1  ;;  %v10940_v1 = vmul.f32 %v10928_v55, %v1230_v52 }
 0x23e   : > { %v1150_v24 = vpop.f32.mrf.mxu1  ;;  %v1233_v25 = vpop.f32.mrf.mxu0 }
 0x23f   : > { %v1175_v27 = vmax.f32 %v1095_v14, %v10918_v18  ;;  %v10925_v32 = vmul.f32 %v10910_v58, %v1150_v24 }
 0x240   : > { %v1152_v38 = vpop.f32.mrf.mxu1 }
 0x241   : > { %v10932_v40 = vmax.f32 %v1175_v27, %v10914_v4  ;;  %v1176_v46 = vmax.f32 %v1096_v33, %v10925_v32 }
 0x242   : > { %v1153_v60 = vpop.f32.mrf.mxu1 }
 0x243   : > { %v1259_v22 = vsub.f32 %v10821_v29, %v10932_v40  ;;  %v1352_v26 = vsub.f32 %v10807_v21, %v10932_v40  ;;  %v1440_v48 = vsub.f32 %v10833_v34, %v10932_v40  ;;  %v1528_v14 = vsub.f32 %v10853_v42, %v10932_v40 }
 0x244   : > { %v10947_v24 = vmax.f32 %v1176_v46, %v10940_v1  ;;  %v1615_v42 = vsub.f32 %v10871_v62, %v10932_v40  ;;  %v1676_v60 = vsub.f32 %v10882_v59, %v10932_v40  ;;  %v1462_v62 = vrot.slane %v10769_v51, %v10776_v57 }
 0x245   : > { %v1261_v63 = vmul.f32 1.442695, %v1259_v22  ;;  %v1354_v2 = vmul.f32 1.442695, %v1352_v26  ;;  %v1442_v21 = vmul.f32 1.442695, %v1440_v48  ;;  %v1370_v59 = vrot.slane %v10759_v45, %v10772_v53 }
 0x246   : > { %v1260_v29 = vsub.f32 %v10841_v9, %v10947_v24  ;;  %v1353_v52 = vsub.f32 %v10830_v31, %v10947_v24  ;;  %v1530_v25 = vmul.f32 1.442695, %v1528_v14  ;;  %v1441_v27 = vsub.f32 %v10866_v16, %v10947_v24 }
 0x247   : > { %10163 = vpow2.f32 %v1261_v63  ;;  %v1529_v34 = vsub.f32 %v10869_v56, %v10947_v24  ;;  %v1677_v9 = vsub.f32 %v1012_v8, %v10947_v24  ;;  %v1616_v31 = vsub.f32 %v10892_v35, %v10947_v24 }
 0x248   : > { %10165 = vpow2.f32 %v1354_v2  ;;  %v1263_v33 = vmul.f32 1.442695, %v1260_v29  ;;  %v1356_v38 = vmul.f32 1.442695, %v1353_v52  ;;  %v1444_v46 = vmul.f32 1.442695, %v1441_v27 }
 0x249   : > { %10167 = vpow2.f32 %v1442_v21  ;;  %v1532_v16 = vmul.f32 1.442695, %v1529_v34  ;;  %v1281_v56 = vrot.slane %v10765_v47, %v10776_v57  ;;  %v1617_v22 = vmul.f32 1.442695, %v1615_v42 }
 0x24a   : > { %10169 = vpow2.f32 %v1530_v25  ;;  %v1680_v26 = vmul.f32 1.442695, %v1677_v9  ;;  %v1277_v8 = vrot.slane %v10765_v47, %v10772_v53  ;;  %v1619_v63 = vmul.f32 1.442695, %v1616_v31 }
 0x24b   : > { %10171 = vpow2.f32 %v1263_v33  ;;  %v1765_v35 = vsub.f32 %v10921_v19, %v10947_v24  ;;  %v1678_v2 = vmul.f32 1.442695, %v1676_v60  ;;  %v1853_v48 = vsub.f32 %v10925_v32, %v10947_v24 }
 0x24c   : > { %10173 = vpow2.f32 %v1356_v38  ;;  %v1458_v14 = vrot.slane %v10769_v51, %v10772_v53  ;;  %v1786_v29 = vrot.slane %v10818_v28, %v10776_v57  ;;  %v1545_v47 = vrot.slane %v10759_v45, %v10779_v61 }
 0x24d   : > { %10175 = vpow2.f32 %v1444_v46  ;;  %v1694_v19 = vrot.slane %v10791_v10, %v10779_v61  ;;  %v1764_v52 = vsub.f32 %v10896_v43, %v10932_v40  ;;  %v1374_v32 = vrot.slane %v10759_v45, %v10776_v57 }
 0x24e   : > { %10177 = vpow2.f32 %v1532_v16  ;;  %v10989_v51 = vrot.slane %v1277_v8, %v10772_v53  ;;  %v1768_v27 = vmul.f32 1.442695, %v1765_v35  ;;  %v10992_v34 = vrot.slane %v1370_v59, %v10772_v53  ;;  %v11027_v8 = vld [vmem:[%s13294_s4] sm:$0xff] }
 0x24f   : > { %10179 = vpow2.f32 %v1617_v22  ;;  %v1549_v42 = vrot.slane %v10759_v45, %v10787_v7  ;;  %v1852_v43 = vsub.f32 %v10918_v18, %v10932_v40  ;;  %v1856_v33 = vmul.f32 1.442695, %v1853_v48 }
 0x250   : > { %10181 = vpow2.f32 %v1680_v26  ;;  %v10999_v38 = vrot.slane %v1458_v14, %v10772_v53  ;;  %v1940_v9 = vsub.f32 %v10940_v1, %v10947_v24  ;;  %v11004_v46 = vrot.slane %v1545_v47, %v10779_v61 }
 0x251   : > { %10183 = vpow2.f32 %v1619_v63  ;;  %v1698_v31 = vrot.slane %v10791_v10, %v10787_v7  ;;  %v11009_v60 = vrot.slane %v1694_v19, %v10779_v61  ;;  %v1766_v16 = vmul.f32 1.442695, %v1764_v52 }
 0x252   : > { %10185 = vpow2.f32 %v1678_v2  ;;  %v11012_v18 = vrot.slane %v1281_v56, %v10772_v53  ;;  %v11015_v22 = vrot.slane %v1374_v32, %v10772_v53  ;;  %v11019_v24 = vrot.slane %v1462_v62, %v10772_v53 }
 0x253   : > { %13398 = vst [vmem:[#allocation17_spill] sm:$0xff] %v11009_v60  ;;  %10187 = vpow2.f32 %v1768_v27  ;;  %v11022_v7 = vrot.slane %v1549_v42, %v10779_v61  ;;  %v1854_v63 = vmul.f32 1.442695, %v1852_v43  ;;  %v1939_v59 = vsub.f32 %v10914_v4, %v10932_v40 }
 0x254   : > { %v10164_v21 = vpop.eup %10163  ;;  %10189 = vpow2.f32 %v1856_v33  ;;  %v1943_v2 = vmul.f32 1.442695, %v1940_v9  ;;  %v11033_v62 = vrot.slane %v1698_v31, %v10779_v61  ;;  %v1873_v48 = vrot.slane %v10791_v10, %v10776_v57 }
 0x255   : > { %v10166_v25 = vpop.eup %10165  ;;  %v1292_v1 = vmul.f32 %v10164_v21, %v10989_v51  ;;  %10191 = vpow2.f32 %v1766_v16  ;;  %v11039_v19 = vpack.c.bf16 %v11027_v8, %v11027_v8  ;;  %v1941_v33 = vmul.f32 1.442695, %v1939_v59 }
 0x256   : > { %v1358_v45 = vadd.f32 %v10166_v25, %v10164_v21  ;;  %v10168_v26 = vpop.eup %10167  ;;  %v1385_v35 = vmul.f32 %v10166_v25, %v10992_v34  ;;  %10193 = vpow2.f32 %v1854_v63 }
 0x257   : > { %v10170_v56 = vpop.eup %10169  ;;  %v1294_v32 = vpack.c.bf16 %v1292_v1, %v1292_v1  ;;  %v1473_v4 = vmul.f32 %v10168_v26, %v10999_v38  ;;  %10195 = vpow2.f32 %v1943_v2 }
 0x258   : > { %v10172_v14 = vpop.eup %10171  ;;  %v1446_v47 = vadd.f32 %v10168_v26, %v1358_v45  ;;  %v1560_v61 = vmul.f32 %v10170_v56, %v11004_v46  ;;  %v1387_v42 = vpack.c.bf16 %v1385_v35, %v1385_v35  ;;  %10197 = vpow2.f32 %v1941_v33 }
 0x259   : > { %v10174_v21 = vpop.eup %10173  ;;  %v1293_v52 = vmul.f32 %v10172_v14, %v11012_v18  ;;  %v1302_v63 = vsel %vm1300_vm11, %v1294_v32, 0  ;;  %v1475_v35 = vpack.c.bf16 %v1473_v4, %v1473_v4  ;;  %v1782_v32 = vrot.slane %v10818_v28, %v10772_v53 }
 0x25a   : > { %v10176_v40 = vpop.eup %10175  ;;  %v1359_v25 = vadd.f32 %v10174_v21, %v10172_v14  ;;  %v1386_v27 = vmul.f32 %v10174_v21, %v11015_v22  ;;  %v1534_v16 = vadd.f32 %v10170_v56, %v1446_v47  ;;  %v1562_v21 = vpack.c.bf16 %v1560_v61, %v1560_v61 }
 0x25b   : > { %v10178_v43 = vpop.eup %10177  ;;  %v1295_v9 = vpack.c.bf16 %v1293_v52, %v1293_v52  ;;  %v1474_v31 = vmul.f32 %v10176_v40, %v11019_v24  ;;  %v1390_v52 = vsel %vm1300_vm11, %v1387_v42, 0 }
 0x25c   : > { %v11046_v45 = vpop.eup %10179  ;;  %v1447_v1 = vadd.f32 %v10176_v40, %v1359_v25  ;;  %v1388_v44 = vpack.c.bf16 %v1386_v27, %v1386_v27  ;;  %v1561_v26 = vmul.f32 %v10178_v43, %v11022_v7  ;;  %v1869_v25 = vrot.slane %v10791_v10, %v10772_v53 }
 0x25d   : > { %v10182_v0 = vpop.eup %10181  ;;  %9841 = vmatprep.subr.msk.bf16.mxu1 %vm1300_vm11, %v1295_v9  ;;  %v1476_v14 = vpack.c.bf16 %v1474_v31, %v1474_v31  ;;  %v1621_v4 = vadd.f32 %v11046_v45, %v1534_v16  ;;  %v1478_v27 = vsel %vm1300_vm11, %v1475_v35, 0  ;;  %v1565_v28 = vsel %vm1300_vm11, %v1562_v21, 0 }
 0x25e   : > { %v10184_v59 = vpop.eup %10183  ;;  %v1535_v2 = vadd.f32 %v10178_v43, %v1447_v1  ;;  %9843 = vmatprep.subr.msk.bf16.mxu0 %vm1300_vm11, %v1388_v44  ;;  %1322 = vmatpush1.bf16.msra.mxu1 %v1302_v63  ;;  %v1563_v56 = vpack.c.bf16 %v1561_v26, %v1561_v26  ;;  %v1710_v47 = vmul.f32 %v10182_v0, %v11033_v62 }
 0x25f   : > { %v10186_v40 = vpop.eup %10185  ;;  %1410 = vmatpush1.bf16.msra.mxu0 %v1390_v52  ;;  %9845 = vmatprep.subr.msk.bf16.mxu1 %vm1300_vm11, %v1476_v14  ;;  %v11063_v44 = vrot.slane %v1786_v29, %v10772_v53  ;;  %v1624_v42 = vpack.c.bf16 %v10184_v59, %v10184_v59  ;;  %v11071_v43 = vrot.slane %v1873_v48, %v10772_v53 }
 0x260   : > { %v1622_v61 = vadd.f32 %v10184_v59, %v1535_v2  ;;  %9847 = vmatprep.subr.msk.bf16.mxu0 %vm1300_vm11, %v1563_v56  ;;  %v10188_v9 = vpop.eup %10187  ;;  %v1712_v29 = vpack.c.bf16 %v1710_v47, %v1710_v47  ;;  %v1709_v10 = vmul.f32 %v10186_v40, %v11009_v60  ;;  %v1961_v16 = vrot.slane %v10850_v41, %v10776_v57 }
 0x261   : > { %13399 = vst [vmem:[#allocation18_spill] sm:$0xff] %v11063_v44  ;;  %9842 = vmatmul.mubr.msk.bf16.vlgmr.msra.gmra.mxu1 %vm1296_vm13, %v11039_v19  ;;  %13400 = vst [vmem:[#allocation19_spill] sm:$0xff] %v11071_v43  ;;  %v10190_v33 = vpop.eup %10189  ;;  %v1682_v48 = vadd.f32 %v10186_v40, %v1621_v4  ;;  %v1623_v63 = vpack.c.bf16 %v11046_v45, %v11046_v45  ;;  %v1798_v14 = vmul.f32 %v10188_v9, %v11063_v44 }
 0x262   : > { %v1683_v31 = vadd.f32 %v10182_v0, %v1622_v61  ;;  %9844 = vmatmul.mubr.msk.bf16.vlgmr.msra.gmra.mxu0 %vm1296_vm13, %v11039_v19  ;;  %1498 = vmatpush1.bf16.msra.mxu1 %v1478_v27  ;;  %v13401_v0 = vmov 0   ;;  %v10192_v26 = vpop.eup %10191  ;;  %v11087_v35 = vrot.slane %v1782_v32, %v10772_v53  ;;  %v1711_v59 = vpack.c.bf16 %v1709_v10, %v1709_v10 }
 0x263   : > { %1585 = vmatpush1.bf16.msra.mxu0 %v1565_v28  ;;  %9849 = vmatprep.subr.msk.bf16.mxu1 %vm1300_vm11, %v1624_v42  ;;  %v1885_v57 = vmul.f32 %v10190_v33, %v11071_v43  ;;  %v11091_v2 = vrot.slane %v1869_v25, %v10772_v53  ;;  %v10194_v52 = vpop.eup %10193  ;;  %v1770_v47 = vadd.f32 %v10192_v26, %v1682_v48  ;;  %v1626_v32 = vsel %vm1300_vm11, %v1623_v63, 0 }
 0x264   : > { %v1771_v1 = vadd.f32 %v10188_v9, %v1683_v31  ;;  %9851 = vmatprep.subr.msk.bf16.mxu0 %vm1300_vm11, %v1712_v29  ;;  %1515 = vmatprep.mubr.bf16.mxu1 %v13401_v0  ;;  %13402 = vst [vmem:[#allocation20_spill] sm:$0xff] %v11087_v35  ;;  %v10196_v56 = vpop.eup %10195  ;;  %v11094_v40 = vrot.slane %v1961_v16, %v10772_v53  ;;  %v1714_v25 = vsel %vm1300_vm11, %v1711_v59, 0  ;;  %v9815_v16 = vld [vmem:[%s10537_s26 + $0x18] sm:$0xff] }
 0x265   : > { %1602 = vmatprep.mubr.bf16.mxu0 %v13401_v0  ;;  %13403 = vst [vmem:[#allocation21_spill] sm:$0xff] %v11091_v2  ;;  %v1957_v45 = vrot.slane %v10850_v41, %v10772_v53  ;;  %v1800_v61 = vpack.c.bf16 %v1798_v14, %v1798_v14  ;;  %v1797_v27 = vmul.f32 %v10192_v26, %v11087_v35  ;;  %v10198_v10 = vpop.eup %10197 }
 0x266   : > { %v1859_v21 = vadd.f32 %v10190_v33, %v1771_v1  ;;  %13404 = vst [vmem:[#allocation22_spill] sm:$0xff] %v11094_v40  ;;  %v1887_v42 = vpack.c.bf16 %v1885_v57, %v1885_v57  ;;  %v1884_v9 = vmul.f32 %v10194_v52, %v11091_v2  ;;  %v1858_v41 = vadd.f32 %v10194_v52, %v1770_v47 }
 0x267   : > { %v1799_v31 = vpack.c.bf16 %v1797_v27, %v1797_v27  ;;  %v1973_v28 = vmul.f32 %v10196_v56, %v11094_v40  ;;  %v11112_v29 = vrot.slane %v1957_v45, %v10772_v53  ;;  %v2165_v14 = vpack.c.bf16 %v9815_v16, %v9815_v16  ;;  %v1268_v27 = vpop.permute.xlu0 %1267 }
 0x268   : > { %v1946_v4 = vadd.f32 %v10196_v56, %v1859_v21  ;;  %v1886_v33 = vpack.c.bf16 %v1884_v9, %v1884_v9  ;;  %v1945_v48 = vadd.f32 %v10198_v10, %v1858_v41  ;;  %v9814_v21 = vld [vmem:[%s10537_s26 + $0x10] sm:$0xff] }
 0x269   : > { %9846 = vmatmul.mubr.msk.bf16.vlgmr.msra.gmra.mxu1 %vm1296_vm13, %v11039_v19  ;;  %13405 = vst [vmem:[#allocation23_spill] sm:$0xff] %v11112_v29  ;;  %v1802_v1 = vsel %vm1300_vm11, %v1799_v31, 0  ;;  %v1975_v26 = vpack.c.bf16 %v1973_v28, %v1973_v28  ;;  %v1972_v63 = vmul.f32 %v10198_v10, %v11112_v29  ;;  %v2164_v59 = vpack.c.bf16 %v9814_v21, %v9814_v21 }
 0x26a   : > { %9848 = vmatmul.mubr.msk.bf16.vlgmr.msra.gmra.mxu0 %vm1296_vm13, %v11039_v19  ;;  %1646 = vmatpush1.bf16.msra.mxu1 %v1626_v32  ;;  %10199 = vrcp.f32 %v1946_v4  ;;  %v1889_v53 = vsel %vm1300_vm11, %v1886_v33, 0  ;;  %v10413_v4 = vld [vmem:[%s13295_s5] sm:$0xff]   ;;  %v13406_v32 = vmov 0.0  }
 0x26b   : > { %1734 = vmatpush1.bf16.msra.mxu0 %v1714_v25  ;;  %9853 = vmatprep.subr.msk.bf16.mxu1 %vm1300_vm11, %v1800_v61  ;;  %10201 = vrcp.f32 %v1945_v48  ;;  %v1974_v57 = vpack.c.bf16 %v1972_v63, %v1972_v63  ;;  %v2167_v52 = vsel %vm491_vm0, %v2164_v59, 0  ;;  %v10414_v61 = vld [vmem:[%s13295_s5 + $0x8] ss:$0 sps:$4 sm:$0xff]   ;;  %v1270_v25 = vpop.permute.xlu1 %1269 }
 0x26c   : > { %9855 = vmatprep.subr.msk.bf16.mxu0 %vm1300_vm11, %v1887_v42  ;;  %1663 = vmatprep.mubr.bf16.mxu1 %v13401_v0  ;;  %v1361_v42 = vpop.permute.xlu0 %1360 }
 0x26d   : > { %1751 = vmatprep.mubr.bf16.mxu0 %v13401_v0  ;;  %v1977_v56 = vsel %vm1300_vm11, %v1974_v57, 0 }
 0x26f   : > { %v1363_v9 = vpop.permute.xlu1 %1362 }
 0x270   : > { %v1449_v41 = vpop.permute.xlu0 %1448  ;;  %v1364_v29 = vsel %vm638_vm2, %v1361_v42, %v1363_v9 }
 0x271   : > { %9850 = vmatmul.mubr.msk.bf16.vlgmr.msra.gmra.mxu1 %vm1296_vm13, %v11039_v19 }
 0x272   : > { %9852 = vmatmul.mubr.msk.bf16.vlgmr.msra.gmra.mxu0 %vm1296_vm13, %v11039_v19  ;;  %1822 = vmatpush1.bf16.msra.mxu1 %v1802_v1 }
 0x273   : > { %1909 = vmatpush1.bf16.msra.mxu0 %v1889_v53  ;;  %9857 = vmatprep.subr.msk.bf16.mxu1 %vm1300_vm11, %v1975_v26  ;;  %v1451_v28 = vpop.permute.xlu1 %1450 }
 0x274   : > { %1839 = vmatprep.mubr.bf16.mxu1 %v13401_v0  ;;  %1926 = vmatprep.mubr.bf16.mxu0 %v13401_v0  ;;  %v1537_v1 = vpop.permute.xlu0 %1536 }
 0x275   : > { %9864 = vmatprep.subr.msk.bf16.mxu0 %vm491_vm0, %v2165_v14 }
 0x277   : > { %v10200_v47 = vpop.eup %10199  ;;  %v1539_v63 = vpop.permute.xlu1 %1538 }
 0x278   : > { %v10202_v45 = vpop.eup %10201  ;;  %v1541_v60 = vsel %vm802_vm5, %v1539_v63, %v1537_v1 }
 0x279   : > { %9854 = vmatmul.mubr.msk.bf16.vlgmr.msra.gmra.mxu1 %vm1296_vm13, %v11039_v19 }
 0x27a   : > { %9856 = vmatmul.mubr.msk.bf16.vlgmr.msra.gmra.mxu0 %vm1296_vm13, %v11039_v19  ;;  %1997 = vmatpush1.bf16.msra.mxu1 %v1977_v56 }
 0x27b   : > { %9859 = vmatprep.subr.msk.mxu1 %vm2032_vm14, %v10200_v47  ;;  %2187 = vmatpush1.bf16.msra.mxu0 %v2167_v52  ;;  %v1685_v52 = vpop.permute.xlu0 %1684  ;;  %v1687_v47 = vpop.permute.xlu1 %1686 }
 0x27c   : > { %2014 = vmatprep.mubr.bf16.mxu1 %v13401_v0  ;;  %2204 = vmatprep.mubr.bf16.mxu0 %v13401_v0 }
 0x27f   : > { %v1773_v44 = vpop.permute.xlu0 %1772 }
 0x281   : > { %9858 = vmatmul.mubr.msk.bf16.vlgmr.msra.gmra.mxu1 %vm1296_vm13, %v11039_v19 }
 0x282   : > { %9860 = vmatpush1.msk.msra.mxu1 %vm2032_vm14, %v10202_v45  ;;  %9865 = vmatmul.mubr.msk.bf16.vlgmr.msra.gmra.mxu0 %vm484_vm1, %v10413_v4  ;;  %v1272_v4 = vsel %vm555_vm3, %v1270_v25, %v1268_v27 }
 0x283   : > { %2103 = vmatprep.mubr.f32.mxu1 %v13406_v32  ;;  %2214 = vmatprep.mubr.bf16.mxu0 %v13401_v0 }
 0x289   : > { %9861 = vmatmul.mubr.msk.f32.vlgmr.msra.gmra.mxu1 %vm1296_vm13, %v11027_v8 }
 0x28a   : > { %9866 = vmatmul.mubr.msk.bf16.gmra.mxu0 %vm484_vm1, %v10414_v61  ;;  %2155 = vmatprep.mubr.bf16.mxu1 %v13401_v0  ;;  %v1365_v61 = vsel %vm638_vm2, %v1363_v9, %v1361_v42 }
 0x28b   : > { %2391 = vmatprep.mubr.bf16.mxu0 %v13401_v0 }
 0x321   : > { %v1341_v31 = vpop.f32.mrf.mxu1 }
 0x322   : > { %v1429_v10 = vpop.f32.mrf.mxu0 }
 0x323   : > { %v1343_v33 = vpop.f32.mrf.mxu1  ;;  %v1436_v32 = vmul.f32 %v1429_v10, %v1365_v61 }
 0x324   : > { %v1431_v8 = vpop.f32.mrf.mxu0 }
 0x325   : > { %v1345_v16 = vpop.f32.mrf.mxu1  ;;  %v1437_v2 = vmul.f32 %v1431_v8, %v1364_v29 }
 0x326   : > { %v1433_v48 = vpop.f32.mrf.mxu0 }
 0x327   : > { %v1346_v26 = vpop.f32.mrf.mxu1  ;;  %v1348_v48 = vmul.f32 %v1341_v31, %v1272_v4  ;;  %v1452_v31 = vsel %vm720_vm4, %v1449_v41, %v1451_v28  ;;  %v1775_v4 = vpop.permute.xlu1 %1774 }
 0x328   : > { %v1434_v14 = vpop.f32.mrf.mxu0 }
 0x329   : > { %v1517_v21 = vpop.f32.mrf.mxu1  ;;  %v1271_v14 = vsel %vm555_vm3, %v1268_v27, %v1270_v25  ;;  %v1438_v61 = vadd.f32 %v1436_v32, %v1348_v48 }
 0x32a   : > { %v1604_v53 = vpop.f32.mrf.mxu0  ;;  %v1349_v40 = vmul.f32 %v1343_v33, %v1271_v14 }
 0x32b   : > { %v1519_v59 = vpop.f32.mrf.mxu1  ;;  %v1611_v29 = vmul.f32 %v1604_v53, %v1541_v60  ;;  %v1688_v60 = vsel %vm937_vm6, %v1685_v52, %v1687_v47 }
 0x32c   : > { %v1606_v57 = vpop.f32.mrf.mxu0 }
 0x32d   : > { %v1521_v56 = vpop.f32.mrf.mxu1 }
 0x32e   : > { %v1608_v45 = vpop.f32.mrf.mxu0  ;;  %v1453_v56 = vsel %vm720_vm4, %v1451_v28, %v1449_v41  ;;  %v1540_v41 = vsel %vm802_vm5, %v1537_v1, %v1539_v63  ;;  %v1863_v28 = vpop.permute.xlu1 %1862 }
 0x32f   : > { %v1522_v16 = vpop.f32.mrf.mxu1  ;;  %v1524_v35 = vmul.f32 %v1517_v21, %v1453_v56  ;;  %v1861_v56 = vpop.permute.xlu0 %1860  ;;  %v1612_v48 = vmul.f32 %v1606_v57, %v1540_v41  ;;  %v1777_v57 = vsel %vm1019_vm7, %v1775_v4, %v1773_v44 }
 0x330   : > { %v1609_v26 = vpop.f32.mrf.mxu0  ;;  %v1525_v16 = vmul.f32 %v1519_v59, %v1452_v31 }
 0x331   : > { %v1665_v45 = vpop.f32.mrf.mxu1  ;;  %v1439_v26 = vadd.f32 %v1437_v2, %v1349_v40  ;;  %v1526_v42 = vadd.f32 %v1524_v35, %v1438_v61 }
 0x332   : > { %v1753_v43 = vpop.f32.mrf.mxu0  ;;  %v1672_v21 = vmul.f32 %v1665_v45, %v10593_v12  ;;  %v1776_v12 = vsel %vm1019_vm7, %v1773_v44, %v1775_v4 }
 0x333   : > { %v1667_v10 = vpop.f32.mrf.mxu1  ;;  %v1527_v8 = vadd.f32 %v1525_v16, %v1439_v26  ;;  %v1613_v59 = vadd.f32 %v1611_v29, %v1526_v42  ;;  %v1760_v45 = vmul.f32 %v1753_v43, %v1688_v60  ;;  %v1948_v26 = vpop.permute.xlu0 %1947 }
 0x334   : > { %v1755_v27 = vpop.f32.mrf.mxu0  ;;  %v1673_v35 = vmul.f32 %v1667_v10, %v10597_v13  ;;  %v1689_v13 = vsel %vm937_vm6, %v1687_v47, %v1685_v52  ;;  %v1950_v42 = vpop.permute.xlu1 %1949 }
 0x335   : > { %v1669_v25 = vpop.f32.mrf.mxu1  ;;  %v1614_v31 = vadd.f32 %v1612_v48, %v1527_v8  ;;  %v1674_v61 = vadd.f32 %v1672_v21, %v1613_v59  ;;  %v1951_v52 = vsel %vm1181_vm9, %v1948_v26, %v1950_v42 }
 0x336   : > { %v1757_v9 = vpop.f32.mrf.mxu0 }
 0x337   : > { %v1670_v33 = vpop.f32.mrf.mxu1  ;;  %v1675_v1 = vadd.f32 %v1673_v35, %v1614_v31  ;;  %v1762_v9 = vadd.f32 %v1760_v45, %v1674_v61  ;;  %v1952_v35 = vsel %vm1181_vm9, %v1950_v42, %v1948_v26 }
 0x338   : > { %v1758_v14 = vpop.f32.mrf.mxu0  ;;  %v1761_v33 = vmul.f32 %v1755_v27, %v1689_v13  ;;  %v1865_v27 = vsel %vm1101_vm8, %v1863_v28, %v1861_v56 }
 0x339   : > { %v1841_v32 = vpop.f32.mrf.mxu1 }
 0x33a   : > { %v1928_v2 = vpop.f32.mrf.mxu0  ;;  %v1848_v63 = vmul.f32 %v1841_v32, %v1776_v12  ;;  %v1763_v14 = vadd.f32 %v1761_v33, %v1675_v1  ;;  %v1864_v32 = vsel %vm1101_vm8, %v1861_v56, %v1863_v28 }
 0x33b   : > { %v1843_v40 = vpop.f32.mrf.mxu1  ;;  %v1935_v59 = vmul.f32 %v1928_v2, %v1864_v32 }
 0x33c   : > { %v1930_v25 = vpop.f32.mrf.mxu0  ;;  %v1849_v29 = vmul.f32 %v1843_v40, %v1777_v57  ;;  %v1850_v41 = vadd.f32 %v1848_v63, %v1762_v9 }
 0x33d   : > { %v1845_v53 = vpop.f32.mrf.mxu1  ;;  %v1936_v61 = vmul.f32 %v1930_v25, %v1865_v27 }
 0x33e   : > { %v1932_v16 = vpop.f32.mrf.mxu0  ;;  %v1851_v44 = vadd.f32 %v1849_v29, %v1763_v14  ;;  %v1937_v31 = vadd.f32 %v1935_v59, %v1850_v41 }
 0x33f   : > { %v1846_v10 = vpop.f32.mrf.mxu1 }
 0x340   : > { %v1933_v8 = vpop.f32.mrf.mxu0  ;;  %v1938_v53 = vadd.f32 %v1936_v61, %v1851_v44  ;;  %v11212_v10 = vld [vmem:[%s13296_s6] sm:$0xf] }
 0x341   : > { %v2016_v21 = vpop.f32.mrf.mxu1 }
 0x342   : > { %v11179_v43 = vpop.f32.mrf.mxu0  ;;  %v2023_v4 = vmul.f32 %v2016_v21, %v1951_v52 }
 0x343   : > { %v2018_v47 = vpop.f32.mrf.mxu1 }
 0x344   : > { %v11185_v48 = vpop.f32.mrf.mxu0  ;;  %v2024_v60 = vmul.f32 %v2018_v47, %v1952_v35  ;;  %v2025_v1 = vadd.f32 %v2023_v4, %v1937_v31 }
 0x345   : > { %v2020_v40 = vpop.f32.mrf.mxu1 }
 0x346   : > { %v11191_v12 = vpop.f32.mrf.mxu0  ;;  %v2026_v63 = vadd.f32 %v2024_v60, %v1938_v53 }
 0x347   : > { %2223 = vrot.lane.b32.xlu0 %v11191_v12, %s10446_s14  ;;  %v2021_v2 = vpop.f32.mrf.mxu1 }
 0x348   : > { %v11195_v45 = vpop.f32.mrf.mxu0 }
 0x349   : > { %2225 = vrot.lane.b32.xlu1 %v11195_v45, %s10446_s14  ;;  %v2105_v56 = vpop.f32.mrf.mxu1 }
 0x34a   : > { %v2110_v28 = vmul.f32 %v2105_v56, %v2025_v1  ;;  %v11237_v42 = vpop.f32.mrf.mxu0 }
 0x34b   : > { %2282 = vrot.lane.b32.xlu0 %v11191_v12, %s10445_s13  ;;  %v2107_v25 = vpop.f32.mrf.mxu1 }
 0x34c   : > { %v2112_v16 = vpack.c.bf16 %v2110_v28, %v2110_v28  ;;  %v2111_v26 = vmul.f32 %v2107_v25, %v2026_v63  ;;  %v11241_v9 = vpop.f32.mrf.mxu0  ;;  %v2465_v63 = vmul.f32 %v11191_v12, %v11179_v43 }
 0x34d   : > { %2284 = vrot.lane.b32.xlu1 %v11195_v45, %s10445_s13 }
 0x34e   : > { %v2113_v13 = vpack.c.bf16 %v2111_v26, %v2111_v26  ;;  %v2118_v57 = vsel %vm491_vm0, %v2112_v16, 0  ;;  %v2220_v33 = vpop.f32.mrf.mxu0 }
 0x34f   : > { %2343 = vrot.lane.b32.xlu0 %v11191_v12, %s10447_s15 }
 0x350   : > { %9862 = vmatprep.subr.msk.bf16.mxu1 %vm491_vm0, %v2113_v13  ;;  %v2221_v29 = vpop.f32.mrf.mxu0  ;;  %v11298_v13 = vld [vmem:[%s13293_s3] sm:$0x1] }
 0x351   : > { %2345 = vrot.lane.b32.xlu1 %v11195_v45, %s10447_s15  ;;  %2138 = vmatpush1.bf16.msra.mxu1 %v2118_v57 }
 0x353   : > { %2404 = vrot.lane.b32.xlu0 %v11191_v12, %s10448_s16 }
 0x354   : > { %9863 = vmatmul.mubr.msk.bf16.vlgmr.msra.gmra.mxu1 %vm484_vm1, %v11212_v10 }
 0x355   : > { %2406 = vrot.lane.b32.xlu1 %v11195_v45, %s10448_s16  ;;  %2271 = vmatprep.mubr.bf16.mxu1 %v13401_v0 }
 0x357   : > { %2520 = vrot.lane.b32.xlu0 %v11191_v12, %s10449_s17 }
 0x359   : > { %2522 = vrot.lane.b32.xlu1 %v11195_v45, %s10449_s17 }
 0x35b   : > { %2581 = vrot.lane.b32.xlu0 %v11191_v12, %s10450_s18 }
 0x35d   : > { %2583 = vrot.lane.b32.xlu1 %v11195_v45, %s10450_s18 }
 0x35f   : > { %2642 = vrot.lane.b32.xlu0 %v11191_v12, %s10451_s19 }
 0x361   : > { %2644 = vrot.lane.b32.xlu1 %v11195_v45, %s10451_s19 }
 0x363   : > { %2703 = vrot.lane.b32.xlu0 %v11191_v12, %s10452_s20  ;;  %v2466_v12 = vmul.f32 %v11195_v45, %v11185_v48 }
 0x365   : > { %2705 = vrot.lane.b32.xlu1 %v11195_v45, %s10452_s20 }
 0x367   : > { %2772 = vrot.lane.b32.xlu0 %v11237_v42, %s10446_s14 }
 0x369   : > { %2774 = vrot.lane.b32.xlu1 %v11241_v9, %s10446_s14 }
 0x36b   : > { %2841 = vrot.lane.b32.xlu0 %v11237_v42, %s10445_s13 }
 0x36d   : > { %2843 = vrot.lane.b32.xlu1 %v11241_v9, %s10445_s13 }
 0x36f   : > { %2910 = vrot.lane.b32.xlu0 %v11237_v42, %s10447_s15 }
 0x371   : > { %2912 = vrot.lane.b32.xlu1 %v11241_v9, %s10447_s15 }
 0x373   : > { %2979 = vrot.lane.b32.xlu0 %v11237_v42, %s10448_s16 }
 0x375   : > { %2981 = vrot.lane.b32.xlu1 %v11241_v9, %s10448_s16 }
 0x377   : > { %3109 = vrot.lane.b32.xlu0 %v11237_v42, %s10449_s17 }
 0x379   : > { %3111 = vrot.lane.b32.xlu1 %v11241_v9, %s10449_s17 }
 0x37b   : > { %3178 = vrot.lane.b32.xlu0 %v11237_v42, %s10450_s18 }
 0x37d   : > { %3180 = vrot.lane.b32.xlu1 %v11241_v9, %s10450_s18 }
 0x37f   : > { %3247 = vrot.lane.b32.xlu0 %v11237_v42, %s10451_s19 }
 0x381   : > { %3249 = vrot.lane.b32.xlu1 %v11241_v9, %s10451_s19 }
 0x383   : > { %3316 = vrot.lane.b32.xlu0 %v11237_v42, %s10452_s20 }
 0x385   : > { %3318 = vrot.lane.b32.xlu1 %v11241_v9, %s10452_s20 }
 0x3b9   : > { %v2224_v8 = vpop.permute.xlu0 %2223 }
 0x3bb   : > { %v2226_v21 = vpop.permute.xlu1 %2225 }
 0x3bc   : > { %v2227_v14 = vsel %vm555_vm3, %v2224_v8, %v2226_v21  ;;  %v2228_v41 = vsel %vm555_vm3, %v2226_v21, %v2224_v8 }
 0x3bd   : > { %v2229_v32 = vmul.f32 %v2228_v41, %v11179_v43  ;;  %v2230_v52 = vmul.f32 %v2227_v14, %v11185_v48  ;;  %v2283_v47 = vpop.permute.xlu0 %2282  ;;  %v2467_v41 = vpack.c.bf16 %v2465_v63, %v2465_v63 }
 0x3bf   : > { %v2231_v59 = vpack.c.bf16 %v2229_v32, %v2229_v32  ;;  %v2232_v44 = vpack.c.bf16 %v2230_v52, %v2230_v52  ;;  %v2285_v4 = vpop.permute.xlu1 %2284 }
 0x3c0   : > { %v2286_v27 = vsel %vm638_vm2, %v2283_v47, %v2285_v4  ;;  %v2287_v35 = vsel %vm638_vm2, %v2285_v4, %v2283_v47 }
 0x3c1   : > { %v2288_v40 = vmul.f32 %v2287_v35, %v11179_v43  ;;  %v2289_v31 = vmul.f32 %v2286_v27, %v11185_v48  ;;  %v2344_v61 = vpop.permute.xlu0 %2343  ;;  %9867 = vmatprep.subr.msk.bf16.mxu1 %vm491_vm0, %v2232_v44  ;;  %v2234_v60 = vsel %vm491_vm0, %v2231_v59, 0  ;;  %v2468_v59 = vpack.c.bf16 %v2466_v12, %v2466_v12 }
 0x3c2   : > { %2254 = vmatpush1.bf16.msra.mxu1 %v2234_v60 }
 0x3c3   : > { %v2290_v2 = vpack.c.bf16 %v2288_v40, %v2288_v40  ;;  %v2291_v53 = vpack.c.bf16 %v2289_v31, %v2289_v31  ;;  %v2346_v1 = vpop.permute.xlu1 %2345 }
 0x3c4   : > { %v2347_v56 = vsel %vm720_vm4, %v2344_v61, %v2346_v1  ;;  %v2348_v28 = vsel %vm720_vm4, %v2346_v1, %v2344_v61 }
 0x3c5   : > { %v2349_v25 = vmul.f32 %v2348_v28, %v11179_v43  ;;  %v2350_v16 = vmul.f32 %v2347_v56, %v11185_v48  ;;  %v2405_v26 = vpop.permute.xlu0 %2404  ;;  %9868 = vmatmul.mubr.msk.bf16.vlgmr.msra.gmra.mxu1 %vm484_vm1, %v11298_v13  ;;  %9869 = vmatprep.subr.msk.bf16.mxu1 %vm491_vm0, %v2291_v53  ;;  %v2293_v57 = vsel %vm491_vm0, %v2290_v2, 0  ;;  %v2470_v53 = vsel %vm491_vm0, %v2467_v41, 0 }
 0x3c6   : > { %2313 = vmatpush1.bf16.msra.mxu1 %v2293_v57  ;;  %2330 = vmatprep.mubr.bf16.mxu1 %v13401_v0 }
 0x3c7   : > { %v2351_v33 = vpack.c.bf16 %v2349_v25, %v2349_v25  ;;  %v2352_v29 = vpack.c.bf16 %v2350_v16, %v2350_v16  ;;  %v2407_v8 = vpop.permute.xlu1 %2406 }
 0x3c8   : > { %v2408_v21 = vsel %vm802_vm5, %v2405_v26, %v2407_v8  ;;  %v2409_v14 = vsel %vm802_vm5, %v2407_v8, %v2405_v26 }
 0x3c9   : > { %v2410_v32 = vmul.f32 %v2409_v14, %v11179_v43  ;;  %v2411_v52 = vmul.f32 %v2408_v21, %v11185_v48  ;;  %v2521_v47 = vpop.permute.xlu0 %2520  ;;  %9871 = vmatprep.subr.msk.bf16.mxu0 %vm491_vm0, %v2352_v29  ;;  %v2354_v45 = vsel %vm491_vm0, %v2351_v33, 0 }
 0x3ca   : > { %2374 = vmatpush1.bf16.msra.mxu0 %v2354_v45 }
 0x3cb   : > { %v2412_v44 = vpack.c.bf16 %v2410_v32, %v2410_v32  ;;  %v2413_v4 = vpack.c.bf16 %v2411_v52, %v2411_v52  ;;  %v2523_v27 = vpop.permute.xlu1 %2522  ;;  %9875 = vmatprep.subr.msk.bf16.mxu0 %vm491_vm0, %v2468_v59 }
 0x3cc   : > { %v2524_v35 = vsel %vm937_vm6, %v2521_v47, %v2523_v27  ;;  %v2525_v40 = vsel %vm937_vm6, %v2523_v27, %v2521_v47 }
 0x3cd   : > { %v2526_v31 = vmul.f32 %v2524_v35, %v11179_v43  ;;  %v2527_v61 = vmul.f32 %v2525_v40, %v11185_v48  ;;  %v2582_v60 = vpop.permute.xlu0 %2581  ;;  %9870 = vmatmul.mubr.msk.bf16.vlgmr.msra.gmra.mxu1 %vm484_vm1, %v11298_v13  ;;  %9872 = vmatmul.mubr.msk.bf16.vlgmr.msra.gmra.mxu0 %vm484_vm1, %v11298_v13  ;;  %v2415_v2 = vsel %vm491_vm0, %v2412_v44, 0 }
 0x3ce   : > { %9873 = vmatprep.subr.msk.bf16.mxu1 %vm491_vm0, %v2413_v4  ;;  %2490 = vmatpush1.bf16.msra.mxu0 %v2470_v53 }
 0x3cf   : > { %v2529_v1 = vpack.c.bf16 %v2527_v61, %v2527_v61  ;;  %2435 = vmatpush1.bf16.msra.mxu1 %v2415_v2  ;;  %v2584_v56 = vpop.permute.xlu1 %2583  ;;  %2452 = vmatprep.mubr.bf16.mxu1 %v13401_v0  ;;  %v2528_v25 = vpack.c.bf16 %v2526_v31, %v2526_v31 }
 0x3d0   : > { %v2585_v28 = vsel %vm1019_vm7, %v2582_v60, %v2584_v56  ;;  %v2586_v63 = vsel %vm1019_vm7, %v2584_v56, %v2582_v60  ;;  %2507 = vmatprep.mubr.bf16.mxu0 %v13401_v0  ;;  %v10417_v56 = vld [vmem:[%s10537_s26 + $0x8] sm:$0xff] }
 0x3d1   : > { %v2587_v16 = vmul.f32 %v2585_v28, %v11179_v43  ;;  %v2588_v26 = vmul.f32 %v2586_v63, %v11185_v48  ;;  %v2643_v57 = vpop.permute.xlu0 %2642  ;;  %9877 = vmatprep.subr.msk.bf16.mxu1 %vm491_vm0, %v2529_v1  ;;  %v2531_v32 = vsel %vm491_vm0, %v2528_v25, 0 }
 0x3d3   : > { %v2589_v12 = vpack.c.bf16 %v2587_v16, %v2587_v16  ;;  %v2590_v33 = vpack.c.bf16 %v2588_v26, %v2588_v26  ;;  %v2645_v29 = vpop.permute.xlu1 %2644 }
 0x3d4   : > { %v2646_v8 = vsel %vm1101_vm8, %v2643_v57, %v2645_v29  ;;  %v2647_v21 = vsel %vm1101_vm8, %v2645_v29, %v2643_v57 }
 0x3d5   : > { %v2648_v14 = vmul.f32 %v2646_v8, %v11179_v43  ;;  %v2649_v41 = vmul.f32 %v2647_v21, %v11185_v48  ;;  %9874 = vmatmul.mubr.msk.bf16.vlgmr.msra.gmra.mxu1 %vm484_vm1, %v11298_v13  ;;  %9876 = vmatmul.mubr.msk.bf16.vlgmr.msra.gmra.mxu0 %vm484_vm1, %v11298_v13  ;;  %v2592_v52 = vsel %vm491_vm0, %v2589_v12, 0  ;;  %v2704_v45 = vpop.permute.xlu0 %2703 }
 0x3d6   : > { %2551 = vmatpush1.bf16.msra.mxu1 %v2531_v32  ;;  %9879 = vmatprep.subr.msk.bf16.mxu0 %vm491_vm0, %v2590_v33 }
 0x3d7   : > { %v2651_v47 = vpack.c.bf16 %v2649_v41, %v2649_v41  ;;  %2612 = vmatpush1.bf16.msra.mxu0 %v2592_v52  ;;  %v2706_v59 = vpop.permute.xlu1 %2705  ;;  %2568 = vmatprep.mubr.bf16.mxu1 %v13401_v0  ;;  %v2650_v27 = vpack.c.bf16 %v2648_v14, %v2648_v14 }
 0x3d8   : > { %v2707_v44 = vsel %vm1181_vm9, %v2704_v45, %v2706_v59  ;;  %v2708_v4 = vsel %vm1181_vm9, %v2706_v59, %v2704_v45  ;;  %2629 = vmatprep.mubr.bf16.mxu0 %v13401_v0 }
 0x3d9   : > { %v2709_v35 = vmul.f32 %v2707_v44, %v11179_v43  ;;  %v2710_v40 = vmul.f32 %v2708_v4, %v11185_v48  ;;  %9881 = vmatprep.subr.msk.bf16.mxu1 %vm491_vm0, %v2651_v47  ;;  %v2653_v60 = vsel %vm491_vm0, %v2650_v27, 0  ;;  %v10416_v48 = vld [vmem:[%s10537_s26] sm:$0xff] }
 0x3db   : > { %v2711_v31 = vpack.c.bf16 %v2709_v35, %v2709_v35  ;;  %v2712_v61 = vpack.c.bf16 %v2710_v40, %v2710_v40 }
 0x3dd   : > { %9878 = vmatmul.mubr.msk.bf16.vlgmr.msra.gmra.mxu1 %vm484_vm1, %v11298_v13  ;;  %9880 = vmatmul.mubr.msk.bf16.vlgmr.msra.gmra.mxu0 %vm484_vm1, %v11298_v13  ;;  %v2714_v2 = vsel %vm491_vm0, %v2711_v31, 0 }
 0x3de   : > { %2673 = vmatpush1.bf16.msra.mxu1 %v2653_v60  ;;  %9883 = vmatprep.subr.msk.bf16.mxu0 %vm491_vm0, %v2712_v61 }
 0x3df   : > { %2734 = vmatpush1.bf16.msra.mxu0 %v2714_v2  ;;  %2690 = vmatprep.mubr.bf16.mxu1 %v13401_v0 }
 0x3e0   : > { %2751 = vmatprep.mubr.bf16.mxu0 %v13401_v0 }
 0x3e5   : > { %9882 = vmatmul.mubr.msk.bf16.vlgmr.msra.gmra.mxu1 %vm484_vm1, %v11298_v13  ;;  %9884 = vmatmul.mubr.msk.bf16.vlgmr.msra.gmra.mxu0 %vm484_vm1, %v11298_v13 }
 0x3e6   : > { %2820 = vmatprep.mubr.bf16.mxu1 %v13401_v0  ;;  %2889 = vmatprep.mubr.bf16.mxu0 %v13401_v0 }
 0x414   : > { %v2157_v43 = vpop.f32.mrf.mxu1 }
 0x415   : > { %v11376_v53 = vadd.f32 %v10416_v48, %v2157_v43 }
 0x416   : > { %v2159_v1 = vpop.f32.mrf.mxu1 }
 0x417   : > { %v11379_v28 = vadd.f32 %v10417_v56, %v2159_v1 }
 0x418   : > { %v2161_v63 = vpop.f32.mrf.mxu1 }
 0x419   : > { %v3507_v25 = vadd.f32 %v11379_v28, %v11376_v53 }
 0x41a   : > { %v2162_v16 = vpop.f32.mrf.mxu1 }
 0x41b   : > { %3508 = vadd.xlane.f32.xlu0 %v3507_v25 }
 0x485   : > { %v2273_v26 = vpop.f32.mrf.mxu1 }
 0x486   : > { %v2280_v45 = vmul.f32 %v2273_v26, %v10794_v11 }
 0x487   : > { %v2275_v13 = vpop.f32.mrf.mxu1 }
 0x488   : > { %v11393_v40 = vmul.f32 %v2275_v13, %v10813_v23 }
 0x489   : > { %v2277_v57 = vpop.f32.mrf.mxu1 }
 0x48b   : > { %v2278_v12 = vpop.f32.mrf.mxu1 }
 0x48d   : > { %v2332_v33 = vpop.f32.mrf.mxu1  ;;  %v2393_v29 = vpop.f32.mrf.mxu0 }
 0x48e   : > { %v11384_v32 = vmul.f32 %v2332_v33, %v10784_v3  ;;  %v2400_v35 = vmul.f32 %v2393_v29, %v10804_v20 }
 0x48f   : > { %v2334_v8 = vpop.f32.mrf.mxu1  ;;  %v2395_v21 = vpop.f32.mrf.mxu0 }
 0x490   : > { %v11388_v59 = vmul.f32 %v2334_v8, %v10801_v15  ;;  %v2341_v27 = vmax.f32 %v2280_v45, %v11384_v32  ;;  %v11399_v56 = vmul.f32 %v2395_v21, %v10844_v37 }
 0x491   : > { %v2336_v14 = vpop.f32.mrf.mxu1  ;;  %v2397_v41 = vpop.f32.mrf.mxu0 }
 0x492   : > { %v2342_v2 = vmax.f32 %v11393_v40, %v11388_v59  ;;  %v2402_v1 = vmax.f32 %v2341_v27, %v2400_v35 }
 0x493   : > { %v2337_v52 = vpop.f32.mrf.mxu1  ;;  %v2398_v47 = vpop.f32.mrf.mxu0 }
 0x494   : > { %v2403_v57 = vmax.f32 %v2342_v2, %v11399_v56 }
 0x495   : > { %v2454_v44 = vpop.f32.mrf.mxu1  ;;  %v2509_v4 = vpop.f32.mrf.mxu0 }
 0x496   : > { %v2461_v60 = vmul.f32 %v2454_v44, %v10824_v30  ;;  %v2516_v13 = vmul.f32 0.5, %v2509_v4 }
 0x497   : > { %v2456_v31 = vpop.f32.mrf.mxu1  ;;  %v2511_v61 = vpop.f32.mrf.mxu0 }
 0x498   : > { %v11402_v63 = vmul.f32 %v2456_v31, %v10847_v39  ;;  %v2463_v26 = vmax.f32 %v2402_v1, %v2461_v60  ;;  %v2517_v21 = vmul.f32 0.5, %v2511_v61 }
 0x499   : > { %v2458_v43 = vpop.f32.mrf.mxu1  ;;  %v2513_v48 = vpop.f32.mrf.mxu0 }
 0x49a   : > { %v2464_v8 = vmax.f32 %v2403_v57, %v11402_v63  ;;  %v2518_v52 = vmax.f32 %v2463_v26, %v2516_v13 }
 0x49b   : > { %v2459_v25 = vpop.f32.mrf.mxu1  ;;  %v2514_v16 = vpop.f32.mrf.mxu0 }
 0x49c   : > { %v2519_v4 = vmax.f32 %v2464_v8, %v2517_v21 }
 0x49d   : > { %v2570_v12 = vpop.f32.mrf.mxu1  ;;  %v2631_v33 = vpop.f32.mrf.mxu0 }
 0x49e   : > { %v2577_v29 = vmul.f32 %v2570_v12, %v10862_v54  ;;  %v2638_v43 = vmul.f32 %v2631_v33, %v10879_v6 }
 0x49f   : > { %v2572_v14 = vpop.f32.mrf.mxu1  ;;  %v2633_v41 = vpop.f32.mrf.mxu0 }
 0x4a0   : > { %v2578_v47 = vmul.f32 %v2572_v14, %v10876_v5  ;;  %v2579_v31 = vmax.f32 %v2518_v52, %v2577_v29  ;;  %v2639_v61 = vmul.f32 %v2633_v41, %v10906_v50 }
 0x4a1   : > { %v2574_v44 = vpop.f32.mrf.mxu1  ;;  %v2635_v27 = vpop.f32.mrf.mxu0 }
 0x4a2   : > { %v2580_v1 = vmax.f32 %v2519_v4, %v2578_v47  ;;  %v2640_v12 = vmax.f32 %v2579_v31, %v2638_v43 }
 0x4a3   : > { %v2575_v48 = vpop.f32.mrf.mxu1  ;;  %v2636_v2 = vpop.f32.mrf.mxu0 }
 0x4a4   : > { %v2641_v8 = vmax.f32 %v2580_v1, %v2639_v61 }
 0x4a5   : > { %v2692_v25 = vpop.f32.mrf.mxu1  ;;  %v2753_v16 = vpop.f32.mrf.mxu0 }
 0x4a6   : > { %v11410_v57 = vmul.f32 %v2692_v25, %v10903_v49  ;;  %v11413_v26 = vmul.f32 %v2753_v16, %v10900_v36 }
 0x4a7   : > { %v2694_v14 = vpop.f32.mrf.mxu1  ;;  %v2755_v44 = vpop.f32.mrf.mxu0 }
 0x4a8   : > { %v2701_v52 = vmax.f32 %v2640_v12, %v11410_v57  ;;  %v2700_v33 = vmul.f32 %v2694_v14, %v10910_v58  ;;  %v2761_v14 = vmul.f32 %v2755_v44, %v10928_v55 }
 0x4a9   : > { %v2696_v27 = vpop.f32.mrf.mxu1  ;;  %v2757_v4 = vpop.f32.mrf.mxu0 }
 0x4aa   : > { %v11419_v48 = vmax.f32 %v2701_v52, %v11413_v26  ;;  %v2702_v31 = vmax.f32 %v2641_v8, %v2700_v33 }
 0x4ab   : > { %v2697_v2 = vpop.f32.mrf.mxu1  ;;  %v2758_v25 = vpop.f32.mrf.mxu0 }
 0x4ac   : > { %v2764_v16 = vsub.f32 %v2280_v45, %v11419_v48  ;;  %v2833_v41 = vsub.f32 %v11384_v32, %v11419_v48  ;;  %v2902_v36 = vsub.f32 %v2400_v35, %v11419_v48  ;;  %v2971_v12 = vsub.f32 %v2461_v60, %v11419_v48 }
 0x4ad   : > { %v2763_v58 = vmax.f32 %v2702_v31, %v2761_v14  ;;  %v3040_v52 = vsub.f32 %v2516_v13, %v11419_v48  ;;  %v3101_v44 = vsub.f32 %v2577_v29, %v11419_v48 }
 0x4ae   : > { %v2766_v1 = vmul.f32 1.442695, %v2764_v16  ;;  %v2835_v27 = vmul.f32 1.442695, %v2833_v41  ;;  %v2904_v4 = vmul.f32 1.442695, %v2902_v36 }
 0x4af   : > { %v2973_v8 = vmul.f32 1.442695, %v2971_v12  ;;  %v2765_v45 = vsub.f32 %v11393_v40, %v2763_v58  ;;  %v2834_v2 = vsub.f32 %v11388_v59, %v2763_v58  ;;  %v2903_v32 = vsub.f32 %v11399_v56, %v2763_v58 }
 0x4b0   : > { %10203 = vpow2.f32 %v2766_v1  ;;  %v3042_v35 = vmul.f32 1.442695, %v3040_v52  ;;  %v2972_v60 = vsub.f32 %v11402_v63, %v2763_v58  ;;  %v3102_v25 = vsub.f32 %v2578_v47, %v2763_v58 }
 0x4b1   : > { %10205 = vpow2.f32 %v2835_v27  ;;  %v2768_v36 = vmul.f32 1.442695, %v2765_v45  ;;  %v2837_v31 = vmul.f32 1.442695, %v2834_v2  ;;  %v2906_v16 = vmul.f32 1.442695, %v2903_v32 }
 0x4b2   : > { %10207 = vpow2.f32 %v2904_v4  ;;  %v3041_v13 = vsub.f32 %v2517_v21, %v2763_v58  ;;  %v2975_v41 = vmul.f32 1.442695, %v2972_v60  ;;  %v3103_v12 = vmul.f32 1.442695, %v3101_v44 }
 0x4b3   : > { %10209 = vpow2.f32 %v2973_v8  ;;  %v3170_v40 = vsub.f32 %v2638_v43, %v11419_v48  ;;  %v3105_v59 = vmul.f32 1.442695, %v3102_v25  ;;  %v3171_v1 = vsub.f32 %v2639_v61, %v2763_v58 }
 0x4b4   : > { %10211 = vpow2.f32 %v3042_v35  ;;  %v3044_v56 = vmul.f32 1.442695, %v3041_v13  ;;  %v3240_v63 = vsub.f32 %v2700_v33, %v2763_v58  ;;  %v3239_v47 = vsub.f32 %v11410_v57, %v11419_v48 }
 0x4b5   : > { %10213 = vpow2.f32 %v2768_v36  ;;  %v3172_v29 = vmul.f32 1.442695, %v3170_v40  ;;  %v3174_v52 = vmul.f32 1.442695, %v3171_v1  ;;  %v3309_v45 = vsub.f32 %v2761_v14, %v2763_v58 }
 0x4b6   : > { %10215 = vpow2.f32 %v2837_v31  ;;  %v3243_v8 = vmul.f32 1.442695, %v3240_v63  ;;  %v3241_v32 = vmul.f32 1.442695, %v3239_v47  ;;  %v3308_v61 = vsub.f32 %v11413_v26, %v11419_v48 }
 0x4b7   : > { %10217 = vpow2.f32 %v2906_v16  ;;  %v3312_v57 = vmul.f32 1.442695, %v3309_v45 }
 0x4b8   : > { %10219 = vpow2.f32 %v2975_v41  ;;  %v3310_v31 = vmul.f32 1.442695, %v3308_v61 }
 0x4b9   : > { %10221 = vpow2.f32 %v3103_v12 }
 0x4ba   : > { %10223 = vpow2.f32 %v3105_v59 }
 0x4bb   : > { %10225 = vpow2.f32 %v3044_v56 }
 0x4bc   : > { %10227 = vpow2.f32 %v3172_v29 }
 0x4bd   : > { %v10204_v27 = vpop.eup %10203  ;;  %10229 = vpow2.f32 %v3174_v52 }
 0x4be   : > { %v10206_v21 = vpop.eup %10205  ;;  %v2778_v35 = vmul.f32 %v10204_v27, %v10989_v51  ;;  %10231 = vpow2.f32 %v3243_v8 }
 0x4bf   : > { %v2839_v4 = vadd.f32 %v10206_v21, %v10204_v27  ;;  %v10208_v43 = vpop.eup %10207  ;;  %v2847_v44 = vmul.f32 %v10206_v21, %v10992_v34  ;;  %10233 = vpow2.f32 %v3241_v32 }
 0x4c0   : > { %v10210_v33 = vpop.eup %10209  ;;  %v2780_v14 = vpack.c.bf16 %v2778_v35, %v2778_v35  ;;  %v2916_v48 = vmul.f32 %v10208_v43, %v10999_v38  ;;  %10235 = vpow2.f32 %v3312_v57 }
 0x4c1   : > { %v2908_v2 = vadd.f32 %v10208_v43, %v2839_v4  ;;  %v11440_v36 = vpop.eup %10211  ;;  %v2985_v13 = vmul.f32 %v10210_v33, %v11004_v46  ;;  %v2849_v59 = vpack.c.bf16 %v2847_v44, %v2847_v44  ;;  %10237 = vpow2.f32 %v3310_v31 }
 0x4c2   : > { %v10214_v58 = vpop.eup %10213  ;;  %v2783_v21 = vsel %vm1300_vm11, %v2780_v14, 0  ;;  %v2918_v45 = vpack.c.bf16 %v2916_v48, %v2916_v48 }
 0x4c3   : > { %v2977_v60 = vadd.f32 %v10210_v33, %v2908_v2  ;;  %v10216_v25 = vpop.eup %10215  ;;  %v2779_v26 = vmul.f32 %v10214_v58, %v11012_v18  ;;  %v2987_v2 = vpack.c.bf16 %v2985_v13, %v2985_v13  ;;  %v2852_v33 = vsel %vm1300_vm11, %v2849_v59, 0  ;;  %v13407_v13 = vld [vmem:[#allocation17_spill] sm:$0xff] }
 0x4c4   : > { %v10218_v41 = vpop.eup %10217  ;;  %v2840_v12 = vadd.f32 %v10216_v25, %v10214_v58  ;;  %v2848_v40 = vmul.f32 %v10216_v25, %v11015_v22  ;;  %v2921_v58 = vsel %vm1300_vm11, %v2918_v45, 0 }
 0x4c5   : > { %v3046_v16 = vadd.f32 %v11440_v36, %v2977_v60  ;;  %v10220_v56 = vpop.eup %10219  ;;  %v2781_v1 = vpack.c.bf16 %v2779_v26, %v2779_v26  ;;  %v2917_v63 = vmul.f32 %v10218_v41, %v11019_v24  ;;  %v2990_v26 = vsel %vm1300_vm11, %v2987_v2, 0 }
 0x4c6   : > { %v10222_v27 = vpop.eup %10221  ;;  %v2909_v29 = vadd.f32 %v10218_v41, %v2840_v12  ;;  %v2850_v47 = vpack.c.bf16 %v2848_v40, %v2848_v40  ;;  %v2986_v4 = vmul.f32 %v10220_v56, %v11022_v7 }
 0x4c7   : > { %v10224_v52 = vpop.eup %10223  ;;  %v3107_v43 = vadd.f32 %v10222_v27, %v3046_v16  ;;  %9885 = vmatprep.subr.msk.bf16.mxu1 %vm1300_vm11, %v2781_v1  ;;  %v2919_v8 = vpack.c.bf16 %v2917_v63, %v2917_v63  ;;  %v3115_v41 = vmul.f32 %v10222_v27, %v13407_v13  ;;  %v3048_v1 = vpack.c.bf16 %v11440_v36, %v11440_v36  ;;  %v13408_v63 = vld [vmem:[#allocation18_spill] sm:$0xff] }
 0x4c8   : > { %v10226_v32 = vpop.eup %10225  ;;  %v2978_v61 = vadd.f32 %v10220_v56, %v2909_v29  ;;  %9887 = vmatprep.subr.msk.bf16.mxu0 %vm1300_vm11, %v2850_v47  ;;  %2803 = vmatpush1.bf16.msra.mxu1 %v2783_v21  ;;  %v2988_v35 = vpack.c.bf16 %v2986_v4, %v2986_v4  ;;  %v3116_v60 = vmul.f32 %v10224_v52, %v11033_v62  ;;  %v13409_v21 = vld [vmem:[#allocation19_spill] sm:$0xff] }
 0x4c9   : > { %2872 = vmatpush1.bf16.msra.mxu0 %v2852_v33  ;;  %9889 = vmatprep.subr.msk.bf16.mxu1 %vm1300_vm11, %v2919_v8  ;;  %v10228_v57 = vpop.eup %10227  ;;  %v3049_v14 = vpack.c.bf16 %v10226_v32, %v10226_v32  ;;  %v3117_v27 = vpack.c.bf16 %v3115_v41, %v3115_v41  ;;  %v3051_v2 = vsel %vm1300_vm11, %v3048_v1, 0  ;;  %v13414_v1 = vmov 0.0  }
 0x4ca   : > { %v3047_v44 = vadd.f32 %v10226_v32, %v2978_v61  ;;  %9891 = vmatprep.subr.msk.bf16.mxu0 %vm1300_vm11, %v2988_v35  ;;  %v3176_v31 = vadd.f32 %v10228_v57, %v3107_v43  ;;  %v10230_v25 = vpop.eup %10229  ;;  %v3118_v48 = vpack.c.bf16 %v3116_v60, %v3116_v60  ;;  %v13410_v61 = vld [vmem:[#allocation20_spill] sm:$0xff]  ;;  %v13411_v60 = vld [vmem:[#allocation21_spill] sm:$0xff] }
 0x4cb   : > { %9886 = vmatmul.mubr.msk.bf16.vlgmr.msra.gmra.mxu1 %vm1296_vm13, %v11039_v19  ;;  %v10232_v12 = vpop.eup %10231  ;;  %v3185_v29 = vmul.f32 %v10230_v25, %v13408_v63  ;;  %v3184_v33 = vmul.f32 %v10228_v57, %v13410_v61  ;;  %v3120_v36 = vsel %vm1300_vm11, %v3117_v27, 0  ;;  %v2775_v27 = vpop.permute.xlu1 %2774 }
 0x4cc   : > { %v3108_v16 = vadd.f32 %v10224_v52, %v3047_v44  ;;  %9888 = vmatmul.mubr.msk.bf16.vlgmr.msra.gmra.mxu0 %vm1296_vm13, %v11039_v19  ;;  %2941 = vmatpush1.bf16.msra.mxu1 %v2921_v58  ;;  %v10234_v40 = vpop.eup %10233  ;;  %v3254_v4 = vmul.f32 %v10232_v12, %v13409_v21 }
 0x4cd   : > { %3010 = vmatpush1.bf16.msra.mxu0 %v2990_v26  ;;  %9893 = vmatprep.subr.msk.bf16.mxu1 %vm1300_vm11, %v3049_v14  ;;  %v3245_v56 = vadd.f32 %v10234_v40, %v3176_v31  ;;  %v10236_v52 = vpop.eup %10235  ;;  %v3187_v32 = vpack.c.bf16 %v3185_v29, %v3185_v29  ;;  %v3253_v44 = vmul.f32 %v10234_v40, %v13411_v60  ;;  %v13412_v31 = vld [vmem:[#allocation22_spill] sm:$0xff]  ;;  %v13413_v26 = vld [vmem:[#allocation23_spill] sm:$0xff] }
 0x4ce   : > { %v3177_v59 = vadd.f32 %v10230_v25, %v3108_v16  ;;  %9895 = vmatprep.subr.msk.bf16.mxu0 %vm1300_vm11, %v3118_v48  ;;  %2958 = vmatprep.mubr.bf16.mxu1 %v13401_v0  ;;  %v10238_v43 = vpop.eup %10237  ;;  %v3256_v35 = vpack.c.bf16 %v3254_v4, %v3254_v4  ;;  %v3186_v57 = vpack.c.bf16 %v3184_v33, %v3184_v33  ;;  %v10418_v29 = vld [vmem:[%s13294_s4] sm:$0xff] }
 0x4cf   : > { %3027 = vmatprep.mubr.bf16.mxu0 %v13401_v0  ;;  %v3314_v45 = vadd.f32 %v10238_v43, %v3245_v56  ;;  %v3323_v58 = vmul.f32 %v10236_v52, %v13412_v31  ;;  %v3255_v14 = vpack.c.bf16 %v3253_v44, %v3253_v44  ;;  %v3322_v48 = vmul.f32 %v10238_v43, %v13413_v26 }
 0x4d0   : > { %v3246_v47 = vadd.f32 %v10232_v12, %v3177_v59  ;;  %v3189_v25 = vsel %vm1300_vm11, %v3186_v57, 0 }
 0x4d1   : > { %v3325_v16 = vpack.c.bf16 %v3323_v58, %v3323_v58  ;;  %v3258_v41 = vsel %vm1300_vm11, %v3255_v14, 0  ;;  %v3324_v12 = vpack.c.bf16 %v3322_v48, %v3322_v48 }
 0x4d2   : > { %v3315_v8 = vadd.f32 %v10236_v52, %v3246_v47  ;;  %v2773_v47 = vpop.permute.xlu0 %2772  ;;  %v2844_v52 = vpop.permute.xlu1 %2843 }
 0x4d3   : > { %9890 = vmatmul.mubr.msk.bf16.vlgmr.msra.gmra.mxu1 %vm1296_vm13, %v11039_v19  ;;  %v3327_v59 = vsel %vm1300_vm11, %v3324_v12, 0 }
 0x4d4   : > { %10239 = vrcp.f32 %v3315_v8  ;;  %9892 = vmatmul.mubr.msk.bf16.vlgmr.msra.gmra.mxu0 %vm1296_vm13, %v11039_v19  ;;  %3071 = vmatpush1.bf16.msra.mxu1 %v3051_v2 }
 0x4d5   : > { %3140 = vmatpush1.bf16.msra.mxu0 %v3120_v36  ;;  %9897 = vmatprep.subr.msk.bf16.mxu1 %vm1300_vm11, %v3187_v32  ;;  %10241 = vrcp.f32 %v3314_v45 }
 0x4d6   : > { %9899 = vmatprep.subr.msk.bf16.mxu0 %vm1300_vm11, %v3256_v35  ;;  %3088 = vmatprep.mubr.bf16.mxu1 %v13401_v0  ;;  %v2842_v4 = vpop.permute.xlu0 %2841  ;;  %v2913_v8 = vpop.permute.xlu1 %2912 }
 0x4d7   : > { %3157 = vmatprep.mubr.bf16.mxu0 %v13401_v0  ;;  %v2846_v12 = vsel %vm638_vm2, %v2844_v52, %v2842_v4 }
 0x4da   : > { %v2911_v43 = vpop.permute.xlu0 %2910  ;;  %v2982_v44 = vpop.permute.xlu1 %2981 }
 0x4db   : > { %9894 = vmatmul.mubr.msk.bf16.vlgmr.msra.gmra.mxu1 %vm1296_vm13, %v11039_v19  ;;  %v2914_v21 = vsel %vm720_vm4, %v2911_v43, %v2913_v8 }
 0x4dc   : > { %9896 = vmatmul.mubr.msk.bf16.vlgmr.msra.gmra.mxu0 %vm1296_vm13, %v11039_v19  ;;  %3209 = vmatpush1.bf16.msra.mxu1 %v3189_v25 }
 0x4dd   : > { %3278 = vmatpush1.bf16.msra.mxu0 %v3258_v41  ;;  %9901 = vmatprep.subr.msk.bf16.mxu1 %vm1300_vm11, %v3325_v16  ;;  %v2777_v41 = vsel %vm555_vm3, %v2775_v27, %v2773_v47 }
 0x4de   : > { %3226 = vmatprep.mubr.bf16.mxu1 %v13401_v0  ;;  %3295 = vmatprep.mubr.bf16.mxu0 %v13401_v0  ;;  %v2980_v36 = vpop.permute.xlu0 %2979 }
 0x4e1   : > { %v10240_v40 = vpop.eup %10239 }
 0x4e2   : > { %9903 = vmatprep.subr.msk.mxu0 %vm2032_vm14, %v10240_v40  ;;  %v10242_v56 = vpop.eup %10241  ;;  %v3110_v48 = vpop.permute.xlu0 %3109 }
 0x4e3   : > { %9898 = vmatmul.mubr.msk.bf16.vlgmr.msra.gmra.mxu1 %vm1296_vm13, %v11039_v19 }
 0x4e4   : > { %9900 = vmatmul.mubr.msk.bf16.vlgmr.msra.gmra.mxu0 %vm1296_vm13, %v11039_v19  ;;  %3347 = vmatpush1.bf16.msra.mxu1 %v3327_v59  ;;  %v3112_v59 = vpop.permute.xlu1 %3111 }
 0x4e5   : > { %9904 = vmatpush1.msk.msra.mxu0 %vm2032_vm14, %v10242_v56  ;;  %3364 = vmatprep.mubr.bf16.mxu1 %v13401_v0 }
 0x4e6   : > { %3449 = vmatprep.mubr.f32.mxu0 %v13414_v1  ;;  %v3179_v63 = vpop.permute.xlu0 %3178 }
 0x4eb   : > { %9902 = vmatmul.mubr.msk.bf16.vlgmr.msra.gmra.mxu1 %vm1296_vm13, %v11039_v19 }
 0x4ec   : > { %9905 = vmatmul.mubr.msk.f32.vlgmr.msra.gmra.mxu0 %vm1296_vm13, %v10418_v29  ;;  %3614 = vmatprep.mubr.bf16.mxu1 %v13401_v0 }
 0x4ed   : > { %3498 = vmatprep.mubr.bf16.mxu0 %v13401_v0 }
 0x58b   : > { %v2822_v45 = vpop.f32.mrf.mxu1 }
 0x58c   : > { %v2891_v2 = vpop.f32.mrf.mxu0  ;;  %v2829_v56 = vmul.f32 %v2822_v45, %v2777_v41 }
 0x58d   : > { %v2824_v32 = vpop.f32.mrf.mxu1  ;;  %v2898_v29 = vmul.f32 %v2891_v2, %v2846_v12 }
 0x58e   : > { %v2893_v33 = vpop.f32.mrf.mxu0 }
 0x58f   : > { %v2826_v35 = vpop.f32.mrf.mxu1  ;;  %v2900_v2 = vadd.f32 %v2898_v29, %v2829_v56 }
 0x590   : > { %v2895_v57 = vpop.f32.mrf.mxu0  ;;  %v2776_v35 = vsel %vm555_vm3, %v2773_v47, %v2775_v27  ;;  %v3181_v27 = vpop.permute.xlu1 %3180 }
 0x591   : > { %v2827_v58 = vpop.f32.mrf.mxu1  ;;  %v2845_v57 = vsel %vm638_vm2, %v2842_v4, %v2844_v52  ;;  %v2830_v26 = vmul.f32 %v2824_v32, %v2776_v35 }
 0x592   : > { %v2896_v14 = vpop.f32.mrf.mxu0  ;;  %v2915_v58 = vsel %vm720_vm4, %v2913_v8, %v2911_v43  ;;  %v2899_v31 = vmul.f32 %v2893_v33, %v2845_v57  ;;  %v2983_v43 = vsel %vm802_vm5, %v2980_v36, %v2982_v44 }
 0x593   : > { %v2960_v25 = vpop.f32.mrf.mxu1 }
 0x594   : > { %v3029_v16 = vpop.f32.mrf.mxu0  ;;  %v2967_v60 = vmul.f32 %v2960_v25, %v2915_v58  ;;  %v2901_v13 = vadd.f32 %v2899_v31, %v2830_v26  ;;  %v3250_v29 = vpop.permute.xlu1 %3249 }
 0x595   : > { %v2962_v40 = vpop.f32.mrf.mxu1 }
 0x596   : > { %v3031_v1 = vpop.f32.mrf.mxu0  ;;  %v2968_v41 = vmul.f32 %v2962_v40, %v2914_v21  ;;  %v2969_v4 = vadd.f32 %v2967_v60, %v2900_v2  ;;  %v3248_v60 = vpop.permute.xlu0 %3247 }
 0x597   : > { %v2964_v14 = vpop.f32.mrf.mxu1  ;;  %v3037_v40 = vmul.f32 %v3031_v1, %v2983_v43 }
 0x598   : > { %v3033_v61 = vpop.f32.mrf.mxu0  ;;  %v2984_v14 = vsel %vm802_vm5, %v2982_v44, %v2980_v36  ;;  %v2970_v25 = vadd.f32 %v2968_v41, %v2901_v13  ;;  %v3113_v13 = vsel %vm937_vm6, %v3110_v48, %v3112_v59  ;;  %v3183_v41 = vsel %vm1019_vm7, %v3181_v27, %v3179_v63 }
 0x599   : > { %v2965_v45 = vpop.f32.mrf.mxu1  ;;  %v3036_v33 = vmul.f32 %v3029_v16, %v2984_v14 }
 0x59a   : > { %v3034_v12 = vpop.f32.mrf.mxu0  ;;  %v3039_v57 = vadd.f32 %v3037_v40, %v2970_v25 }
 0x59b   : > { %v3090_v47 = vpop.f32.mrf.mxu1  ;;  %v3038_v8 = vadd.f32 %v3036_v33, %v2969_v4  ;;  %v3317_v33 = vpop.permute.xlu0 %3316 }
 0x59c   : > { %v3159_v52 = vpop.f32.mrf.mxu0  ;;  %v3097_v61 = vmul.f32 %v3090_v47, %v11237_v42  ;;  %v3182_v42 = vsel %vm1019_vm7, %v3179_v63, %v3181_v27  ;;  %v3252_v63 = vsel %vm1101_vm8, %v3250_v29, %v3248_v60 }
 0x59d   : > { %v3092_v32 = vpop.f32.mrf.mxu1  ;;  %v3166_v36 = vmul.f32 %v3159_v52, %v3113_v13 }
 0x59e   : > { %v3161_v35 = vpop.f32.mrf.mxu0  ;;  %v3098_v56 = vmul.f32 %v3092_v32, %v11241_v9  ;;  %v3099_v58 = vadd.f32 %v3097_v61, %v3038_v8  ;;  %v3114_v9 = vsel %vm937_vm6, %v3112_v59, %v3110_v48  ;;  %v3319_v61 = vpop.permute.xlu1 %3318  ;;  %v3251_v8 = vsel %vm1101_vm8, %v3248_v60, %v3250_v29 }
 0x59f   : > { %v3094_v21 = vpop.f32.mrf.mxu1  ;;  %v3167_v4 = vmul.f32 %v3161_v35, %v3114_v9  ;;  %v3320_v27 = vsel %vm1181_vm9, %v3317_v33, %v3319_v61 }
 0x5a0   : > { %v3163_v31 = vpop.f32.mrf.mxu0  ;;  %v3100_v44 = vadd.f32 %v3098_v56, %v3039_v57  ;;  %v3168_v47 = vadd.f32 %v3166_v36, %v3099_v58  ;;  %v3321_v58 = vsel %vm1181_vm9, %v3319_v61, %v3317_v33 }
 0x5a1   : > { %v3095_v26 = vpop.f32.mrf.mxu1 }
 0x5a2   : > { %v3164_v45 = vpop.f32.mrf.mxu0  ;;  %v3169_v43 = vadd.f32 %v3167_v4, %v3100_v44 }
 0x5a3   : > { %v3228_v16 = vpop.f32.mrf.mxu1 }
 0x5a4   : > { %v3235_v2 = vmul.f32 %v3228_v16, %v3182_v42  ;;  %v3297_v1 = vpop.f32.mrf.mxu0 }
 0x5a5   : > { %v3230_v12 = vpop.f32.mrf.mxu1  ;;  %v3304_v56 = vmul.f32 %v3297_v1, %v3251_v8  ;;  %v3509_v8 = vpop.xlane.xlu0 %3508 }
 0x5a6   : > { %v3236_v14 = vmul.f32 %v3230_v12, %v3183_v41  ;;  %v3299_v32 = vpop.f32.mrf.mxu0  ;;  %v3237_v21 = vadd.f32 %v3235_v2, %v3168_v47 }
 0x5a7   : > { %v3232_v25 = vpop.f32.mrf.mxu1  ;;  %v3305_v26 = vmul.f32 %v3299_v32, %v3252_v63  ;;  %v10419_v32 = vld [vmem:[%s10537_s26 + $0x10] sm:$0xff] }
 0x5a8   : > { %v3301_v52 = vpop.f32.mrf.mxu0  ;;  %v3238_v48 = vadd.f32 %v3236_v14, %v3169_v43  ;;  %v3306_v31 = vadd.f32 %v3304_v56, %v3237_v21  ;;  %v10420_v25 = vld [vmem:[%s10537_s26 + $0x18] sm:$0xff] }
 0x5a9   : > { %v3233_v40 = vpop.f32.mrf.mxu1 }
 0x5aa   : > { %v3302_v59 = vpop.f32.mrf.mxu0  ;;  %v3307_v42 = vadd.f32 %v3305_v26, %v3238_v48 }
 0x5ab   : > { %v3366_v35 = vpop.f32.mrf.mxu1 }
 0x5ac   : > { %v3373_v57 = vmul.f32 %v3366_v35, %v3320_v27  ;;  %v3451_v13 = vpop.f32.mrf.mxu0 }
 0x5ad   : > { %v3368_v45 = vpop.f32.mrf.mxu1 }
 0x5ae   : > { %v3374_v16 = vmul.f32 %v3368_v45, %v3321_v58  ;;  %v3375_v36 = vadd.f32 %v3373_v57, %v3306_v31  ;;  %v3453_v29 = vpop.f32.mrf.mxu0 }
 0x5af   : > { %v3370_v44 = vpop.f32.mrf.mxu1 }
 0x5b0   : > { %v3456_v2 = vmul.f32 %v3451_v13, %v3375_v36  ;;  %v3376_v60 = vadd.f32 %v3374_v16, %v3307_v42 }
 0x5b1   : > { %v3371_v1 = vpop.f32.mrf.mxu1 }
 0x5b2   : > { %v3458_v9 = vpack.c.bf16 %v3456_v2, %v3456_v2  ;;  %v3457_v41 = vmul.f32 %v3453_v29, %v3376_v60  ;;  %v13325_v2 = vmov 1   ;;  %v469_v60 = vld [vmem:[%s13301_s11] sm:$0xff] }
 0x5b3   : > { %10148 = vset.pattern.permute.xlu1 %v13325_v2 }
 0x5b4   : > { %v3459_v12 = vpack.c.bf16 %v3457_v41, %v3457_v41  ;;  %v3461_v47 = vsel %vm491_vm0, %v3458_v9, 0 }
 0x5b6   : > { %9906 = vmatprep.subr.msk.bf16.mxu0 %vm491_vm0, %v3459_v12 }
 0x5b7   : > { %3481 = vmatpush1.bf16.msra.mxu0 %v3461_v47  ;;  %v3563_v47 = vld [vmem:[%s13298_s8] sm:$0xff] }
 0x5ba   : > { %9907 = vmatmul.mubr.msk.bf16.vlgmr.msra.gmra.mxu0 %vm484_vm1, %v11212_v10 }
 0x5bb   : > { %3673 = vmatprep.mubr.bf16.mxu0 %v13401_v0 }
 0x67a   : > { %v3500_v4 = vpop.f32.mrf.mxu0 }
 0x67b   : > { %v3501_v33 = vadd.f32 %v10419_v32, %v3500_v4 }
 0x67c   : > { %v3502_v14 = vpop.f32.mrf.mxu0 }
 0x67d   : > { %v3503_v61 = vadd.f32 %v10420_v25, %v3502_v14 }
 0x67e   : > { %v3504_v43 = vpop.f32.mrf.mxu0 }
 0x67f   : > { %v3511_v21 = vadd.f32 %v3503_v61, %v3501_v33 }
 0x680   : > { %v3505_v52 = vpop.f32.mrf.mxu0 }
 0x681   : > { %3512 = vadd.xlane.f32.xlu1 %v3511_v21 }
 0x70a   : > { %v3513_v40 = vpop.xlane.xlu1 %3512 }
 0x70b   : > { %v3514_v56 = vadd.f32 %v3513_v40, %v3509_v8 }
 0x70d   : > { %v3515_v48 = vmul.f32 0.001953125, %v3514_v56 }
 0x70f   : > { %v3516_v59 = vsub.f32 %v11376_v53, %v3515_v48  ;;  %v3517_v10 = vsub.f32 %v11379_v28, %v3515_v48  ;;  %v3524_v63 = vsub.f32 %v3501_v33, %v3515_v48  ;;  %v3525_v27 = vsub.f32 %v3503_v61, %v3515_v48 }
 0x711   : > { %v3518_v35 = vmul.f32 %v3516_v59, %v3516_v59  ;;  %v3519_v31 = vmul.f32 %v3517_v10, %v3517_v10  ;;  %v3526_v57 = vmul.f32 %v3524_v63, %v3524_v63  ;;  %v3527_v58 = vmul.f32 %v3525_v27, %v3525_v27  ;;  %v3562_v10 = vld [vmem:[%s13297_s7] sm:$0xf] }
 0x712   : > { %v464_v27 = vld [vmem:[%s11569_s22] sm:$0xff] }
 0x713   : > { %v3520_v26 = vadd.f32 %v3519_v31, %v3518_v35  ;;  %v3528_v45 = vadd.f32 %v3527_v58, %v3526_v57  ;;  %v3847_v31 = vpack.c.bf16 %v464_v27, %v464_v27  ;;  %v11605_v57 = vld [vmem:[%s13295_s5 + $0xc] sm:$0xff]   ;;  %v11613_v58 = vld [vmem:[%s13295_s5 + $0x14] ss:$0 sps:$4 sm:$0xff]  }
 0x715   : > { %3521 = vadd.xlane.f32.xlu0 %v3520_v26  ;;  %v3864_v26 = vsel %vm491_vm0, %v3847_v31, 0 }
 0x719   : > { %3529 = vadd.xlane.f32.xlu0 %v3528_v45 }
 0x79e   : > { %v3522_v13 = vpop.xlane.xlu0 %3521 }
 0x7a2   : > { %v3530_v42 = vpop.xlane.xlu0 %3529 }
 0x7a3   : > { %v3531_v16 = vadd.f32 %v3530_v42, %v3522_v13 }
 0x7a5   : > { %v3532_v36 = vmul.f32 0.001953125, %v3531_v16 }
 0x7a7   : > { %v3533_v44 = vadd.f32 1e-05, %v3532_v36 }
 0x7a9   : > { %10243 = vrsqrt.f32 %v3533_v44 }
 0x7b6   : > { %v10244_v29 = vpop.eup %10243 }
 0x7b7   : > { %v3535_v1 = vmul.f32 %v10244_v29, %v469_v60 }
 0x7b9   : > { %3544 = vperm.xlu0 %10147, %v3535_v1   ;;  %v3536_v9 = vmul.f32 %v3535_v1, %v3515_v48 }
 0x7bb   : > { %3538 = vrot.lane.b32.xlu1 %v3536_v9, %s10448_s16 }
 0x82d   : > { %v3539_v41 = vpop.permute.xlu1 %3538 }
 0x82e   : > { %v3541_v12 = vsub.f32 %v469_v60, %v3539_v41 }
 0x830   : > { %3551 = vperm.xlu1 %10148, %v3541_v12  }
 0x834   : > { %10149 = vset.pattern.permute.xlu1 %v13401_v0  ;;  %v3545_v4 = vpop.permute.xlu0 %3544 }
 0x835   : > { %3570 = vperm.xlu1 %10149, %v3563_v47   ;;  %v3547_v14 = vmul.f32 %v3545_v4, %v11376_v53  ;;  %v3548_v32 = vmul.f32 %v3545_v4, %v11379_v28  ;;  %v3556_v25 = vmul.f32 %v3545_v4, %v3501_v33  ;;  %v3557_v43 = vmul.f32 %v3545_v4, %v3503_v61  ;;  %v465_v33 = vld [vmem:[%s11569_s22 + $0x8] sm:$0xff] }
 0x836   : > { %v3848_v63 = vpack.c.bf16 %v465_v33, %v465_v33 }
 0x8ab   : > { %v3552_v21 = vpop.permute.xlu1 %3551 }
 0x8ac   : > { %v11571_v52 = vadd.f32 %v3552_v21, %v3548_v32  ;;  %v11573_v8 = vadd.f32 %v3557_v43, %v3552_v21  ;;  %v11575_v40 = vadd.f32 %v3552_v21, %v3547_v14  ;;  %v11577_v56 = vadd.f32 %v3556_v25, %v3552_v21  ;;  %v3564_v32 = vld [vmem:[%s13299_s9] sm:$0xf] }
 0x8ae   : > { %13415 = vst [vmem:[#allocation24_spill] sm:$0xff] %v11571_v52  ;;  %13416 = vst [vmem:[#allocation25_spill] sm:$0xff] %v11573_v8  ;;  %v3567_v53 = vpack.c.bf16 %v11571_v52, %v11571_v52  ;;  %v3566_v28 = vpack.c.bf16 %v11575_v40, %v11575_v40  ;;  %v3683_v48 = vpack.c.bf16 %v11573_v8, %v11573_v8 }
 0x8af   : > { %13417 = vst [vmem:[#allocation26_spill] sm:$0xff] %v11575_v40  ;;  %13418 = vst [vmem:[#allocation27_spill] sm:$0xff] %v11577_v56  ;;  %v3682_v59 = vpack.c.bf16 %v11577_v56, %v11577_v56 }
 0x8b0   : > { %9909 = vmatprep.subr.msk.bf16.mxu1 %vm491_vm0, %v3567_v53  ;;  %v3577_v61 = vsel %vm491_vm0, %v3566_v28, 0  ;;  %v3571_v45 = vpop.permute.xlu1 %3570 }
 0x8b1   : > { %3597 = vmatpush1.bf16.msra.mxu1 %v3577_v61  ;;  %v3685_v35 = vsel %vm491_vm0, %v3682_v59, 0 }
 0x8b2   : > { %9913 = vmatprep.subr.msk.bf16.mxu1 %vm491_vm0, %v3683_v48 }
 0x8b4   : > { %9910 = vmatmul.mubr.msk.bf16.vlgmr.msra.gmra.mxu1 %vm484_vm1, %v3562_v10 }
 0x8b5   : > { %3705 = vmatpush1.bf16.msra.mxu1 %v3685_v35  ;;  %3722 = vmatprep.mubr.bf16.mxu1 %v13401_v0 }
 0x8b6   : > { %9924 = vmatprep.subr.msk.bf16.mxu1 %vm491_vm0, %v3848_v63 }
 0x8bc   : > { %9914 = vmatmul.mubr.msk.bf16.vlgmr.msra.gmra.mxu1 %vm484_vm1, %v3562_v10 }
 0x8bd   : > { %3884 = vmatpush1.bf16.msra.mxu1 %v3864_v26  ;;  %3901 = vmatprep.mubr.bf16.mxu1 %v13401_v0 }
 0x8c4   : > { %9925 = vmatmul.mubr.msk.bf16.vlgmr.msra.gmra.mxu1 %vm484_vm1, %v11605_v57 }
 0x8c5   : > { %3911 = vmatprep.mubr.bf16.mxu1 %v13401_v0 }
 0x8cc   : > { %9926 = vmatmul.mubr.msk.bf16.gmra.mxu1 %vm484_vm1, %v11613_v58 }
 0x8cd   : > { %4088 = vmatprep.mubr.bf16.mxu1 %v13401_v0 }
 0x974   : > { %v3616_v13 = vpop.f32.mrf.mxu1 }
 0x975   : > { %v3617_v42 = vadd.f32 %v3616_v13, %v3571_v45 }
 0x976   : > { %v3618_v16 = vpop.f32.mrf.mxu1 }
 0x977   : > { %v3619_v36 = vadd.f32 %v3618_v16, %v3571_v45  ;;  %v3623_v44 = vmax.f32 %v3617_v42, 0.0 }
 0x978   : > { %v3620_v60 = vpop.f32.mrf.mxu1 }
 0x979   : > { %v3624_v29 = vmax.f32 %v3619_v36, 0.0  ;;  %v3625_v1 = vpack.c.bf16 %v3623_v44, %v3623_v44 }
 0x97a   : > { %v3621_v9 = vpop.f32.mrf.mxu1 }
 0x97b   : > { %v3626_v41 = vpack.c.bf16 %v3624_v29, %v3624_v29  ;;  %v3636_v4 = vsel %vm491_vm0, %v3625_v1, 0 }
 0x97c   : > { %v3724_v12 = vpop.f32.mrf.mxu1 }
 0x97d   : > { %v3725_v47 = vadd.f32 %v3724_v12, %v3571_v45  ;;  %9911 = vmatprep.subr.msk.bf16.mxu0 %vm491_vm0, %v3626_v41 }
 0x97e   : > { %3656 = vmatpush1.bf16.msra.mxu0 %v3636_v4  ;;  %v3726_v14 = vpop.f32.mrf.mxu1 }
 0x97f   : > { %v3731_v25 = vmax.f32 %v3725_v47, 0.0  ;;  %v3727_v43 = vadd.f32 %v3726_v14, %v3571_v45 }
 0x980   : > { %v3728_v21 = vpop.f32.mrf.mxu1 }
 0x981   : > { %v3733_v53 = vpack.c.bf16 %v3731_v25, %v3731_v25  ;;  %v3732_v28 = vmax.f32 %v3727_v43, 0.0  ;;  %9912 = vmatmul.mubr.msk.bf16.vlgmr.msra.gmra.mxu0 %vm484_vm1, %v3564_v32  ;;  %v11716_v21 = vld [vmem:[%s13293_s3] sm:$0x1] }
 0x982   : > { %v3729_v33 = vpop.f32.mrf.mxu1  ;;  %3773 = vmatprep.mubr.bf16.mxu0 %v13401_v0 }
 0x983   : > { %v3734_v61 = vpack.c.bf16 %v3732_v28, %v3732_v28  ;;  %v3736_v59 = vsel %vm491_vm0, %v3733_v53, 0 }
 0x984   : > { %v11625_v48 = vpop.f32.mrf.mxu1 }
 0x985   : > { %9915 = vmatprep.subr.msk.bf16.mxu0 %vm491_vm0, %v3734_v61 }
 0x986   : > { %3756 = vmatpush1.bf16.msra.mxu0 %v3736_v59  ;;  %v11629_v10 = vpop.f32.mrf.mxu1 }
 0x988   : > { %v11631_v63 = vpop.f32.mrf.mxu1 }
 0x989   : > { %4101 = vrot.lane.b32.xlu0 %v11631_v63, %s10448_s16  ;;  %3920 = vrot.lane.b32.xlu1 %v11631_v63, %s10446_s14 }
 0x98a   : > { %9916 = vmatmul.mubr.msk.bf16.vlgmr.msra.gmra.mxu0 %vm484_vm1, %v3564_v32  ;;  %v11643_v27 = vpop.f32.mrf.mxu1 }
 0x98b   : > { %3968 = vmatprep.mubr.bf16.mxu0 %v13401_v0 }
 0x98c   : > { %v11669_v35 = vpop.f32.mrf.mxu1 }
 0x98d   : > { %4217 = vrot.lane.b32.xlu0 %v11631_v63, %s10449_s17  ;;  %3979 = vrot.lane.b32.xlu1 %v11631_v63, %s10445_s13 }
 0x98e   : > { %v11673_v31 = vpop.f32.mrf.mxu1 }
 0x990   : > { %v3917_v26 = vpop.f32.mrf.mxu1 }
 0x991   : > { %4278 = vrot.lane.b32.xlu0 %v11631_v63, %s10450_s18  ;;  %3922 = vrot.lane.b32.xlu1 %v11643_v27, %s10446_s14  ;;  %v4162_v26 = vmul.f32 %v11631_v63, %v11625_v48 }
 0x992   : > { %v3918_v45 = vpop.f32.mrf.mxu1 }
 0x995   : > { %4339 = vrot.lane.b32.xlu0 %v11631_v63, %s10451_s19  ;;  %4040 = vrot.lane.b32.xlu1 %v11631_v63, %s10447_s15 }
 0x999   : > { %4400 = vrot.lane.b32.xlu0 %v11631_v63, %s10452_s20  ;;  %3981 = vrot.lane.b32.xlu1 %v11643_v27, %s10445_s13 }
 0x99d   : > { %4042 = vrot.lane.b32.xlu1 %v11643_v27, %s10447_s15  ;;  %4469 = vrot.lane.b32.xlu0 %v11669_v35, %s10446_s14 }
 0x9a1   : > { %4103 = vrot.lane.b32.xlu1 %v11643_v27, %s10448_s16  ;;  %4538 = vrot.lane.b32.xlu0 %v11669_v35, %s10445_s13 }
 0x9a5   : > { %4219 = vrot.lane.b32.xlu1 %v11643_v27, %s10449_s17  ;;  %4607 = vrot.lane.b32.xlu0 %v11669_v35, %s10447_s15 }
 0x9a9   : > { %4280 = vrot.lane.b32.xlu1 %v11643_v27, %s10450_s18  ;;  %4676 = vrot.lane.b32.xlu0 %v11669_v35, %s10448_s16 }
 0x9ad   : > { %4341 = vrot.lane.b32.xlu1 %v11643_v27, %s10451_s19  ;;  %4806 = vrot.lane.b32.xlu0 %v11669_v35, %s10449_s17 }
 0x9b1   : > { %4402 = vrot.lane.b32.xlu1 %v11643_v27, %s10452_s20  ;;  %4875 = vrot.lane.b32.xlu0 %v11669_v35, %s10450_s18 }
 0x9b5   : > { %4471 = vrot.lane.b32.xlu1 %v11673_v31, %s10446_s14  ;;  %4944 = vrot.lane.b32.xlu0 %v11669_v35, %s10451_s19 }
 0x9b9   : > { %4540 = vrot.lane.b32.xlu1 %v11673_v31, %s10445_s13  ;;  %5013 = vrot.lane.b32.xlu0 %v11669_v35, %s10452_s20 }
 0x9bd   : > { %4609 = vrot.lane.b32.xlu1 %v11673_v31, %s10447_s15 }
 0x9c1   : > { %4678 = vrot.lane.b32.xlu1 %v11673_v31, %s10448_s16 }
 0x9c5   : > { %4808 = vrot.lane.b32.xlu1 %v11673_v31, %s10449_s17 }
 0x9c9   : > { %4877 = vrot.lane.b32.xlu1 %v11673_v31, %s10450_s18 }
 0x9cd   : > { %4946 = vrot.lane.b32.xlu1 %v11673_v31, %s10451_s19 }
 0x9d1   : > { %5015 = vrot.lane.b32.xlu1 %v11673_v31, %s10452_s20 }
 0x9fb   : > { %v3921_v13 = vpop.permute.xlu1 %3920  ;;  %v4102_v47 = vpop.permute.xlu0 %4101 }
 0x9ff   : > { %v3980_v42 = vpop.permute.xlu1 %3979  ;;  %v4218_v45 = vpop.permute.xlu0 %4217 }
 0xa03   : > { %v3923_v16 = vpop.permute.xlu1 %3922 }
 0xa04   : > { %v3924_v36 = vsel %vm555_vm3, %v3921_v13, %v3923_v16  ;;  %v3925_v44 = vsel %vm555_vm3, %v3923_v16, %v3921_v13 }
 0xa05   : > { %v3926_v60 = vmul.f32 %v3925_v44, %v11625_v48  ;;  %v3927_v29 = vmul.f32 %v3924_v36, %v11629_v10  ;;  %v4163_v36 = vmul.f32 %v11643_v27, %v11629_v10 }
 0xa07   : > { %v3928_v1 = vpack.c.bf16 %v3926_v60, %v3926_v60  ;;  %v3929_v9 = vpack.c.bf16 %v3927_v29, %v3927_v29  ;;  %v4041_v41 = vpop.permute.xlu1 %4040 }
 0xa09   : > { %9927 = vmatprep.subr.msk.bf16.mxu0 %vm491_vm0, %v3929_v9  ;;  %v3931_v12 = vsel %vm491_vm0, %v3928_v1, 0  ;;  %v4164_v9 = vpack.c.bf16 %v4162_v26, %v4162_v26 }
 0xa0a   : > { %3951 = vmatpush1.bf16.msra.mxu0 %v3931_v12 }
 0xa0b   : > { %v3982_v4 = vpop.permute.xlu1 %3981 }
 0xa0c   : > { %v3983_v14 = vsel %vm638_vm2, %v3980_v42, %v3982_v4  ;;  %v3984_v32 = vsel %vm638_vm2, %v3982_v4, %v3980_v42  ;;  %v4165_v4 = vpack.c.bf16 %v4163_v36, %v4163_v36 }
 0xa0d   : > { %v3985_v25 = vmul.f32 %v3984_v32, %v11625_v48  ;;  %v3986_v43 = vmul.f32 %v3983_v14, %v11629_v10  ;;  %9928 = vmatmul.mubr.msk.bf16.vlgmr.msra.gmra.mxu0 %vm484_vm1, %v11716_v21  ;;  %v4279_v14 = vpop.permute.xlu0 %4278 }
 0xa0e   : > { %4027 = vmatprep.mubr.bf16.mxu0 %v13401_v0 }
 0xa0f   : > { %v3987_v53 = vpack.c.bf16 %v3985_v25, %v3985_v25  ;;  %v3988_v28 = vpack.c.bf16 %v3986_v43, %v3986_v43  ;;  %v4043_v33 = vpop.permute.xlu1 %4042 }
 0xa10   : > { %v4044_v61 = vsel %vm720_vm4, %v4041_v41, %v4043_v33  ;;  %v4045_v59 = vsel %vm720_vm4, %v4043_v33, %v4041_v41 }
 0xa11   : > { %v4046_v13 = vmul.f32 %v4045_v59, %v11625_v48  ;;  %v4047_v42 = vmul.f32 %v4044_v61, %v11629_v10  ;;  %9929 = vmatprep.subr.msk.bf16.mxu0 %vm491_vm0, %v3988_v28  ;;  %v3990_v16 = vsel %vm491_vm0, %v3987_v53, 0  ;;  %v4167_v59 = vsel %vm491_vm0, %v4164_v9, 0  ;;  %v4340_v36 = vpop.permute.xlu0 %4339 }
 0xa12   : > { %4010 = vmatpush1.bf16.msra.mxu0 %v3990_v16 }
 0xa13   : > { %v4048_v63 = vpack.c.bf16 %v4046_v13, %v4046_v13  ;;  %v4049_v44 = vpack.c.bf16 %v4047_v42, %v4047_v42  ;;  %v4104_v60 = vpop.permute.xlu1 %4103 }
 0xa14   : > { %v4105_v29 = vsel %vm802_vm5, %v4102_v47, %v4104_v60  ;;  %v4106_v1 = vsel %vm802_vm5, %v4104_v60, %v4102_v47 }
 0xa15   : > { %v4107_v41 = vmul.f32 %v4106_v1, %v11625_v48  ;;  %v4108_v12 = vmul.f32 %v4105_v29, %v11629_v10  ;;  %9930 = vmatmul.mubr.msk.bf16.vlgmr.msra.gmra.mxu0 %vm484_vm1, %v11716_v21  ;;  %9931 = vmatprep.subr.msk.bf16.mxu1 %vm491_vm0, %v4049_v44  ;;  %v4051_v27 = vsel %vm491_vm0, %v4048_v63, 0 }
 0xa16   : > { %4071 = vmatpush1.bf16.msra.mxu1 %v4051_v27  ;;  %4149 = vmatprep.mubr.bf16.mxu0 %v13401_v0 }
 0xa17   : > { %v4109_v32 = vpack.c.bf16 %v4107_v41, %v4107_v41  ;;  %v4110_v25 = vpack.c.bf16 %v4108_v12, %v4108_v12  ;;  %9935 = vmatprep.subr.msk.bf16.mxu1 %vm491_vm0, %v4165_v4  ;;  %v4220_v47 = vpop.permute.xlu1 %4219 }
 0xa18   : > { %v4221_v43 = vsel %vm937_vm6, %v4218_v45, %v4220_v47  ;;  %v4222_v53 = vsel %vm937_vm6, %v4220_v47, %v4218_v45 }
 0xa19   : > { %v4223_v28 = vmul.f32 %v4221_v43, %v11625_v48  ;;  %v4224_v33 = vmul.f32 %v4222_v53, %v11629_v10  ;;  %9932 = vmatmul.mubr.msk.bf16.vlgmr.msra.gmra.mxu1 %vm484_vm1, %v11716_v21  ;;  %9933 = vmatprep.subr.msk.bf16.mxu0 %vm491_vm0, %v4110_v25  ;;  %v4112_v61 = vsel %vm491_vm0, %v4109_v32, 0  ;;  %v4401_v32 = vpop.permute.xlu0 %4400 }
 0xa1a   : > { %4132 = vmatpush1.bf16.msra.mxu0 %v4112_v61  ;;  %4187 = vmatpush1.bf16.msra.mxu1 %v4167_v59 }
 0xa1b   : > { %v4225_v26 = vpack.c.bf16 %v4223_v28, %v4223_v28  ;;  %v4226_v13 = vpack.c.bf16 %v4224_v33, %v4224_v33  ;;  %v4281_v42 = vpop.permute.xlu1 %4280  ;;  %4204 = vmatprep.mubr.bf16.mxu1 %v13401_v0 }
 0xa1c   : > { %v4282_v45 = vsel %vm1019_vm7, %v4279_v14, %v4281_v42  ;;  %v4283_v16 = vsel %vm1019_vm7, %v4281_v42, %v4279_v14 }
 0xa1d   : > { %v4284_v63 = vmul.f32 %v4282_v45, %v11625_v48  ;;  %v4285_v44 = vmul.f32 %v4283_v16, %v11629_v10  ;;  %9934 = vmatmul.mubr.msk.bf16.vlgmr.msra.gmra.mxu0 %vm484_vm1, %v11716_v21  ;;  %9937 = vmatprep.subr.msk.bf16.mxu0 %vm491_vm0, %v4226_v13  ;;  %v4228_v60 = vsel %vm491_vm0, %v4225_v26, 0 }
 0xa1e   : > { %4248 = vmatpush1.bf16.msra.mxu0 %v4228_v60  ;;  %4265 = vmatprep.mubr.bf16.mxu0 %v13401_v0 }
 0xa1f   : > { %v4286_v29 = vpack.c.bf16 %v4284_v63, %v4284_v63  ;;  %v4287_v1 = vpack.c.bf16 %v4285_v44, %v4285_v44  ;;  %v4342_v9 = vpop.permute.xlu1 %4341 }
 0xa20   : > { %v4343_v41 = vsel %vm1101_vm8, %v4340_v36, %v4342_v9  ;;  %v4344_v12 = vsel %vm1101_vm8, %v4342_v9, %v4340_v36 }
 0xa21   : > { %v4345_v27 = vmul.f32 %v4343_v41, %v11625_v48  ;;  %v4346_v4 = vmul.f32 %v4344_v12, %v11629_v10  ;;  %9936 = vmatmul.mubr.msk.bf16.vlgmr.msra.gmra.mxu1 %vm484_vm1, %v11716_v21  ;;  %9939 = vmatprep.subr.msk.bf16.mxu1 %vm491_vm0, %v4287_v1  ;;  %v4289_v14 = vsel %vm491_vm0, %v4286_v29, 0 }
 0xa22   : > { %4309 = vmatpush1.bf16.msra.mxu1 %v4289_v14  ;;  %4326 = vmatprep.mubr.bf16.mxu1 %v13401_v0 }
 0xa23   : > { %v4347_v25 = vpack.c.bf16 %v4345_v27, %v4345_v27  ;;  %v4348_v47 = vpack.c.bf16 %v4346_v4, %v4346_v4  ;;  %v4403_v43 = vpop.permute.xlu1 %4402 }
 0xa24   : > { %v4404_v53 = vsel %vm1181_vm9, %v4401_v32, %v4403_v43  ;;  %v4405_v28 = vsel %vm1181_vm9, %v4403_v43, %v4401_v32 }
 0xa25   : > { %v4406_v33 = vmul.f32 %v4404_v53, %v11625_v48  ;;  %v4407_v61 = vmul.f32 %v4405_v28, %v11629_v10  ;;  %9938 = vmatmul.mubr.msk.bf16.vlgmr.msra.gmra.mxu0 %vm484_vm1, %v11716_v21  ;;  %9941 = vmatprep.subr.msk.bf16.mxu0 %vm491_vm0, %v4348_v47  ;;  %v4350_v59 = vsel %vm491_vm0, %v4347_v25, 0 }
 0xa26   : > { %4370 = vmatpush1.bf16.msra.mxu0 %v4350_v59  ;;  %4387 = vmatprep.mubr.bf16.mxu0 %v13401_v0 }
 0xa27   : > { %v4408_v26 = vpack.c.bf16 %v4406_v33, %v4406_v33  ;;  %v4409_v13 = vpack.c.bf16 %v4407_v61, %v4407_v61 }
 0xa29   : > { %9940 = vmatmul.mubr.msk.bf16.vlgmr.msra.gmra.mxu1 %vm484_vm1, %v11716_v21  ;;  %9943 = vmatprep.subr.msk.bf16.mxu1 %vm491_vm0, %v4409_v13  ;;  %v4411_v48 = vsel %vm491_vm0, %v4408_v26, 0 }
 0xa2a   : > { %4431 = vmatpush1.bf16.msra.mxu1 %v4411_v48  ;;  %4448 = vmatprep.mubr.bf16.mxu1 %v13401_v0 }
 0xa2d   : > { %9942 = vmatmul.mubr.msk.bf16.vlgmr.msra.gmra.mxu0 %vm484_vm1, %v11716_v21 }
 0xa2e   : > { %4517 = vmatprep.mubr.bf16.mxu0 %v13401_v0 }
 0xa31   : > { %9944 = vmatmul.mubr.msk.bf16.vlgmr.msra.gmra.mxu1 %vm484_vm1, %v11716_v21 }
 0xa32   : > { %4586 = vmatprep.mubr.bf16.mxu1 %v13401_v0 }
 0xa41   : > { %v11807_v10 = vpop.f32.mrf.mxu0 }
 0xa43   : > { %v11809_v42 = vpop.f32.mrf.mxu0 }
 0xa45   : > { %v3679_v45 = vpop.f32.mrf.mxu0 }
 0xa47   : > { %v3680_v16 = vpop.f32.mrf.mxu0 }
 0xa4a   : > { %v11811_v36 = vpop.f32.mrf.mxu0 }
 0xa4c   : > { %v11813_v63 = vpop.f32.mrf.mxu0 }
 0xa4e   : > { %v3779_v44 = vpop.f32.mrf.mxu0 }
 0xa50   : > { %v3780_v60 = vpop.f32.mrf.mxu0 }
 0xacd   : > { %v3970_v29 = vpop.f32.mrf.mxu0 }
 0xace   : > { %v3977_v13 = vmul.f32 %v3970_v29, %v10794_v11 }
 0xacf   : > { %v3972_v1 = vpop.f32.mrf.mxu0 }
 0xad1   : > { %v3974_v9 = vpop.f32.mrf.mxu0 }
 0xad3   : > { %v3975_v41 = vpop.f32.mrf.mxu0 }
 0xad5   : > { %v4029_v12 = vpop.f32.mrf.mxu0 }
 0xad6   : > { %v4036_v61 = vmul.f32 %v4029_v12, %v10784_v3  ;;  %v3978_v12 = vmul.f32 %v3972_v1, %v10813_v23 }
 0xad7   : > { %v4031_v21 = vpop.f32.mrf.mxu0 }
 0xad8   : > { %v4038_v44 = vmax.f32 %v3977_v13, %v4036_v61  ;;  %v11820_v9 = vmul.f32 %v4031_v21, %v10801_v15 }
 0xad9   : > { %v4033_v27 = vpop.f32.mrf.mxu0  ;;  %v4090_v4 = vpop.f32.mrf.mxu1 }
 0xada   : > { %v4097_v48 = vmul.f32 %v4090_v4, %v10804_v20 }
 0xadb   : > { %v4034_v14 = vpop.f32.mrf.mxu0  ;;  %v4092_v32 = vpop.f32.mrf.mxu1 }
 0xadc   : > { %v4099_v14 = vmax.f32 %v4038_v44, %v4097_v48 }
 0xadd   : > { %v4094_v25 = vpop.f32.mrf.mxu1  ;;  %v4151_v47 = vpop.f32.mrf.mxu0 }
 0xade   : > { %v4158_v60 = vmul.f32 %v4151_v47, %v10824_v30 }
 0xadf   : > { %v4095_v43 = vpop.f32.mrf.mxu1  ;;  %v4153_v53 = vpop.f32.mrf.mxu0 }
 0xae0   : > { %v4098_v43 = vmul.f32 %v4092_v32, %v10844_v37  ;;  %v4159_v47 = vmul.f32 %v4153_v53, %v10847_v39 }
 0xae1   : > { %v4155_v28 = vpop.f32.mrf.mxu0  ;;  %v4206_v33 = vpop.f32.mrf.mxu1 }
 0xae2   : > { %v4213_v25 = vmul.f32 0.5, %v4206_v33 }
 0xae3   : > { %v4156_v59 = vpop.f32.mrf.mxu0  ;;  %v4208_v26 = vpop.f32.mrf.mxu1 }
 0xae4   : > { %v4160_v59 = vmax.f32 %v4099_v14, %v4158_v60  ;;  %v4214_v44 = vmul.f32 0.5, %v4208_v26 }
 0xae5   : > { %v4210_v45 = vpop.f32.mrf.mxu1  ;;  %v4267_v16 = vpop.f32.mrf.mxu0 }
 0xae6   : > { %v4274_v4 = vmul.f32 %v4267_v16, %v10862_v54  ;;  %v4039_v45 = vmax.f32 %v3978_v12, %v11820_v9  ;;  %v4215_v56 = vmax.f32 %v4160_v59, %v4213_v25 }
 0xae7   : > { %v4211_v41 = vpop.f32.mrf.mxu1  ;;  %v4269_v27 = vpop.f32.mrf.mxu0 }
 0xae8   : > { %v4100_v33 = vmax.f32 %v4039_v45, %v4098_v43  ;;  %v4276_v32 = vmax.f32 %v4215_v56, %v4274_v4  ;;  %v4275_v16 = vmul.f32 %v4269_v27, %v10876_v5  ;;  %v13419_v45 = vld [vmem:[#allocation13_spill] sm:$0xff] }
 0xae9   : > { %v4271_v28 = vpop.f32.mrf.mxu0  ;;  %v4328_v29 = vpop.f32.mrf.mxu1 }
 0xaea   : > { %v11828_v41 = vmul.f32 %v4328_v29, %v10879_v6  ;;  %v4161_v14 = vmax.f32 %v4100_v33, %v4159_v47 }
 0xaeb   : > { %v4272_v2 = vpop.f32.mrf.mxu0  ;;  %v4330_v21 = vpop.f32.mrf.mxu1 }
 0xaec   : > { %v4337_v2 = vmax.f32 %v4276_v32, %v11828_v41  ;;  %v4216_v53 = vmax.f32 %v4161_v14, %v4214_v44  ;;  %v4336_v59 = vmul.f32 %v4330_v21, %v10906_v50 }
 0xaed   : > { %v4332_v1 = vpop.f32.mrf.mxu1  ;;  %v4389_v8 = vpop.f32.mrf.mxu0 }
 0xaee   : > { %v11831_v28 = vmul.f32 %v4389_v8, %v10903_v49  ;;  %v4277_v56 = vmax.f32 %v4216_v53, %v4275_v16  ;;  %v13420_v8 = vld [vmem:[#allocation16_spill] sm:$0xff] }
 0xaef   : > { %v4333_v40 = vpop.f32.mrf.mxu1  ;;  %v4391_v52 = vpop.f32.mrf.mxu0 }
 0xaf0   : > { %v4398_v26 = vmax.f32 %v4337_v2, %v11831_v28  ;;  %v4397_v49 = vmul.f32 %v4391_v52, %v13420_v8  ;;  %v4338_v27 = vmax.f32 %v4277_v56, %v4336_v59 }
 0xaf1   : > { %v4393_v29 = vpop.f32.mrf.mxu0  ;;  %v4450_v6 = vpop.f32.mrf.mxu1 }
 0xaf2   : > { %v11838_v1 = vmul.f32 %v4450_v6, %v13419_v45  ;;  %v4399_v6 = vmax.f32 %v4338_v27, %v4397_v49 }
 0xaf3   : > { %v4394_v33 = vpop.f32.mrf.mxu0  ;;  %v4452_v54 = vpop.f32.mrf.mxu1 }
 0xaf4   : > { %v11842_v40 = vmax.f32 %v4398_v26, %v11838_v1  ;;  %v4458_v32 = vmul.f32 %v4452_v54, %v10928_v55 }
 0xaf5   : > { %v4454_v14 = vpop.f32.mrf.mxu1 }
 0xaf6   : > { %v4461_v21 = vsub.f32 %v3977_v13, %v11842_v40  ;;  %v4530_v29 = vsub.f32 %v4036_v61, %v11842_v40  ;;  %v4599_v2 = vsub.f32 %v4097_v48, %v11842_v40  ;;  %v4668_v53 = vsub.f32 %v4158_v60, %v11842_v40 }
 0xaf7   : > { %v4455_v45 = vpop.f32.mrf.mxu1  ;;  %v4460_v50 = vmax.f32 %v4399_v6, %v4458_v32  ;;  %v4737_v26 = vsub.f32 %v4213_v25, %v11842_v40  ;;  %v4798_v60 = vsub.f32 %v4274_v4, %v11842_v40 }
 0xaf8   : > { %v4463_v52 = vmul.f32 1.442695, %v4461_v21  ;;  %v4532_v33 = vmul.f32 1.442695, %v4530_v29  ;;  %v4601_v8 = vmul.f32 1.442695, %v4599_v2 }
 0xaf9   : > { %v4670_v54 = vmul.f32 1.442695, %v4668_v53  ;;  %v4462_v56 = vsub.f32 %v3978_v12, %v4460_v50  ;;  %v4531_v13 = vsub.f32 %v11820_v9, %v4460_v50  ;;  %v4600_v61 = vsub.f32 %v4098_v43, %v4460_v50 }
 0xafa   : > { %10245 = vpow2.f32 %v4463_v52  ;;  %v4739_v14 = vmul.f32 1.442695, %v4737_v26  ;;  %v4669_v48 = vsub.f32 %v4159_v47, %v4460_v50  ;;  %v4799_v21 = vsub.f32 %v4275_v16, %v4460_v50 }
 0xafb   : > { %10247 = vpow2.f32 %v4532_v33  ;;  %v4465_v45 = vmul.f32 1.442695, %v4462_v56  ;;  %v4534_v27 = vmul.f32 1.442695, %v4531_v13  ;;  %v4603_v29 = vmul.f32 1.442695, %v4600_v61 }
 0xafc   : > { %10249 = vpow2.f32 %v4601_v8  ;;  %v4738_v2 = vsub.f32 %v4214_v44, %v4460_v50  ;;  %v4672_v6 = vmul.f32 1.442695, %v4669_v48  ;;  %v4800_v25 = vmul.f32 1.442695, %v4798_v60 }
 0xafd   : > { %10251 = vpow2.f32 %v4670_v54  ;;  %v4867_v12 = vsub.f32 %v11828_v41, %v11842_v40  ;;  %v4802_v9 = vmul.f32 1.442695, %v4799_v21  ;;  %v4868_v47 = vsub.f32 %v4336_v59, %v4460_v50 }
 0xafe   : > { %10253 = vpow2.f32 %v4739_v14  ;;  %v4741_v43 = vmul.f32 1.442695, %v4738_v2  ;;  %v4937_v8 = vsub.f32 %v4397_v49, %v4460_v50  ;;  %v4936_v44 = vsub.f32 %v11831_v28, %v11842_v40 }
 0xaff   : > { %10255 = vpow2.f32 %v4465_v45  ;;  %v4869_v53 = vmul.f32 1.442695, %v4867_v12  ;;  %v4871_v33 = vmul.f32 1.442695, %v4868_v47  ;;  %v5006_v54 = vsub.f32 %v4458_v32, %v4460_v50 }
 0xb00   : > { %10257 = vpow2.f32 %v4534_v27  ;;  %v4940_v26 = vmul.f32 1.442695, %v4937_v8  ;;  %v4938_v13 = vmul.f32 1.442695, %v4936_v44  ;;  %v5005_v49 = vsub.f32 %v11838_v1, %v11842_v40 }
 0xb01   : > { %10259 = vpow2.f32 %v4603_v29  ;;  %v5009_v28 = vmul.f32 1.442695, %v5006_v54 }
 0xb02   : > { %10261 = vpow2.f32 %v4672_v6  ;;  %v5007_v45 = vmul.f32 1.442695, %v5005_v49 }
 0xb03   : > { %10263 = vpow2.f32 %v4800_v25 }
 0xb04   : > { %10265 = vpow2.f32 %v4802_v9 }
 0xb05   : > { %10267 = vpow2.f32 %v4741_v43 }
 0xb06   : > { %10269 = vpow2.f32 %v4869_v53 }
 0xb07   : > { %v10246_v4 = vpop.eup %10245  ;;  %10271 = vpow2.f32 %v4871_v33 }
 0xb08   : > { %v10248_v16 = vpop.eup %10247  ;;  %v4475_v61 = vmul.f32 %v10246_v4, %v10989_v51  ;;  %10273 = vpow2.f32 %v4940_v26 }
 0xb09   : > { %v4536_v52 = vadd.f32 %v10248_v16, %v10246_v4  ;;  %v10250_v41 = vpop.eup %10249  ;;  %v4544_v48 = vmul.f32 %v10248_v16, %v10992_v34  ;;  %10275 = vpow2.f32 %v4938_v13 }
 0xb0a   : > { %v10252_v59 = vpop.eup %10251  ;;  %v4477_v32 = vpack.c.bf16 %v4475_v61, %v4475_v61  ;;  %v4613_v40 = vmul.f32 %v10250_v41, %v10999_v38  ;;  %10277 = vpow2.f32 %v5009_v28 }
 0xb0b   : > { %v4605_v56 = vadd.f32 %v10250_v41, %v4536_v52  ;;  %v11860_v60 = vpop.eup %10253  ;;  %v4682_v29 = vmul.f32 %v10252_v59, %v11004_v46  ;;  %v4546_v12 = vpack.c.bf16 %v4544_v48, %v4544_v48  ;;  %10279 = vpow2.f32 %v5007_v45 }
 0xb0c   : > { %v10256_v50 = vpop.eup %10255  ;;  %v4480_v44 = vsel %vm1300_vm11, %v4477_v32, 0  ;;  %v4615_v26 = vpack.c.bf16 %v4613_v40, %v4613_v40  ;;  %v13421_v40 = vld [vmem:[#allocation17_spill] sm:$0xff] }
 0xb0d   : > { %v4674_v14 = vadd.f32 %v10252_v59, %v4605_v56  ;;  %v10258_v27 = vpop.eup %10257  ;;  %v4476_v1 = vmul.f32 %v10256_v50, %v11012_v18  ;;  %v4684_v54 = vpack.c.bf16 %v4682_v29, %v4682_v29  ;;  %v4549_v49 = vsel %vm1300_vm11, %v4546_v12, 0 }
 0xb0e   : > { %v10260_v2 = vpop.eup %10259  ;;  %v4537_v6 = vadd.f32 %v10258_v27, %v10256_v50  ;;  %v4545_v25 = vmul.f32 %v10258_v27, %v11015_v22  ;;  %v4618_v45 = vsel %vm1300_vm11, %v4615_v26, 0 }
 0xb0f   : > { %v4743_v21 = vadd.f32 %v11860_v60, %v4674_v14  ;;  %v10262_v9 = vpop.eup %10261  ;;  %v4478_v43 = vpack.c.bf16 %v4476_v1, %v4476_v1  ;;  %v4614_v47 = vmul.f32 %v10260_v2, %v11019_v24 }
 0xb10   : > { %v10264_v8 = vpop.eup %10263  ;;  %v4606_v4 = vadd.f32 %v10260_v2, %v4537_v6  ;;  %v4547_v53 = vpack.c.bf16 %v4545_v25, %v4545_v25  ;;  %v4683_v16 = vmul.f32 %v10262_v9, %v11022_v7 }
 0xb11   : > { %v10266_v52 = vpop.eup %10265  ;;  %v4804_v33 = vadd.f32 %v10264_v8, %v4743_v21  ;;  %9945 = vmatprep.subr.msk.bf16.mxu0 %vm1300_vm11, %v4478_v43  ;;  %v4616_v41 = vpack.c.bf16 %v4614_v47, %v4614_v47  ;;  %v4687_v21 = vsel %vm1300_vm11, %v4684_v54, 0  ;;  %v4812_v29 = vmul.f32 %v10264_v8, %v13421_v40  ;;  %v13422_v43 = vld [vmem:[#allocation18_spill] sm:$0xff] }
 0xb12   : > { %v10268_v56 = vpop.eup %10267  ;;  %v4675_v13 = vadd.f32 %v10262_v9, %v4606_v4  ;;  %9947 = vmatprep.subr.msk.bf16.mxu1 %vm1300_vm11, %v4547_v53  ;;  %4500 = vmatpush1.bf16.msra.mxu0 %v4480_v44  ;;  %v4685_v59 = vpack.c.bf16 %v4683_v16, %v4683_v16  ;;  %v4813_v61 = vmul.f32 %v10266_v52, %v11033_v62  ;;  %v13423_v53 = vld [vmem:[#allocation19_spill] sm:$0xff] }
 0xb13   : > { %4569 = vmatpush1.bf16.msra.mxu1 %v4549_v49  ;;  %9949 = vmatprep.subr.msk.bf16.mxu0 %vm1300_vm11, %v4616_v41  ;;  %v10270_v14 = vpop.eup %10269  ;;  %v4746_v50 = vpack.c.bf16 %v10268_v56, %v10268_v56  ;;  %v4745_v9 = vpack.c.bf16 %v11860_v60, %v11860_v60  ;;  %v4814_v8 = vpack.c.bf16 %v4812_v29, %v4812_v29 }
 0xb14   : > { %v4744_v28 = vadd.f32 %v10268_v56, %v4675_v13  ;;  %9951 = vmatprep.subr.msk.bf16.mxu1 %vm1300_vm11, %v4685_v59  ;;  %v4873_v48 = vadd.f32 %v10270_v14, %v4804_v33  ;;  %v10272_v32 = vpop.eup %10271  ;;  %v4815_v1 = vpack.c.bf16 %v4813_v61, %v4813_v61  ;;  %v13424_v56 = vld [vmem:[#allocation20_spill] sm:$0xff]  ;;  %v13425_v59 = vld [vmem:[#allocation21_spill] sm:$0xff] }
 0xb15   : > { %9946 = vmatmul.mubr.msk.bf16.vlgmr.msra.gmra.mxu0 %vm1296_vm13, %v11039_v19  ;;  %v10274_v2 = vpop.eup %10273  ;;  %v4882_v47 = vmul.f32 %v10272_v32, %v13422_v43  ;;  %v4748_v26 = vsel %vm1300_vm11, %v4745_v9, 0  ;;  %v4881_v13 = vmul.f32 %v10270_v14, %v13424_v56  ;;  %v4817_v60 = vsel %vm1300_vm11, %v4814_v8, 0 }
 0xb16   : > { %v4805_v27 = vadd.f32 %v10266_v52, %v4744_v28  ;;  %9948 = vmatmul.mubr.msk.bf16.vlgmr.msra.gmra.mxu1 %vm1296_vm13, %v11039_v19  ;;  %4638 = vmatpush1.bf16.msra.mxu0 %v4618_v45  ;;  %v10276_v6 = vpop.eup %10275  ;;  %v4951_v44 = vmul.f32 %v10274_v2, %v13423_v53  ;;  %v13426_v28 = vld [vmem:[#allocation22_spill] sm:$0xff]  ;;  %v13428_v8 = vmov 0.0  }
 0xb17   : > { %4707 = vmatpush1.bf16.msra.mxu1 %v4687_v21  ;;  %9953 = vmatprep.subr.msk.bf16.mxu0 %vm1300_vm11, %v4746_v50  ;;  %v4942_v12 = vadd.f32 %v10276_v6, %v4873_v48  ;;  %v10278_v16 = vpop.eup %10277  ;;  %v4884_v54 = vpack.c.bf16 %v4882_v47, %v4882_v47  ;;  %v4950_v61 = vmul.f32 %v10276_v6, %v13425_v59 }
 0xb18   : > { %v4874_v25 = vadd.f32 %v10272_v32, %v4805_v27  ;;  %9955 = vmatprep.subr.msk.bf16.mxu1 %vm1300_vm11, %v4815_v1  ;;  %4655 = vmatprep.mubr.bf16.mxu0 %v13401_v0  ;;  %v10280_v52 = vpop.eup %10279  ;;  %v4953_v49 = vpack.c.bf16 %v4951_v44, %v4951_v44  ;;  %v4883_v14 = vpack.c.bf16 %v4881_v13, %v4881_v13  ;;  %v13427_v27 = vld [vmem:[#allocation23_spill] sm:$0xff] }
 0xb19   : > { %4724 = vmatprep.mubr.bf16.mxu1 %v13401_v0  ;;  %v5011_v41 = vadd.f32 %v10280_v52, %v4942_v12  ;;  %v5020_v48 = vmul.f32 %v10278_v16, %v13426_v28  ;;  %v4952_v45 = vpack.c.bf16 %v4950_v61, %v4950_v61  ;;  %v5019_v21 = vmul.f32 %v10280_v52, %v13427_v27  ;;  %v9816_v12 = vld [vmem:[%s11569_s22 + $0x10] sm:$0xff]  ;;  %v4470_v52 = vpop.permute.xlu0 %4469 }
 0xb1a   : > { %v4943_v4 = vadd.f32 %v10274_v2, %v4874_v25  ;;  %v4886_v50 = vsel %vm1300_vm11, %v4883_v14, 0  ;;  %v9817_v2 = vld [vmem:[%s11569_s22 + $0x18] sm:$0xff] }
 0xb1b   : > { %v5022_v32 = vpack.c.bf16 %v5020_v48, %v5020_v48  ;;  %v4955_v1 = vsel %vm1300_vm11, %v4952_v45, 0  ;;  %v5021_v29 = vpack.c.bf16 %v5019_v21, %v5019_v21  ;;  %v5208_v25 = vpack.c.bf16 %v9817_v2, %v9817_v2 }
 0xb1c   : > { %v5012_v33 = vadd.f32 %v10278_v16, %v4943_v4  ;;  %v5207_v4 = vpack.c.bf16 %v9816_v12, %v9816_v12  ;;  %v10422_v16 = vld [vmem:[%s13294_s4] sm:$0xff] }
 0xb1d   : > { %9950 = vmatmul.mubr.msk.bf16.vlgmr.msra.gmra.mxu0 %vm1296_vm13, %v11039_v19  ;;  %v5024_v9 = vsel %vm1300_vm11, %v5021_v29, 0 }
 0xb1e   : > { %10281 = vrcp.f32 %v5012_v33  ;;  %9952 = vmatmul.mubr.msk.bf16.vlgmr.msra.gmra.mxu1 %vm1296_vm13, %v11039_v19  ;;  %4768 = vmatpush1.bf16.msra.mxu0 %v4748_v26  ;;  %v5210_v44 = vsel %vm491_vm0, %v5207_v4, 0  ;;  %v4472_v33 = vpop.permute.xlu1 %4471 }
 0xb1f   : > { %4837 = vmatpush1.bf16.msra.mxu1 %v4817_v60  ;;  %9957 = vmatprep.subr.msk.bf16.mxu0 %vm1300_vm11, %v4884_v54  ;;  %10283 = vrcp.f32 %v5011_v41  ;;  %v4539_v41 = vpop.permute.xlu0 %4538  ;;  %v4474_v2 = vsel %vm555_vm3, %v4472_v33, %v4470_v52 }
 0xb20   : > { %9959 = vmatprep.subr.msk.bf16.mxu1 %vm1300_vm11, %v4953_v49  ;;  %4785 = vmatprep.mubr.bf16.mxu0 %v13401_v0 }
 0xb21   : > { %4854 = vmatprep.mubr.bf16.mxu1 %v13401_v0 }
 0xb22   : > { %v4541_v26 = vpop.permute.xlu1 %4540 }
 0xb23   : > { %v4608_v54 = vpop.permute.xlu0 %4607 }
 0xb25   : > { %9954 = vmatmul.mubr.msk.bf16.vlgmr.msra.gmra.mxu0 %vm1296_vm13, %v11039_v19 }
 0xb26   : > { %9956 = vmatmul.mubr.msk.bf16.vlgmr.msra.gmra.mxu1 %vm1296_vm13, %v11039_v19  ;;  %4906 = vmatpush1.bf16.msra.mxu0 %v4886_v50  ;;  %v4610_v13 = vpop.permute.xlu1 %4609 }
 0xb27   : > { %4975 = vmatpush1.bf16.msra.mxu1 %v4955_v1  ;;  %9961 = vmatprep.subr.msk.bf16.mxu0 %vm1300_vm11, %v5022_v32  ;;  %v4677_v48 = vpop.permute.xlu0 %4676  ;;  %v4611_v28 = vsel %vm720_vm4, %v4608_v54, %v4610_v13 }
 0xb28   : > { %4923 = vmatprep.mubr.bf16.mxu0 %v13401_v0  ;;  %4992 = vmatprep.mubr.bf16.mxu1 %v13401_v0 }
 0xb2b   : > { %v10282_v6 = vpop.eup %10281  ;;  %v4807_v29 = vpop.permute.xlu0 %4806 }
 0xb2c   : > { %9963 = vmatprep.subr.msk.mxu1 %vm2032_vm14, %v10282_v6  ;;  %v10284_v47 = vpop.eup %10283  ;;  %v4543_v6 = vsel %vm638_vm2, %v4541_v26, %v4539_v41 }
 0xb2d   : > { %9958 = vmatmul.mubr.msk.bf16.vlgmr.msra.gmra.mxu0 %vm1296_vm13, %v11039_v19 }
 0xb2e   : > { %9960 = vmatmul.mubr.msk.bf16.vlgmr.msra.gmra.mxu1 %vm1296_vm13, %v11039_v19  ;;  %5044 = vmatpush1.bf16.msra.mxu0 %v5024_v9 }
 0xb2f   : > { %9964 = vmatpush1.msk.msra.mxu1 %vm2032_vm14, %v10284_v47  ;;  %5061 = vmatprep.mubr.bf16.mxu0 %v13401_v0  ;;  %v4876_v59 = vpop.permute.xlu0 %4875 }
 0xb30   : > { %5146 = vmatprep.mubr.f32.mxu1 %v13428_v8  ;;  %9968 = vmatprep.subr.msk.bf16.mxu0 %vm491_vm0, %v5208_v25 }
 0xb35   : > { %9962 = vmatmul.mubr.msk.bf16.vlgmr.msra.gmra.mxu0 %vm1296_vm13, %v11039_v19 }
 0xb36   : > { %9965 = vmatmul.mubr.msk.f32.vlgmr.msra.gmra.mxu1 %vm1296_vm13, %v10422_v16  ;;  %5230 = vmatpush1.bf16.msra.mxu0 %v5210_v44  ;;  %v4473_v44 = vsel %vm555_vm3, %v4470_v52, %v4472_v33  ;;  %v4542_v16 = vsel %vm638_vm2, %v4539_v41, %v4541_v26 }
 0xb37   : > { %5247 = vmatprep.mubr.bf16.mxu0 %v13401_v0  ;;  %5198 = vmatprep.mubr.bf16.mxu1 %v13401_v0 }
 0xb3d   : > { %9969 = vmatmul.mubr.msk.bf16.vlgmr.msra.gmra.mxu0 %vm484_vm1, %v11605_v57  ;;  %v4679_v57 = vpop.permute.xlu1 %4678 }
 0xb3e   : > { %5257 = vmatprep.mubr.bf16.mxu0 %v13401_v0 }
 0xb41   : > { %v4809_v12 = vpop.permute.xlu1 %4808 }
 0xb45   : > { %9970 = vmatmul.mubr.msk.bf16.gmra.mxu0 %vm484_vm1, %v11613_v58  ;;  %v4878_v33 = vpop.permute.xlu1 %4877 }
 0xb46   : > { %5434 = vmatprep.mubr.bf16.mxu0 %v13401_v0 }
 0xbd5   : > { %v4519_v60 = vpop.f32.mrf.mxu0 }
 0xbd6   : > { %v4588_v49 = vpop.f32.mrf.mxu1  ;;  %v4526_v9 = vmul.f32 %v4519_v60, %v4474_v2 }
 0xbd7   : > { %v4521_v61 = vpop.f32.mrf.mxu0  ;;  %v4595_v47 = vmul.f32 %v4588_v49, %v4543_v6 }
 0xbd8   : > { %v4590_v14 = vpop.f32.mrf.mxu1 }
 0xbd9   : > { %v4523_v45 = vpop.f32.mrf.mxu0  ;;  %v4597_v49 = vadd.f32 %v4595_v47, %v4526_v9 }
 0xbda   : > { %v4592_v50 = vpop.f32.mrf.mxu1  ;;  %v4612_v45 = vsel %vm720_vm4, %v4610_v13, %v4608_v54  ;;  %v4680_v54 = vsel %vm802_vm5, %v4677_v48, %v4679_v57 }
 0xbdb   : > { %v4524_v32 = vpop.f32.mrf.mxu0 }
 0xbdc   : > { %v4593_v21 = vpop.f32.mrf.mxu1  ;;  %v4527_v32 = vmul.f32 %v4521_v61, %v4473_v44 }
 0xbdd   : > { %v4657_v1 = vpop.f32.mrf.mxu0  ;;  %v4596_v21 = vmul.f32 %v4590_v14, %v4542_v16 }
 0xbde   : > { %v4726_v58 = vpop.f32.mrf.mxu1  ;;  %v4664_v8 = vmul.f32 %v4657_v1, %v4612_v45  ;;  %v4947_v45 = vpop.permute.xlu1 %4946 }
 0xbdf   : > { %v4659_v25 = vpop.f32.mrf.mxu0  ;;  %v4598_v56 = vadd.f32 %v4596_v21, %v4527_v32 }
 0xbe0   : > { %v4728_v4 = vpop.f32.mrf.mxu1  ;;  %v4665_v2 = vmul.f32 %v4659_v25, %v4611_v28  ;;  %v4666_v41 = vadd.f32 %v4664_v8, %v4597_v49  ;;  %v4945_v8 = vpop.permute.xlu0 %4944 }
 0xbe1   : > { %v4661_v50 = vpop.f32.mrf.mxu0  ;;  %v4734_v25 = vmul.f32 %v4728_v4, %v4680_v54 }
 0xbe2   : > { %v4730_v27 = vpop.f32.mrf.mxu1  ;;  %v4681_v50 = vsel %vm802_vm5, %v4679_v57, %v4677_v48  ;;  %v4667_v1 = vadd.f32 %v4665_v2, %v4598_v56  ;;  %v4810_v56 = vsel %vm937_vm6, %v4807_v29, %v4809_v12  ;;  %v4880_v2 = vsel %vm1019_vm7, %v4878_v33, %v4876_v59 }
 0xbe3   : > { %v4662_v60 = vpop.f32.mrf.mxu0  ;;  %v4733_v14 = vmul.f32 %v4726_v58, %v4681_v50 }
 0xbe4   : > { %v4731_v6 = vpop.f32.mrf.mxu1  ;;  %v4736_v32 = vadd.f32 %v4734_v25, %v4667_v1 }
 0xbe5   : > { %v4787_v52 = vpop.f32.mrf.mxu0  ;;  %v4735_v13 = vadd.f32 %v4733_v14, %v4666_v41  ;;  %v5014_v14 = vpop.permute.xlu0 %5013 }
 0xbe6   : > { %v4856_v26 = vpop.f32.mrf.mxu1  ;;  %v4794_v27 = vmul.f32 %v4787_v52, %v11669_v35  ;;  %v4879_v35 = vsel %vm1019_vm7, %v4876_v59, %v4878_v33  ;;  %v4949_v59 = vsel %vm1101_vm8, %v4947_v45, %v4945_v8 }
 0xbe7   : > { %v4789_v61 = vpop.f32.mrf.mxu0  ;;  %v4863_v48 = vmul.f32 %v4856_v26, %v4810_v56 }
 0xbe8   : > { %v4858_v44 = vpop.f32.mrf.mxu1  ;;  %v4795_v9 = vmul.f32 %v4789_v61, %v11673_v31  ;;  %v4796_v21 = vadd.f32 %v4794_v27, %v4735_v13  ;;  %v4811_v31 = vsel %vm937_vm6, %v4809_v12, %v4807_v29  ;;  %v5016_v27 = vpop.permute.xlu1 %5015  ;;  %v4948_v13 = vsel %vm1101_vm8, %v4945_v8, %v4947_v45 }
 0xbe9   : > { %v4791_v28 = vpop.f32.mrf.mxu0  ;;  %v4864_v41 = vmul.f32 %v4858_v44, %v4811_v31  ;;  %v5017_v33 = vsel %vm1181_vm9, %v5014_v14, %v5016_v27 }
 0xbea   : > { %v4860_v47 = vpop.f32.mrf.mxu1  ;;  %v4797_v57 = vadd.f32 %v4795_v9, %v4736_v32  ;;  %v4865_v52 = vadd.f32 %v4863_v48, %v4796_v21 }
 0xbeb   : > { %v4792_v16 = vpop.f32.mrf.mxu0 }
 0xbec   : > { %v4861_v60 = vpop.f32.mrf.mxu1  ;;  %v4866_v54 = vadd.f32 %v4864_v41, %v4797_v57 }
 0xbed   : > { %v4925_v58 = vpop.f32.mrf.mxu0  ;;  %v5018_v60 = vsel %vm1181_vm9, %v5016_v27, %v5014_v14  ;;  %v9921_v14 = vld [vmem:[%s13296_s6 + $0x4] sm:$0xf] }
 0xbee   : > { %v4932_v49 = vmul.f32 %v4925_v58, %v4879_v35  ;;  %v4994_v4 = vpop.f32.mrf.mxu1 }
 0xbef   : > { %v4927_v6 = vpop.f32.mrf.mxu0  ;;  %v5001_v9 = vmul.f32 %v4994_v4, %v4948_v13  ;;  %v3565_v13 = vld [vmem:[%s13300_s10] sm:$0xff] }
 0xbf0   : > { %v4933_v50 = vmul.f32 %v4927_v6, %v4880_v2  ;;  %v4996_v61 = vpop.f32.mrf.mxu1  ;;  %v4934_v28 = vadd.f32 %v4932_v49, %v4865_v52 }
 0xbf1   : > { %v4929_v1 = vpop.f32.mrf.mxu0  ;;  %v5002_v16 = vmul.f32 %v4996_v61, %v4949_v59 }
 0xbf2   : > { %v4998_v26 = vpop.f32.mrf.mxu1  ;;  %v4935_v29 = vadd.f32 %v4933_v50, %v4866_v54  ;;  %v5003_v47 = vadd.f32 %v5001_v9, %v4934_v28 }
 0xbf3   : > { %v4930_v25 = vpop.f32.mrf.mxu0 }
 0xbf4   : > { %v4999_v12 = vpop.f32.mrf.mxu1  ;;  %v5004_v35 = vadd.f32 %v5002_v16, %v4935_v29  ;;  %v13429_v25 = vmov 1  }
 0xbf5   : > { %v5063_v44 = vpop.f32.mrf.mxu0 }
 0xbf6   : > { %v5070_v32 = vmul.f32 %v5063_v44, %v5017_v33  ;;  %v5148_v21 = vpop.f32.mrf.mxu1 }
 0xbf7   : > { %v5065_v56 = vpop.f32.mrf.mxu0 }
 0xbf8   : > { %v5071_v58 = vmul.f32 %v5065_v56, %v5018_v60  ;;  %v5072_v48 = vadd.f32 %v5070_v32, %v5003_v47  ;;  %v5150_v49 = vpop.f32.mrf.mxu1 }
 0xbf9   : > { %v5067_v57 = vpop.f32.mrf.mxu0 }
 0xbfa   : > { %v5153_v4 = vmul.f32 %v5148_v21, %v5072_v48  ;;  %v5073_v31 = vadd.f32 %v5071_v58, %v5004_v35 }
 0xbfb   : > { %v5068_v8 = vpop.f32.mrf.mxu0 }
 0xbfc   : > { %v5155_v45 = vpack.c.bf16 %v5153_v4, %v5153_v4  ;;  %v5154_v2 = vmul.f32 %v5150_v49, %v5073_v31 }
 0xbfd   : > { %v11975_v6 = vpop.f32.mrf.mxu0 }
 0xbfe   : > { %v5156_v52 = vpack.c.bf16 %v5154_v2, %v5154_v2  ;;  %v5161_v50 = vsel %vm491_vm0, %v5155_v45, 0 }
 0xbff   : > { %v11977_v41 = vpop.f32.mrf.mxu0 }
 0xc00   : > { %9966 = vmatprep.subr.msk.bf16.mxu1 %vm491_vm0, %v5156_v52 }
 0xc01   : > { %5181 = vmatpush1.bf16.msra.mxu1 %v5161_v50  ;;  %v11981_v61 = vpop.f32.mrf.mxu0 }
 0xc02   : > { %5266 = vrot.lane.b32.xlu0 %v11981_v61, %s10446_s14 }
 0xc03   : > { %v11988_v1 = vpop.f32.mrf.mxu0 }
 0xc04   : > { %5268 = vrot.lane.b32.xlu1 %v11988_v1, %s10446_s14  ;;  %9967 = vmatmul.mubr.msk.bf16.vlgmr.msra.gmra.mxu1 %vm484_vm1, %v9921_v14  ;;  %v12085_v14 = vld [vmem:[%s13293_s3] sm:$0x1] }
 0xc05   : > { %v11993_v27 = vpop.f32.mrf.mxu0  ;;  %5314 = vmatprep.mubr.bf16.mxu1 %v13401_v0 }
 0xc06   : > { %5325 = vrot.lane.b32.xlu0 %v11981_v61, %s10445_s13 }
 0xc07   : > { %v11998_v54 = vpop.f32.mrf.mxu0 }
 0xc08   : > { %5327 = vrot.lane.b32.xlu1 %v11988_v1, %s10445_s13 }
 0xc09   : > { %v5263_v28 = vpop.f32.mrf.mxu0 }
 0xc0a   : > { %5386 = vrot.lane.b32.xlu0 %v11981_v61, %s10447_s15 }
 0xc0b   : > { %v5264_v26 = vpop.f32.mrf.mxu0 }
 0xc0c   : > { %5388 = vrot.lane.b32.xlu1 %v11988_v1, %s10447_s15  ;;  %v5509_v26 = vmul.f32 %v11988_v1, %v11977_v41 }
 0xc0e   : > { %5447 = vrot.lane.b32.xlu0 %v11981_v61, %s10448_s16 }
 0xc10   : > { %5449 = vrot.lane.b32.xlu1 %v11988_v1, %s10448_s16 }
 0xc12   : > { %5563 = vrot.lane.b32.xlu0 %v11981_v61, %s10449_s17 }
 0xc14   : > { %5565 = vrot.lane.b32.xlu1 %v11988_v1, %s10449_s17 }
 0xc16   : > { %5624 = vrot.lane.b32.xlu0 %v11981_v61, %s10450_s18 }
 0xc18   : > { %5626 = vrot.lane.b32.xlu1 %v11988_v1, %s10450_s18 }
 0xc1a   : > { %5685 = vrot.lane.b32.xlu0 %v11981_v61, %s10451_s19 }
 0xc1c   : > { %5687 = vrot.lane.b32.xlu1 %v11988_v1, %s10451_s19 }
 0xc1e   : > { %5746 = vrot.lane.b32.xlu0 %v11981_v61, %s10452_s20 }
 0xc20   : > { %5748 = vrot.lane.b32.xlu1 %v11988_v1, %s10452_s20 }
 0xc22   : > { %5815 = vrot.lane.b32.xlu0 %v11993_v27, %s10446_s14 }
 0xc24   : > { %5817 = vrot.lane.b32.xlu1 %v11998_v54, %s10446_s14 }
 0xc26   : > { %5884 = vrot.lane.b32.xlu0 %v11993_v27, %s10445_s13 }
 0xc28   : > { %5886 = vrot.lane.b32.xlu1 %v11998_v54, %s10445_s13 }
 0xc2a   : > { %5953 = vrot.lane.b32.xlu0 %v11993_v27, %s10447_s15 }
 0xc2c   : > { %5955 = vrot.lane.b32.xlu1 %v11998_v54, %s10447_s15 }
 0xc2e   : > { %6022 = vrot.lane.b32.xlu0 %v11993_v27, %s10448_s16 }
 0xc30   : > { %6024 = vrot.lane.b32.xlu1 %v11998_v54, %s10448_s16 }
 0xc32   : > { %6152 = vrot.lane.b32.xlu0 %v11993_v27, %s10449_s17 }
 0xc34   : > { %6154 = vrot.lane.b32.xlu1 %v11998_v54, %s10449_s17 }
 0xc36   : > { %6221 = vrot.lane.b32.xlu0 %v11993_v27, %s10450_s18 }
 0xc38   : > { %6223 = vrot.lane.b32.xlu1 %v11998_v54, %s10450_s18 }
 0xc3a   : > { %6290 = vrot.lane.b32.xlu0 %v11993_v27, %s10451_s19 }
 0xc3c   : > { %6292 = vrot.lane.b32.xlu1 %v11998_v54, %s10451_s19 }
 0xc3e   : > { %6359 = vrot.lane.b32.xlu0 %v11993_v27, %s10452_s20 }
 0xc40   : > { %6361 = vrot.lane.b32.xlu1 %v11998_v54, %s10452_s20 }
 0xc42   : > { %3629 = vperm.xlu0 %10147, %v3565_v13   ;;  %v5508_v13 = vmul.f32 %v11981_v61, %v11975_v6 }
 0xc44   : > { %v5510_v61 = vpack.c.bf16 %v5508_v13, %v5508_v13 }
 0xc46   : > { %10152 = vset.pattern.permute.xlu0 %v13429_v25 }
 0xc74   : > { %v5267_v9 = vpop.permute.xlu0 %5266 }
 0xc76   : > { %v5269_v29 = vpop.permute.xlu1 %5268 }
 0xc77   : > { %v5270_v12 = vsel %vm555_vm3, %v5267_v9, %v5269_v29  ;;  %v5271_v59 = vsel %vm555_vm3, %v5269_v29, %v5267_v9 }
 0xc78   : > { %v5272_v33 = vmul.f32 %v5271_v59, %v11975_v6  ;;  %v5273_v44 = vmul.f32 %v5270_v12, %v11977_v41  ;;  %v5326_v47 = vpop.permute.xlu0 %5325 }
 0xc7a   : > { %v5274_v16 = vpack.c.bf16 %v5272_v33, %v5272_v33  ;;  %v5275_v32 = vpack.c.bf16 %v5273_v44, %v5273_v44  ;;  %v5328_v21 = vpop.permute.xlu1 %5327 }
 0xc7b   : > { %v5329_v60 = vsel %vm638_vm2, %v5326_v47, %v5328_v21  ;;  %v5330_v56 = vsel %vm638_vm2, %v5328_v21, %v5326_v47 }
 0xc7c   : > { %v5331_v35 = vmul.f32 %v5330_v56, %v11975_v6  ;;  %v5332_v58 = vmul.f32 %v5329_v60, %v11977_v41  ;;  %v5387_v48 = vpop.permute.xlu0 %5386  ;;  %9971 = vmatprep.subr.msk.bf16.mxu1 %vm491_vm0, %v5275_v32  ;;  %v5277_v57 = vsel %vm491_vm0, %v5274_v16, 0  ;;  %v5511_v32 = vpack.c.bf16 %v5509_v26, %v5509_v26 }
 0xc7d   : > { %5297 = vmatpush1.bf16.msra.mxu1 %v5277_v57 }
 0xc7e   : > { %v5333_v49 = vpack.c.bf16 %v5331_v35, %v5331_v35  ;;  %v5334_v4 = vpack.c.bf16 %v5332_v58, %v5332_v58  ;;  %v5389_v31 = vpop.permute.xlu1 %5388 }
 0xc7f   : > { %v5390_v8 = vsel %vm720_vm4, %v5387_v48, %v5389_v31  ;;  %v5391_v45 = vsel %vm720_vm4, %v5389_v31, %v5387_v48  ;;  %v5513_v31 = vsel %vm491_vm0, %v5510_v61, 0 }
 0xc80   : > { %v5392_v2 = vmul.f32 %v5391_v45, %v11975_v6  ;;  %v5393_v52 = vmul.f32 %v5390_v8, %v11977_v41  ;;  %v5448_v50 = vpop.permute.xlu0 %5447  ;;  %9972 = vmatmul.mubr.msk.bf16.vlgmr.msra.gmra.mxu1 %vm484_vm1, %v12085_v14  ;;  %9973 = vmatprep.subr.msk.bf16.mxu1 %vm491_vm0, %v5334_v4  ;;  %v5336_v28 = vsel %vm491_vm0, %v5333_v49, 0 }
 0xc81   : > { %5356 = vmatpush1.bf16.msra.mxu1 %v5336_v28  ;;  %5373 = vmatprep.mubr.bf16.mxu1 %v13401_v0 }
 0xc82   : > { %v5394_v9 = vpack.c.bf16 %v5392_v2, %v5392_v2  ;;  %v5395_v29 = vpack.c.bf16 %v5393_v52, %v5393_v52  ;;  %v5450_v12 = vpop.permute.xlu1 %5449 }
 0xc83   : > { %v5451_v59 = vsel %vm802_vm5, %v5448_v50, %v5450_v12  ;;  %v5452_v33 = vsel %vm802_vm5, %v5450_v12, %v5448_v50 }
 0xc84   : > { %v5453_v44 = vmul.f32 %v5452_v33, %v11975_v6  ;;  %v5454_v47 = vmul.f32 %v5451_v59, %v11977_v41  ;;  %v5564_v1 = vpop.permute.xlu0 %5563  ;;  %9975 = vmatprep.subr.msk.bf16.mxu0 %vm491_vm0, %v5395_v29  ;;  %v5397_v16 = vsel %vm491_vm0, %v5394_v9, 0 }
 0xc85   : > { %5417 = vmatpush1.bf16.msra.mxu0 %v5397_v16 }
 0xc86   : > { %v5455_v21 = vpack.c.bf16 %v5453_v44, %v5453_v44  ;;  %v5456_v60 = vpack.c.bf16 %v5454_v47, %v5454_v47  ;;  %9979 = vmatprep.subr.msk.bf16.mxu0 %vm491_vm0, %v5511_v32  ;;  %v5566_v56 = vpop.permute.xlu1 %5565 }
 0xc87   : > { %v5567_v35 = vsel %vm937_vm6, %v5564_v1, %v5566_v56  ;;  %v5568_v58 = vsel %vm937_vm6, %v5566_v56, %v5564_v1 }
 0xc88   : > { %v5569_v48 = vmul.f32 %v5567_v35, %v11975_v6  ;;  %v5570_v57 = vmul.f32 %v5568_v58, %v11977_v41  ;;  %v5625_v49 = vpop.permute.xlu0 %5624  ;;  %9974 = vmatmul.mubr.msk.bf16.vlgmr.msra.gmra.mxu1 %vm484_vm1, %v12085_v14  ;;  %9977 = vmatprep.subr.msk.bf16.mxu1 %vm491_vm0, %v5456_v60  ;;  %v5458_v4 = vsel %vm491_vm0, %v5455_v21, 0 }
 0xc89   : > { %9976 = vmatmul.mubr.msk.bf16.vlgmr.msra.gmra.mxu0 %vm484_vm1, %v12085_v14  ;;  %5478 = vmatpush1.bf16.msra.mxu1 %v5458_v4 }
 0xc8a   : > { %v5572_v8 = vpack.c.bf16 %v5570_v57, %v5570_v57  ;;  %5533 = vmatpush1.bf16.msra.mxu0 %v5513_v31  ;;  %v5627_v45 = vpop.permute.xlu1 %5626  ;;  %5495 = vmatprep.mubr.bf16.mxu1 %v13401_v0  ;;  %v5571_v50 = vpack.c.bf16 %v5569_v48, %v5569_v48 }
 0xc8b   : > { %v5628_v2 = vsel %vm1019_vm7, %v5625_v49, %v5627_v45  ;;  %v5629_v52 = vsel %vm1019_vm7, %v5627_v45, %v5625_v49  ;;  %5550 = vmatprep.mubr.bf16.mxu0 %v13401_v0 }
 0xc8c   : > { %v5630_v28 = vmul.f32 %v5628_v2, %v11975_v6  ;;  %v5631_v26 = vmul.f32 %v5629_v52, %v11977_v41  ;;  %v5686_v13 = vpop.permute.xlu0 %5685  ;;  %9981 = vmatprep.subr.msk.bf16.mxu1 %vm491_vm0, %v5572_v8  ;;  %v5574_v16 = vsel %vm491_vm0, %v5571_v50, 0 }
 0xc8e   : > { %v5632_v9 = vpack.c.bf16 %v5630_v28, %v5630_v28  ;;  %v5633_v29 = vpack.c.bf16 %v5631_v26, %v5631_v26  ;;  %v5688_v12 = vpop.permute.xlu1 %5687 }
 0xc8f   : > { %v5689_v59 = vsel %vm1101_vm8, %v5686_v13, %v5688_v12  ;;  %v5690_v33 = vsel %vm1101_vm8, %v5688_v12, %v5686_v13 }
 0xc90   : > { %v5691_v44 = vmul.f32 %v5689_v59, %v11975_v6  ;;  %v5692_v47 = vmul.f32 %v5690_v33, %v11977_v41  ;;  %v5747_v1 = vpop.permute.xlu0 %5746  ;;  %9978 = vmatmul.mubr.msk.bf16.vlgmr.msra.gmra.mxu1 %vm484_vm1, %v12085_v14  ;;  %9983 = vmatprep.subr.msk.bf16.mxu0 %vm491_vm0, %v5633_v29  ;;  %v5635_v32 = vsel %vm491_vm0, %v5632_v9, 0 }
 0xc91   : > { %5594 = vmatpush1.bf16.msra.mxu1 %v5574_v16  ;;  %9980 = vmatmul.mubr.msk.bf16.vlgmr.msra.gmra.mxu0 %vm484_vm1, %v12085_v14 }
 0xc92   : > { %v5694_v61 = vpack.c.bf16 %v5692_v47, %v5692_v47  ;;  %5655 = vmatpush1.bf16.msra.mxu0 %v5635_v32  ;;  %v5749_v21 = vpop.permute.xlu1 %5748  ;;  %5611 = vmatprep.mubr.bf16.mxu1 %v13401_v0  ;;  %v5693_v35 = vpack.c.bf16 %v5691_v44, %v5691_v44  ;;  %v10425_v47 = vld [vmem:[%s11569_s22 + $0x8] sm:$0xff] }
 0xc93   : > { %v5750_v60 = vsel %vm1181_vm9, %v5747_v1, %v5749_v21  ;;  %v5751_v56 = vsel %vm1181_vm9, %v5749_v21, %v5747_v1  ;;  %5672 = vmatprep.mubr.bf16.mxu0 %v13401_v0 }
 0xc94   : > { %v5752_v58 = vmul.f32 %v5750_v60, %v11975_v6  ;;  %v5753_v48 = vmul.f32 %v5751_v56, %v11977_v41  ;;  %9985 = vmatprep.subr.msk.bf16.mxu1 %vm491_vm0, %v5694_v61  ;;  %v12149_v57 = vpop.permute.xlu0 %5815  ;;  %v5696_v31 = vsel %vm491_vm0, %v5693_v35, 0 }
 0xc96   : > { %v5754_v49 = vpack.c.bf16 %v5752_v58, %v5752_v58  ;;  %v5755_v4 = vpack.c.bf16 %v5753_v48, %v5753_v48  ;;  %v12204_v32 = vpop.permute.xlu1 %5817 }
 0xc98   : > { %9982 = vmatmul.mubr.msk.bf16.vlgmr.msra.gmra.mxu1 %vm484_vm1, %v12085_v14  ;;  %9987 = vmatprep.subr.msk.bf16.mxu0 %vm491_vm0, %v5755_v4  ;;  %v5757_v8 = vsel %vm491_vm0, %v5754_v49, 0  ;;  %v12156_v45 = vpop.permute.xlu0 %5884 }
 0xc99   : > { %5716 = vmatpush1.bf16.msra.mxu1 %v5696_v31  ;;  %9984 = vmatmul.mubr.msk.bf16.vlgmr.msra.gmra.mxu0 %vm484_vm1, %v12085_v14 }
 0xc9a   : > { %5777 = vmatpush1.bf16.msra.mxu0 %v5757_v8  ;;  %5733 = vmatprep.mubr.bf16.mxu1 %v13401_v0  ;;  %v12206_v61 = vpop.permute.xlu1 %5886 }
 0xc9b   : > { %5794 = vmatprep.mubr.bf16.mxu0 %v13401_v0 }
 0xc9c   : > { %v12162_v6 = vpop.permute.xlu0 %5953 }
 0xc9e   : > { %v12208_v21 = vpop.permute.xlu1 %5955 }
 0xca0   : > { %9986 = vmatmul.mubr.msk.bf16.vlgmr.msra.gmra.mxu1 %vm484_vm1, %v12085_v14  ;;  %v12166_v41 = vpop.permute.xlu0 %6022 }
 0xca1   : > { %9988 = vmatmul.mubr.msk.bf16.vlgmr.msra.gmra.mxu0 %vm484_vm1, %v12085_v14  ;;  %5863 = vmatprep.mubr.bf16.mxu1 %v13401_v0 }
 0xca2   : > { %5932 = vmatprep.mubr.bf16.mxu0 %v13401_v0  ;;  %v12210_v60 = vpop.permute.xlu1 %6024 }
 0xca4   : > { %v12172_v2 = vpop.permute.xlu0 %6152 }
 0xca6   : > { %v12212_v56 = vpop.permute.xlu1 %6154 }
 0xca8   : > { %v12174_v52 = vpop.permute.xlu0 %6221 }
 0xcaa   : > { %v12214_v35 = vpop.permute.xlu1 %6223 }
 0xcac   : > { %v12176_v50 = vpop.permute.xlu0 %6290 }
 0xcad   : > { %13430 = vst [vmem:[#allocation17_spill] sm:$0xff] %v12176_v50 }
 0xcae   : > { %v12216_v58 = vpop.permute.xlu1 %6292 }
 0xcb0   : > { %v12178_v28 = vpop.permute.xlu0 %6359 }
 0xcb1   : > { %13431 = vst [vmem:[#allocation18_spill] sm:$0xff] %v12178_v28 }
 0xcb2   : > { %v12218_v31 = vpop.permute.xlu1 %6361 }
 0xcb3   : > { %13438 = vst [vmem:[#allocation33_spill] sm:$0xff] %v12218_v31 }
 0xcbd   : > { %v3630_v26 = vpop.permute.xlu0 %3629 }
 0xcbe   : > { %v12181_v13 = vadd.f32 %v11807_v10, %v3630_v26  ;;  %v12184_v14 = vadd.f32 %v11809_v42, %v3630_v26  ;;  %v12187_v9 = vadd.f32 %v11811_v36, %v3630_v26  ;;  %v12190_v29 = vadd.f32 %v11813_v63, %v3630_v26  ;;  %v10424_v10 = vld [vmem:[%s11569_s22] sm:$0xff] }
 0xcc0   : > { %13432 = vst [vmem:[#allocation19_spill] sm:$0xff] %v12181_v13  ;;  %13433 = vst [vmem:[#allocation28_spill] sm:$0xff] %v12184_v14  ;;  %v3786_v12 = vadd.f32 %v12190_v29, %v12187_v9  ;;  %v3782_v59 = vadd.f32 %v12184_v14, %v12181_v13 }
 0xcc1   : > { %13434 = vst [vmem:[#allocation29_spill] sm:$0xff] %v12187_v9  ;;  %13435 = vst [vmem:[#allocation30_spill] sm:$0xff] %v12190_v29 }
 0xcc2   : > { %3787 = vadd.xlane.f32.xlu0 %v3786_v12  ;;  %3783 = vadd.xlane.f32.xlu1 %v3782_v59 }
 0xcc4   : > { %v5200_v33 = vpop.f32.mrf.mxu1 }
 0xcc5   : > { %v12197_v44 = vadd.f32 %v10424_v10, %v5200_v33 }
 0xcc6   : > { %v5202_v42 = vpop.f32.mrf.mxu1 }
 0xcc7   : > { %13436 = vst [vmem:[#allocation31_spill] sm:$0xff] %v12197_v44  ;;  %v12200_v1 = vadd.f32 %v10425_v47, %v5202_v42 }
 0xcc8   : > { %v5204_v36 = vpop.f32.mrf.mxu1 }
 0xcc9   : > { %13437 = vst [vmem:[#allocation32_spill] sm:$0xff] %v12200_v1  ;;  %v6550_v63 = vadd.f32 %v12200_v1, %v12197_v44 }
 0xcca   : > { %v5205_v16 = vpop.f32.mrf.mxu1 }
 0xccb   : > { %6551 = vadd.xlane.f32.xlu0 %v6550_v63 }
 0xd40   : > { %v5316_v48 = vpop.f32.mrf.mxu1 }
 0xd42   : > { %v5318_v49 = vpop.f32.mrf.mxu1 }
 0xd44   : > { %v5320_v4 = vpop.f32.mrf.mxu1 }
 0xd45   : > { %v12226_v4 = vmul.f32 %v5316_v48, %v10794_v11 }
 0xd46   : > { %v5321_v8 = vpop.f32.mrf.mxu1 }
 0xd48   : > { %v5375_v26 = vpop.f32.mrf.mxu1 }
 0xd49   : > { %v5436_v12 = vpop.f32.mrf.mxu0  ;;  %v12221_v63 = vmul.f32 %v5375_v26, %v10784_v3 }
 0xd4a   : > { %v5377_v59 = vpop.f32.mrf.mxu1 }
 0xd4b   : > { %v3788_v33 = vpop.xlane.xlu0 %3787  ;;  %v3784_v10 = vpop.xlane.xlu1 %3783  ;;  %v12229_v8 = vmul.f32 %v5377_v59, %v10801_v15  ;;  %v5384_v26 = vmax.f32 %v12226_v4, %v12221_v63 }
 0xd4c   : > { %v3789_v42 = vadd.f32 %v3788_v33, %v3784_v10  ;;  %v5379_v47 = vpop.f32.mrf.mxu1  ;;  %v5438_v36 = vpop.f32.mrf.mxu0 }
 0xd4d   : > { %v12245_v9 = vmul.f32 %v5438_v36, %v10844_v37 }
 0xd4e   : > { %v12223_v16 = vmul.f32 0.001953125, %v3789_v42  ;;  %v5380_v25 = vpop.f32.mrf.mxu1  ;;  %v5440_v1 = vpop.f32.mrf.mxu0 }
 0xd4f   : > { %v5443_v25 = vmul.f32 %v5436_v12, %v10804_v20  ;;  %v12239_v1 = vmul.f32 %v5318_v49, %v10813_v23 }
 0xd50   : > { %13439 = vst [vmem:[#allocation34_spill] sm:$0xff] %v12223_v16  ;;  %v5441_v44 = vpop.f32.mrf.mxu0  ;;  %v5497_v29 = vpop.f32.mrf.mxu1  ;;  %v3791_v33 = vsub.f32 %v12181_v13, %v12223_v16  ;;  %v3792_v10 = vsub.f32 %v12184_v14, %v12223_v16  ;;  %v13440_v16 = vld [vmem:[#allocation10_spill] sm:$0xff] }
 0xd51   : > { %v5504_v44 = vmul.f32 %v5497_v29, %v10824_v30  ;;  %v5385_v15 = vmax.f32 %v12239_v1, %v12229_v8  ;;  %v5445_v13 = vmax.f32 %v5384_v26, %v5443_v25 }
 0xd52   : > { %v5499_v48 = vpop.f32.mrf.mxu1  ;;  %v5552_v42 = vpop.f32.mrf.mxu0  ;;  %v3793_v59 = vmul.f32 %v3791_v33, %v3791_v33  ;;  %v3794_v47 = vmul.f32 %v3792_v10, %v3792_v10 }
 0xd53   : > { %v12248_v12 = vmul.f32 %v5499_v48, %v10847_v39  ;;  %v5506_v33 = vmax.f32 %v5445_v13, %v5504_v44  ;;  %v5559_v10 = vmul.f32 0.5, %v5552_v42  ;;  %v5446_v29 = vmax.f32 %v5385_v15, %v12245_v9 }
 0xd54   : > { %v5501_v3 = vpop.f32.mrf.mxu1  ;;  %v5554_v11 = vpop.f32.mrf.mxu0  ;;  %v3795_v14 = vadd.f32 %v3794_v47, %v3793_v59 }
 0xd55   : > { %v5507_v59 = vmax.f32 %v5446_v29, %v12248_v12  ;;  %v5561_v36 = vmax.f32 %v5506_v33, %v5559_v10  ;;  %v5560_v37 = vmul.f32 0.5, %v5554_v11  ;;  %v13443_v11 = vld [vmem:[#allocation15_spill] sm:$0xff] }
 0xd56   : > { %v5502_v49 = vpop.f32.mrf.mxu1  ;;  %v5556_v23 = vpop.f32.mrf.mxu0  ;;  %3796 = vadd.xlane.f32.xlu0 %v3795_v14  ;;  %v13441_v14 = vld [vmem:[#allocation12_spill] sm:$0xff] }
 0xd57   : > { %v5562_v42 = vmax.f32 %v5507_v59, %v5560_v37 }
 0xd58   : > { %v5557_v30 = vpop.f32.mrf.mxu0  ;;  %v5613_v20 = vpop.f32.mrf.mxu1 }
 0xd59   : > { %v5620_v3 = vmul.f32 %v5613_v20, %v13440_v16  ;;  %v13442_v16 = vld [vmem:[#allocation14_spill] sm:$0xff] }
 0xd5a   : > { %v5615_v26 = vpop.f32.mrf.mxu1  ;;  %v5674_v47 = vpop.f32.mrf.mxu0 }
 0xd5b   : > { %v5621_v48 = vmul.f32 %v5615_v26, %v10876_v5  ;;  %v5622_v23 = vmax.f32 %v5561_v36, %v5620_v3  ;;  %v12255_v13 = vmul.f32 %v5674_v47, %v13441_v14  ;;  %v13444_v5 = vld [vmem:[#allocation16_spill] sm:$0xff]  ;;  %v13445_v14 = vld [vmem:[#allocation13_spill] sm:$0xff] }
 0xd5c   : > { %v5617_v39 = vpop.f32.mrf.mxu1  ;;  %v5676_v49 = vpop.f32.mrf.mxu0 }
 0xd5d   : > { %v5623_v28 = vmax.f32 %v5562_v42, %v5621_v48  ;;  %v5683_v29 = vmax.f32 %v5622_v23, %v12255_v13  ;;  %v5682_v33 = vmul.f32 %v5676_v49, %v13443_v11 }
 0xd5e   : > { %v5618_v15 = vpop.f32.mrf.mxu1  ;;  %v5678_v30 = vpop.f32.mrf.mxu0 }
 0xd5f   : > { %v5684_v15 = vmax.f32 %v5623_v28, %v5682_v33 }
 0xd60   : > { %v5679_v31 = vpop.f32.mrf.mxu0  ;;  %v5735_v20 = vpop.f32.mrf.mxu1 }
 0xd61   : > { %v12259_v50 = vmul.f32 %v5735_v20, %v13442_v16 }
 0xd62   : > { %v5737_v26 = vpop.f32.mrf.mxu1  ;;  %v5796_v39 = vpop.f32.mrf.mxu0 }
 0xd63   : > { %v5744_v36 = vmax.f32 %v5683_v29, %v12259_v50  ;;  %v5743_v47 = vmul.f32 %v5737_v26, %v13444_v5  ;;  %v12265_v59 = vmul.f32 %v5796_v39, %v13445_v14 }
 0xd64   : > { %v5798_v42 = vpop.f32.mrf.mxu0  ;;  %v5739_v31 = vpop.f32.mrf.mxu1 }
 0xd65   : > { %v12268_v30 = vmax.f32 %v5744_v36, %v12265_v59  ;;  %v5745_v23 = vmax.f32 %v5684_v15, %v5743_v47  ;;  %v5804_v28 = vmul.f32 %v5798_v42, %v10928_v55 }
 0xd66   : > { %v5740_v20 = vpop.f32.mrf.mxu1  ;;  %v5800_v16 = vpop.f32.mrf.mxu0 }
 0xd67   : > { %v5807_v49 = vsub.f32 %v12226_v4, %v12268_v30  ;;  %v5876_v29 = vsub.f32 %v12221_v63, %v12268_v30  ;;  %v5945_v26 = vsub.f32 %v5443_v25, %v12268_v30  ;;  %v6014_v39 = vsub.f32 %v5504_v44, %v12268_v30 }
 0xd68   : > { %v5801_v5 = vpop.f32.mrf.mxu0  ;;  %v5806_v11 = vmax.f32 %v5745_v23, %v5804_v28  ;;  %v6083_v16 = vsub.f32 %v5559_v10, %v12268_v30 }
 0xd69   : > { %v5809_v31 = vmul.f32 1.442695, %v5807_v49  ;;  %v5878_v14 = vmul.f32 1.442695, %v5876_v29  ;;  %v5947_v36 = vmul.f32 1.442695, %v5945_v26  ;;  %v6144_v5 = vsub.f32 %v5620_v3, %v12268_v30 }
 0xd6a   : > { %v6016_v15 = vmul.f32 1.442695, %v6014_v39  ;;  %v5808_v4 = vsub.f32 %v12239_v1, %v5806_v11  ;;  %v5877_v63 = vsub.f32 %v12229_v8, %v5806_v11  ;;  %v5946_v25 = vsub.f32 %v12245_v9, %v5806_v11 }
 0xd6b   : > { %10285 = vpow2.f32 %v5809_v31  ;;  %v6085_v44 = vmul.f32 1.442695, %v6083_v16  ;;  %v6015_v42 = vsub.f32 %v12248_v12, %v5806_v11  ;;  %v6145_v49 = vsub.f32 %v5621_v48, %v5806_v11 }
 0xd6c   : > { %10287 = vpow2.f32 %v5878_v14  ;;  %v5811_v20 = vmul.f32 1.442695, %v5808_v4  ;;  %v5880_v23 = vmul.f32 1.442695, %v5877_v63  ;;  %v5949_v29 = vmul.f32 1.442695, %v5946_v25 }
 0xd6d   : > { %10289 = vpow2.f32 %v5947_v36  ;;  %v6084_v10 = vsub.f32 %v5560_v37, %v5806_v11  ;;  %v6018_v14 = vmul.f32 1.442695, %v6015_v42  ;;  %v6146_v26 = vmul.f32 1.442695, %v6144_v5 }
 0xd6e   : > { %10291 = vpow2.f32 %v6016_v15  ;;  %v6213_v8 = vsub.f32 %v12255_v13, %v12268_v30  ;;  %v6148_v9 = vmul.f32 1.442695, %v6145_v49  ;;  %v6214_v12 = vsub.f32 %v5682_v33, %v5806_v11 }
 0xd6f   : > { %10293 = vpow2.f32 %v6085_v44  ;;  %v6087_v1 = vmul.f32 1.442695, %v6084_v10  ;;  %v6283_v39 = vsub.f32 %v5743_v47, %v5806_v11  ;;  %v6282_v37 = vsub.f32 %v12259_v50, %v12268_v30 }
 0xd70   : > { %10295 = vpow2.f32 %v5811_v20  ;;  %v6215_v31 = vmul.f32 1.442695, %v6213_v8  ;;  %v6217_v16 = vmul.f32 1.442695, %v6214_v12  ;;  %v6352_v4 = vsub.f32 %v5804_v28, %v5806_v11 }
 0xd71   : > { %10297 = vpow2.f32 %v5880_v23  ;;  %v6286_v15 = vmul.f32 1.442695, %v6283_v39  ;;  %v6284_v25 = vmul.f32 1.442695, %v6282_v37  ;;  %v6351_v33 = vsub.f32 %v12265_v59, %v12268_v30 }
 0xd72   : > { %10299 = vpow2.f32 %v5949_v29  ;;  %v6355_v50 = vmul.f32 1.442695, %v6352_v4 }
 0xd73   : > { %10301 = vpow2.f32 %v6018_v14  ;;  %v6353_v23 = vmul.f32 1.442695, %v6351_v33 }
 0xd74   : > { %10303 = vpow2.f32 %v6146_v26 }
 0xd75   : > { %10305 = vpow2.f32 %v6148_v9 }
 0xd76   : > { %10307 = vpow2.f32 %v6087_v1 }
 0xd77   : > { %10309 = vpow2.f32 %v6215_v31 }
 0xd78   : > { %v10286_v3 = vpop.eup %10285  ;;  %10311 = vpow2.f32 %v6217_v16 }
 0xd79   : > { %v10288_v48 = vpop.eup %10287  ;;  %v5821_v44 = vmul.f32 %v10286_v3, %v10989_v51  ;;  %10313 = vpow2.f32 %v6286_v15 }
 0xd7a   : > { %v5882_v36 = vadd.f32 %v10288_v48, %v10286_v3  ;;  %v10290_v13 = vpop.eup %10289  ;;  %v5890_v5 = vmul.f32 %v10288_v48, %v10992_v34  ;;  %10315 = vpow2.f32 %v6284_v25 }
 0xd7b   : > { %v10292_v47 = vpop.eup %10291  ;;  %v5823_v28 = vpack.c.bf16 %v5821_v44, %v5821_v44  ;;  %v5959_v30 = vmul.f32 %v10290_v13, %v10999_v38  ;;  %10317 = vpow2.f32 %v6355_v50 }
 0xd7c   : > { %v5951_v63 = vadd.f32 %v10290_v13, %v5882_v36  ;;  %v12291_v20 = vpop.eup %10293  ;;  %v6028_v10 = vmul.f32 %v10292_v47, %v11004_v46  ;;  %v5892_v9 = vpack.c.bf16 %v5890_v5, %v5890_v5  ;;  %10319 = vpow2.f32 %v6353_v23 }
 0xd7d   : > { %v10296_v11 = vpop.eup %10295  ;;  %v5826_v48 = vsel %vm1300_vm11, %v5823_v28, 0  ;;  %v5961_v4 = vpack.c.bf16 %v5959_v30, %v5959_v30 }
 0xd7e   : > { %v6020_v42 = vadd.f32 %v10292_v47, %v5951_v63  ;;  %v10298_v49 = vpop.eup %10297  ;;  %v5822_v59 = vmul.f32 %v10296_v11, %v11012_v18  ;;  %v6030_v63 = vpack.c.bf16 %v6028_v10, %v6028_v10  ;;  %v5895_v47 = vsel %vm1300_vm11, %v5892_v9, 0 }
 0xd7f   : > { %v10300_v14 = vpop.eup %10299  ;;  %v5883_v26 = vadd.f32 %v10298_v49, %v10296_v11  ;;  %v5891_v8 = vmul.f32 %v10298_v49, %v11015_v22  ;;  %v5964_v11 = vsel %vm1300_vm11, %v5961_v4, 0  ;;  %v13446_v4 = vld [vmem:[#allocation20_spill] sm:$0xff] }
 0xd80   : > { %v6089_v29 = vadd.f32 %v12291_v20, %v6020_v42  ;;  %v10302_v1 = vpop.eup %10301  ;;  %v5824_v12 = vpack.c.bf16 %v5822_v59, %v5822_v59  ;;  %v5960_v39 = vmul.f32 %v10300_v14, %v11019_v24  ;;  %v6033_v59 = vsel %vm1300_vm11, %v6030_v63, 0 }
 0xd81   : > { %v10304_v3 = vpop.eup %10303  ;;  %v5952_v31 = vadd.f32 %v10300_v14, %v5883_v26  ;;  %v5893_v37 = vpack.c.bf16 %v5891_v8, %v5891_v8  ;;  %v6029_v36 = vmul.f32 %v10302_v1, %v11022_v7 }
 0xd82   : > { %v10306_v16 = vpop.eup %10305  ;;  %v6150_v13 = vadd.f32 %v10304_v3, %v6089_v29  ;;  %9989 = vmatprep.subr.msk.bf16.mxu1 %vm1300_vm11, %v5824_v12  ;;  %v5962_v15 = vpack.c.bf16 %v5960_v39, %v5960_v39  ;;  %v6158_v10 = vmul.f32 %v10304_v3, %v13421_v40 }
 0xd83   : > { %v10308_v25 = vpop.eup %10307  ;;  %v6021_v33 = vadd.f32 %v10302_v1, %v5952_v31  ;;  %9991 = vmatprep.subr.msk.bf16.mxu0 %vm1300_vm11, %v5893_v37  ;;  %5846 = vmatpush1.bf16.msra.mxu1 %v5826_v48  ;;  %v6031_v44 = vpack.c.bf16 %v6029_v36, %v6029_v36  ;;  %v6159_v42 = vmul.f32 %v10306_v16, %v11033_v62 }
 0xd84   : > { %5915 = vmatpush1.bf16.msra.mxu0 %v5895_v47  ;;  %9993 = vmatprep.subr.msk.bf16.mxu1 %vm1300_vm11, %v5962_v15  ;;  %v10310_v50 = vpop.eup %10309  ;;  %v6092_v28 = vpack.c.bf16 %v10308_v25, %v10308_v25  ;;  %v6091_v1 = vpack.c.bf16 %v12291_v20, %v12291_v20  ;;  %v6160_v3 = vpack.c.bf16 %v6158_v10, %v6158_v10 }
 0xd85   : > { %v6090_v5 = vadd.f32 %v10308_v25, %v6021_v33  ;;  %9995 = vmatprep.subr.msk.bf16.mxu0 %vm1300_vm11, %v6031_v44  ;;  %v6219_v23 = vadd.f32 %v10310_v50, %v6150_v13  ;;  %v10312_v49 = vpop.eup %10311  ;;  %v6161_v30 = vpack.c.bf16 %v6159_v42, %v6159_v42  ;;  %v6227_v63 = vmul.f32 %v10310_v50, %v13446_v4  ;;  %v13447_v33 = vld [vmem:[#allocation21_spill] sm:$0xff]  ;;  %v13448_v42 = vld [vmem:[#allocation22_spill] sm:$0xff] }
 0xd86   : > { %9990 = vmatmul.mubr.msk.bf16.vlgmr.msra.gmra.mxu1 %vm1296_vm13, %v11039_v19  ;;  %v10314_v14 = vpop.eup %10313  ;;  %v6228_v12 = vmul.f32 %v10312_v49, %v13422_v43  ;;  %v6094_v13 = vsel %vm1300_vm11, %v6091_v1, 0  ;;  %v6163_v20 = vsel %vm1300_vm11, %v6160_v3, 0 }
 0xd87   : > { %v6151_v29 = vadd.f32 %v10306_v16, %v6090_v5  ;;  %9992 = vmatmul.mubr.msk.bf16.vlgmr.msra.gmra.mxu0 %vm1296_vm13, %v11039_v19  ;;  %5984 = vmatpush1.bf16.msra.mxu1 %v5964_v11  ;;  %v10316_v26 = vpop.eup %10315  ;;  %v6297_v31 = vmul.f32 %v10314_v14, %v13423_v53  ;;  %v6229_v44 = vpack.c.bf16 %v6227_v63, %v6227_v63 }
 0xd88   : > { %6053 = vmatpush1.bf16.msra.mxu0 %v6033_v59  ;;  %9997 = vmatprep.subr.msk.bf16.mxu1 %vm1300_vm11, %v6092_v28  ;;  %v6288_v9 = vadd.f32 %v10316_v26, %v6219_v23  ;;  %v10318_v37 = vpop.eup %10317  ;;  %v6230_v15 = vpack.c.bf16 %v6228_v12, %v6228_v12  ;;  %v6296_v47 = vmul.f32 %v10316_v26, %v13447_v33  ;;  %v13449_v28 = vld [vmem:[#allocation23_spill] sm:$0xff]  ;;  %v13450_v26 = vmov 0.0  }
 0xd89   : > { %v6220_v8 = vadd.f32 %v10312_v49, %v6151_v29  ;;  %9999 = vmatprep.subr.msk.bf16.mxu0 %vm1300_vm11, %v6161_v30  ;;  %6001 = vmatprep.mubr.bf16.mxu1 %v13401_v0  ;;  %v10320_v48 = vpop.eup %10319  ;;  %v6299_v25 = vpack.c.bf16 %v6297_v31, %v6297_v31  ;;  %v6366_v50 = vmul.f32 %v10318_v37, %v13448_v42  ;;  %v6232_v23 = vsel %vm1300_vm11, %v6229_v44, 0 }
 0xd8a   : > { %6070 = vmatprep.mubr.bf16.mxu0 %v13401_v0  ;;  %v6357_v16 = vadd.f32 %v10320_v48, %v6288_v9  ;;  %v6298_v5 = vpack.c.bf16 %v6296_v47, %v6296_v47  ;;  %v6365_v49 = vmul.f32 %v10320_v48, %v13449_v28  ;;  %v5819_v44 = vsel %vm555_vm3, %v12149_v57, %v12204_v32 }
 0xd8b   : > { %v6289_v39 = vadd.f32 %v10314_v14, %v6220_v8  ;;  %v6368_v11 = vpack.c.bf16 %v6366_v50, %v6366_v50  ;;  %v10426_v8 = vld [vmem:[%s13294_s4] sm:$0xff]  ;;  %v5888_v50 = vsel %vm638_vm2, %v12156_v45, %v12206_v61 }
 0xd8c   : > { %v6301_v29 = vsel %vm1300_vm11, %v6298_v5, 0  ;;  %v6367_v59 = vpack.c.bf16 %v6365_v49, %v6365_v49  ;;  %v5958_v5 = vsel %vm720_vm4, %v12208_v21, %v12162_v6 }
 0xd8d   : > { %v6358_v36 = vadd.f32 %v10318_v37, %v6289_v39 }
 0xd8e   : > { %9994 = vmatmul.mubr.msk.bf16.vlgmr.msra.gmra.mxu1 %vm1296_vm13, %v11039_v19  ;;  %v6370_v10 = vsel %vm1300_vm11, %v6367_v59, 0 }
 0xd8f   : > { %10321 = vrcp.f32 %v6358_v36  ;;  %9996 = vmatmul.mubr.msk.bf16.vlgmr.msra.gmra.mxu0 %vm1296_vm13, %v11039_v19  ;;  %6114 = vmatpush1.bf16.msra.mxu1 %v6094_v13  ;;  %v5820_v13 = vsel %vm555_vm3, %v12204_v32, %v12149_v57  ;;  %v5957_v57 = vsel %vm720_vm4, %v12162_v6, %v12208_v21  ;;  %v6026_v6 = vsel %vm802_vm5, %v12166_v41, %v12210_v60 }
 0xd90   : > { %6183 = vmatpush1.bf16.msra.mxu0 %v6163_v20  ;;  %10001 = vmatprep.subr.msk.bf16.mxu1 %vm1300_vm11, %v6230_v15  ;;  %10323 = vrcp.f32 %v6357_v16  ;;  %v5889_v15 = vsel %vm638_vm2, %v12206_v61, %v12156_v45 }
 0xd91   : > { %10003 = vmatprep.subr.msk.bf16.mxu0 %vm1300_vm11, %v6299_v25  ;;  %6131 = vmatprep.mubr.bf16.mxu1 %v13401_v0 }
 0xd92   : > { %6200 = vmatprep.mubr.bf16.mxu0 %v13401_v0 }
 0xd96   : > { %9998 = vmatmul.mubr.msk.bf16.vlgmr.msra.gmra.mxu1 %vm1296_vm13, %v11039_v19 }
 0xd97   : > { %10000 = vmatmul.mubr.msk.bf16.vlgmr.msra.gmra.mxu0 %vm1296_vm13, %v11039_v19  ;;  %6252 = vmatpush1.bf16.msra.mxu1 %v6232_v23 }
 0xd98   : > { %6321 = vmatpush1.bf16.msra.mxu0 %v6301_v29  ;;  %10005 = vmatprep.subr.msk.bf16.mxu1 %vm1300_vm11, %v6368_v11 }
 0xd99   : > { %6269 = vmatprep.mubr.bf16.mxu1 %v13401_v0  ;;  %6338 = vmatprep.mubr.bf16.mxu0 %v13401_v0 }
 0xd9c   : > { %v10322_v30 = vpop.eup %10321 }
 0xd9d   : > { %10007 = vmatprep.subr.msk.mxu0 %vm2032_vm14, %v10322_v30  ;;  %v10324_v14 = vpop.eup %10323 }
 0xd9e   : > { %10002 = vmatmul.mubr.msk.bf16.vlgmr.msra.gmra.mxu1 %vm1296_vm13, %v11039_v19 }
 0xd9f   : > { %10004 = vmatmul.mubr.msk.bf16.vlgmr.msra.gmra.mxu0 %vm1296_vm13, %v11039_v19  ;;  %6390 = vmatpush1.bf16.msra.mxu1 %v6370_v10 }
 0xda0   : > { %10008 = vmatpush1.msk.msra.mxu0 %vm2032_vm14, %v10324_v14  ;;  %6407 = vmatprep.mubr.bf16.mxu1 %v13401_v0 }
 0xda1   : > { %6492 = vmatprep.mubr.f32.mxu0 %v13450_v26 }
 0xda6   : > { %10006 = vmatmul.mubr.msk.bf16.vlgmr.msra.gmra.mxu1 %vm1296_vm13, %v11039_v19 }
 0xda7   : > { %10009 = vmatmul.mubr.msk.f32.vlgmr.msra.gmra.mxu0 %vm1296_vm13, %v10426_v8  ;;  %6656 = vmatprep.mubr.bf16.mxu1 %v13401_v0 }
 0xda8   : > { %6541 = vmatprep.mubr.bf16.mxu0 %v13401_v0 }
 0xe46   : > { %v5865_v9 = vpop.f32.mrf.mxu1 }
 0xe47   : > { %v5934_v1 = vpop.f32.mrf.mxu0  ;;  %v5872_v20 = vmul.f32 %v5865_v9, %v5820_v13 }
 0xe48   : > { %v5867_v12 = vpop.f32.mrf.mxu1  ;;  %v5941_v25 = vmul.f32 %v5934_v1, %v5889_v15  ;;  %v6027_v1 = vsel %vm802_vm5, %v12210_v60, %v12166_v41  ;;  %v6225_v41 = vsel %vm1019_vm7, %v12174_v52, %v12214_v35 }
 0xe49   : > { %v5936_v39 = vpop.f32.mrf.mxu0  ;;  %v5873_v11 = vmul.f32 %v5867_v12, %v5819_v44 }
 0xe4a   : > { %v5869_v3 = vpop.f32.mrf.mxu1  ;;  %v5942_v49 = vmul.f32 %v5936_v39, %v5888_v50  ;;  %v5943_v30 = vadd.f32 %v5941_v25, %v5872_v20 }
 0xe4b   : > { %v5938_v31 = vpop.f32.mrf.mxu0 }
 0xe4c   : > { %v5870_v37 = vpop.f32.mrf.mxu1  ;;  %v5944_v61 = vadd.f32 %v5942_v49, %v5873_v11 }
 0xe4d   : > { %v5939_v48 = vpop.f32.mrf.mxu0 }
 0xe4e   : > { %v6003_v36 = vpop.f32.mrf.mxu1 }
 0xe4f   : > { %v6072_v16 = vpop.f32.mrf.mxu0  ;;  %v6010_v29 = vmul.f32 %v6003_v36, %v5958_v5  ;;  %v6157_v5 = vsel %vm937_vm6, %v12212_v56, %v12172_v2 }
 0xe50   : > { %v6005_v63 = vpop.f32.mrf.mxu1  ;;  %v6079_v39 = vmul.f32 %v6072_v16, %v6027_v1  ;;  %v13453_v1 = vld [vmem:[#allocation18_spill] sm:$0xff] }
 0xe51   : > { %v6074_v47 = vpop.f32.mrf.mxu0  ;;  %v6011_v10 = vmul.f32 %v6005_v63, %v5957_v57  ;;  %v6012_v8 = vadd.f32 %v6010_v29, %v5943_v30 }
 0xe52   : > { %v6007_v23 = vpop.f32.mrf.mxu1  ;;  %v6080_v36 = vmul.f32 %v6074_v47, %v6026_v6 }
 0xe53   : > { %v6076_v59 = vpop.f32.mrf.mxu0  ;;  %v6013_v3 = vadd.f32 %v6011_v10, %v5944_v61  ;;  %v6081_v48 = vadd.f32 %v6079_v39, %v6012_v8  ;;  %v6226_v23 = vsel %vm1019_vm7, %v12214_v35, %v12174_v52  ;;  %v13452_v35 = vld [vmem:[#allocation33_spill] sm:$0xff] }
 0xe54   : > { %v6008_v32 = vpop.f32.mrf.mxu1  ;;  %v6364_v6 = vsel %vm1181_vm9, %v13452_v35, %v13453_v1 }
 0xe55   : > { %v6077_v14 = vpop.f32.mrf.mxu0  ;;  %v6082_v20 = vadd.f32 %v6080_v36, %v6013_v3 }
 0xe56   : > { %v6133_v45 = vpop.f32.mrf.mxu1 }
 0xe57   : > { %v6202_v9 = vpop.f32.mrf.mxu0  ;;  %v6140_v31 = vmul.f32 %v6133_v45, %v11993_v27  ;;  %v6156_v27 = vsel %vm937_vm6, %v12172_v2, %v12212_v56  ;;  %v13451_v45 = vld [vmem:[#allocation17_spill] sm:$0xff] }
 0xe58   : > { %v6135_v12 = vpop.f32.mrf.mxu1  ;;  %v6209_v16 = vmul.f32 %v6202_v9, %v6156_v27  ;;  %v6294_v61 = vsel %vm1101_vm8, %v13451_v45, %v12216_v58  ;;  %v6295_v52 = vsel %vm1101_vm8, %v12216_v58, %v13451_v45 }
 0xe59   : > { %v6204_v37 = vpop.f32.mrf.mxu0  ;;  %v6141_v13 = vmul.f32 %v6135_v12, %v11998_v54  ;;  %v6142_v25 = vadd.f32 %v6140_v31, %v6081_v48  ;;  %v6363_v12 = vsel %vm1181_vm9, %v13453_v1, %v13452_v35 }
 0xe5a   : > { %v6137_v21 = vpop.f32.mrf.mxu1  ;;  %v6210_v29 = vmul.f32 %v6204_v37, %v6157_v5  ;;  %v13455_v5 = vld [vmem:[#allocation29_spill] sm:$0xff] }
 0xe5b   : > { %v6206_v15 = vpop.f32.mrf.mxu0  ;;  %v6143_v47 = vadd.f32 %v6141_v13, %v6082_v20  ;;  %v6211_v49 = vadd.f32 %v6209_v16, %v6142_v25 }
 0xe5c   : > { %v6138_v63 = vpop.f32.mrf.mxu1 }
 0xe5d   : > { %v6207_v44 = vpop.f32.mrf.mxu0  ;;  %v6212_v30 = vadd.f32 %v6210_v29, %v6143_v47  ;;  %v10427_v47 = vld [vmem:[%s13296_s6 + $0x4] sm:$0xf] }
 0xe5e   : > { %v6271_v60 = vpop.f32.mrf.mxu1 }
 0xe5f   : > { %v6278_v50 = vmul.f32 %v6271_v60, %v6225_v41  ;;  %v6340_v54 = vpop.f32.mrf.mxu0 }
 0xe60   : > { %v6273_v11 = vpop.f32.mrf.mxu1  ;;  %v6347_v56 = vmul.f32 %v6340_v54, %v6294_v61  ;;  %v13454_v54 = vld [vmem:[#allocation34_spill] sm:$0xff] }
 0xe61   : > { %v6279_v59 = vmul.f32 %v6273_v11, %v6226_v23  ;;  %v6342_v57 = vpop.f32.mrf.mxu0  ;;  %v6280_v10 = vadd.f32 %v6278_v50, %v6211_v49  ;;  %v3799_v23 = vsub.f32 %v13455_v5, %v13454_v54  ;;  %v13456_v11 = vld [vmem:[#allocation30_spill] sm:$0xff] }
 0xe62   : > { %v6275_v32 = vpop.f32.mrf.mxu1  ;;  %v6348_v31 = vmul.f32 %v6342_v57, %v6295_v52  ;;  %v3800_v49 = vsub.f32 %v13456_v11, %v13454_v54 }
 0xe63   : > { %v6344_v14 = vpop.f32.mrf.mxu0  ;;  %v6281_v8 = vadd.f32 %v6279_v59, %v6212_v30  ;;  %v6349_v3 = vadd.f32 %v6347_v56, %v6280_v10  ;;  %v10428_v59 = vld [vmem:[%s11569_s22 + $0x10] sm:$0xff]  ;;  %v10429_v32 = vld [vmem:[%s11569_s22 + $0x18] sm:$0xff]  ;;  %v3801_v45 = vmul.f32 %v3799_v23, %v3799_v23 }
 0xe64   : > { %v6276_v2 = vpop.f32.mrf.mxu1  ;;  %v3802_v61 = vmul.f32 %v3800_v49, %v3800_v49 }
 0xe65   : > { %v6345_v9 = vpop.f32.mrf.mxu0  ;;  %v6350_v36 = vadd.f32 %v6348_v31, %v6281_v8  ;;  %v6552_v8 = vpop.xlane.xlu0 %6551 }
 0xe66   : > { %v6409_v39 = vpop.f32.mrf.mxu1  ;;  %v3803_v56 = vadd.f32 %v3802_v61, %v3801_v45 }
 0xe67   : > { %v6416_v37 = vmul.f32 %v6409_v39, %v6363_v12  ;;  %v6494_v48 = vpop.f32.mrf.mxu0 }
 0xe68   : > { %v6411_v21 = vpop.f32.mrf.mxu1 }
 0xe69   : > { %v6417_v13 = vmul.f32 %v6411_v21, %v6364_v6  ;;  %v6418_v15 = vadd.f32 %v6416_v37, %v6349_v3  ;;  %v6496_v25 = vpop.f32.mrf.mxu0  ;;  %v3797_v1 = vpop.xlane.xlu0 %3796  ;;  %v13457_v37 = vld [vmem:[#allocation31_spill] sm:$0xff]  ;;  %v13458_v21 = vld [vmem:[#allocation32_spill] sm:$0xff] }
 0xe6a   : > { %v6413_v58 = vpop.f32.mrf.mxu1 }
 0xe6b   : > { %v6499_v63 = vmul.f32 %v6494_v48, %v6418_v15  ;;  %v6419_v20 = vadd.f32 %v6417_v13, %v6350_v36 }
 0xe6c   : > { %v6414_v44 = vpop.f32.mrf.mxu1 }
 0xe6d   : > { %v6501_v27 = vpack.c.bf16 %v6499_v63, %v6499_v63  ;;  %v6500_v41 = vmul.f32 %v6496_v25, %v6419_v20 }
 0xe6f   : > { %v6502_v60 = vpack.c.bf16 %v6500_v41, %v6500_v41  ;;  %v6504_v16 = vsel %vm491_vm0, %v6501_v27, 0  ;;  %v9908_v27 = vld [vmem:[%s13301_s11 + $0x8] sm:$0xff] }
 0xe71   : > { %10010 = vmatprep.subr.msk.bf16.mxu0 %vm491_vm0, %v6502_v60 }
 0xe72   : > { %6524 = vmatpush1.bf16.msra.mxu0 %v6504_v16 }
 0xe75   : > { %10011 = vmatmul.mubr.msk.bf16.vlgmr.msra.gmra.mxu0 %vm484_vm1, %v10427_v47  ;;  %v13459_v47 = vmov 1  }
 0xe76   : > { %6711 = vmatprep.mubr.bf16.mxu0 %v13401_v0 }
 0xf35   : > { %v6543_v50 = vpop.f32.mrf.mxu0 }
 0xf36   : > { %v12440_v57 = vadd.f32 %v10428_v59, %v6543_v50 }
 0xf37   : > { %v6545_v29 = vpop.f32.mrf.mxu0 }
 0xf38   : > { %v12443_v30 = vadd.f32 %v10429_v32, %v6545_v29 }
 0xf39   : > { %v6547_v10 = vpop.f32.mrf.mxu0 }
 0xf3a   : > { %v6554_v14 = vadd.f32 %v12443_v30, %v12440_v57 }
 0xf3b   : > { %v6548_v2 = vpop.f32.mrf.mxu0 }
 0xf3c   : > { %6555 = vadd.xlane.f32.xlu1 %v6554_v14  ;;  %v9917_v14 = vld [vmem:[%s13301_s11 + $0x10] sm:$0xff] }
 0xf40   : > { %3804 = vadd.xlane.f32.xlu1 %v3803_v56  ;;  %v13461_v56 = vld [vmem:[#allocation19_spill] sm:$0xff] }
 0xfc5   : > { %v6556_v9 = vpop.xlane.xlu1 %6555 }
 0xfc6   : > { %v6557_v52 = vadd.f32 %v6556_v9, %v6552_v8  ;;  %v13462_v9 = vld [vmem:[#allocation28_spill] sm:$0xff] }
 0xfc8   : > { %v6558_v35 = vmul.f32 0.001953125, %v6557_v52 }
 0xfc9   : > { %v3805_v12 = vpop.xlane.xlu1 %3804 }
 0xfca   : > { %v3806_v39 = vadd.f32 %v3805_v12, %v3797_v1  ;;  %v6567_v3 = vsub.f32 %v12440_v57, %v6558_v35  ;;  %v6568_v31 = vsub.f32 %v12443_v30, %v6558_v35  ;;  %v6559_v6 = vsub.f32 %v13457_v37, %v6558_v35 }
 0xfcb   : > { %v6560_v48 = vsub.f32 %v13458_v21, %v6558_v35 }
 0xfcc   : > { %v3807_v36 = vmul.f32 0.001953125, %v3806_v39  ;;  %v6569_v13 = vmul.f32 %v6567_v3, %v6567_v3  ;;  %v6570_v15 = vmul.f32 %v6568_v31, %v6568_v31  ;;  %v6561_v58 = vmul.f32 %v6559_v6, %v6559_v6  ;;  %v13464_v3 = vld [vmem:[#allocation24_spill] sm:$0xff]  ;;  %v13465_v31 = vld [vmem:[#allocation26_spill] sm:$0xff] }
 0xfcd   : > { %v6562_v63 = vmul.f32 %v6560_v48, %v6560_v48 }
 0xfce   : > { %v3808_v20 = vadd.f32 1e-05, %v3807_v36  ;;  %v6571_v25 = vadd.f32 %v6570_v15, %v6569_v13  ;;  %v10162_v15 = vld [vmem:[%s13295_s5 + $0x1c] sm:$0xff]  }
 0xfcf   : > { %v6563_v44 = vadd.f32 %v6562_v63, %v6561_v58 }
 0xfd0   : > { %10325 = vrsqrt.f32 %v3808_v20  ;;  %6572 = vadd.xlane.f32.xlu1 %v6571_v25 }
 0xfd1   : > { %6564 = vadd.xlane.f32.xlu0 %v6563_v44 }
 0xfdd   : > { %v10326_v41 = vpop.eup %10325 }
 0xfde   : > { %v3810_v60 = vmul.f32 %v10326_v41, %v9908_v27 }
 0xfe0   : > { %v3811_v16 = vmul.f32 %v3810_v60, %v13454_v54 }
 0xfe1   : > { %3819 = vperm.xlu1 %10149, %v3810_v60  }
 0xfe5   : > { %10150 = vset.pattern.permute.xlu1 %v13459_v47 }
 0xfe7   : > { %3813 = vrot.lane.b32.xlu0 %v3811_v16, %s10448_s16 }
0x1059   : > { %v6573_v50 = vpop.xlane.xlu1 %6572 }
0x105a   : > { %v6565_v23 = vpop.xlane.xlu0 %6564 }
0x105b   : > { %v6574_v49 = vadd.f32 %v6573_v50, %v6565_v23 }
0x105d   : > { %v6575_v29 = vmul.f32 0.001953125, %v6574_v49  ;;  %v12463_v2 = vpop.permute.xlu1 %3819 }
0x105e   : > { %v3814_v59 = vpop.permute.xlu0 %3813  ;;  %13460 = vst [vmem:[#allocation20_spill] sm:$0xff] %v12463_v2  ;;  %v3822_v8 = vmul.f32 %v12463_v2, %v13461_v56  ;;  %v3823_v52 = vmul.f32 %v12463_v2, %v13462_v9  ;;  %v13481_v2 = vld [vmem:[#allocation13_spill] sm:$0xff] }
0x105f   : > { %v6576_v32 = vadd.f32 1e-05, %v6575_v29  ;;  %v3816_v10 = vsub.f32 %v9908_v27, %v3814_v59 }
0x1061   : > { %10327 = vrsqrt.f32 %v6576_v32  ;;  %3826 = vperm.xlu1 %10150, %v3816_v10  }
0x1065   : > { %10151 = vset.pattern.permute.xlu1 %v13401_v0 }
0x106e   : > { %v10328_v54 = vpop.eup %10327 }
0x106f   : > { %v6578_v45 = vmul.f32 %v10328_v54, %v9917_v14 }
0x1071   : > { %6587 = vperm.xlu1 %10151, %v6578_v45   ;;  %v6579_v61 = vmul.f32 %v6578_v45, %v6558_v35 }
0x1073   : > { %6581 = vrot.lane.b32.xlu0 %v6579_v61, %s10448_s16 }
0x1075   : > { %10154 = vset.pattern.permute.xlu1 %v13459_v47  ;;  %v13475_v47 = vld [vmem:[#allocation9_spill] sm:$0xff] }
0x10dc   : > { %v12469_v1 = vpop.permute.xlu1 %3826 }
0x10dd   : > { %13463 = vst [vmem:[#allocation21_spill] sm:$0xff] %v12469_v1  ;;  %v3829_v12 = vadd.f32 %v12469_v1, %v3822_v8  ;;  %v3830_v39 = vadd.f32 %v12469_v1, %v3823_v52  ;;  %v13478_v1 = vld [vmem:[#allocation11_spill] sm:$0xff] }
0x10df   : > { %v3836_v35 = vadd.f32 %v3830_v39, %v13464_v3  ;;  %v3835_v6 = vadd.f32 %v3829_v12, %v13465_v31 }
0x10e1   : > { %v6614_v48 = vpack.c.bf16 %v3836_v35, %v3836_v35  ;;  %v6613_v36 = vpack.c.bf16 %v3835_v6, %v3835_v6 }
0x10e3   : > { %10020 = vmatprep.subr.msk.bf16.mxu0 %vm491_vm0, %v6614_v48  ;;  %v6674_v13 = vsel %vm491_vm0, %v6613_v36, 0 }
0x10e4   : > { %6694 = vmatpush1.bf16.msra.mxu0 %v6674_v13 }
0x10e5   : > { %v6582_v58 = vpop.permute.xlu0 %6581 }
0x10e6   : > { %v6584_v63 = vsub.f32 %v9917_v14, %v6582_v58 }
0x10e7   : > { %10021 = vmatmul.mubr.msk.bf16.vlgmr.msra.gmra.mxu0 %vm484_vm1, %v10162_v15 }
0x10e8   : > { %6594 = vperm.xlu0 %10152, %v6584_v63   ;;  %6829 = vmatprep.mubr.bf16.mxu0 %v13401_v0 }
0x10ec   : > { %10153 = vset.pattern.permute.xlu0 %v13401_v0  ;;  %v12483_v20 = vpop.permute.xlu1 %6587 }
0x10ed   : > { %v6590_v25 = vmul.f32 %v12483_v20, %v13457_v37  ;;  %v6591_v44 = vmul.f32 %v12483_v20, %v13458_v21  ;;  %v12506_v21 = vld [vmem:[%s13295_s5 + $0x18] sm:$0xf] }
0x1163   : > { %v12489_v27 = vpop.permute.xlu0 %6594 }
0x1164   : > { %v12492_v41 = vadd.f32 %v12489_v27, %v6590_v25  ;;  %v12495_v60 = vadd.f32 %v12489_v27, %v6591_v44 }
0x1166   : > { %13466 = vst [vmem:[#allocation22_spill] sm:$0xff] %v12492_v41  ;;  %13467 = vst [vmem:[#allocation23_spill] sm:$0xff] %v12495_v60  ;;  %v6612_v16 = vpack.c.bf16 %v12495_v60, %v12495_v60  ;;  %v6611_v50 = vpack.c.bf16 %v12492_v41, %v12492_v41 }
0x1168   : > { %10017 = vmatprep.subr.msk.bf16.mxu1 %vm491_vm0, %v6612_v16  ;;  %v6619_v37 = vsel %vm491_vm0, %v6611_v50, 0 }
0x1169   : > { %6639 = vmatpush1.bf16.msra.mxu1 %v6619_v37 }
0x116c   : > { %10018 = vmatmul.mubr.msk.bf16.vlgmr.msra.gmra.mxu1 %vm484_vm1, %v12506_v21 }
0x116d   : > { %6770 = vmatprep.mubr.bf16.mxu1 %v13401_v0 }
0x11a7   : > { %v12511_v23 = vpop.f32.mrf.mxu0 }
0x11a8   : > { %6781 = vrot.lane.b32.xlu0 %v12511_v23, %s10445_s13  ;;  %6722 = vrot.lane.b32.xlu1 %v12511_v23, %s10446_s14 }
0x11a9   : > { %v12517_v49 = vpop.f32.mrf.mxu0 }
0x11ab   : > { %v12543_v29 = vpop.f32.mrf.mxu0 }
0x11ac   : > { %6842 = vrot.lane.b32.xlu0 %v12511_v23, %s10447_s15  ;;  %6724 = vrot.lane.b32.xlu1 %v12517_v49, %s10446_s14 }
0x11ad   : > { %v12553_v59 = vpop.f32.mrf.mxu0 }
0x11b0   : > { %6903 = vrot.lane.b32.xlu0 %v12511_v23, %s10448_s16  ;;  %6783 = vrot.lane.b32.xlu1 %v12517_v49, %s10445_s13 }
0x11b4   : > { %7019 = vrot.lane.b32.xlu0 %v12511_v23, %s10449_s17  ;;  %6844 = vrot.lane.b32.xlu1 %v12517_v49, %s10447_s15 }
0x11b8   : > { %7080 = vrot.lane.b32.xlu0 %v12511_v23, %s10450_s18  ;;  %6905 = vrot.lane.b32.xlu1 %v12517_v49, %s10448_s16 }
0x11bc   : > { %7141 = vrot.lane.b32.xlu0 %v12511_v23, %s10451_s19  ;;  %7021 = vrot.lane.b32.xlu1 %v12517_v49, %s10449_s17 }
0x11c0   : > { %7202 = vrot.lane.b32.xlu0 %v12511_v23, %s10452_s20  ;;  %7082 = vrot.lane.b32.xlu1 %v12517_v49, %s10450_s18 }
0x11c4   : > { %7143 = vrot.lane.b32.xlu1 %v12517_v49, %s10451_s19  ;;  %7271 = vrot.lane.b32.xlu0 %v12543_v29, %s10446_s14 }
0x11c8   : > { %7204 = vrot.lane.b32.xlu1 %v12517_v49, %s10452_s20  ;;  %7340 = vrot.lane.b32.xlu0 %v12543_v29, %s10445_s13 }
0x11cc   : > { %7409 = vrot.lane.b32.xlu0 %v12543_v29, %s10447_s15  ;;  %7273 = vrot.lane.b32.xlu1 %v12553_v59, %s10446_s14 }
0x11d0   : > { %7478 = vrot.lane.b32.xlu0 %v12543_v29, %s10448_s16  ;;  %7342 = vrot.lane.b32.xlu1 %v12553_v59, %s10445_s13 }
0x11d4   : > { %7608 = vrot.lane.b32.xlu0 %v12543_v29, %s10449_s17  ;;  %7411 = vrot.lane.b32.xlu1 %v12553_v59, %s10447_s15 }
0x11d8   : > { %7677 = vrot.lane.b32.xlu0 %v12543_v29, %s10450_s18  ;;  %7480 = vrot.lane.b32.xlu1 %v12553_v59, %s10448_s16 }
0x11dc   : > { %7746 = vrot.lane.b32.xlu0 %v12543_v29, %s10451_s19  ;;  %7610 = vrot.lane.b32.xlu1 %v12553_v59, %s10449_s17 }
0x11e0   : > { %7815 = vrot.lane.b32.xlu0 %v12543_v29, %s10452_s20  ;;  %7679 = vrot.lane.b32.xlu1 %v12553_v59, %s10450_s18 }
0x11e4   : > { %7748 = vrot.lane.b32.xlu1 %v12553_v59, %s10451_s19 }
0x11e8   : > { %7817 = vrot.lane.b32.xlu1 %v12553_v59, %s10452_s20 }
0x121a   : > { %v6782_v32 = vpop.permute.xlu0 %6781  ;;  %v6723_v10 = vpop.permute.xlu1 %6722 }
0x121e   : > { %v6725_v14 = vpop.permute.xlu1 %6724  ;;  %v6843_v54 = vpop.permute.xlu0 %6842 }
0x121f   : > { %v6726_v52 = vsel %vm555_vm3, %v6723_v10, %v6725_v14  ;;  %v6727_v12 = vsel %vm555_vm3, %v6725_v14, %v6723_v10 }
0x1222   : > { %v6784_v45 = vpop.permute.xlu1 %6783  ;;  %v6904_v61 = vpop.permute.xlu0 %6903 }
0x1223   : > { %v6786_v39 = vsel %vm638_vm2, %v6784_v45, %v6782_v32  ;;  %v6785_v36 = vsel %vm638_vm2, %v6782_v32, %v6784_v45 }
0x1226   : > { %v6845_v56 = vpop.permute.xlu1 %6844  ;;  %v7020_v9 = vpop.permute.xlu0 %7019 }
0x1227   : > { %v6847_v35 = vsel %vm720_vm4, %v6845_v56, %v6843_v54  ;;  %v6846_v13 = vsel %vm720_vm4, %v6843_v54, %v6845_v56 }
0x122a   : > { %v6906_v8 = vpop.permute.xlu1 %6905 }
0x122b   : > { %v6908_v31 = vsel %vm802_vm5, %v6906_v8, %v6904_v61  ;;  %v6907_v15 = vsel %vm802_vm5, %v6904_v61, %v6906_v8  ;;  %v7081_v61 = vpop.permute.xlu0 %7080 }
0x122c   : > { %v12589_v3 = vpop.f32.mrf.mxu1 }
0x122d   : > { %v6728_v6 = vmul.f32 %v6727_v12, %v12589_v3  ;;  %v6787_v48 = vmul.f32 %v6786_v39, %v12589_v3  ;;  %v6848_v63 = vmul.f32 %v6847_v35, %v12589_v3  ;;  %v6909_v45 = vmul.f32 %v6908_v31, %v12589_v3 }
0x122e   : > { %v12603_v58 = vpop.f32.mrf.mxu1  ;;  %v7022_v25 = vpop.permute.xlu1 %7021 }
0x122f   : > { %v6729_v44 = vmul.f32 %v6726_v52, %v12603_v58  ;;  %v6788_v16 = vmul.f32 %v6785_v36, %v12603_v58  ;;  %v6730_v50 = vpack.c.bf16 %v6728_v6, %v6728_v6  ;;  %v6789_v37 = vpack.c.bf16 %v6787_v48, %v6787_v48 }
0x1230   : > { %v7024_v32 = vsel %vm937_vm6, %v7022_v25, %v7020_v9  ;;  %v6662_v10 = vpop.f32.mrf.mxu1  ;;  %v6849_v14 = vmul.f32 %v6846_v13, %v12603_v58  ;;  %v6910_v54 = vmul.f32 %v6907_v15, %v12603_v58  ;;  %v7023_v52 = vsel %vm937_vm6, %v7020_v9, %v7022_v25 }
0x1231   : > { %v6731_v56 = vpack.c.bf16 %v6729_v44, %v6729_v44  ;;  %v6790_v8 = vpack.c.bf16 %v6788_v16, %v6788_v16  ;;  %v7026_v12 = vmul.f32 %v7024_v32, %v12603_v58  ;;  %v6733_v35 = vsel %vm491_vm0, %v6730_v50, 0  ;;  %v7142_v16 = vpop.permute.xlu0 %7141 }
0x1232   : > { %v6663_v39 = vpop.f32.mrf.mxu1  ;;  %v7083_v6 = vpop.permute.xlu1 %7082  ;;  %v6792_v48 = vsel %vm491_vm0, %v6789_v37, 0  ;;  %v6851_v36 = vpack.c.bf16 %v6849_v14, %v6849_v14  ;;  %v6912_v31 = vpack.c.bf16 %v6910_v54, %v6910_v54  ;;  %v6850_v13 = vpack.c.bf16 %v6848_v63, %v6848_v63  ;;  %v10430_v63 = vld [vmem:[%s13293_s3] sm:$0x1] }
0x1233   : > { %10022 = vmatprep.subr.msk.bf16.mxu1 %vm491_vm0, %v6731_v56  ;;  %10024 = vmatprep.subr.msk.bf16.mxu0 %vm491_vm0, %v6790_v8  ;;  %v6911_v15 = vpack.c.bf16 %v6909_v45, %v6909_v45  ;;  %v6965_v9 = vmul.f32 %v12517_v49, %v12603_v58  ;;  %v7025_v25 = vmul.f32 %v7023_v52, %v12589_v3 }
0x1234   : > { %6753 = vmatpush1.bf16.msra.mxu1 %v6733_v35  ;;  %6812 = vmatpush1.bf16.msra.mxu0 %v6792_v48  ;;  %v6964_v44 = vmul.f32 %v12511_v23, %v12589_v3  ;;  %v7028_v50 = vpack.c.bf16 %v7026_v12, %v7026_v12  ;;  %v6853_v32 = vsel %vm491_vm0, %v6850_v13, 0  ;;  %v7085_v14 = vsel %vm1019_vm7, %v7083_v6, %v7081_v61 }
0x1235   : > { %10026 = vmatprep.subr.msk.bf16.mxu1 %vm491_vm0, %v6851_v36  ;;  %10028 = vmatprep.subr.msk.bf16.mxu0 %vm491_vm0, %v6912_v31  ;;  %v6914_v49 = vsel %vm491_vm0, %v6911_v15, 0  ;;  %v6967_v10 = vpack.c.bf16 %v6965_v9, %v6965_v9  ;;  %v7027_v54 = vpack.c.bf16 %v7025_v25, %v7025_v25  ;;  %v7084_v45 = vsel %vm1019_vm7, %v7081_v61, %v7083_v6  ;;  %v7203_v36 = vpop.permute.xlu0 %7202 }
0x1236   : > { %v7144_v37 = vpop.permute.xlu1 %7143  ;;  %v7087_v56 = vmul.f32 %v7085_v14, %v12603_v58  ;;  %v6966_v52 = vpack.c.bf16 %v6964_v44, %v6964_v44  ;;  %v7086_v35 = vmul.f32 %v7084_v45, %v12589_v3 }
0x1237   : > { %10023 = vmatmul.mubr.msk.bf16.vlgmr.msra.gmra.mxu1 %vm484_vm1, %v10430_v63  ;;  %10025 = vmatmul.mubr.msk.bf16.vlgmr.msra.gmra.mxu0 %vm484_vm1, %v10430_v63  ;;  %v7146_v23 = vsel %vm1101_vm8, %v7144_v37, %v7142_v16  ;;  %v7145_v12 = vsel %vm1101_vm8, %v7142_v16, %v7144_v37  ;;  %v7030_v48 = vsel %vm491_vm0, %v7027_v54, 0 }
0x1238   : > { %6873 = vmatpush1.bf16.msra.mxu1 %v6853_v32  ;;  %6934 = vmatpush1.bf16.msra.mxu0 %v6914_v49  ;;  %v7148_v8 = vmul.f32 %v7146_v23, %v12603_v58  ;;  %v7089_v31 = vpack.c.bf16 %v7087_v56, %v7087_v56  ;;  %v7147_v13 = vmul.f32 %v7145_v12, %v12589_v3  ;;  %v6969_v61 = vsel %vm491_vm0, %v6966_v52, 0 }
0x1239   : > { %10030 = vmatprep.subr.msk.bf16.mxu1 %vm491_vm0, %v6967_v10  ;;  %10032 = vmatprep.subr.msk.bf16.mxu0 %vm491_vm0, %v7028_v50  ;;  %v7088_v9 = vpack.c.bf16 %v7086_v35, %v7086_v35 }
0x123a   : > { %6890 = vmatprep.mubr.bf16.mxu1 %v13401_v0  ;;  %6951 = vmatprep.mubr.bf16.mxu0 %v13401_v0  ;;  %v7205_v39 = vpop.permute.xlu1 %7204  ;;  %v7150_v15 = vpack.c.bf16 %v7148_v8, %v7148_v8  ;;  %v7149_v25 = vpack.c.bf16 %v7147_v13, %v7147_v13  ;;  %v13469_v13 = vld [vmem:[#allocation2_spill] sm:$0xff] }
0x123b   : > { %v7207_v6 = vsel %vm1181_vm9, %v7205_v39, %v7203_v36  ;;  %v7206_v16 = vsel %vm1181_vm9, %v7203_v36, %v7205_v39  ;;  %v7091_v32 = vsel %vm491_vm0, %v7088_v9, 0  ;;  %v13468_v36 = vld [vmem:[#allocation3_spill] sm:$0xff] }
0x123c   : > { %v7209_v44 = vmul.f32 %v7207_v6, %v12603_v58  ;;  %v7208_v50 = vmul.f32 %v7206_v16, %v12589_v3  ;;  %v7152_v49 = vsel %vm491_vm0, %v7149_v25, 0  ;;  %v13470_v6 = vld [vmem:[#allocation5_spill] sm:$0xff] }
0x123e   : > { %v7211_v37 = vpack.c.bf16 %v7209_v44, %v7209_v44  ;;  %v7210_v58 = vpack.c.bf16 %v7208_v50, %v7208_v50  ;;  %v13471_v50 = vld [vmem:[#allocation6_spill] sm:$0xff] }
0x123f   : > { %10027 = vmatmul.mubr.msk.bf16.vlgmr.msra.gmra.mxu1 %vm484_vm1, %v10430_v63  ;;  %10029 = vmatmul.mubr.msk.bf16.vlgmr.msra.gmra.mxu0 %vm484_vm1, %v10430_v63 }
0x1240   : > { %6989 = vmatpush1.bf16.msra.mxu1 %v6969_v61  ;;  %7050 = vmatpush1.bf16.msra.mxu0 %v7030_v48  ;;  %v7213_v3 = vsel %vm491_vm0, %v7210_v58, 0 }
0x1241   : > { %10034 = vmatprep.subr.msk.bf16.mxu1 %vm491_vm0, %v7089_v31  ;;  %10036 = vmatprep.subr.msk.bf16.mxu0 %vm491_vm0, %v7150_v15 }
0x1242   : > { %7006 = vmatprep.mubr.bf16.mxu1 %v13401_v0  ;;  %7067 = vmatprep.mubr.bf16.mxu0 %v13401_v0 }
0x1247   : > { %10031 = vmatmul.mubr.msk.bf16.vlgmr.msra.gmra.mxu1 %vm484_vm1, %v10430_v63  ;;  %10033 = vmatmul.mubr.msk.bf16.vlgmr.msra.gmra.mxu0 %vm484_vm1, %v10430_v63 }
0x1248   : > { %7111 = vmatpush1.bf16.msra.mxu1 %v7091_v32  ;;  %7172 = vmatpush1.bf16.msra.mxu0 %v7152_v49  ;;  %v13472_v32 = vld [vmem:[#allocation4_spill] sm:$0xff] }
0x1249   : > { %10038 = vmatprep.subr.msk.bf16.mxu1 %vm491_vm0, %v7211_v37  ;;  %7128 = vmatprep.mubr.bf16.mxu1 %v13401_v0 }
0x124a   : > { %7189 = vmatprep.mubr.bf16.mxu0 %v13401_v0 }
0x124f   : > { %10035 = vmatmul.mubr.msk.bf16.vlgmr.msra.gmra.mxu1 %vm484_vm1, %v10430_v63  ;;  %10037 = vmatmul.mubr.msk.bf16.vlgmr.msra.gmra.mxu0 %vm484_vm1, %v10430_v63 }
0x1250   : > { %7233 = vmatpush1.bf16.msra.mxu1 %v7213_v3  ;;  %7250 = vmatprep.mubr.bf16.mxu1 %v13401_v0 }
0x1251   : > { %7319 = vmatprep.mubr.bf16.mxu0 %v13401_v0 }
0x1257   : > { %10039 = vmatmul.mubr.msk.bf16.vlgmr.msra.gmra.mxu1 %vm484_vm1, %v10430_v63 }
0x1258   : > { %7388 = vmatprep.mubr.bf16.mxu1 %v13401_v0 }
0x12f7   : > { %v6772_v10 = vpop.f32.mrf.mxu1  ;;  %v6831_v14 = vpop.f32.mrf.mxu0 }
0x12f8   : > { %v6779_v31 = vmul.f32 %v6772_v10, %v13468_v36  ;;  %v6838_v15 = vmul.f32 %v6831_v14, %v13469_v13  ;;  %v13477_v13 = vld [vmem:[#allocation12_spill] sm:$0xff] }
0x12f9   : > { %v6774_v23 = vpop.f32.mrf.mxu1  ;;  %v6833_v54 = vpop.f32.mrf.mxu0 }
0x12fa   : > { %v6840_v16 = vmax.f32 %v6779_v31, %v6838_v15  ;;  %v12682_v37 = vmul.f32 %v6774_v23, %v13471_v50  ;;  %v12685_v49 = vmul.f32 %v6833_v54, %v13472_v32 }
0x12fb   : > { %v6776_v45 = vpop.f32.mrf.mxu1  ;;  %v6835_v56 = vpop.f32.mrf.mxu0 }
0x12fc   : > { %v13473_v56 = vld [vmem:[#allocation7_spill] sm:$0xff] }
0x12fd   : > { %v6777_v8 = vpop.f32.mrf.mxu1  ;;  %v6836_v52 = vpop.f32.mrf.mxu0 }
0x12fe   : > { %v13474_v8 = vld [vmem:[#allocation8_spill] sm:$0xff] }
0x12ff   : > { %v6892_v12 = vpop.f32.mrf.mxu1  ;;  %v6953_v39 = vpop.f32.mrf.mxu0 }
0x1300   : > { %v6899_v9 = vmul.f32 %v6892_v12, %v13470_v6  ;;  %v6960_v10 = vmul.f32 %v6953_v39, %v13473_v56  ;;  %v13476_v39 = vld [vmem:[#allocation10_spill] sm:$0xff] }
0x1301   : > { %v6894_v35 = vpop.f32.mrf.mxu1  ;;  %v6955_v48 = vpop.f32.mrf.mxu0 }
0x1302   : > { %v6901_v45 = vmax.f32 %v6840_v16, %v6899_v9  ;;  %v12689_v14 = vmul.f32 %v6894_v35, %v13474_v8  ;;  %v6961_v50 = vmul.f32 %v6955_v48, %v13475_v47 }
0x1303   : > { %v6896_v61 = vpop.f32.mrf.mxu1  ;;  %v6957_v63 = vpop.f32.mrf.mxu0 }
0x1304   : > { %v6841_v63 = vmax.f32 %v12682_v37, %v12685_v49 }
0x1305   : > { %v6897_v25 = vpop.f32.mrf.mxu1  ;;  %v6958_v44 = vpop.f32.mrf.mxu0 }
0x1306   : > { %v6962_v44 = vmax.f32 %v6901_v45, %v6960_v10  ;;  %v6902_v54 = vmax.f32 %v6841_v63, %v12689_v14 }
0x1307   : > { %v7008_v58 = vpop.f32.mrf.mxu1  ;;  %v7069_v3 = vpop.f32.mrf.mxu0 }
0x1308   : > { %v7015_v12 = vmul.f32 0.5, %v7008_v58  ;;  %v7076_v56 = vmul.f32 %v7069_v3, %v13476_v39  ;;  %v6963_v41 = vmax.f32 %v6902_v54, %v6961_v50  ;;  %v13480_v3 = vld [vmem:[#allocation15_spill] sm:$0xff] }
0x1309   : > { %v7010_v52 = vpop.f32.mrf.mxu1  ;;  %v7071_v61 = vpop.f32.mrf.mxu0 }
0x130a   : > { %v7017_v6 = vmax.f32 %v6962_v44, %v7015_v12  ;;  %v7016_v35 = vmul.f32 0.5, %v7010_v52  ;;  %v7077_v63 = vmul.f32 %v7071_v61, %v13478_v1  ;;  %v13479_v44 = vld [vmem:[#allocation14_spill] sm:$0xff]  ;;  %v13482_v61 = vld [vmem:[#allocation16_spill] sm:$0xff] }
0x130b   : > { %v7012_v25 = vpop.f32.mrf.mxu1  ;;  %v7073_v23 = vpop.f32.mrf.mxu0 }
0x130c   : > { %v7078_v23 = vmax.f32 %v7017_v6, %v7076_v56  ;;  %v7018_v45 = vmax.f32 %v6963_v41, %v7016_v35 }
0x130d   : > { %v7013_v32 = vpop.f32.mrf.mxu1  ;;  %v7074_v16 = vpop.f32.mrf.mxu0 }
0x130f   : > { %v7130_v8 = vpop.f32.mrf.mxu1  ;;  %v7191_v36 = vpop.f32.mrf.mxu0 }
0x1310   : > { %v12697_v58 = vmul.f32 %v7130_v8, %v13477_v13  ;;  %v12702_v16 = vmul.f32 %v7191_v36, %v13479_v44  ;;  %v7079_v8 = vmax.f32 %v7018_v45, %v7077_v63 }
0x1311   : > { %v7132_v60 = vpop.f32.mrf.mxu1  ;;  %v7193_v25 = vpop.f32.mrf.mxu0 }
0x1312   : > { %v7139_v32 = vmax.f32 %v7078_v23, %v12697_v58  ;;  %v7138_v52 = vmul.f32 %v7132_v60, %v13480_v3 }
0x1313   : > { %v7134_v11 = vpop.f32.mrf.mxu1  ;;  %v7195_v48 = vpop.f32.mrf.mxu0 }
0x1314   : > { %v7200_v54 = vmax.f32 %v7139_v32, %v12702_v16  ;;  %v7140_v41 = vmax.f32 %v7079_v8, %v7138_v52  ;;  %v7199_v11 = vmul.f32 %v7193_v25, %v13482_v61 }
0x1315   : > { %v7135_v47 = vpop.f32.mrf.mxu1  ;;  %v7196_v39 = vpop.f32.mrf.mxu0 }
0x1316   : > { %v7201_v45 = vmax.f32 %v7140_v41, %v7199_v11 }
0x1317   : > { %v7252_v13 = vpop.f32.mrf.mxu1 }
0x1318   : > { %v12707_v6 = vmul.f32 %v7252_v13, %v13481_v2 }
0x1319   : > { %v7254_v48 = vpop.f32.mrf.mxu1 }
0x131a   : > { %v12711_v23 = vmax.f32 %v7200_v54, %v12707_v6  ;;  %v7260_v36 = vmul.f32 %v7254_v48, %v10928_v55 }
0x131b   : > { %v7256_v1 = vpop.f32.mrf.mxu1 }
0x131c   : > { %v7263_v47 = vsub.f32 %v6779_v31, %v12711_v23  ;;  %v7332_v60 = vsub.f32 %v6838_v15, %v12711_v23  ;;  %v7401_v39 = vsub.f32 %v6899_v9, %v12711_v23  ;;  %v7470_v13 = vsub.f32 %v6960_v10, %v12711_v23 }
0x131d   : > { %v7257_v32 = vpop.f32.mrf.mxu1  ;;  %v7262_v61 = vmax.f32 %v7201_v45, %v7260_v36  ;;  %v7539_v54 = vsub.f32 %v7015_v12, %v12711_v23  ;;  %v7600_v10 = vsub.f32 %v7076_v56, %v12711_v23 }
0x131e   : > { %v7265_v8 = vmul.f32 1.442695, %v7263_v47  ;;  %v7334_v2 = vmul.f32 1.442695, %v7332_v60  ;;  %v7403_v25 = vmul.f32 1.442695, %v7401_v39 }
0x131f   : > { %v7472_v48 = vmul.f32 1.442695, %v7470_v13  ;;  %v7264_v1 = vsub.f32 %v12682_v37, %v7262_v61  ;;  %v7333_v31 = vsub.f32 %v12685_v49, %v7262_v61  ;;  %v7402_v15 = vsub.f32 %v12689_v14, %v7262_v61 }
0x1320   : > { %10329 = vpow2.f32 %v7265_v8  ;;  %v7541_v9 = vmul.f32 1.442695, %v7539_v54  ;;  %v7471_v41 = vsub.f32 %v6961_v50, %v7262_v61  ;;  %v7601_v39 = vsub.f32 %v7077_v63, %v7262_v61 }
0x1321   : > { %10331 = vpow2.f32 %v7334_v2  ;;  %v7267_v47 = vmul.f32 1.442695, %v7264_v1  ;;  %v7336_v60 = vmul.f32 1.442695, %v7333_v31  ;;  %v7405_v45 = vmul.f32 1.442695, %v7402_v15 }
0x1322   : > { %10333 = vpow2.f32 %v7403_v25  ;;  %v7540_v32 = vsub.f32 %v7016_v35, %v7262_v61  ;;  %v7474_v2 = vmul.f32 1.442695, %v7471_v41  ;;  %v7602_v12 = vmul.f32 1.442695, %v7600_v10 }
0x1323   : > { %10335 = vpow2.f32 %v7472_v48  ;;  %v7669_v37 = vsub.f32 %v12697_v58, %v12711_v23  ;;  %v7604_v49 = vmul.f32 1.442695, %v7601_v39  ;;  %v7670_v50 = vsub.f32 %v7138_v52, %v7262_v61 }
0x1324   : > { %10337 = vpow2.f32 %v7541_v9  ;;  %v7543_v14 = vmul.f32 1.442695, %v7540_v32  ;;  %v7739_v13 = vsub.f32 %v7199_v11, %v7262_v61  ;;  %v7738_v35 = vsub.f32 %v12702_v16, %v12711_v23 }
0x1325   : > { %10339 = vpow2.f32 %v7267_v47  ;;  %v7671_v8 = vmul.f32 1.442695, %v7669_v37  ;;  %v7673_v54 = vmul.f32 1.442695, %v7670_v50  ;;  %v7808_v1 = vsub.f32 %v7260_v36, %v7262_v61 }
0x1326   : > { %10341 = vpow2.f32 %v7336_v60  ;;  %v7742_v48 = vmul.f32 1.442695, %v7739_v13  ;;  %v7740_v15 = vmul.f32 1.442695, %v7738_v35  ;;  %v7807_v52 = vsub.f32 %v12707_v6, %v12711_v23 }
0x1327   : > { %10343 = vpow2.f32 %v7405_v45  ;;  %v7811_v16 = vmul.f32 1.442695, %v7808_v1 }
0x1328   : > { %10345 = vpow2.f32 %v7474_v2  ;;  %v7809_v60 = vmul.f32 1.442695, %v7807_v52 }
0x1329   : > { %10347 = vpow2.f32 %v7602_v12 }
0x132a   : > { %10349 = vpow2.f32 %v7604_v49 }
0x132b   : > { %10351 = vpow2.f32 %v7543_v14 }
0x132c   : > { %10353 = vpow2.f32 %v7671_v8 }
0x132d   : > { %v10330_v56 = vpop.eup %10329  ;;  %10355 = vpow2.f32 %v7673_v54 }
0x132e   : > { %v10332_v63 = vpop.eup %10331  ;;  %v7277_v9 = vmul.f32 %v10330_v56, %v10989_v51  ;;  %10357 = vpow2.f32 %v7742_v48 }
0x132f   : > { %v7338_v25 = vadd.f32 %v10332_v63, %v10330_v56  ;;  %v10334_v58 = vpop.eup %10333  ;;  %v7346_v10 = vmul.f32 %v10332_v63, %v10992_v34  ;;  %10359 = vpow2.f32 %v7740_v15 }
0x1330   : > { %v10336_v11 = vpop.eup %10335  ;;  %v7279_v36 = vpack.c.bf16 %v7277_v9, %v7277_v9  ;;  %v7415_v23 = vmul.f32 %v10334_v58, %v10999_v38  ;;  %10361 = vpow2.f32 %v7811_v16 }
0x1331   : > { %v7407_v31 = vadd.f32 %v10334_v58, %v7338_v25  ;;  %v12731_v47 = vpop.eup %10337  ;;  %v7484_v32 = vmul.f32 %v10336_v11, %v11004_v46  ;;  %v7348_v49 = vpack.c.bf16 %v7346_v10, %v7346_v10  ;;  %10363 = vpow2.f32 %v7809_v60 }
0x1332   : > { %v10340_v61 = vpop.eup %10339  ;;  %v7282_v63 = vsel %vm1300_vm11, %v7279_v36, 0  ;;  %v7417_v1 = vpack.c.bf16 %v7415_v23, %v7415_v23 }
0x1333   : > { %v7476_v41 = vadd.f32 %v10336_v11, %v7407_v31  ;;  %v10342_v39 = vpop.eup %10341  ;;  %v7278_v6 = vmul.f32 %v10340_v61, %v11012_v18  ;;  %v7486_v31 = vpack.c.bf16 %v7484_v32, %v7484_v32  ;;  %v7351_v11 = vsel %vm1300_vm11, %v7348_v49, 0 }
0x1334   : > { %v10344_v2 = vpop.eup %10343  ;;  %v7339_v12 = vadd.f32 %v10342_v39, %v10340_v61  ;;  %v7347_v37 = vmul.f32 %v10342_v39, %v11015_v22  ;;  %v7420_v61 = vsel %vm1300_vm11, %v7417_v1, 0 }
0x1335   : > { %v7545_v45 = vadd.f32 %v12731_v47, %v7476_v41  ;;  %v10346_v14 = vpop.eup %10345  ;;  %v7280_v50 = vpack.c.bf16 %v7278_v6, %v7278_v6  ;;  %v7416_v13 = vmul.f32 %v10344_v2, %v11019_v24  ;;  %v7489_v6 = vsel %vm1300_vm11, %v7486_v31, 0 }
0x1336   : > { %v10348_v56 = vpop.eup %10347  ;;  %v7408_v8 = vadd.f32 %v10344_v2, %v7339_v12  ;;  %v7349_v35 = vpack.c.bf16 %v7347_v37, %v7347_v37  ;;  %v7485_v25 = vmul.f32 %v10346_v14, %v11022_v7 }
0x1337   : > { %v10350_v54 = vpop.eup %10349  ;;  %v7606_v58 = vadd.f32 %v10348_v56, %v7545_v45  ;;  %10040 = vmatprep.subr.msk.bf16.mxu0 %vm1300_vm11, %v7280_v50  ;;  %v7418_v48 = vpack.c.bf16 %v7416_v13, %v7416_v13  ;;  %v7614_v32 = vmul.f32 %v10348_v56, %v13421_v40 }
0x1338   : > { %v10352_v15 = vpop.eup %10351  ;;  %v7477_v52 = vadd.f32 %v10346_v14, %v7408_v8  ;;  %10042 = vmatprep.subr.msk.bf16.mxu1 %vm1300_vm11, %v7349_v35  ;;  %7302 = vmatpush1.bf16.msra.mxu0 %v7282_v63  ;;  %v7487_v9 = vpack.c.bf16 %v7485_v25, %v7485_v25  ;;  %v7615_v41 = vmul.f32 %v10350_v54, %v11033_v62 }
0x1339   : > { %7371 = vmatpush1.bf16.msra.mxu1 %v7351_v11  ;;  %10044 = vmatprep.subr.msk.bf16.mxu0 %vm1300_vm11, %v7418_v48  ;;  %v10354_v16 = vpop.eup %10353  ;;  %v7548_v36 = vpack.c.bf16 %v10352_v15, %v10352_v15  ;;  %v7547_v14 = vpack.c.bf16 %v12731_v47, %v12731_v47  ;;  %v7616_v56 = vpack.c.bf16 %v7614_v32, %v7614_v32 }
0x133a   : > { %v7546_v10 = vadd.f32 %v10352_v15, %v7477_v52  ;;  %10046 = vmatprep.subr.msk.bf16.mxu1 %vm1300_vm11, %v7487_v9  ;;  %v7675_v60 = vadd.f32 %v10354_v16, %v7606_v58  ;;  %v10356_v39 = vpop.eup %10355  ;;  %v7617_v23 = vpack.c.bf16 %v7615_v41, %v7615_v41  ;;  %v7683_v1 = vmul.f32 %v10354_v16, %v13446_v4 }
0x133b   : > { %10041 = vmatmul.mubr.msk.bf16.vlgmr.msra.gmra.mxu0 %vm1296_vm13, %v11039_v19  ;;  %v10358_v2 = vpop.eup %10357  ;;  %v7684_v50 = vmul.f32 %v10356_v39, %v13422_v43  ;;  %v7550_v58 = vsel %vm1300_vm11, %v7547_v14, 0  ;;  %v7619_v47 = vsel %vm1300_vm11, %v7616_v56, 0 }
0x133c   : > { %v7607_v45 = vadd.f32 %v10350_v54, %v7546_v10  ;;  %10043 = vmatmul.mubr.msk.bf16.vlgmr.msra.gmra.mxu1 %vm1296_vm13, %v11039_v19  ;;  %7440 = vmatpush1.bf16.msra.mxu0 %v7420_v61  ;;  %v10360_v12 = vpop.eup %10359  ;;  %v7753_v8 = vmul.f32 %v10358_v2, %v13423_v53  ;;  %v7685_v52 = vpack.c.bf16 %v7683_v1, %v7683_v1 }
0x133d   : > { %7509 = vmatpush1.bf16.msra.mxu1 %v7489_v6  ;;  %10048 = vmatprep.subr.msk.bf16.mxu0 %vm1300_vm11, %v7548_v36  ;;  %v7744_v49 = vadd.f32 %v10360_v12, %v7675_v60  ;;  %v10362_v35 = vpop.eup %10361  ;;  %v7686_v48 = vpack.c.bf16 %v7684_v50, %v7684_v50  ;;  %v7752_v15 = vmul.f32 %v10360_v12, %v13447_v33  ;;  %v7274_v12 = vpop.permute.xlu1 %7273 }
0x133e   : > { %v7676_v37 = vadd.f32 %v10356_v39, %v7607_v45  ;;  %10050 = vmatprep.subr.msk.bf16.mxu1 %vm1300_vm11, %v7617_v23  ;;  %7457 = vmatprep.mubr.bf16.mxu0 %v13401_v0  ;;  %v10364_v63 = vpop.eup %10363  ;;  %v7755_v31 = vpack.c.bf16 %v7753_v8, %v7753_v8  ;;  %v7822_v11 = vmul.f32 %v10362_v35, %v13448_v42  ;;  %v7688_v41 = vsel %vm1300_vm11, %v7685_v52, 0 }
0x133f   : > { %7526 = vmatprep.mubr.bf16.mxu1 %v13401_v0  ;;  %v7813_v54 = vadd.f32 %v10364_v63, %v7744_v49  ;;  %v7754_v9 = vpack.c.bf16 %v7752_v15, %v7752_v15  ;;  %v7821_v10 = vmul.f32 %v10364_v63, %v13449_v28  ;;  %v6600_v61 = vmul.f32 %v12483_v20, %v12443_v30 }
0x1340   : > { %v7745_v13 = vadd.f32 %v10358_v2, %v7676_v37  ;;  %v7824_v16 = vpack.c.bf16 %v7822_v11, %v7822_v11  ;;  %v6599_v6 = vmul.f32 %v12483_v20, %v12440_v57  ;;  %v7272_v37 = vpop.permute.xlu0 %7271 }
0x1341   : > { %v7757_v60 = vsel %vm1300_vm11, %v7754_v9, 0  ;;  %v12788_v36 = vadd.f32 %v6600_v61, %v12489_v27  ;;  %v7823_v39 = vpack.c.bf16 %v7821_v10, %v7821_v10  ;;  %v7343_v49 = vpop.permute.xlu1 %7342  ;;  %v7276_v15 = vsel %vm555_vm3, %v7274_v12, %v7272_v37 }
0x1342   : > { %v7814_v25 = vadd.f32 %v10362_v35, %v7745_v13  ;;  %v12794_v23 = vadd.f32 %v6599_v6, %v12489_v27  ;;  %v10431_v27 = vld [vmem:[%s13294_s4] sm:$0xff] }
0x1343   : > { %10045 = vmatmul.mubr.msk.bf16.vlgmr.msra.gmra.mxu0 %vm1296_vm13, %v11039_v19  ;;  %v7826_v30 = vsel %vm1300_vm11, %v7823_v39, 0  ;;  %v8010_v32 = vpack.c.bf16 %v12788_v36, %v12788_v36 }
0x1344   : > { %10365 = vrcp.f32 %v7814_v25  ;;  %10047 = vmatmul.mubr.msk.bf16.vlgmr.msra.gmra.mxu1 %vm1296_vm13, %v11039_v19  ;;  %7570 = vmatpush1.bf16.msra.mxu0 %v7550_v58  ;;  %v8009_v57 = vpack.c.bf16 %v12794_v23, %v12794_v23  ;;  %v7341_v14 = vpop.permute.xlu0 %7340 }
0x1345   : > { %7639 = vmatpush1.bf16.msra.mxu1 %v7619_v47  ;;  %10052 = vmatprep.subr.msk.bf16.mxu0 %vm1300_vm11, %v7686_v48  ;;  %10367 = vrcp.f32 %v7813_v54  ;;  %v7412_v50 = vpop.permute.xlu1 %7411  ;;  %v7345_v52 = vsel %vm638_vm2, %v7343_v49, %v7341_v14  ;;  %v7344_v61 = vsel %vm638_vm2, %v7341_v14, %v7343_v49 }
0x1346   : > { %10054 = vmatprep.subr.msk.bf16.mxu1 %vm1300_vm11, %v7755_v31  ;;  %7587 = vmatprep.mubr.bf16.mxu0 %v13401_v0  ;;  %v8014_v20 = vsel %vm491_vm0, %v8009_v57, 0 }
0x1347   : > { %7656 = vmatprep.mubr.bf16.mxu1 %v13401_v0 }
0x1348   : > { %v7410_v56 = vpop.permute.xlu0 %7409 }
0x1349   : > { %v7481_v54 = vpop.permute.xlu1 %7480  ;;  %v7414_v39 = vsel %vm720_vm4, %v7412_v50, %v7410_v56 }
0x134b   : > { %10049 = vmatmul.mubr.msk.bf16.vlgmr.msra.gmra.mxu0 %vm1296_vm13, %v11039_v19 }
0x134c   : > { %10051 = vmatmul.mubr.msk.bf16.vlgmr.msra.gmra.mxu1 %vm1296_vm13, %v11039_v19  ;;  %7708 = vmatpush1.bf16.msra.mxu0 %v7688_v41  ;;  %v7479_v1 = vpop.permute.xlu0 %7478 }
0x134d   : > { %7777 = vmatpush1.bf16.msra.mxu1 %v7757_v60  ;;  %10056 = vmatprep.subr.msk.bf16.mxu0 %vm1300_vm11, %v7824_v16  ;;  %v7611_v9 = vpop.permute.xlu1 %7610  ;;  %v7275_v60 = vsel %vm555_vm3, %v7272_v37, %v7274_v12 }
0x134e   : > { %7725 = vmatprep.mubr.bf16.mxu0 %v13401_v0  ;;  %7794 = vmatprep.mubr.bf16.mxu1 %v13401_v0 }
0x1350   : > { %v7609_v6 = vpop.permute.xlu0 %7608 }
0x1351   : > { %v10366_v45 = vpop.eup %10365  ;;  %v7680_v37 = vpop.permute.xlu1 %7679 }
0x1352   : > { %10058 = vmatprep.subr.msk.mxu1 %vm2032_vm14, %v10366_v45  ;;  %v10368_v2 = vpop.eup %10367 }
0x1353   : > { %10053 = vmatmul.mubr.msk.bf16.vlgmr.msra.gmra.mxu0 %vm1296_vm13, %v11039_v19 }
0x1354   : > { %10055 = vmatmul.mubr.msk.bf16.vlgmr.msra.gmra.mxu1 %vm1296_vm13, %v11039_v19  ;;  %7846 = vmatpush1.bf16.msra.mxu0 %v7826_v30 }
0x1355   : > { %10059 = vmatpush1.msk.msra.mxu1 %vm2032_vm14, %v10368_v2  ;;  %10063 = vmatprep.subr.msk.bf16.mxu0 %vm491_vm0, %v8010_v32 }
0x1356   : > { %7863 = vmatprep.mubr.bf16.mxu0 %v13401_v0  ;;  %7948 = vmatprep.mubr.f32.mxu1 %v13450_v26 }
0x135b   : > { %10057 = vmatmul.mubr.msk.bf16.vlgmr.msra.gmra.mxu0 %vm1296_vm13, %v11039_v19 }
0x135c   : > { %8034 = vmatpush1.bf16.msra.mxu0 %v8014_v20  ;;  %10060 = vmatmul.mubr.msk.f32.vlgmr.msra.gmra.mxu1 %vm1296_vm13, %v10431_v27  ;;  %v7413_v20 = vsel %vm720_vm4, %v7410_v56, %v7412_v50  ;;  %v7482_v50 = vsel %vm802_vm5, %v7479_v1, %v7481_v54 }
0x135d   : > { %8000 = vmatprep.mubr.bf16.mxu1 %v13401_v0  ;;  %8051 = vmatprep.mubr.bf16.mxu0 %v13401_v0 }
0x1363   : > { %10064 = vmatmul.mubr.msk.bf16.vlgmr.msra.gmra.mxu0 %vm484_vm1, %v12506_v21 }
0x1364   : > { %8157 = vmatprep.mubr.bf16.mxu0 %v13401_v0 }
0x13fb   : > { %v7321_v13 = vpop.f32.mrf.mxu0 }
0x13fc   : > { %v7390_v8 = vpop.f32.mrf.mxu1  ;;  %v7328_v41 = vmul.f32 %v7321_v13, %v7276_v15 }
0x13fd   : > { %v7323_v35 = vpop.f32.mrf.mxu0  ;;  %v7397_v16 = vmul.f32 %v7390_v8, %v7345_v52 }
0x13fe   : > { %v7392_v63 = vpop.f32.mrf.mxu1  ;;  %v7329_v30 = vmul.f32 %v7323_v35, %v7275_v60  ;;  %v7678_v35 = vpop.permute.xlu0 %7677 }
0x13ff   : > { %v7325_v25 = vpop.f32.mrf.mxu0  ;;  %v7398_v32 = vmul.f32 %v7392_v63, %v7344_v61  ;;  %v7399_v13 = vadd.f32 %v7397_v16, %v7328_v41 }
0x1400   : > { %v7394_v58 = vpop.f32.mrf.mxu1 }
0x1401   : > { %v7326_v48 = vpop.f32.mrf.mxu0  ;;  %v7400_v58 = vadd.f32 %v7398_v32, %v7329_v30 }
0x1402   : > { %v7395_v47 = vpop.f32.mrf.mxu1  ;;  %v7483_v48 = vsel %vm802_vm5, %v7481_v54, %v7479_v1 }
0x1403   : > { %v7459_v31 = vpop.f32.mrf.mxu0 }
0x1404   : > { %v7528_v21 = vpop.f32.mrf.mxu1  ;;  %v7466_v2 = vmul.f32 %v7459_v31, %v7414_v39  ;;  %v7749_v39 = vpop.permute.xlu1 %7748 }
0x1405   : > { %v7461_v11 = vpop.f32.mrf.mxu0  ;;  %v7535_v63 = vmul.f32 %v7528_v21, %v7483_v48  ;;  %v7612_v21 = vsel %vm937_vm6, %v7609_v6, %v7611_v9 }
0x1406   : > { %v7530_v10 = vpop.f32.mrf.mxu1  ;;  %v7467_v8 = vmul.f32 %v7461_v11, %v7413_v20  ;;  %v7468_v49 = vadd.f32 %v7466_v2, %v7399_v13 }
0x1407   : > { %v7463_v45 = vpop.f32.mrf.mxu0  ;;  %v7536_v41 = vmul.f32 %v7530_v10, %v7482_v50 }
0x1408   : > { %v7532_v57 = vpop.f32.mrf.mxu1  ;;  %v7469_v31 = vadd.f32 %v7467_v8, %v7400_v58  ;;  %v7537_v11 = vadd.f32 %v7535_v63, %v7468_v49  ;;  %v7818_v48 = vpop.permute.xlu1 %7817 }
0x1409   : > { %v7464_v27 = vpop.f32.mrf.mxu0  ;;  %v7747_v57 = vpop.permute.xlu0 %7746 }
0x140a   : > { %v7533_v25 = vpop.f32.mrf.mxu1  ;;  %v7538_v45 = vadd.f32 %v7536_v41, %v7469_v31  ;;  %v7682_v27 = vsel %vm1019_vm7, %v7680_v37, %v7678_v35 }
0x140b   : > { %v7589_v12 = vpop.f32.mrf.mxu0 }
0x140c   : > { %v7658_v14 = vpop.f32.mrf.mxu1  ;;  %v7596_v15 = vmul.f32 %v7589_v12, %v12543_v29  ;;  %v7681_v29 = vsel %vm1019_vm7, %v7678_v35, %v7680_v37  ;;  %v13483_v37 = vld [vmem:[#allocation20_spill] sm:$0xff] }
0x140d   : > { %v7591_v47 = vpop.f32.mrf.mxu0  ;;  %v7665_v54 = vmul.f32 %v7658_v14, %v7612_v21  ;;  %v7750_v14 = vsel %vm1101_vm8, %v7747_v57, %v7749_v39  ;;  %v7816_v50 = vpop.permute.xlu0 %7815  ;;  %v3831_v35 = vmul.f32 %v13483_v37, %v13455_v5 }
0x140e   : > { %v7660_v52 = vpop.f32.mrf.mxu1  ;;  %v7597_v16 = vmul.f32 %v7591_v47, %v12553_v59  ;;  %v7598_v30 = vadd.f32 %v7596_v15, %v7537_v11  ;;  %v7613_v59 = vsel %vm937_vm6, %v7611_v9, %v7609_v6  ;;  %v7819_v11 = vsel %vm1181_vm9, %v7816_v50, %v7818_v48 }
0x140f   : > { %v7593_v56 = vpop.f32.mrf.mxu0  ;;  %v7666_v25 = vmul.f32 %v7660_v52, %v7613_v59  ;;  %v7751_v52 = vsel %vm1101_vm8, %v7749_v39, %v7747_v57 }
0x1410   : > { %v7662_v60 = vpop.f32.mrf.mxu1  ;;  %v7599_v1 = vadd.f32 %v7597_v16, %v7538_v45  ;;  %v7667_v8 = vadd.f32 %v7665_v54, %v7598_v30  ;;  %v13484_v16 = vld [vmem:[#allocation30_spill] sm:$0xff] }
0x1411   : > { %v7594_v61 = vpop.f32.mrf.mxu0  ;;  %v3832_v60 = vmul.f32 %v13483_v37, %v13484_v16 }
0x1412   : > { %v7663_v32 = vpop.f32.mrf.mxu1  ;;  %v7668_v47 = vadd.f32 %v7666_v25, %v7599_v1 }
0x1413   : > { %v7727_v2 = vpop.f32.mrf.mxu0  ;;  %v13485_v32 = vld [vmem:[#allocation21_spill] sm:$0xff] }
0x1414   : > { %v7734_v20 = vmul.f32 %v7727_v2, %v7681_v29  ;;  %v7796_v10 = vpop.f32.mrf.mxu1  ;;  %v3833_v21 = vadd.f32 %v3831_v35, %v13485_v32  ;;  %v7820_v29 = vsel %vm1181_vm9, %v7818_v48, %v7816_v50  ;;  %v3834_v54 = vadd.f32 %v3832_v60, %v13485_v32  ;;  %v13488_v32 = vld [vmem:[#allocation23_spill] sm:$0xff] }
0x1415   : > { %v7729_v13 = vpop.f32.mrf.mxu0  ;;  %v7803_v56 = vmul.f32 %v7796_v10, %v7750_v14 }
0x1416   : > { %v7735_v12 = vmul.f32 %v7729_v13, %v7682_v27  ;;  %v7798_v58 = vpop.f32.mrf.mxu1  ;;  %v7736_v63 = vadd.f32 %v7734_v20, %v7667_v8  ;;  %v13486_v8 = vld [vmem:[#allocation25_spill] sm:$0xff] }
0x1417   : > { %v7731_v49 = vpop.f32.mrf.mxu0  ;;  %v7804_v45 = vmul.f32 %v7798_v58, %v7751_v52  ;;  %v3838_v25 = vadd.f32 %v3834_v54, %v13486_v8 }
0x1418   : > { %v7800_v31 = vpop.f32.mrf.mxu1  ;;  %v7737_v9 = vadd.f32 %v7735_v12, %v7668_v47  ;;  %v7805_v61 = vadd.f32 %v7803_v56, %v7736_v63  ;;  %v13487_v49 = vld [vmem:[#allocation27_spill] sm:$0xff]  ;;  %v10432_v56 = vld [vmem:[%s13295_s5 + $0x1c] sm:$0xff]  }
0x1419   : > { %v7732_v15 = vpop.f32.mrf.mxu0  ;;  %v3837_v47 = vadd.f32 %v3833_v21, %v13487_v49  ;;  %v8012_v31 = vpack.c.bf16 %v3838_v25, %v3838_v25 }
0x141a   : > { %v7801_v6 = vpop.f32.mrf.mxu1  ;;  %v7806_v39 = vadd.f32 %v7804_v45, %v7737_v9  ;;  %v10016_v15 = vld [vmem:[%s13296_s6 + $0x8] sm:$0xf] }
0x141b   : > { %v7865_v41 = vpop.f32.mrf.mxu0  ;;  %v8011_v14 = vpack.c.bf16 %v3837_v47, %v3837_v47 }
0x141c   : > { %v7872_v30 = vmul.f32 %v7865_v41, %v7819_v11  ;;  %v7950_v5 = vpop.f32.mrf.mxu1 }
0x141d   : > { %v7867_v2 = vpop.f32.mrf.mxu0  ;;  %v8061_v50 = vsel %vm491_vm0, %v8011_v14, 0 }
0x141e   : > { %v7873_v57 = vmul.f32 %v7867_v2, %v7820_v29  ;;  %v7874_v1 = vadd.f32 %v7872_v30, %v7805_v61  ;;  %v7952_v27 = vpop.f32.mrf.mxu1  ;;  %v13489_v29 = vld [vmem:[#allocation22_spill] sm:$0xff] }
0x141f   : > { %v7869_v20 = vpop.f32.mrf.mxu0 }
0x1420   : > { %v7955_v10 = vmul.f32 %v7950_v5, %v7874_v1  ;;  %v7875_v59 = vadd.f32 %v7873_v57, %v7806_v39 }
0x1421   : > { %v7870_v13 = vpop.f32.mrf.mxu0 }
0x1422   : > { %v7957_v12 = vpack.c.bf16 %v7955_v10, %v7955_v10  ;;  %v7956_v58 = vmul.f32 %v7952_v27, %v7875_v59 }
0x1423   : > { %v12877_v9 = vpop.f32.mrf.mxu0 }
0x1424   : > { %v7958_v63 = vpack.c.bf16 %v7956_v58, %v7956_v58  ;;  %v7963_v48 = vsel %vm491_vm0, %v7957_v12, 0 }
0x1425   : > { %v12879_v6 = vpop.f32.mrf.mxu0 }
0x1426   : > { %10061 = vmatprep.subr.msk.bf16.mxu1 %vm491_vm0, %v7958_v63 }
0x1427   : > { %7983 = vmatpush1.bf16.msra.mxu1 %v7963_v48  ;;  %v8057_v37 = vpop.f32.mrf.mxu0 }
0x1428   : > { %10065 = vmatprep.subr.msk.bf16.mxu1 %vm491_vm0, %v8012_v31 }
0x1429   : > { %v8058_v35 = vpop.f32.mrf.mxu0 }
0x142a   : > { %10062 = vmatmul.mubr.msk.bf16.vlgmr.msra.gmra.mxu1 %vm484_vm1, %v10016_v15 }
0x142b   : > { %8081 = vmatpush1.bf16.msra.mxu1 %v8061_v50  ;;  %8098 = vmatprep.mubr.bf16.mxu1 %v13401_v0 }
0x1432   : > { %10066 = vmatmul.mubr.msk.bf16.vlgmr.msra.gmra.mxu1 %vm484_vm1, %v10432_v56 }
0x1433   : > { %8216 = vmatprep.mubr.bf16.mxu1 %v13401_v0 }
0x14ea   : > { %v8002_v52 = vpop.f32.mrf.mxu1 }
0x14eb   : > { %v12957_v2 = vadd.f32 %v8002_v52, %v13489_v29 }
0x14ec   : > { %v8004_v11 = vpop.f32.mrf.mxu1 }
0x14ed   : > { %v12954_v21 = vadd.f32 %v8004_v11, %v13488_v32  ;;  %v12986_v11 = vld [vmem:[%s13293_s3] sm:$0x1] }
0x14ee   : > { %v8006_v41 = vpop.f32.mrf.mxu1 }
0x14ef   : > { %v9393_v5 = vadd.f32 %v12954_v21, %v12957_v2 }
0x14f0   : > { %v8007_v16 = vpop.f32.mrf.mxu1 }
0x14f2   : > { %v12881_v60 = vpop.f32.mrf.mxu1 }
0x14f3   : > { %8109 = vrot.lane.b32.xlu0 %v12881_v60, %s10446_s14  ;;  %v8351_v56 = vmul.f32 %v12881_v60, %v12877_v9 }
0x14f4   : > { %v12885_v61 = vpop.f32.mrf.mxu1 }
0x14f5   : > { %8111 = vrot.lane.b32.xlu1 %v12885_v61, %s10446_s14  ;;  %v8352_v16 = vmul.f32 %v12885_v61, %v12879_v6 }
0x14f6   : > { %v12915_v45 = vpop.f32.mrf.mxu1 }
0x14f7   : > { %8168 = vrot.lane.b32.xlu0 %v12881_v60, %s10445_s13 }
0x14f8   : > { %v12921_v30 = vpop.f32.mrf.mxu1 }
0x14f9   : > { %8170 = vrot.lane.b32.xlu1 %v12885_v61, %s10445_s13 }
0x14fb   : > { %8229 = vrot.lane.b32.xlu0 %v12881_v60, %s10447_s15 }
0x14fd   : > { %8231 = vrot.lane.b32.xlu1 %v12885_v61, %s10447_s15 }
0x14ff   : > { %8290 = vrot.lane.b32.xlu0 %v12881_v60, %s10448_s16 }
0x1501   : > { %8292 = vrot.lane.b32.xlu1 %v12885_v61, %s10448_s16 }
0x1503   : > { %8406 = vrot.lane.b32.xlu0 %v12881_v60, %s10449_s17 }
0x1505   : > { %8408 = vrot.lane.b32.xlu1 %v12885_v61, %s10449_s17 }
0x1507   : > { %8467 = vrot.lane.b32.xlu0 %v12881_v60, %s10450_s18 }
0x1509   : > { %8469 = vrot.lane.b32.xlu1 %v12885_v61, %s10450_s18 }
0x150b   : > { %8528 = vrot.lane.b32.xlu0 %v12881_v60, %s10451_s19 }
0x150d   : > { %8530 = vrot.lane.b32.xlu1 %v12885_v61, %s10451_s19 }
0x150f   : > { %8589 = vrot.lane.b32.xlu0 %v12881_v60, %s10452_s20 }
0x1511   : > { %8591 = vrot.lane.b32.xlu1 %v12885_v61, %s10452_s20 }
0x1513   : > { %8658 = vrot.lane.b32.xlu0 %v12915_v45, %s10446_s14 }
0x1515   : > { %8660 = vrot.lane.b32.xlu1 %v12921_v30, %s10446_s14 }
0x1517   : > { %8727 = vrot.lane.b32.xlu0 %v12915_v45, %s10445_s13 }
0x1519   : > { %8729 = vrot.lane.b32.xlu1 %v12921_v30, %s10445_s13 }
0x151b   : > { %8796 = vrot.lane.b32.xlu0 %v12915_v45, %s10447_s15 }
0x151d   : > { %8798 = vrot.lane.b32.xlu1 %v12921_v30, %s10447_s15 }
0x151f   : > { %8865 = vrot.lane.b32.xlu0 %v12915_v45, %s10448_s16 }
0x1521   : > { %8867 = vrot.lane.b32.xlu1 %v12921_v30, %s10448_s16 }
0x1523   : > { %8995 = vrot.lane.b32.xlu0 %v12915_v45, %s10449_s17 }
0x1525   : > { %8997 = vrot.lane.b32.xlu1 %v12921_v30, %s10449_s17 }
0x1527   : > { %9064 = vrot.lane.b32.xlu0 %v12915_v45, %s10450_s18 }
0x1529   : > { %9066 = vrot.lane.b32.xlu1 %v12921_v30, %s10450_s18 }
0x152b   : > { %9133 = vrot.lane.b32.xlu0 %v12915_v45, %s10451_s19 }
0x152d   : > { %9135 = vrot.lane.b32.xlu1 %v12921_v30, %s10451_s19  ;;  %s433_s19 = scalar_lea.vmem %s13302_s12, %s10531_s23 }
0x152f   : > { %9202 = vrot.lane.b32.xlu0 %v12915_v45, %s10452_s20 }
0x1531   : > { %9204 = vrot.lane.b32.xlu1 %v12921_v30, %s10452_s20 }
0x154e   : > { %9394 = vadd.xlane.f32.xlu0 %v9393_v5 }
0x1565   : > { %v8110_v54 = vpop.permute.xlu0 %8109 }
0x1567   : > { %v8112_v39 = vpop.permute.xlu1 %8111 }
0x1568   : > { %v8113_v57 = vsel %vm555_vm3, %v8110_v54, %v8112_v39  ;;  %v8114_v1 = vsel %vm555_vm3, %v8112_v39, %v8110_v54  ;;  %v8353_v39 = vpack.c.bf16 %v8351_v56, %v8351_v56 }
0x1569   : > { %v8115_v20 = vmul.f32 %v8114_v1, %v12877_v9  ;;  %v8116_v10 = vmul.f32 %v8113_v57, %v12879_v6  ;;  %v8169_v59 = vpop.permute.xlu0 %8168 }
0x156b   : > { %v8117_v27 = vpack.c.bf16 %v8115_v20, %v8115_v20  ;;  %v8118_v13 = vpack.c.bf16 %v8116_v10, %v8116_v10  ;;  %v8171_v8 = vpop.permute.xlu1 %8170  ;;  %v8354_v10 = vpack.c.bf16 %v8352_v16, %v8352_v16 }
0x156c   : > { %v8172_v25 = vsel %vm638_vm2, %v8169_v59, %v8171_v8  ;;  %v8173_v12 = vsel %vm638_vm2, %v8171_v8, %v8169_v59 }
0x156d   : > { %v8174_v58 = vmul.f32 %v8173_v12, %v12877_v9  ;;  %v8175_v49 = vmul.f32 %v8172_v25, %v12879_v6  ;;  %v8230_v47 = vpop.permute.xlu0 %8229  ;;  %10067 = vmatprep.subr.msk.bf16.mxu0 %vm491_vm0, %v8118_v13  ;;  %v8120_v63 = vsel %vm491_vm0, %v8117_v27, 0 }
0x156e   : > { %8140 = vmatpush1.bf16.msra.mxu0 %v8120_v63  ;;  %v8356_v63 = vsel %vm491_vm0, %v8353_v39, 0 }
0x156f   : > { %v8176_v48 = vpack.c.bf16 %v8174_v58, %v8174_v58  ;;  %v8177_v31 = vpack.c.bf16 %v8175_v49, %v8175_v49  ;;  %v8232_v14 = vpop.permute.xlu1 %8231 }
0x1570   : > { %v8233_v15 = vsel %vm720_vm4, %v8230_v47, %v8232_v14  ;;  %v8234_v50 = vsel %vm720_vm4, %v8232_v14, %v8230_v47 }
0x1571   : > { %v8235_v37 = vmul.f32 %v8234_v50, %v12877_v9  ;;  %v8236_v35 = vmul.f32 %v8233_v15, %v12879_v6  ;;  %v8291_v52 = vpop.permute.xlu0 %8290  ;;  %10068 = vmatmul.mubr.msk.bf16.vlgmr.msra.gmra.mxu0 %vm484_vm1, %v12986_v11  ;;  %10069 = vmatprep.subr.msk.bf16.mxu1 %vm491_vm0, %v8177_v31  ;;  %v8179_v41 = vsel %vm491_vm0, %v8176_v48, 0 }
0x1572   : > { %8199 = vmatpush1.bf16.msra.mxu1 %v8179_v41  ;;  %8277 = vmatprep.mubr.bf16.mxu0 %v13401_v0 }
0x1573   : > { %v8237_v60 = vpack.c.bf16 %v8235_v37, %v8235_v37  ;;  %v8238_v32 = vpack.c.bf16 %v8236_v35, %v8236_v35  ;;  %v8293_v29 = vpop.permute.xlu1 %8292 }
0x1574   : > { %v8294_v5 = vsel %vm802_vm5, %v8291_v52, %v8293_v29  ;;  %v8295_v54 = vsel %vm802_vm5, %v8293_v29, %v8291_v52 }
0x1575   : > { %v8296_v57 = vmul.f32 %v8295_v54, %v12877_v9  ;;  %v8297_v1 = vmul.f32 %v8294_v5, %v12879_v6  ;;  %v8407_v20 = vpop.permute.xlu0 %8406  ;;  %10070 = vmatmul.mubr.msk.bf16.vlgmr.msra.gmra.mxu1 %vm484_vm1, %v12986_v11  ;;  %10071 = vmatprep.subr.msk.bf16.mxu0 %vm491_vm0, %v8238_v32  ;;  %v8240_v61 = vsel %vm491_vm0, %v8237_v60, 0 }
0x1576   : > { %8260 = vmatpush1.bf16.msra.mxu0 %v8240_v61  ;;  %8338 = vmatprep.mubr.bf16.mxu1 %v13401_v0 }
0x1577   : > { %v8298_v59 = vpack.c.bf16 %v8296_v57, %v8296_v57  ;;  %v8299_v27 = vpack.c.bf16 %v8297_v1, %v8297_v1  ;;  %v8409_v13 = vpop.permute.xlu1 %8408  ;;  %10075 = vmatprep.subr.msk.bf16.mxu0 %vm491_vm0, %v8354_v10 }
0x1578   : > { %v8410_v8 = vsel %vm937_vm6, %v8407_v20, %v8409_v13  ;;  %v8411_v25 = vsel %vm937_vm6, %v8409_v13, %v8407_v20 }
0x1579   : > { %v8412_v12 = vmul.f32 %v8410_v8, %v12877_v9  ;;  %v8413_v58 = vmul.f32 %v8411_v25, %v12879_v6  ;;  %v8468_v49 = vpop.permute.xlu0 %8467  ;;  %10072 = vmatmul.mubr.msk.bf16.vlgmr.msra.gmra.mxu0 %vm484_vm1, %v12986_v11  ;;  %10073 = vmatprep.subr.msk.bf16.mxu1 %vm491_vm0, %v8299_v27  ;;  %v8301_v47 = vsel %vm491_vm0, %v8298_v59, 0 }
0x157a   : > { %8321 = vmatpush1.bf16.msra.mxu1 %v8301_v47  ;;  %8376 = vmatpush1.bf16.msra.mxu0 %v8356_v63 }
0x157b   : > { %v8414_v48 = vpack.c.bf16 %v8412_v12, %v8412_v12  ;;  %v8415_v31 = vpack.c.bf16 %v8413_v58, %v8413_v58  ;;  %v8470_v14 = vpop.permute.xlu1 %8469  ;;  %8393 = vmatprep.mubr.bf16.mxu0 %v13401_v0 }
0x157c   : > { %v8471_v15 = vsel %vm1019_vm7, %v8468_v49, %v8470_v14  ;;  %v8472_v50 = vsel %vm1019_vm7, %v8470_v14, %v8468_v49 }
0x157d   : > { %v8473_v56 = vmul.f32 %v8471_v15, %v12877_v9  ;;  %v8474_v37 = vmul.f32 %v8472_v50, %v12879_v6  ;;  %v8529_v35 = vpop.permute.xlu0 %8528  ;;  %10074 = vmatmul.mubr.msk.bf16.vlgmr.msra.gmra.mxu1 %vm484_vm1, %v12986_v11  ;;  %10077 = vmatprep.subr.msk.bf16.mxu1 %vm491_vm0, %v8415_v31  ;;  %v8417_v52 = vsel %vm491_vm0, %v8414_v48, 0 }
0x157e   : > { %8437 = vmatpush1.bf16.msra.mxu1 %v8417_v52  ;;  %8454 = vmatprep.mubr.bf16.mxu1 %v13401_v0 }
0x157f   : > { %v8475_v41 = vpack.c.bf16 %v8473_v56, %v8473_v56  ;;  %v8476_v16 = vpack.c.bf16 %v8474_v37, %v8474_v37  ;;  %v8531_v60 = vpop.permute.xlu1 %8530 }
0x1580   : > { %v8532_v32 = vsel %vm1101_vm8, %v8529_v35, %v8531_v60  ;;  %v8533_v29 = vsel %vm1101_vm8, %v8531_v60, %v8529_v35  ;;  %v13490_v60 = vld [vmem:[#allocation2_spill] sm:$0xff] }
0x1581   : > { %v8534_v5 = vmul.f32 %v8532_v32, %v12877_v9  ;;  %v8535_v54 = vmul.f32 %v8533_v29, %v12879_v6  ;;  %10076 = vmatmul.mubr.msk.bf16.vlgmr.msra.gmra.mxu0 %vm484_vm1, %v12986_v11  ;;  %10079 = vmatprep.subr.msk.bf16.mxu0 %vm491_vm0, %v8476_v16  ;;  %v8478_v39 = vsel %vm491_vm0, %v8475_v41, 0  ;;  %v8590_v20 = vpop.permute.xlu0 %8589 }
0x1582   : > { %8498 = vmatpush1.bf16.msra.mxu0 %v8478_v39  ;;  %8515 = vmatprep.mubr.bf16.mxu0 %v13401_v0  ;;  %v13492_v39 = vld [vmem:[#allocation5_spill] sm:$0xff] }
0x1583   : > { %v8536_v57 = vpack.c.bf16 %v8534_v5, %v8534_v5  ;;  %v8537_v1 = vpack.c.bf16 %v8535_v54, %v8535_v54  ;;  %v8592_v61 = vpop.permute.xlu1 %8591  ;;  %v13491_v5 = vld [vmem:[#allocation3_spill] sm:$0xff] }
0x1584   : > { %v8593_v10 = vsel %vm1181_vm9, %v8590_v20, %v8592_v61  ;;  %v8594_v59 = vsel %vm1181_vm9, %v8592_v61, %v8590_v20 }
0x1585   : > { %v8595_v27 = vmul.f32 %v8593_v10, %v12877_v9  ;;  %v8596_v13 = vmul.f32 %v8594_v59, %v12879_v6  ;;  %10078 = vmatmul.mubr.msk.bf16.vlgmr.msra.gmra.mxu1 %vm484_vm1, %v12986_v11  ;;  %10081 = vmatprep.subr.msk.bf16.mxu1 %vm491_vm0, %v8537_v1  ;;  %v8539_v8 = vsel %vm491_vm0, %v8536_v57, 0  ;;  %v13493_v10 = vld [vmem:[#allocation7_spill] sm:$0xff] }
0x1586   : > { %8559 = vmatpush1.bf16.msra.mxu1 %v8539_v8  ;;  %8576 = vmatprep.mubr.bf16.mxu1 %v13401_v0 }
0x1587   : > { %v8597_v25 = vpack.c.bf16 %v8595_v27, %v8595_v27  ;;  %v8598_v12 = vpack.c.bf16 %v8596_v13, %v8596_v13  ;;  %v13494_v27 = vld [vmem:[#allocation4_spill] sm:$0xff] }
0x1589   : > { %10080 = vmatmul.mubr.msk.bf16.vlgmr.msra.gmra.mxu0 %vm484_vm1, %v12986_v11  ;;  %10083 = vmatprep.subr.msk.bf16.mxu0 %vm491_vm0, %v8598_v12  ;;  %v8600_v9 = vsel %vm491_vm0, %v8597_v25, 0 }
0x158a   : > { %8620 = vmatpush1.bf16.msra.mxu0 %v8600_v9  ;;  %8637 = vmatprep.mubr.bf16.mxu0 %v13401_v0 }
0x158d   : > { %10082 = vmatmul.mubr.msk.bf16.vlgmr.msra.gmra.mxu1 %vm484_vm1, %v12986_v11 }
0x158e   : > { %8706 = vmatprep.mubr.bf16.mxu1 %v13401_v0 }
0x1591   : > { %10084 = vmatmul.mubr.msk.bf16.vlgmr.msra.gmra.mxu0 %vm484_vm1, %v12986_v11 }
0x1592   : > { %8775 = vmatprep.mubr.bf16.mxu0 %v13401_v0 }
0x1631   : > { %v8159_v6 = vpop.f32.mrf.mxu0 }
0x1632   : > { %v8166_v54 = vmul.f32 %v8159_v6, %v13491_v5 }
0x1633   : > { %v8161_v58 = vpop.f32.mrf.mxu0 }
0x1635   : > { %v8163_v49 = vpop.f32.mrf.mxu0  ;;  %v8218_v47 = vpop.f32.mrf.mxu1 }
0x1636   : > { %v8225_v11 = vmul.f32 %v8218_v47, %v13490_v60  ;;  %v13495_v49 = vld [vmem:[#allocation6_spill] sm:$0xff]  ;;  %v13498_v60 = vld [vmem:[#allocation9_spill] sm:$0xff] }
0x1637   : > { %v8164_v63 = vpop.f32.mrf.mxu0  ;;  %v8220_v48 = vpop.f32.mrf.mxu1  ;;  %v8167_v47 = vmul.f32 %v8161_v58, %v13495_v49 }
0x1638   : > { %v8227_v61 = vmax.f32 %v8166_v54, %v8225_v11  ;;  %v13068_v13 = vmul.f32 %v8220_v48, %v13494_v27  ;;  %v13496_v63 = vld [vmem:[#allocation8_spill] sm:$0xff] }
0x1639   : > { %v8222_v31 = vpop.f32.mrf.mxu1  ;;  %v8279_v14 = vpop.f32.mrf.mxu0 }
0x163a   : > { %v8286_v57 = vmul.f32 %v8279_v14, %v13492_v39  ;;  %v13497_v14 = vld [vmem:[#allocation10_spill] sm:$0xff]  ;;  %v13499_v39 = vld [vmem:[#allocation12_spill] sm:$0xff] }
0x163b   : > { %v8223_v15 = vpop.f32.mrf.mxu1  ;;  %v8281_v50 = vpop.f32.mrf.mxu0 }
0x163c   : > { %v8288_v12 = vmax.f32 %v8227_v61, %v8286_v57  ;;  %v8287_v31 = vmul.f32 %v8281_v50, %v13496_v63 }
0x163d   : > { %v8283_v56 = vpop.f32.mrf.mxu0  ;;  %v8340_v37 = vpop.f32.mrf.mxu1 }
0x163e   : > { %v8347_v59 = vmul.f32 %v8340_v37, %v13493_v10 }
0x163f   : > { %v8284_v35 = vpop.f32.mrf.mxu0  ;;  %v8342_v52 = vpop.f32.mrf.mxu1 }
0x1640   : > { %v8349_v56 = vmax.f32 %v8288_v12, %v8347_v59  ;;  %v8348_v37 = vmul.f32 %v8342_v52, %v13498_v60 }
0x1641   : > { %v8344_v41 = vpop.f32.mrf.mxu1  ;;  %v8395_v16 = vpop.f32.mrf.mxu0 }
0x1642   : > { %v8402_v9 = vmul.f32 0.5, %v8395_v16  ;;  %v8228_v41 = vmax.f32 %v8167_v47, %v13068_v13 }
0x1643   : > { %v8345_v32 = vpop.f32.mrf.mxu1  ;;  %v8397_v29 = vpop.f32.mrf.mxu0 }
0x1644   : > { %v8404_v5 = vmax.f32 %v8349_v56, %v8402_v9  ;;  %v8289_v16 = vmax.f32 %v8228_v41, %v8287_v31  ;;  %v8403_v61 = vmul.f32 0.5, %v8397_v29  ;;  %v13501_v41 = vld [vmem:[#allocation13_spill] sm:$0xff] }
0x1645   : > { %v8399_v1 = vpop.f32.mrf.mxu0  ;;  %v8456_v20 = vpop.f32.mrf.mxu1 }
0x1646   : > { %v8463_v35 = vmul.f32 %v8456_v20, %v13497_v14  ;;  %v13500_v20 = vld [vmem:[#allocation11_spill] sm:$0xff] }
0x1647   : > { %v8400_v8 = vpop.f32.mrf.mxu0  ;;  %v8458_v25 = vpop.f32.mrf.mxu1 }
0x1648   : > { %v8465_v50 = vmax.f32 %v8404_v5, %v8463_v35  ;;  %v8350_v8 = vmax.f32 %v8289_v16, %v8348_v37  ;;  %v8464_v12 = vmul.f32 %v8458_v25, %v13500_v20 }
0x1649   : > { %v8460_v15 = vpop.f32.mrf.mxu1  ;;  %v8517_v6 = vpop.f32.mrf.mxu0 }
0x164a   : > { %v13076_v1 = vmul.f32 %v8517_v6, %v13499_v39  ;;  %v8405_v15 = vmax.f32 %v8350_v8, %v8403_v61 }
0x164b   : > { %v8461_v32 = vpop.f32.mrf.mxu1  ;;  %v8519_v48 = vpop.f32.mrf.mxu0 }
0x164c   : > { %v8526_v52 = vmax.f32 %v8465_v50, %v13076_v1  ;;  %v8525_v56 = vmul.f32 %v8519_v48, %v13480_v3  ;;  %v8466_v32 = vmax.f32 %v8405_v15, %v8464_v12 }
0x164d   : > { %v8521_v58 = vpop.f32.mrf.mxu0  ;;  %v8578_v10 = vpop.f32.mrf.mxu1 }
0x164e   : > { %v13079_v27 = vmul.f32 %v8578_v10, %v13479_v44  ;;  %v13502_v44 = vld [vmem:[#allocation16_spill] sm:$0xff]  ;;  %v8527_v58 = vmax.f32 %v8466_v32, %v8525_v56 }
0x164f   : > { %v8522_v49 = vpop.f32.mrf.mxu0  ;;  %v8580_v63 = vpop.f32.mrf.mxu1 }
0x1650   : > { %v8587_v29 = vmax.f32 %v8526_v52, %v13079_v27  ;;  %v8586_v5 = vmul.f32 %v8580_v63, %v13502_v44 }
0x1651   : > { %v8639_v6 = vpop.f32.mrf.mxu0  ;;  %v8582_v14 = vpop.f32.mrf.mxu1 }
0x1652   : > { %v13086_v60 = vmul.f32 %v8639_v6, %v13501_v41  ;;  %v8588_v20 = vmax.f32 %v8527_v58, %v8586_v5 }
0x1653   : > { %v8641_v39 = vpop.f32.mrf.mxu0  ;;  %v8583_v16 = vpop.f32.mrf.mxu1 }
0x1654   : > { %v13090_v25 = vmax.f32 %v8587_v29, %v13086_v60  ;;  %v8647_v10 = vmul.f32 %v8641_v39, %v10928_v55 }
0x1655   : > { %v8643_v50 = vpop.f32.mrf.mxu0 }
0x1656   : > { %v8650_v3 = vsub.f32 %v8166_v54, %v13090_v25  ;;  %v8719_v48 = vsub.f32 %v8225_v11, %v13090_v25  ;;  %v8788_v8 = vsub.f32 %v8286_v57, %v13090_v25  ;;  %v8857_v49 = vsub.f32 %v8347_v59, %v13090_v25 }
0x1657   : > { %v8644_v52 = vpop.f32.mrf.mxu0  ;;  %v8649_v14 = vmax.f32 %v8588_v20, %v8647_v10  ;;  %v8926_v29 = vsub.f32 %v8402_v9, %v13090_v25  ;;  %v8987_v59 = vsub.f32 %v8463_v35, %v13090_v25 }
0x1658   : > { %v8652_v63 = vmul.f32 1.442695, %v8650_v3  ;;  %v8721_v15 = vmul.f32 1.442695, %v8719_v48  ;;  %v8790_v6 = vmul.f32 1.442695, %v8788_v8 }
0x1659   : > { %v8859_v55 = vmul.f32 1.442695, %v8857_v49  ;;  %v8651_v41 = vsub.f32 %v8167_v47, %v8649_v14  ;;  %v8720_v54 = vsub.f32 %v13068_v13, %v8649_v14  ;;  %v8789_v11 = vsub.f32 %v8287_v31, %v8649_v14 }
0x165a   : > { %10369 = vpow2.f32 %v8652_v63  ;;  %v8928_v32 = vmul.f32 1.442695, %v8926_v29  ;;  %v8858_v57 = vsub.f32 %v8348_v37, %v8649_v14  ;;  %v8988_v16 = vsub.f32 %v8464_v12, %v8649_v14 }
0x165b   : > { %10371 = vpow2.f32 %v8721_v15  ;;  %v8654_v44 = vmul.f32 1.442695, %v8651_v41  ;;  %v8723_v39 = vmul.f32 1.442695, %v8720_v54  ;;  %v8792_v58 = vmul.f32 1.442695, %v8789_v11 }
0x165c   : > { %10373 = vpow2.f32 %v8790_v6  ;;  %v8927_v50 = vsub.f32 %v8403_v61, %v8649_v14  ;;  %v8861_v3 = vmul.f32 1.442695, %v8858_v57  ;;  %v8989_v9 = vmul.f32 1.442695, %v8987_v59 }
0x165d   : > { %10375 = vpow2.f32 %v8859_v55  ;;  %v9056_v47 = vsub.f32 %v13076_v1, %v13090_v25  ;;  %v8991_v13 = vmul.f32 1.442695, %v8988_v16  ;;  %v9057_v37 = vsub.f32 %v8525_v56, %v8649_v14 }
0x165e   : > { %10377 = vpow2.f32 %v8928_v32  ;;  %v8930_v31 = vmul.f32 1.442695, %v8927_v50  ;;  %v9126_v48 = vsub.f32 %v8586_v5, %v8649_v14  ;;  %v9125_v61 = vsub.f32 %v13079_v27, %v13090_v25 }
0x165f   : > { %10379 = vpow2.f32 %v8654_v44  ;;  %v9058_v8 = vmul.f32 1.442695, %v9056_v47  ;;  %v9060_v49 = vmul.f32 1.442695, %v9057_v37  ;;  %v9195_v63 = vsub.f32 %v8647_v10, %v8649_v14 }
0x1660   : > { %10381 = vpow2.f32 %v8723_v39  ;;  %v9129_v52 = vmul.f32 1.442695, %v9126_v48  ;;  %v9127_v6 = vmul.f32 1.442695, %v9125_v61  ;;  %v9194_v56 = vsub.f32 %v13086_v60, %v13090_v25 }
0x1661   : > { %10383 = vpow2.f32 %v8792_v58  ;;  %v9198_v27 = vmul.f32 1.442695, %v9195_v63 }
0x1662   : > { %10385 = vpow2.f32 %v8861_v3  ;;  %v9196_v11 = vmul.f32 1.442695, %v9194_v56 }
0x1663   : > { %10387 = vpow2.f32 %v8989_v9 }
0x1664   : > { %10389 = vpow2.f32 %v8991_v13 }
0x1665   : > { %10391 = vpow2.f32 %v8930_v31 }
0x1666   : > { %10393 = vpow2.f32 %v9058_v8 }
0x1667   : > { %v10370_v35 = vpop.eup %10369  ;;  %10395 = vpow2.f32 %v9060_v49 }
0x1668   : > { %v10372_v12 = vpop.eup %10371  ;;  %v8664_v29 = vmul.f32 %v10370_v35, %v10989_v51  ;;  %10397 = vpow2.f32 %v9129_v52 }
0x1669   : > { %v8725_v20 = vadd.f32 %v10372_v12, %v10370_v35  ;;  %v10374_v1 = vpop.eup %10373  ;;  %v8733_v41 = vmul.f32 %v10372_v12, %v10992_v34  ;;  %10399 = vpow2.f32 %v9127_v6 }
0x166a   : > { %v10376_v5 = vpop.eup %10375  ;;  %v8666_v14 = vpack.c.bf16 %v8664_v29, %v8664_v29  ;;  %v8802_v25 = vmul.f32 %v10374_v1, %v10999_v38  ;;  %10401 = vpow2.f32 %v9198_v27 }
0x166b   : > { %v8794_v15 = vadd.f32 %v10374_v1, %v8725_v20  ;;  %v13108_v54 = vpop.eup %10377  ;;  %v8871_v51 = vmul.f32 %v10376_v5, %v11004_v46  ;;  %v8735_v39 = vpack.c.bf16 %v8733_v41, %v8733_v41  ;;  %10403 = vpow2.f32 %v9196_v11 }
0x166c   : > { %v10380_v10 = vpop.eup %10379  ;;  %v8804_v37 = vpack.c.bf16 %v8802_v25, %v8802_v25  ;;  %v8934_v27 = vpack.c.bf16 %v13108_v54, %v13108_v54 }
0x166d   : > { %v8863_v55 = vadd.f32 %v10376_v5, %v8794_v15  ;;  %v10382_v32 = vpop.eup %10381  ;;  %v8665_v60 = vmul.f32 %v10380_v10, %v11012_v18  ;;  %v8669_v18 = vsel %vm1300_vm11, %v8666_v14, 0 }
0x166e   : > { %v10384_v59 = vpop.eup %10383  ;;  %v8726_v44 = vadd.f32 %v10382_v32, %v10380_v10  ;;  %v8734_v34 = vmul.f32 %v10382_v32, %v11015_v22  ;;  %v8873_v22 = vpack.c.bf16 %v8871_v51, %v8871_v51  ;;  %v8807_v49 = vsel %vm1300_vm11, %v8804_v37, 0 }
0x166f   : > { %v8932_v57 = vadd.f32 %v13108_v54, %v8863_v55  ;;  %v10386_v16 = vpop.eup %10385  ;;  %v8667_v58 = vpack.c.bf16 %v8665_v60, %v8665_v60  ;;  %v8803_v50 = vmul.f32 %v10384_v59, %v11019_v24  ;;  %v8738_v24 = vsel %vm1300_vm11, %v8735_v39, 0 }
0x1670   : > { %v10388_v3 = vpop.eup %10387  ;;  %v8795_v9 = vadd.f32 %v10384_v59, %v8726_v44  ;;  %v8736_v47 = vpack.c.bf16 %v8734_v34, %v8734_v34  ;;  %v8872_v38 = vmul.f32 %v10386_v16, %v11022_v7  ;;  %v8937_v25 = vsel %vm1300_vm11, %v8934_v27, 0 }
0x1671   : > { %v10390_v13 = vpop.eup %10389  ;;  %v8993_v46 = vadd.f32 %v10388_v3, %v8932_v57  ;;  %10085 = vmatprep.subr.msk.bf16.mxu1 %vm1300_vm11, %v8667_v58  ;;  %v8805_v31 = vpack.c.bf16 %v8803_v50, %v8803_v50  ;;  %v9001_v6 = vmul.f32 %v10388_v3, %v13421_v40 }
0x1672   : > { %v10392_v48 = vpop.eup %10391  ;;  %v8864_v35 = vadd.f32 %v10386_v16, %v8795_v9  ;;  %10087 = vmatprep.subr.msk.bf16.mxu0 %vm1300_vm11, %v8736_v47  ;;  %8689 = vmatpush1.bf16.msra.mxu1 %v8669_v18  ;;  %v8874_v8 = vpack.c.bf16 %v8872_v38, %v8872_v38  ;;  %v9002_v61 = vmul.f32 %v10390_v13, %v11033_v62  ;;  %v8876_v62 = vsel %vm1300_vm11, %v8873_v22, 0  ;;  %v10434_v9 = vld [vmem:[%s13294_s4] sm:$0xff]  ;;  %v8661_v47 = vpop.permute.xlu1 %8660 }
0x1673   : > { %8758 = vmatpush1.bf16.msra.mxu0 %v8738_v24  ;;  %10089 = vmatprep.subr.msk.bf16.mxu1 %vm1300_vm11, %v8805_v31  ;;  %v10394_v7 = vpop.eup %10393  ;;  %v8935_v1 = vpack.c.bf16 %v10392_v48, %v10392_v48  ;;  %v9003_v40 = vpack.c.bf16 %v9001_v6, %v9001_v6  ;;  %v8659_v18 = vpop.permute.xlu0 %8658 }
0x1674   : > { %v8933_v12 = vadd.f32 %v10392_v48, %v8864_v35  ;;  %10091 = vmatprep.subr.msk.bf16.mxu0 %vm1300_vm11, %v8874_v8  ;;  %v9062_v20 = vadd.f32 %v10394_v7, %v8993_v46  ;;  %v10396_v52 = vpop.eup %10395  ;;  %v9004_v15 = vpack.c.bf16 %v9002_v61, %v9002_v61  ;;  %v9070_v59 = vmul.f32 %v10394_v7, %v13446_v4 }
0x1675   : > { %10086 = vmatmul.mubr.msk.bf16.vlgmr.msra.gmra.mxu1 %vm1296_vm13, %v11039_v19  ;;  %v10398_v56 = vpop.eup %10397  ;;  %v9071_v41 = vmul.f32 %v10396_v52, %v13422_v43  ;;  %v9006_v43 = vsel %vm1300_vm11, %v9003_v40, 0 }
0x1676   : > { %v8994_v63 = vadd.f32 %v10390_v13, %v8933_v12  ;;  %10088 = vmatmul.mubr.msk.bf16.vlgmr.msra.gmra.mxu0 %vm1296_vm13, %v11039_v19  ;;  %8827 = vmatpush1.bf16.msra.mxu1 %v8807_v49  ;;  %v10400_v5 = vpop.eup %10399  ;;  %v9140_v10 = vmul.f32 %v10398_v56, %v13423_v53  ;;  %v9072_v4 = vpack.c.bf16 %v9070_v59, %v9070_v59  ;;  %v8730_v38 = vpop.permute.xlu1 %8729 }
0x1677   : > { %8896 = vmatpush1.bf16.msra.mxu0 %v8876_v62  ;;  %10093 = vmatprep.subr.msk.bf16.mxu1 %vm1300_vm11, %v8935_v1  ;;  %v9131_v55 = vadd.f32 %v10400_v5, %v9062_v20  ;;  %v10402_v14 = vpop.eup %10401  ;;  %v9073_v51 = vpack.c.bf16 %v9071_v41, %v9071_v41  ;;  %v9139_v54 = vmul.f32 %v10400_v5, %v13447_v33  ;;  %v8728_v13 = vpop.permute.xlu0 %8727 }
0x1678   : > { %v9063_v29 = vadd.f32 %v10396_v52, %v8994_v63  ;;  %10095 = vmatprep.subr.msk.bf16.mxu0 %vm1300_vm11, %v9004_v15  ;;  %8844 = vmatprep.mubr.bf16.mxu1 %v13401_v0  ;;  %v10404_v32 = vpop.eup %10403  ;;  %v9142_v53 = vpack.c.bf16 %v9140_v10, %v9140_v10  ;;  %v9209_v44 = vmul.f32 %v10402_v14, %v13448_v42  ;;  %v9075_v39 = vsel %vm1300_vm11, %v9072_v4, 0 }
0x1679   : > { %8913 = vmatprep.mubr.bf16.mxu0 %v13401_v0  ;;  %v9200_v60 = vadd.f32 %v10404_v32, %v9131_v55  ;;  %v9141_v34 = vpack.c.bf16 %v9139_v54, %v9139_v54  ;;  %v9208_v16 = vmul.f32 %v10404_v32, %v13449_v28  ;;  %v8663_v49 = vsel %vm555_vm3, %v8661_v47, %v8659_v18 }
0x167a   : > { %v9132_v11 = vadd.f32 %v10398_v56, %v9063_v29  ;;  %v9211_v33 = vpack.c.bf16 %v9209_v44, %v9209_v44  ;;  %v8799_v46 = vpop.permute.xlu1 %8798  ;;  %v8732_v1 = vsel %vm638_vm2, %v8730_v38, %v8728_v13  ;;  %v8662_v56 = vsel %vm555_vm3, %v8659_v18, %v8661_v47 }
0x167b   : > { %v9144_v58 = vsel %vm1300_vm11, %v9141_v34, 0  ;;  %v9210_v42 = vpack.c.bf16 %v9208_v16, %v9208_v16  ;;  %v8731_v5 = vsel %vm638_vm2, %v8728_v13, %v8730_v38 }
0x167c   : > { %v9201_v57 = vadd.f32 %v10402_v14, %v9132_v11 }
0x167d   : > { %10090 = vmatmul.mubr.msk.bf16.vlgmr.msra.gmra.mxu1 %vm1296_vm13, %v11039_v19  ;;  %v9213_v28 = vsel %vm1300_vm11, %v9210_v42, 0 }
0x167e   : > { %10405 = vrcp.f32 %v9201_v57  ;;  %10092 = vmatmul.mubr.msk.bf16.vlgmr.msra.gmra.mxu0 %vm1296_vm13, %v11039_v19  ;;  %8957 = vmatpush1.bf16.msra.mxu1 %v8937_v25  ;;  %v8868_v35 = vpop.permute.xlu1 %8867 }
0x167f   : > { %9026 = vmatpush1.bf16.msra.mxu0 %v9006_v43  ;;  %10097 = vmatprep.subr.msk.bf16.mxu1 %vm1300_vm11, %v9073_v51  ;;  %10407 = vrcp.f32 %v9200_v60 }
0x1680   : > { %10099 = vmatprep.subr.msk.bf16.mxu0 %vm1300_vm11, %v9142_v53  ;;  %8974 = vmatprep.mubr.bf16.mxu1 %v13401_v0 }
0x1681   : > { %9043 = vmatprep.mubr.bf16.mxu0 %v13401_v0 }
0x1682   : > { %v8998_v63 = vpop.permute.xlu1 %8997 }
0x1685   : > { %10094 = vmatmul.mubr.msk.bf16.vlgmr.msra.gmra.mxu1 %vm1296_vm13, %v11039_v19 }
0x1686   : > { %10096 = vmatmul.mubr.msk.bf16.vlgmr.msra.gmra.mxu0 %vm1296_vm13, %v11039_v19  ;;  %9095 = vmatpush1.bf16.msra.mxu1 %v9075_v39  ;;  %v9067_v59 = vpop.permute.xlu1 %9066 }
0x1687   : > { %9164 = vmatpush1.bf16.msra.mxu0 %v9144_v58  ;;  %10101 = vmatprep.subr.msk.bf16.mxu1 %vm1300_vm11, %v9211_v33 }
0x1688   : > { %9112 = vmatprep.mubr.bf16.mxu1 %v13401_v0  ;;  %9181 = vmatprep.mubr.bf16.mxu0 %v13401_v0 }
0x168a   : > { %v9136_v38 = vpop.permute.xlu1 %9135 }
0x168b   : > { %v10406_v50 = vpop.eup %10405 }
0x168c   : > { %10103 = vmatprep.subr.msk.mxu0 %vm2032_vm14, %v10406_v50  ;;  %v10408_v3 = vpop.eup %10407 }
0x168d   : > { %10098 = vmatmul.mubr.msk.bf16.vlgmr.msra.gmra.mxu1 %vm1296_vm13, %v11039_v19 }
0x168e   : > { %10100 = vmatmul.mubr.msk.bf16.vlgmr.msra.gmra.mxu0 %vm1296_vm13, %v11039_v19  ;;  %9233 = vmatpush1.bf16.msra.mxu1 %v9213_v28 }
0x168f   : > { %10104 = vmatpush1.msk.msra.mxu0 %vm2032_vm14, %v10408_v3  ;;  %9250 = vmatprep.mubr.bf16.mxu1 %v13401_v0 }
0x1690   : > { %9335 = vmatprep.mubr.f32.mxu0 %v13450_v26  ;;  %v8797_v26 = vpop.permute.xlu0 %8796 }
0x1691   : > { %v8801_v29 = vsel %vm720_vm4, %v8799_v46, %v8797_v26  ;;  %v8800_v14 = vsel %vm720_vm4, %v8797_v26, %v8799_v46 }
0x1694   : > { %v8866_v61 = vpop.permute.xlu0 %8865 }
0x1695   : > { %10102 = vmatmul.mubr.msk.bf16.vlgmr.msra.gmra.mxu1 %vm1296_vm13, %v11039_v19  ;;  %v8870_v4 = vsel %vm802_vm5, %v8868_v35, %v8866_v61  ;;  %v8869_v42 = vsel %vm802_vm5, %v8866_v61, %v8868_v35 }
0x1696   : > { %10105 = vmatmul.mubr.msk.f32.vlgmr.msra.gmra.mxu0 %vm1296_vm13, %v10434_v9  ;;  %9504 = vmatprep.mubr.bf16.mxu1 %v13401_v0 }
0x1697   : > { %9384 = vmatprep.mubr.bf16.mxu0 %v13401_v0 }
0x1698   : > { %v8996_v27 = vpop.permute.xlu0 %8995 }
0x1699   : > { %v8999_v26 = vsel %vm937_vm6, %v8996_v27, %v8998_v63 }
0x169c   : > { %v9065_v34 = vpop.permute.xlu0 %9064 }
0x1735   : > { %v8708_v31 = vpop.f32.mrf.mxu1 }
0x1736   : > { %v8777_v37 = vpop.f32.mrf.mxu0  ;;  %v8715_v62 = vmul.f32 %v8708_v31, %v8663_v49 }
0x1737   : > { %v8710_v22 = vpop.f32.mrf.mxu1  ;;  %v8784_v15 = vmul.f32 %v8777_v37, %v8732_v1 }
0x1738   : > { %v8779_v19 = vpop.f32.mrf.mxu0  ;;  %v8716_v41 = vmul.f32 %v8710_v22, %v8662_v56  ;;  %v9134_v22 = vpop.permute.xlu0 %9133 }
0x1739   : > { %v8712_v48 = vpop.f32.mrf.mxu1  ;;  %v8785_v11 = vmul.f32 %v8779_v19, %v8731_v5  ;;  %v8786_v57 = vadd.f32 %v8784_v15, %v8715_v62  ;;  %v9137_v56 = vsel %vm1101_vm8, %v9134_v22, %v9136_v38 }
0x173a   : > { %v8781_v24 = vpop.f32.mrf.mxu0 }
0x173b   : > { %v8713_v8 = vpop.f32.mrf.mxu1  ;;  %v8787_v43 = vadd.f32 %v8785_v11, %v8716_v41  ;;  %v9138_v41 = vsel %vm1101_vm8, %v9136_v38, %v9134_v22 }
0x173c   : > { %v8782_v7 = vpop.f32.mrf.mxu0  ;;  %v9069_v8 = vsel %vm1019_vm7, %v9067_v59, %v9065_v34 }
0x173d   : > { %v8846_v12 = vpop.f32.mrf.mxu1 }
0x173e   : > { %v8915_v20 = vpop.f32.mrf.mxu0  ;;  %v8853_v40 = vmul.f32 %v8846_v12, %v8801_v29  ;;  %v9203_v29 = vpop.permute.xlu0 %9202 }
0x173f   : > { %v8848_v52 = vpop.f32.mrf.mxu1  ;;  %v8922_v39 = vmul.f32 %v8915_v20, %v8870_v4 }
0x1740   : > { %v8917_v6 = vpop.f32.mrf.mxu0  ;;  %v8854_v60 = vmul.f32 %v8848_v52, %v8800_v14  ;;  %v8855_v53 = vadd.f32 %v8853_v40, %v8786_v57  ;;  %v9205_v52 = vpop.permute.xlu1 %9204 }
0x1741   : > { %v8850_v55 = vpop.f32.mrf.mxu1  ;;  %v8923_v3 = vmul.f32 %v8917_v6, %v8869_v42  ;;  %v9206_v11 = vsel %vm1181_vm9, %v9203_v29, %v9205_v52  ;;  %v9207_v57 = vsel %vm1181_vm9, %v9205_v52, %v9203_v29 }
0x1742   : > { %v8919_v10 = vpop.f32.mrf.mxu0  ;;  %v8856_v33 = vadd.f32 %v8854_v60, %v8787_v43  ;;  %v8924_v28 = vadd.f32 %v8922_v39, %v8855_v53  ;;  %v9395_v38 = vpop.xlane.xlu0 %9394 }
0x1743   : > { %v8851_v32 = vpop.f32.mrf.mxu1 }
0x1744   : > { %v8920_v25 = vpop.f32.mrf.mxu0  ;;  %v8925_v13 = vadd.f32 %v8923_v3, %v8856_v33 }
0x1745   : > { %v8976_v51 = vpop.f32.mrf.mxu1 }
0x1746   : > { %v9045_v54 = vpop.f32.mrf.mxu0  ;;  %v8983_v16 = vmul.f32 %v8976_v51, %v12915_v45  ;;  %v9068_v45 = vsel %vm1019_vm7, %v9065_v34, %v9067_v59 }
0x1747   : > { %v8978_v44 = vpop.f32.mrf.mxu1  ;;  %v9052_v19 = vmul.f32 %v9045_v54, %v8999_v26 }
0x1748   : > { %v9047_v58 = vpop.f32.mrf.mxu0  ;;  %v8984_v9 = vmul.f32 %v8978_v44, %v12921_v30  ;;  %v8985_v46 = vadd.f32 %v8983_v16, %v8924_v28  ;;  %v9000_v30 = vsel %vm937_vm6, %v8998_v63, %v8996_v27 }
0x1749   : > { %v8980_v50 = vpop.f32.mrf.mxu1  ;;  %v9053_v12 = vmul.f32 %v9047_v58, %v9000_v30 }
0x174a   : > { %v9049_v47 = vpop.f32.mrf.mxu0  ;;  %v8986_v48 = vadd.f32 %v8984_v9, %v8925_v13  ;;  %v9054_v7 = vadd.f32 %v9052_v19, %v8985_v46 }
0x174b   : > { %v8981_v18 = vpop.f32.mrf.mxu1 }
0x174c   : > { %v9050_v31 = vpop.f32.mrf.mxu0  ;;  %v9055_v62 = vadd.f32 %v9053_v12, %v8986_v48 }
0x174d   : > { %v9114_v37 = vpop.f32.mrf.mxu1 }
0x174e   : > { %v9121_v35 = vmul.f32 %v9114_v37, %v9068_v45  ;;  %v9183_v24 = vpop.f32.mrf.mxu0 }
0x174f   : > { %v9116_v61 = vpop.f32.mrf.mxu1  ;;  %v9190_v55 = vmul.f32 %v9183_v24, %v9137_v56  ;;  %v10112_v56 = vld [vmem:[%s13300_s10 + $0x8] sm:$0xff] }
0x1750   : > { %v9122_v20 = vmul.f32 %v9116_v61, %v9069_v8  ;;  %v9185_v49 = vpop.f32.mrf.mxu0  ;;  %v9123_v15 = vadd.f32 %v9121_v35, %v9054_v7 }
0x1751   : > { %v9118_v1 = vpop.f32.mrf.mxu1  ;;  %v9191_v14 = vmul.f32 %v9185_v49, %v9138_v41 }
0x1752   : > { %v9187_v6 = vpop.f32.mrf.mxu0  ;;  %v9124_v63 = vadd.f32 %v9122_v20, %v9055_v62  ;;  %v9192_v10 = vadd.f32 %v9190_v55, %v9123_v15  ;;  %v10012_v20 = vld [vmem:[%s13301_s11 + $0x18] sm:$0xff] }
0x1753   : > { %v9119_v5 = vpop.f32.mrf.mxu1  ;;  %v10110_v6 = vld [vmem:[%s13298_s8 + $0x8] sm:$0xff] }
0x1754   : > { %v9188_v27 = vpop.f32.mrf.mxu0  ;;  %v9193_v51 = vadd.f32 %v9191_v14, %v9124_v63  ;;  %v13503_v5 = vmov 1  }
0x1755   : > { %v9252_v40 = vpop.f32.mrf.mxu1 }
0x1756   : > { %v9259_v32 = vmul.f32 %v9252_v40, %v9206_v11  ;;  %v9337_v25 = vpop.f32.mrf.mxu0 }
0x1757   : > { %v9254_v60 = vpop.f32.mrf.mxu1 }
0x1758   : > { %v9260_v59 = vmul.f32 %v9254_v60, %v9207_v57  ;;  %v9261_v43 = vadd.f32 %v9259_v32, %v9192_v10  ;;  %v9339_v44 = vpop.f32.mrf.mxu0 }
0x1759   : > { %v9256_v53 = vpop.f32.mrf.mxu1 }
0x175a   : > { %v9342_v54 = vmul.f32 %v9337_v25, %v9261_v43  ;;  %v9262_v4 = vadd.f32 %v9260_v59, %v9193_v51  ;;  %v10109_v51 = vld [vmem:[%s13297_s7 + $0x4] sm:$0xf] }
0x175b   : > { %v9257_v34 = vpop.f32.mrf.mxu1 }
0x175c   : > { %v9344_v39 = vpack.c.bf16 %v9342_v54, %v9342_v54  ;;  %v9343_v33 = vmul.f32 %v9339_v44, %v9262_v4 }
0x175e   : > { %v9345_v16 = vpack.c.bf16 %v9343_v33, %v9343_v33  ;;  %v9347_v58 = vsel %vm491_vm0, %v9344_v39, 0 }
0x1760   : > { %10106 = vmatprep.subr.msk.bf16.mxu0 %vm491_vm0, %v9345_v16 }
0x1761   : > { %9367 = vmatpush1.bf16.msra.mxu0 %v9347_v58 }
0x1764   : > { %10107 = vmatmul.mubr.msk.bf16.vlgmr.msra.gmra.mxu0 %vm484_vm1, %v10435_v17 }
0x1765   : > { %9563 = vmatprep.mubr.bf16.mxu0 %v13401_v0 }
0x1824   : > { %v9386_v42 = vpop.f32.mrf.mxu0 }
0x1825   : > { %v9387_v28 = vadd.f32 %v9386_v42, %v12794_v23 }
0x1826   : > { %v9388_v50 = vpop.f32.mrf.mxu0 }
0x1827   : > { %v9389_v3 = vadd.f32 %v9388_v50, %v12788_v36 }
0x1828   : > { %v9390_v9 = vpop.f32.mrf.mxu0 }
0x1829   : > { %v9397_v47 = vadd.f32 %v9389_v3, %v9387_v28  ;;  %v10111_v9 = vld [vmem:[%s13299_s9 + $0x4] sm:$0xf] }
0x182a   : > { %v9391_v18 = vpop.f32.mrf.mxu0 }
0x182b   : > { %9398 = vadd.xlane.f32.xlu1 %v9397_v47 }
0x18b4   : > { %v9399_v13 = vpop.xlane.xlu1 %9398 }
0x18b5   : > { %v9400_v46 = vadd.f32 %v9399_v13, %v9395_v38 }
0x18b7   : > { %v9401_v31 = vmul.f32 0.001953125, %v9400_v46 }
0x18b9   : > { %v9402_v26 = vsub.f32 %v12957_v2, %v9401_v31  ;;  %v9403_v45 = vsub.f32 %v12954_v21, %v9401_v31  ;;  %v9410_v37 = vsub.f32 %v9387_v28, %v9401_v31  ;;  %v9411_v22 = vsub.f32 %v9389_v3, %v9401_v31 }
0x18bb   : > { %v9404_v19 = vmul.f32 %v9402_v26, %v9402_v26  ;;  %v9405_v48 = vmul.f32 %v9403_v45, %v9403_v45  ;;  %v9412_v23 = vmul.f32 %v9410_v37, %v9410_v37  ;;  %v9413_v24 = vmul.f32 %v9411_v22, %v9411_v22 }
0x18bd   : > { %v9406_v35 = vadd.f32 %v9405_v48, %v9404_v19  ;;  %v9414_v36 = vadd.f32 %v9413_v24, %v9412_v23 }
0x18bf   : > { %9407 = vadd.xlane.f32.xlu0 %v9406_v35 }
0x18c3   : > { %9415 = vadd.xlane.f32.xlu0 %v9414_v36 }
0x1948   : > { %v9408_v30 = vpop.xlane.xlu0 %9407 }
0x194c   : > { %v9416_v8 = vpop.xlane.xlu0 %9415 }
0x194d   : > { %v9417_v61 = vadd.f32 %v9416_v8, %v9408_v30 }
0x194f   : > { %v9418_v7 = vmul.f32 0.001953125, %v9417_v61 }
0x1951   : > { %v9419_v12 = vadd.f32 1e-05, %v9418_v7 }
0x1953   : > { %10409 = vrsqrt.f32 %v9419_v12 }
0x1960   : > { %v10410_v49 = vpop.eup %10409 }
0x1961   : > { %v9421_v1 = vmul.f32 %v10410_v49, %v10012_v20 }
0x1963   : > { %9430 = vperm.xlu0 %10153, %v9421_v1   ;;  %v9422_v52 = vmul.f32 %v9421_v1, %v9401_v31 }
0x1965   : > { %9424 = vrot.lane.b32.xlu1 %v9422_v52, %s10448_s16 }
0x19d7   : > { %v9425_v62 = vpop.permute.xlu1 %9424 }
0x19d8   : > { %v9427_v15 = vsub.f32 %v10012_v20, %v9425_v62 }
0x19da   : > { %9437 = vperm.xlu1 %10154, %v9427_v15  }
0x19de   : > { %10155 = vset.pattern.permute.xlu1 %v13401_v0  ;;  %v9431_v29 = vpop.permute.xlu0 %9430 }
0x19df   : > { %9460 = vperm.xlu1 %10155, %v10110_v6   ;;  %v9433_v55 = vmul.f32 %v9431_v29, %v12957_v2  ;;  %v9434_v63 = vmul.f32 %v9431_v29, %v12954_v21  ;;  %v9442_v27 = vmul.f32 %v9431_v29, %v9387_v28  ;;  %v9443_v41 = vmul.f32 %v9431_v29, %v9389_v3 }
0x19e3   : > { %9519 = vperm.xlu1 %10155, %v10112_v56  }
0x19e7   : > { %10156 = vset.pattern.permute.xlu1 %v13503_v5 }
0x1a55   : > { %v9438_v11 = vpop.permute.xlu1 %9437 }
0x1a56   : > { %v13238_v40 = vadd.f32 %v9438_v11, %v9433_v55  ;;  %v13240_v10 = vadd.f32 %v9438_v11, %v9434_v63  ;;  %v13242_v14 = vadd.f32 %v9442_v27, %v9438_v11  ;;  %v13244_v32 = vadd.f32 %v9443_v41, %v9438_v11 }
0x1a58   : > { %v9457_v57 = vpack.c.bf16 %v13240_v10, %v13240_v10  ;;  %v9456_v60 = vpack.c.bf16 %v13238_v40, %v13238_v40  ;;  %v9573_v2 = vpack.c.bf16 %v13244_v32, %v13244_v32  ;;  %v9572_v25 = vpack.c.bf16 %v13242_v14, %v13242_v14 }
0x1a5a   : > { %10113 = vmatprep.subr.msk.bf16.mxu1 %vm491_vm0, %v9457_v57  ;;  %v9467_v21 = vsel %vm491_vm0, %v9456_v60, 0  ;;  %v9575_v59 = vsel %vm491_vm0, %v9572_v25, 0  ;;  %v9461_v53 = vpop.permute.xlu1 %9460 }
0x1a5b   : > { %9487 = vmatpush1.bf16.msra.mxu1 %v9467_v21 }
0x1a5c   : > { %10117 = vmatprep.subr.msk.bf16.mxu1 %vm491_vm0, %v9573_v2 }
0x1a5e   : > { %10114 = vmatmul.mubr.msk.bf16.vlgmr.msra.gmra.mxu1 %vm484_vm1, %v10109_v51  ;;  %v9520_v22 = vpop.permute.xlu1 %9519 }
0x1a5f   : > { %9595 = vmatpush1.bf16.msra.mxu1 %v9575_v59  ;;  %9612 = vmatprep.mubr.bf16.mxu1 %v13401_v0  ;;  %v10108_v59 = vld [vmem:[%s13301_s11 + $0x20] sm:$0xff] }
0x1a66   : > { %10118 = vmatmul.mubr.msk.bf16.vlgmr.msra.gmra.mxu1 %vm484_vm1, %v10109_v51 }
0x1b1e   : > { %v9506_v43 = vpop.f32.mrf.mxu1 }
0x1b1f   : > { %v9507_v54 = vadd.f32 %v9506_v43, %v9461_v53 }
0x1b20   : > { %v9508_v4 = vpop.f32.mrf.mxu1 }
0x1b21   : > { %v9509_v44 = vadd.f32 %v9508_v4, %v9461_v53  ;;  %v9513_v34 = vmax.f32 %v9507_v54, 0.0 }
0x1b22   : > { %v9510_v39 = vpop.f32.mrf.mxu1 }
0x1b23   : > { %v9514_v33 = vmax.f32 %v9509_v44, 0.0  ;;  %v9515_v16 = vpack.c.bf16 %v9513_v34, %v9513_v34 }
0x1b24   : > { %v9511_v58 = vpop.f32.mrf.mxu1 }
0x1b25   : > { %v9516_v17 = vpack.c.bf16 %v9514_v33, %v9514_v33  ;;  %v9526_v28 = vsel %vm491_vm0, %v9515_v16, 0 }
0x1b26   : > { %v9614_v42 = vpop.f32.mrf.mxu1 }
0x1b27   : > { %v9615_v50 = vadd.f32 %v9614_v42, %v9461_v53  ;;  %10115 = vmatprep.subr.msk.bf16.mxu0 %vm491_vm0, %v9516_v17 }
0x1b28   : > { %9546 = vmatpush1.bf16.msra.mxu0 %v9526_v28  ;;  %v9616_v3 = vpop.f32.mrf.mxu1 }
0x1b29   : > { %v9621_v47 = vmax.f32 %v9615_v50, 0.0  ;;  %v9617_v18 = vadd.f32 %v9616_v3, %v9461_v53 }
0x1b2a   : > { %v9618_v38 = vpop.f32.mrf.mxu1 }
0x1b2b   : > { %v9623_v13 = vpack.c.bf16 %v9621_v47, %v9621_v47  ;;  %v9622_v46 = vmax.f32 %v9617_v18, 0.0  ;;  %10116 = vmatmul.mubr.msk.bf16.vlgmr.msra.gmra.mxu0 %vm484_vm1, %v10111_v9 }
0x1b2c   : > { %v9619_v31 = vpop.f32.mrf.mxu1  ;;  %9663 = vmatprep.mubr.bf16.mxu0 %v13401_v0 }
0x1b2d   : > { %v9624_v26 = vpack.c.bf16 %v9622_v46, %v9622_v46  ;;  %v9626_v45 = vsel %vm491_vm0, %v9623_v13, 0 }
0x1b2f   : > { %10119 = vmatprep.subr.msk.bf16.mxu0 %vm491_vm0, %v9624_v26 }
0x1b30   : > { %9646 = vmatpush1.bf16.msra.mxu0 %v9626_v45 }
0x1b33   : > { %10120 = vmatmul.mubr.msk.bf16.vlgmr.msra.gmra.mxu0 %vm484_vm1, %v10111_v9 }
0x1beb   : > { %v9565_v37 = vpop.f32.mrf.mxu0 }
0x1bec   : > { %v9566_v48 = vadd.f32 %v9565_v37, %v9520_v22 }
0x1bed   : > { %v9567_v19 = vpop.f32.mrf.mxu0 }
0x1bee   : > { %v9568_v35 = vadd.f32 %v9567_v19, %v9520_v22 }
0x1bef   : > { %v9569_v23 = vpop.f32.mrf.mxu0 }
0x1bf0   : > { %v9672_v24 = vadd.f32 %v9568_v35, %v9566_v48 }
0x1bf1   : > { %v9570_v36 = vpop.f32.mrf.mxu0 }
0x1bf2   : > { %9673 = vadd.xlane.f32.xlu1 %v9672_v24 }
0x1bf3   : > { %v9665_v30 = vpop.f32.mrf.mxu0 }
0x1bf4   : > { %v9666_v0 = vadd.f32 %v9665_v30, %v9520_v22 }
0x1bf5   : > { %v9667_v8 = vpop.f32.mrf.mxu0 }
0x1bf6   : > { %v9668_v61 = vadd.f32 %v9667_v8, %v9520_v22 }
0x1bf7   : > { %v9669_v7 = vpop.f32.mrf.mxu0 }
0x1bf8   : > { %v9676_v12 = vadd.f32 %v9668_v61, %v9666_v0 }
0x1bf9   : > { %v9670_v20 = vpop.f32.mrf.mxu0 }
0x1bfa   : > { %9677 = vadd.xlane.f32.xlu0 %v9676_v12 }
0x1c7b   : > { %v9674_v49 = vpop.xlane.xlu1 %9673 }
0x1c83   : > { %v9678_v1 = vpop.xlane.xlu0 %9677 }
0x1c84   : > { %v9679_v52 = vadd.f32 %v9678_v1, %v9674_v49 }
0x1c86   : > { %v9680_v62 = vmul.f32 0.001953125, %v9679_v52 }
0x1c88   : > { %v9681_v15 = vsub.f32 %v9566_v48, %v9680_v62  ;;  %v9682_v6 = vsub.f32 %v9568_v35, %v9680_v62  ;;  %v9689_v56 = vsub.f32 %v9666_v0, %v9680_v62  ;;  %v9690_v29 = vsub.f32 %v9668_v61, %v9680_v62 }
0x1c8a   : > { %v9683_v55 = vmul.f32 %v9681_v15, %v9681_v15  ;;  %v9684_v63 = vmul.f32 %v9682_v6, %v9682_v6  ;;  %v9691_v41 = vmul.f32 %v9689_v56, %v9689_v56  ;;  %v9692_v11 = vmul.f32 %v9690_v29, %v9690_v29 }
0x1c8c   : > { %v9685_v27 = vadd.f32 %v9684_v63, %v9683_v55  ;;  %v9693_v57 = vadd.f32 %v9692_v11, %v9691_v41 }
0x1c8e   : > { %9686 = vadd.xlane.f32.xlu1 %v9685_v27 }
0x1c92   : > { %9694 = vadd.xlane.f32.xlu1 %v9693_v57 }
0x1d17   : > { %v9687_v60 = vpop.xlane.xlu1 %9686 }
0x1d1b   : > { %v9695_v21 = vpop.xlane.xlu1 %9694 }
0x1d1c   : > { %v9696_v2 = vadd.f32 %v9695_v21, %v9687_v60 }
0x1d1e   : > { %v9697_v25 = vmul.f32 0.001953125, %v9696_v2 }
0x1d20   : > { %v9698_v51 = vadd.f32 1e-05, %v9697_v25 }
0x1d22   : > { %10411 = vrsqrt.f32 %v9698_v51 }
0x1d2f   : > { %v10412_v43 = vpop.eup %10411 }
0x1d30   : > { %v9700_v53 = vmul.f32 %v10412_v43, %v10108_v59 }
0x1d32   : > { %9709 = vperm.xlu0 %10153, %v9700_v53   ;;  %v9701_v54 = vmul.f32 %v9700_v53, %v9680_v62 }
0x1d34   : > { %9703 = vrot.lane.b32.xlu1 %v9701_v54, %s10448_s16 }
0x1d36   : > { %10157 = vset.pattern.permute.xlu0 %v13503_v5 }
0x1da6   : > { %v9704_v4 = vpop.permute.xlu1 %9703 }
0x1da7   : > { %v9706_v44 = vsub.f32 %v10108_v59, %v9704_v4 }
0x1da9   : > { %9716 = vperm.xlu1 %10156, %v9706_v44  }
0x1dad   : > { %v9710_v34 = vpop.permute.xlu0 %9709 }
0x1dae   : > { %v9712_v39 = vmul.f32 %v9710_v34, %v9566_v48  ;;  %v9713_v33 = vmul.f32 %v9710_v34, %v9568_v35  ;;  %v9721_v16 = vmul.f32 %v9710_v34, %v9666_v0  ;;  %v9722_v58 = vmul.f32 %v9710_v34, %v9668_v61 }
0x1e24   : > { %v9717_v17 = vpop.permute.xlu1 %9716 }
0x1e25   : > { %v9719_v42 = vadd.f32 %v9717_v17, %v9712_v39  ;;  %v9720_v50 = vadd.f32 %v9717_v17, %v9713_v33  ;;  %v9723_v28 = vadd.f32 %v9721_v16, %v9717_v17  ;;  %v9724_v3 = vadd.f32 %v9722_v58, %v9717_v17 }
0x1e27   : > { %v9725_v9 = vadd.f32 %v9719_v42, %v13238_v40  ;;  %v9726_v5 = vadd.f32 %v9720_v50, %v13240_v10  ;;  %v9727_v47 = vadd.f32 %v9723_v28, %v13242_v14  ;;  %v9728_v18 = vadd.f32 %v9724_v3, %v13244_v32 }
0x1e29   : > { %9729 = vst [vmem:[%s433_s19] sm:$0xff] %v9725_v9  ;;  %9730 = vst [vmem:[%s433_s19 + $0x8] sm:$0xff] %v9726_v5 }
0x1e2a   : > { %10121 = vst [vmem:[%s433_s19 + $0x10] sm:$0xff] %v9727_v47  ;;  %10122 = vst [vmem:[%s433_s19 + $0x18] sm:$0xff] %v9728_v18 }
0x1e2b PF: > { %s22_s21 = sadd.s32 1, %s10442_s21  }
0x1e2c   : > { %p19_p4 = scmp.ge.s32.totalorder %s22_s21, 4  }
0x1e2e   :  { %21 = sbr.rel (!%p19_p4) target bundleno = 1 (0x1), region = 116 }

</bundles_post_ra>
